<compile_context>
chip_gen: v7x
topology: tpu7x:2x2x1
jax: 0.10.0
libtpu: 0.0.40
codegen_flags: <defaults>
</compile_context>

<pallas_src>
import functools

import jax
import jax.numpy as jnp
from jax.experimental import pallas as pl
from jax.experimental.pallas import tpu as pltpu

EPS = 1e-5


def _bn_relu_bf16(v):
    """v: (M, C) f32.  BatchNorm (no affine, batch stats) + ReLU, emitted as bf16.

    Stats and normalize stay f32; the bf16 cast is fused into the store so the following
    conv needs no separate full-activation cast pass.
    """
    m = v.shape[0]
    s = jnp.sum(v, axis=0, keepdims=True)             # (1, C)
    ss = jnp.sum(v * v, axis=0, keepdims=True)        # (1, C)
    mean = s * (1.0 / m)
    var = ss * (1.0 / m) - mean * mean                # biased variance (single pass)
    inv = jax.lax.rsqrt(var + EPS)
    return jnp.maximum((v - mean) * inv, 0.0).astype(jnp.bfloat16)


def _conv3x3(hb, w_ref, N, H, W, C, Cp):
    """'same' 3x3 conv, stride 1.

    hb:    (N, H, W, C) bf16, post BN+ReLU.
    w_ref: (3, C, 3*Cp) bf16 VMEM ref, w_ref[ky, c, kx*Cp + o] = w[o, c, ky, kx]
           (columns with o >= C are zero padding so the kx chunks are 128-lane aligned).
    Returns (N, H, W, C) f32.
    """
    NH = N * H
    M = NH * W

    # Pad H only: leading-dim concat, no sublane/lane relayout.
    zrow = jnp.zeros((N, 1, W, C), jnp.bfloat16)
    hp = jnp.concatenate([zrow, hb, zrow], axis=1)                    # (N, H+2, W, C)

    # Three K=C bf16 MXU dots (one per ky row slice), f32 accumulation.
    taps = [
        jnp.dot(hp[:, ky:ky + H].reshape(M, C), w_ref[ky],
                preferred_element_type=jnp.float32)
        for ky in range(3)
    ]
    r = (taps[0] + taps[1] + taps[2]).reshape(NH, W, 3 * Cp)          # (NH, W, 3*Cp)

    # kx chunks: 128-aligned lane slices -> free views.
    g0 = r[:, :, 0 * Cp:1 * Cp]     # kx = 0, needs input column x-1
    g1 = r[:, :, 1 * Cp:2 * Cp]     # kx = 1
    g2 = r[:, :, 2 * Cp:3 * Cp]     # kx = 2, needs input column x+1

    # Combine kx taps: out[x] = g1[x] + g0[x-1] + g2[x+1], zero outside [0, W).
    # pltpu.roll goes to the otherwise-idle XLU; the boundary masks are single VPU selects.
    xpos = jax.lax.broadcasted_iota(jnp.int32, (NH, W, Cp), 1)
    g0s = jnp.where(xpos > 0, pltpu.roll(g0, shift=1, axis=1), 0.0)
    g2s = jnp.where(xpos < W - 1, pltpu.roll(g2, shift=W - 1, axis=1), 0.0)

    out = g1 + g0s + g2s                                              # (NH, W, Cp)
    return out[:, :, :C].reshape(N, H, W, C)                          # aligned offset-0 slice


def block_kernel(x_ref, w0_ref, w1_ref, o_ref, *, N, H, W, C, Cp):
    x = x_ref[...]                                                    # (N, H, W, C) f32
    M = N * H * W

    h = _bn_relu_bf16(x.reshape(M, C)).reshape(N, H, W, C)            # bn0 + relu (-> bf16)
    h = _conv3x3(h, w0_ref, N, H, W, C, Cp)                           # conv0 (f32 out)
    h = _bn_relu_bf16(h.reshape(M, C)).reshape(N, H, W, C)            # bn1 + relu (-> bf16)
    h = _conv3x3(h, w1_ref, N, H, W, C, Cp)                           # conv1 (f32 out)

    o_ref[...] = (x + h).astype(o_ref.dtype)                          # residual


def _pack_conv_weight(w_oihw, cp):
    # torch OIHW (O, I, 3, 3) -> (3, I, 3*cp) bf16 with
    #   packed[ky, c, kx*cp + o] = w[o, c, ky, kx], zero columns for o in [O, cp).
    o, i, kh, kw = w_oihw.shape
    w = jnp.transpose(w_oihw, (2, 1, 3, 0))                           # (ky, c, kx, o)
    w = jnp.pad(w, ((0, 0), (0, 0), (0, 0), (0, cp - o)))             # (ky, c, kx, cp)
    return w.reshape(kh, i, kw * cp).astype(jnp.bfloat16)


@jax.jit
def block_forward_nhwc(x_nhwc, conv0, conv1):
    """NHWC fast path (use end-to-end in a real network; no layout transposes)."""
    N, H, W, C = x_nhwc.shape
    Cp = ((C + 127) // 128) * 128            # 128-lane-aligned kx chunk width
    w0 = _pack_conv_weight(conv0, Cp)
    w1 = _pack_conv_weight(conv1, Cp)

    kernel = functools.partial(block_kernel, N=N, H=H, W=W, C=C, Cp=Cp)
    return pl.pallas_call(
        kernel,
        out_shape=jax.ShapeDtypeStruct(x_nhwc.shape, x_nhwc.dtype),
        in_specs=[
            pl.BlockSpec(memory_space=pltpu.MemorySpace.VMEM),
            pl.BlockSpec(memory_space=pltpu.MemorySpace.VMEM),
            pl.BlockSpec(memory_space=pltpu.MemorySpace.VMEM),
        ],
        out_specs=pl.BlockSpec(memory_space=pltpu.MemorySpace.VMEM),
        compiler_params=pltpu.CompilerParams(vmem_limit_bytes=32 * 1024 * 1024),
    )(x_nhwc, w0, w1)


@jax.jit
def block_forward(x_nchw, conv0, conv1):
    """Torch-layout wrapper: x (N, C, H, W); conv0/conv1 (Cout, Cin, 3, 3)."""
    # These two transposes are full HBM passes kept only for NCHW interface parity with the
    # PyTorch module; a full network should stay NHWC and call block_forward_nhwc directly.
    x = jnp.transpose(x_nchw, (0, 2, 3, 1))                           # NCHW -> NHWC
    out = block_forward_nhwc(x, conv0, conv1)
    return jnp.transpose(out, (0, 3, 1, 2))                           # NHWC -> NCHW


def reference_forward(x_nchw, conv0, conv1):
    # Pure-JAX reference with the same (training-mode) BatchNorm semantics.
    def bn_relu(v):
        mean = jnp.mean(v, axis=(0, 2, 3), keepdims=True)
        var = jnp.mean((v - mean) ** 2, axis=(0, 2, 3), keepdims=True)
        return jnp.maximum((v - mean) * jax.lax.rsqrt(var + EPS), 0.0)

    def conv(v, w):
        return jax.lax.conv_general_dilated(
            v, w, window_strides=(1, 1), padding=((1, 1), (1, 1)),
            dimension_numbers=("NCHW", "OIHW", "NCHW"),
            precision=jax.lax.Precision.HIGHEST)

    h = conv(bn_relu(x_nchw), conv0)
    h = conv(bn_relu(h), conv1)
    return x_nchw + h


if __name__ == "__main__":
    width = 32          # channels
    N, H, W = 2, 16, 16

    key = jax.random.PRNGKey(0)
    kx, k0, k1 = jax.random.split(key, 3)

    # kaiming_normal_(mode='fan_out', nonlinearity='relu'): std = sqrt(2 / (Cout*kh*kw)).
    std = (2.0 / (width * 3 * 3)) ** 0.5
    x = jax.random.normal(kx, (N, width, H, W), dtype=jnp.float32)
    conv0 = std * jax.random.normal(k0, (width, width, 3, 3), dtype=jnp.float32)
    conv1 = std * jax.random.normal(k1, (width, width, 3, 3), dtype=jnp.float32)

    out = jax.block_until_ready(block_forward(x, conv0, conv1))
    ref = jax.block_until_ready(reference_forward(x, conv0, conv1))

    assert out.shape == x.shape and out.dtype == x.dtype
    err = float(jnp.max(jnp.abs(out - ref)))
    assert err < 2e-2, "max abs err = %e" % err

    print("KERNEL_OK")
</pallas_src>

<mosaic_0001>
module attributes {stable_mosaic.version = 11 : i64} {
  func.func @block_kernel(%arg0: memref<2x16x16x32xf32, #tpu.memory_space<vmem>>, %arg1: memref<3x32x384xbf16, #tpu.memory_space<vmem>>, %arg2: memref<3x32x384xbf16, #tpu.memory_space<vmem>>, %arg3: memref<2x16x16x32xf32, #tpu.memory_space<vmem>>) attributes {dimension_semantics = [], scalar_prefetch = 0 : i64, scratch_operands = 0 : i64, tpu.core_type = #tpu.core_type<tc>} {
    %c0 = arith.constant 0 : index
    %c0_0 = arith.constant 0 : index
    %c0_1 = arith.constant 0 : index
    %c0_2 = arith.constant 0 : index
    %0 = vector.load %arg0[%c0, %c0_0, %c0_1, %c0_2] : memref<2x16x16x32xf32, #tpu.memory_space<vmem>>, vector<2x16x16x32xf32>
    %1 = vector.shape_cast %0 : vector<2x16x16x32xf32> to vector<512x32xf32>
    %cst = arith.constant dense<0.000000e+00> : vector<32xf32>
    %2 = vector.multi_reduction <add>, %1, %cst [0] : vector<512x32xf32> to vector<32xf32>
    %3 = vector.shape_cast %2 : vector<32xf32> to vector<1x32xf32>
    %4 = arith.mulf %1, %1 : vector<512x32xf32>
    %cst_3 = arith.constant dense<0.000000e+00> : vector<32xf32>
    %5 = vector.multi_reduction <add>, %4, %cst_3 [0] : vector<512x32xf32> to vector<32xf32>
    %6 = vector.shape_cast %5 : vector<32xf32> to vector<1x32xf32>
    %cst_4 = arith.constant 0.001953125 : f32
    %7 = vector.broadcast %cst_4 : f32 to vector<1x32xf32>
    %8 = arith.mulf %3, %7 : vector<1x32xf32>
    %cst_5 = arith.constant 0.001953125 : f32
    %9 = vector.broadcast %cst_5 : f32 to vector<1x32xf32>
    %10 = arith.mulf %6, %9 : vector<1x32xf32>
    %11 = arith.mulf %8, %8 : vector<1x32xf32>
    %12 = arith.subf %10, %11 : vector<1x32xf32>
    %cst_6 = arith.constant 9.99999974E-6 : f32
    %13 = vector.broadcast %cst_6 : f32 to vector<1x32xf32>
    %14 = arith.addf %12, %13 : vector<1x32xf32>
    %15 = math.rsqrt %14 : vector<1x32xf32>
    %16 = vector.broadcast %8 : vector<1x32xf32> to vector<512x32xf32>
    %17 = arith.subf %1, %16 : vector<512x32xf32>
    %18 = vector.broadcast %15 : vector<1x32xf32> to vector<512x32xf32>
    %19 = arith.mulf %17, %18 : vector<512x32xf32>
    %cst_7 = arith.constant 0.000000e+00 : f32
    %20 = vector.broadcast %cst_7 : f32 to vector<512x32xf32>
    %21 = arith.maximumf %19, %20 : vector<512x32xf32>
    %22 = arith.truncf %21 : vector<512x32xf32> to vector<512x32xbf16>
    %23 = vector.shape_cast %22 : vector<512x32xbf16> to vector<2x16x16x32xbf16>
    %cst_8 = arith.constant 0.000000e+00 : bf16
    %24 = vector.broadcast %cst_8 : bf16 to vector<2x1x16x32xbf16>
    %25 = tpu.concatenate %24, %23, %24 in 1 : vector<2x1x16x32xbf16>, vector<2x16x16x32xbf16>, vector<2x1x16x32xbf16> -> vector<2x18x16x32xbf16>
    %26 = vector.extract_strided_slice %25 {offsets = [0, 0, 0, 0], sizes = [2, 16, 16, 32], strides = [1, 1, 1, 1]} : vector<2x18x16x32xbf16> to vector<2x16x16x32xbf16>
    %27 = vector.shape_cast %26 : vector<2x16x16x32xbf16> to vector<512x32xbf16>
    %c0_9 = arith.constant 0 : index
    %c0_10 = arith.constant 0 : index
    %c0_11 = arith.constant 0 : index
    %28 = vector.load %arg1[%c0_9, %c0_10, %c0_11] : memref<3x32x384xbf16, #tpu.memory_space<vmem>>, vector<1x32x384xbf16>
    %29 = vector.shape_cast %28 : vector<1x32x384xbf16> to vector<32x384xbf16>
    %cst_12 = arith.constant dense<0.000000e+00> : vector<512x384xf32>
    %30 = tpu.matmul %27, %29, %cst_12 {dimension_numbers = #tpu.dot_dimension_numbers<[1], [0], [0], [1], [0, 0, 1, 1], [], []>} : vector<512x32xbf16>, vector<32x384xbf16>, vector<512x384xf32> -> vector<512x384xf32>
    %31 = vector.extract_strided_slice %25 {offsets = [0, 1, 0, 0], sizes = [2, 16, 16, 32], strides = [1, 1, 1, 1]} : vector<2x18x16x32xbf16> to vector<2x16x16x32xbf16>
    %32 = vector.shape_cast %31 : vector<2x16x16x32xbf16> to vector<512x32xbf16>
    %c1 = arith.constant 1 : index
    %c0_13 = arith.constant 0 : index
    %c0_14 = arith.constant 0 : index
    %33 = vector.load %arg1[%c1, %c0_13, %c0_14] : memref<3x32x384xbf16, #tpu.memory_space<vmem>>, vector<1x32x384xbf16>
    %34 = vector.shape_cast %33 : vector<1x32x384xbf16> to vector<32x384xbf16>
    %cst_15 = arith.constant dense<0.000000e+00> : vector<512x384xf32>
    %35 = tpu.matmul %32, %34, %cst_15 {dimension_numbers = #tpu.dot_dimension_numbers<[1], [0], [0], [1], [0, 0, 1, 1], [], []>} : vector<512x32xbf16>, vector<32x384xbf16>, vector<512x384xf32> -> vector<512x384xf32>
    %36 = vector.extract_strided_slice %25 {offsets = [0, 2, 0, 0], sizes = [2, 16, 16, 32], strides = [1, 1, 1, 1]} : vector<2x18x16x32xbf16> to vector<2x16x16x32xbf16>
    %37 = vector.shape_cast %36 : vector<2x16x16x32xbf16> to vector<512x32xbf16>
    %c2 = arith.constant 2 : index
    %c0_16 = arith.constant 0 : index
    %c0_17 = arith.constant 0 : index
    %38 = vector.load %arg1[%c2, %c0_16, %c0_17] : memref<3x32x384xbf16, #tpu.memory_space<vmem>>, vector<1x32x384xbf16>
    %39 = vector.shape_cast %38 : vector<1x32x384xbf16> to vector<32x384xbf16>
    %cst_18 = arith.constant dense<0.000000e+00> : vector<512x384xf32>
    %40 = tpu.matmul %37, %39, %cst_18 {dimension_numbers = #tpu.dot_dimension_numbers<[1], [0], [0], [1], [0, 0, 1, 1], [], []>} : vector<512x32xbf16>, vector<32x384xbf16>, vector<512x384xf32> -> vector<512x384xf32>
    %41 = arith.addf %30, %35 : vector<512x384xf32>
    %42 = arith.addf %41, %40 : vector<512x384xf32>
    %43 = vector.shape_cast %42 : vector<512x384xf32> to vector<32x16x384xf32>
    %44 = vector.extract_strided_slice %43 {offsets = [0, 0, 0], sizes = [32, 16, 128], strides = [1, 1, 1]} : vector<32x16x384xf32> to vector<32x16x128xf32>
    %45 = vector.extract_strided_slice %43 {offsets = [0, 0, 128], sizes = [32, 16, 128], strides = [1, 1, 1]} : vector<32x16x384xf32> to vector<32x16x128xf32>
    %46 = vector.extract_strided_slice %43 {offsets = [0, 0, 256], sizes = [32, 16, 128], strides = [1, 1, 1]} : vector<32x16x384xf32> to vector<32x16x128xf32>
    %47 = tpu.iota {dimensions = array<i32: 1>} : vector<32x16x128xi32>
    %c0_i32 = arith.constant 0 : i32
    %48 = vector.broadcast %c0_i32 : i32 to vector<32x16x128xi32>
    %49 = arith.cmpi sgt, %47, %48 : vector<32x16x128xi32>
    %c1_i32 = arith.constant 1 : i32
    %50 = tpu.dynamic_rotate %44 by %c1_i32 dim 1 : vector<32x16x128xf32>, i32 -> vector<32x16x128xf32>
    %cst_19 = arith.constant 0.000000e+00 : f32
    %51 = vector.broadcast %cst_19 : f32 to vector<32x16x128xf32>
    %52 = arith.select %49, %50, %51 : vector<32x16x128xi1>, vector<32x16x128xf32>
    %c15_i32 = arith.constant 15 : i32
    %53 = vector.broadcast %c15_i32 : i32 to vector<32x16x128xi32>
    %54 = arith.cmpi slt, %47, %53 : vector<32x16x128xi32>
    %c15_i32_20 = arith.constant 15 : i32
    %55 = tpu.dynamic_rotate %46 by %c15_i32_20 dim 1 : vector<32x16x128xf32>, i32 -> vector<32x16x128xf32>
    %cst_21 = arith.constant 0.000000e+00 : f32
    %56 = vector.broadcast %cst_21 : f32 to vector<32x16x128xf32>
    %57 = arith.select %54, %55, %56 : vector<32x16x128xi1>, vector<32x16x128xf32>
    %58 = arith.addf %45, %52 : vector<32x16x128xf32>
    %59 = arith.addf %58, %57 : vector<32x16x128xf32>
    %60 = vector.extract_strided_slice %59 {offsets = [0, 0, 0], sizes = [32, 16, 32], strides = [1, 1, 1]} : vector<32x16x128xf32> to vector<32x16x32xf32>
    %61 = vector.shape_cast %60 : vector<32x16x32xf32> to vector<2x16x16x32xf32>
    %62 = vector.shape_cast %61 : vector<2x16x16x32xf32> to vector<512x32xf32>
    %cst_22 = arith.constant dense<0.000000e+00> : vector<32xf32>
    %63 = vector.multi_reduction <add>, %62, %cst_22 [0] : vector<512x32xf32> to vector<32xf32>
    %64 = vector.shape_cast %63 : vector<32xf32> to vector<1x32xf32>
    %65 = arith.mulf %62, %62 : vector<512x32xf32>
    %cst_23 = arith.constant dense<0.000000e+00> : vector<32xf32>
    %66 = vector.multi_reduction <add>, %65, %cst_23 [0] : vector<512x32xf32> to vector<32xf32>
    %67 = vector.shape_cast %66 : vector<32xf32> to vector<1x32xf32>
    %cst_24 = arith.constant 0.001953125 : f32
    %68 = vector.broadcast %cst_24 : f32 to vector<1x32xf32>
    %69 = arith.mulf %64, %68 : vector<1x32xf32>
    %cst_25 = arith.constant 0.001953125 : f32
    %70 = vector.broadcast %cst_25 : f32 to vector<1x32xf32>
    %71 = arith.mulf %67, %70 : vector<1x32xf32>
    %72 = arith.mulf %69, %69 : vector<1x32xf32>
    %73 = arith.subf %71, %72 : vector<1x32xf32>
    %cst_26 = arith.constant 9.99999974E-6 : f32
    %74 = vector.broadcast %cst_26 : f32 to vector<1x32xf32>
    %75 = arith.addf %73, %74 : vector<1x32xf32>
    %76 = math.rsqrt %75 : vector<1x32xf32>
    %77 = vector.broadcast %69 : vector<1x32xf32> to vector<512x32xf32>
    %78 = arith.subf %62, %77 : vector<512x32xf32>
    %79 = vector.broadcast %76 : vector<1x32xf32> to vector<512x32xf32>
    %80 = arith.mulf %78, %79 : vector<512x32xf32>
    %cst_27 = arith.constant 0.000000e+00 : f32
    %81 = vector.broadcast %cst_27 : f32 to vector<512x32xf32>
    %82 = arith.maximumf %80, %81 : vector<512x32xf32>
    %83 = arith.truncf %82 : vector<512x32xf32> to vector<512x32xbf16>
    %84 = vector.shape_cast %83 : vector<512x32xbf16> to vector<2x16x16x32xbf16>
    %cst_28 = arith.constant 0.000000e+00 : bf16
    %85 = vector.broadcast %cst_28 : bf16 to vector<2x1x16x32xbf16>
    %86 = tpu.concatenate %85, %84, %85 in 1 : vector<2x1x16x32xbf16>, vector<2x16x16x32xbf16>, vector<2x1x16x32xbf16> -> vector<2x18x16x32xbf16>
    %87 = vector.extract_strided_slice %86 {offsets = [0, 0, 0, 0], sizes = [2, 16, 16, 32], strides = [1, 1, 1, 1]} : vector<2x18x16x32xbf16> to vector<2x16x16x32xbf16>
    %88 = vector.shape_cast %87 : vector<2x16x16x32xbf16> to vector<512x32xbf16>
    %c0_29 = arith.constant 0 : index
    %c0_30 = arith.constant 0 : index
    %c0_31 = arith.constant 0 : index
    %89 = vector.load %arg2[%c0_29, %c0_30, %c0_31] : memref<3x32x384xbf16, #tpu.memory_space<vmem>>, vector<1x32x384xbf16>
    %90 = vector.shape_cast %89 : vector<1x32x384xbf16> to vector<32x384xbf16>
    %cst_32 = arith.constant dense<0.000000e+00> : vector<512x384xf32>
    %91 = tpu.matmul %88, %90, %cst_32 {dimension_numbers = #tpu.dot_dimension_numbers<[1], [0], [0], [1], [0, 0, 1, 1], [], []>} : vector<512x32xbf16>, vector<32x384xbf16>, vector<512x384xf32> -> vector<512x384xf32>
    %92 = vector.extract_strided_slice %86 {offsets = [0, 1, 0, 0], sizes = [2, 16, 16, 32], strides = [1, 1, 1, 1]} : vector<2x18x16x32xbf16> to vector<2x16x16x32xbf16>
    %93 = vector.shape_cast %92 : vector<2x16x16x32xbf16> to vector<512x32xbf16>
    %c1_33 = arith.constant 1 : index
    %c0_34 = arith.constant 0 : index
    %c0_35 = arith.constant 0 : index
    %94 = vector.load %arg2[%c1_33, %c0_34, %c0_35] : memref<3x32x384xbf16, #tpu.memory_space<vmem>>, vector<1x32x384xbf16>
    %95 = vector.shape_cast %94 : vector<1x32x384xbf16> to vector<32x384xbf16>
    %cst_36 = arith.constant dense<0.000000e+00> : vector<512x384xf32>
    %96 = tpu.matmul %93, %95, %cst_36 {dimension_numbers = #tpu.dot_dimension_numbers<[1], [0], [0], [1], [0, 0, 1, 1], [], []>} : vector<512x32xbf16>, vector<32x384xbf16>, vector<512x384xf32> -> vector<512x384xf32>
    %97 = vector.extract_strided_slice %86 {offsets = [0, 2, 0, 0], sizes = [2, 16, 16, 32], strides = [1, 1, 1, 1]} : vector<2x18x16x32xbf16> to vector<2x16x16x32xbf16>
    %98 = vector.shape_cast %97 : vector<2x16x16x32xbf16> to vector<512x32xbf16>
    %c2_37 = arith.constant 2 : index
    %c0_38 = arith.constant 0 : index
    %c0_39 = arith.constant 0 : index
    %99 = vector.load %arg2[%c2_37, %c0_38, %c0_39] : memref<3x32x384xbf16, #tpu.memory_space<vmem>>, vector<1x32x384xbf16>
    %100 = vector.shape_cast %99 : vector<1x32x384xbf16> to vector<32x384xbf16>
    %cst_40 = arith.constant dense<0.000000e+00> : vector<512x384xf32>
    %101 = tpu.matmul %98, %100, %cst_40 {dimension_numbers = #tpu.dot_dimension_numbers<[1], [0], [0], [1], [0, 0, 1, 1], [], []>} : vector<512x32xbf16>, vector<32x384xbf16>, vector<512x384xf32> -> vector<512x384xf32>
    %102 = arith.addf %91, %96 : vector<512x384xf32>
    %103 = arith.addf %102, %101 : vector<512x384xf32>
    %104 = vector.shape_cast %103 : vector<512x384xf32> to vector<32x16x384xf32>
    %105 = vector.extract_strided_slice %104 {offsets = [0, 0, 0], sizes = [32, 16, 128], strides = [1, 1, 1]} : vector<32x16x384xf32> to vector<32x16x128xf32>
    %106 = vector.extract_strided_slice %104 {offsets = [0, 0, 128], sizes = [32, 16, 128], strides = [1, 1, 1]} : vector<32x16x384xf32> to vector<32x16x128xf32>
    %107 = vector.extract_strided_slice %104 {offsets = [0, 0, 256], sizes = [32, 16, 128], strides = [1, 1, 1]} : vector<32x16x384xf32> to vector<32x16x128xf32>
    %108 = tpu.iota {dimensions = array<i32: 1>} : vector<32x16x128xi32>
    %c0_i32_41 = arith.constant 0 : i32
    %109 = vector.broadcast %c0_i32_41 : i32 to vector<32x16x128xi32>
    %110 = arith.cmpi sgt, %108, %109 : vector<32x16x128xi32>
    %c1_i32_42 = arith.constant 1 : i32
    %111 = tpu.dynamic_rotate %105 by %c1_i32_42 dim 1 : vector<32x16x128xf32>, i32 -> vector<32x16x128xf32>
    %cst_43 = arith.constant 0.000000e+00 : f32
    %112 = vector.broadcast %cst_43 : f32 to vector<32x16x128xf32>
    %113 = arith.select %110, %111, %112 : vector<32x16x128xi1>, vector<32x16x128xf32>
    %c15_i32_44 = arith.constant 15 : i32
    %114 = vector.broadcast %c15_i32_44 : i32 to vector<32x16x128xi32>
    %115 = arith.cmpi slt, %108, %114 : vector<32x16x128xi32>
    %c15_i32_45 = arith.constant 15 : i32
    %116 = tpu.dynamic_rotate %107 by %c15_i32_45 dim 1 : vector<32x16x128xf32>, i32 -> vector<32x16x128xf32>
    %cst_46 = arith.constant 0.000000e+00 : f32
    %117 = vector.broadcast %cst_46 : f32 to vector<32x16x128xf32>
    %118 = arith.select %115, %116, %117 : vector<32x16x128xi1>, vector<32x16x128xf32>
    %119 = arith.addf %106, %113 : vector<32x16x128xf32>
    %120 = arith.addf %119, %118 : vector<32x16x128xf32>
    %121 = vector.extract_strided_slice %120 {offsets = [0, 0, 0], sizes = [32, 16, 32], strides = [1, 1, 1]} : vector<32x16x128xf32> to vector<32x16x32xf32>
    %122 = vector.shape_cast %121 : vector<32x16x32xf32> to vector<2x16x16x32xf32>
    %123 = arith.addf %0, %122 : vector<2x16x16x32xf32>
    %c0_47 = arith.constant 0 : index
    %c0_48 = arith.constant 0 : index
    %c0_49 = arith.constant 0 : index
    %c0_50 = arith.constant 0 : index
    %124 = vector.load %arg3[%c0_47, %c0_48, %c0_49, %c0_50] : memref<2x16x16x32xf32, #tpu.memory_space<vmem>>, vector<2x16x16x32xf32>
    tpu.vector_store %arg3[%c0_47, %c0_48, %c0_49, %c0_50], %123 {strides = array<i32>} : memref<2x16x16x32xf32, #tpu.memory_space<vmem>>, vector<2x16x16x32xf32>,
    return
  }
}

</mosaic_0001>

<bundles_post_ra>
// kernel: block_forward_nhwc.1
= control target key start
LH: loop header
LB: loop body
LE: loop exit
PB: predicated region body
PF: predicated region fallthrough
CT: control target
= control target key end

     0   :  { %v14100_v2 = vmov 0   ;;  %vm80_vm0 = vcmask 261120   ;;  %s14096_s0 = inlined_call_operand.vmem [shape: f32[2,16,16,32], index: 0, kind: input, shape index: {}]   ;;  %s14097_s1 = inlined_call_operand.vmem [shape: bf16[3,32,384], index: 1, kind: input, shape index: {}]   ;;  %s14098_s2 = inlined_call_operand.vmem [shape: bf16[3,32,384], index: 2, kind: input, shape index: {}]   ;;  %s14099_s3 = inlined_call_operand.hbm [shape: f32[2,16,16,32], index: 3, kind: output, shape index: {}]  }
   0x1   :  { %v8873_v0 = vld [vmem:[%s14097_s1 + $0x34] ss:$12 sps:$4 sm:$0xff]   ;;  %v8875_v1 = vld [vmem:[%s14097_s1 + $0x30] ss:$12 sps:$4 sm:$0xff]   ;;  %818 = vmatprep.mubr.bf16.mxu0 %v14100_v2  ;;  %v8876_v3 = vld [vmem:[%s14097_s1 + $0x4c] ss:$12 sps:$4 sm:$0xff]  }
   0x2   :  { %786 = vmatprep.subr.bf16.mxu0 %v8873_v0  ;;  %v8878_v4 = vld [vmem:[%s14097_s1 + $0x48] ss:$12 sps:$4 sm:$0xff]   ;;  %v9055_v5 = vld [vmem:[%s14097_s1 + $0x38] ss:$12 sps:$4 sm:$0xff]  }
   0x3   :  { %787 = vmatpush1.bf16.msra.mxu0 %v8875_v1  ;;  %v9060_v6 = vld [vmem:[%s14096_s0] sm:$0xff]  ;;  %v9065_v7 = vld [vmem:[%s14096_s0 + $0x8] sm:$0xff]  ;;  %v9070_v8 = vld [vmem:[%s14096_s0 + $0x10] sm:$0xff] }
   0x4   :  { %788 = vmatprep.subr.bf16.mxu0 %v8876_v3  ;;  %v9075_v9 = vld [vmem:[%s14096_s0 + $0x18] sm:$0xff]  ;;  %v81_v10 = vsel %vm80_vm0, %v9060_v6, 0.0  ;;  %v82_v11 = vsel %vm80_vm0, %v9065_v7, 0.0  ;;  %v84_v12 = vsel %vm80_vm0, %v9070_v8, 0.0  ;;  %v9086_v13 = vld [vmem:[%s14096_s0 + $0x20] sm:$0xff]  ;;  %v9094_v16 = vld [vmem:[%s14096_s0 + $0x28] sm:$0xff]  ;;  %v214_v62 = vmul.f32 %v9060_v6, %v9060_v6 }
   0x5   :  { %v83_v14 = vadd.f32 %v82_v11, %v81_v10  ;;  %v86_v15 = vsel %vm80_vm0, %v9075_v9, 0.0  ;;  %v88_v18 = vsel %vm80_vm0, %v9086_v13, 0.0  ;;  %v9101_v19 = vld [vmem:[%s14096_s0 + $0x30] sm:$0xff]  ;;  %v90_v21 = vsel %vm80_vm0, %v9094_v16, 0.0  ;;  %v9108_v22 = vld [vmem:[%s14096_s0 + $0x38] sm:$0xff]  ;;  %v9115_v25 = vld [vmem:[%s14096_s0 + $0x40] sm:$0xff] }
   0x6   :  { %v92_v24 = vsel %vm80_vm0, %v9101_v19, 0.0  ;;  %v94_v27 = vsel %vm80_vm0, %v9108_v22, 0.0  ;;  %v9122_v28 = vld [vmem:[%s14096_s0 + $0x48] sm:$0xff]  ;;  %v96_v30 = vsel %vm80_vm0, %v9115_v25, 0.0  ;;  %v9129_v31 = vld [vmem:[%s14096_s0 + $0x50] sm:$0xff]  ;;  %v9136_v34 = vld [vmem:[%s14096_s0 + $0x58] sm:$0xff]  ;;  %v215_v63 = vmul.f32 %v9065_v7, %v9065_v7 }
   0x7   :  { %789 = vmatpush1.bf16.msra.mxu0 %v8878_v4  ;;  %v85_v17 = vadd.f32 %v84_v12, %v83_v14  ;;  %v98_v33 = vsel %vm80_vm0, %v9122_v28, 0.0  ;;  %v100_v36 = vsel %vm80_vm0, %v9129_v31, 0.0  ;;  %v9143_v37 = vld [vmem:[%s14096_s0 + $0x60] sm:$0xff]  ;;  %v9148_v38 = vld [vmem:[%s14096_s0 + $0x68] sm:$0xff]  ;;  %v102_v40 = vsel %vm80_vm0, %v9136_v34, 0.0  ;;  %v9155_v42 = vld [vmem:[%s14096_s0 + $0x70] sm:$0xff] }
   0x8   :  { %7693 = vmatprep.subr.bf16.mxu0 %v9055_v5  ;;  %v104_v43 = vsel %vm80_vm0, %v9143_v37, 0.0  ;;  %v106_v44 = vsel %vm80_vm0, %v9148_v38, 0.0  ;;  %v9164_v45 = vld [vmem:[%s14096_s0 + $0x78] sm:$0xff]  ;;  %v9169_v47 = vld [vmem:[%s14096_s0 + $0x80] sm:$0xff]  ;;  %v108_v49 = vsel %vm80_vm0, %v9155_v42, 0.0  ;;  %v9176_v50 = vld [vmem:[%s14096_s0 + $0x88] sm:$0xff]  ;;  %v216_v0 = vmul.f32 %v9070_v8, %v9070_v8 }
   0x9   :  { %v87_v20 = vadd.f32 %v86_v15, %v85_v17  ;;  %v110_v52 = vsel %vm80_vm0, %v9164_v45, 0.0  ;;  %v9183_v53 = vld [vmem:[%s14096_s0 + $0x90] sm:$0xff]  ;;  %v112_v55 = vsel %vm80_vm0, %v9169_v47, 0.0  ;;  %v9190_v56 = vld [vmem:[%s14096_s0 + $0x98] sm:$0xff]  ;;  %v9195_v58 = vld [vmem:[%s14096_s0 + $0xa0] sm:$0xff]  ;;  %v114_v59 = vsel %vm80_vm0, %v9176_v50, 0.0 }
   0xa   :  { %v116_v61 = vsel %vm80_vm0, %v9183_v53, 0.0  ;;  %v118_v3 = vsel %vm80_vm0, %v9190_v56, 0.0  ;;  %v217_v4 = vmul.f32 %v9075_v9, %v9075_v9 }
   0xb   :  { %v89_v23 = vadd.f32 %v88_v18, %v87_v20 }
   0xd   :  { %v91_v26 = vadd.f32 %v90_v21, %v89_v23 }
   0xf   :  { %v93_v29 = vadd.f32 %v92_v24, %v91_v26 }
  0x11   :  { %v95_v32 = vadd.f32 %v94_v27, %v93_v29 }
  0x13   :  { %v97_v35 = vadd.f32 %v96_v30, %v95_v32 }
  0x15   :  { %v99_v39 = vadd.f32 %v98_v33, %v97_v35 }
  0x17   :  { %v101_v41 = vadd.f32 %v100_v36, %v99_v39 }
  0x19   :  { %v103_v46 = vadd.f32 %v102_v40, %v101_v41 }
  0x1b   :  { %v105_v48 = vadd.f32 %v104_v43, %v103_v46 }
  0x1d   :  { %v107_v51 = vadd.f32 %v106_v44, %v105_v48 }
  0x1f   :  { %v109_v54 = vadd.f32 %v108_v49, %v107_v51 }
  0x21   :  { %v111_v57 = vadd.f32 %v110_v52, %v109_v54 }
  0x23   :  { %v113_v60 = vadd.f32 %v112_v55, %v111_v57 }
  0x25   :  { %v115_v1 = vadd.f32 %v114_v59, %v113_v60 }
  0x26   :  { %8 = vsyncpa [#allocation3], 0  ;;  %v9214_v10 = vld [vmem:[%s14096_s0 + $0xa8] sm:$0xff]  ;;  %v120_v12 = vsel %vm80_vm0, %v9195_v58, 0.0  ;;  %v218_v14 = vmul.f32 %v9086_v13, %v9086_v13  ;;  %v278_v15 = vsel %vm80_vm0, %v214_v62, 0.0  ;;  %v279_v17 = vsel %vm80_vm0, %v215_v63, 0.0 }
  0x27   :  { %v117_v11 = vadd.f32 %v116_v61, %v115_v1  ;;  %v281_v18 = vsel %vm80_vm0, %v216_v0, 0.0  ;;  %v9226_v20 = vld [vmem:[%s14096_s0 + $0xb0] sm:$0xff]  ;;  %v280_v23 = vadd.f32 %v279_v17, %v278_v15  ;;  %v122_v24 = vsel %vm80_vm0, %v9214_v10, 0.0  ;;  %v9236_v29 = vld [vmem:[%s14096_s0 + $0xb8] sm:$0xff]  ;;  %v9246_v39 = vld [vmem:[%s14096_s0 + $0xc0] sm:$0xff]  ;;  %s9016_s28 = smov [#allocation2]  }
  0x28   :  { %v219_v26 = vmul.f32 %v9094_v16, %v9094_v16  ;;  %v283_v27 = vsel %vm80_vm0, %v217_v4, 0.0  ;;  %v124_v33 = vsel %vm80_vm0, %v9226_v20, 0.0  ;;  %v220_v35 = vmul.f32 %v9101_v19, %v9101_v19  ;;  %v9256_v48 = vld [vmem:[%s14096_s0 + $0xc8] sm:$0xff]  ;;  %v9266_v57 = vld [vmem:[%s14096_s0 + $0xd0] sm:$0xff]  ;;  %v9276_v0 = vld [vmem:[%s14096_s0 + $0xd8] sm:$0xff]  ;;  %s7042_s29 = sshll.u32 %s9016_s28, 4  ;;  %s7043_s29 = int_to_ptr.vmem [resolvable:$true] %s7042_s29 }
  0x29   :  { %v119_v21 = vadd.f32 %v118_v3, %v117_v11  ;;  %v282_v32 = vadd.f32 %v281_v18, %v280_v23  ;;  %v285_v36 = vsel %vm80_vm0, %v218_v14, 0.0  ;;  %v126_v43 = vsel %vm80_vm0, %v9236_v29, 0.0  ;;  %14222 = vst [vmem:[#allocation5_spill] sm:$0xff] %v9276_v0  ;;  %v9286_v14 = vld [vmem:[%s14096_s0 + $0xe0] sm:$0xff]  ;;  %s8991_s11 = scalar_lea.vmem %s7043_s29, 8192  ;;  %p8996_p1 = scmp.lt.s32.totalorder %s7043_s29, %s7043_s29 }
  0x2a   :  { %v221_v44 = vmul.f32 %v9108_v22, %v9108_v22  ;;  %v287_v46 = vsel %vm80_vm0, %v219_v26, 0.0  ;;  %v128_v52 = vsel %vm80_vm0, %v9246_v39, 0.0  ;;  %v222_v54 = vmul.f32 %v9115_v25, %v9115_v25  ;;  %14223 = vst [vmem:[#allocation6_spill] sm:$0xff] %v9286_v14  ;;  %p8992_p0 = scmp.ne.s32.totalorder %s7043_s29, %s8991_s11  ;;  %p8997_p2 = scmp.lt.s32.totalorder %s8991_s11, %s8991_s11 }
  0x2b   :  { %v121_v30 = vadd.f32 %v120_v12, %v119_v21  ;;  %v284_v41 = vadd.f32 %v283_v27, %v282_v32  ;;  %v289_v55 = vsel %vm80_vm0, %v220_v35, 0.0  ;;  %v130_v61 = vsel %vm80_vm0, %v9256_v48, 0.0  ;;  %v9306_v35 = vld [vmem:[%s14096_s0 + $0xf0] sm:$0xff] }
  0x2c   :  { %v223_v62 = vmul.f32 %v9122_v28, %v9122_v28  ;;  %v291_v63 = vsel %vm80_vm0, %v221_v44, 0.0  ;;  %v132_v4 = vsel %vm80_vm0, %v9266_v57, 0.0  ;;  %v224_v11 = vmul.f32 %v9129_v31, %v9129_v31  ;;  %14225 = vst [vmem:[#allocation8_spill] sm:$0xff] %v9306_v35  ;;  %p8998_p3 = por %p8997_p2, %p8996_p1 }
  0x2d   :  { %v123_v40 = vadd.f32 %v122_v24, %v121_v30  ;;  %v286_v51 = vadd.f32 %v285_v36, %v284_v41  ;;  %v293_v12 = vsel %vm80_vm0, %v222_v54, 0.0  ;;  %v134_v18 = vsel %vm80_vm0, %v9276_v0, 0.0  ;;  %v9296_v24 = vld [vmem:[%s14096_s0 + $0xe8] sm:$0xff] }
  0x2e   :  { %v225_v21 = vmul.f32 %v9136_v34, %v9136_v34  ;;  %v295_v23 = vsel %vm80_vm0, %v223_v62, 0.0  ;;  %14224 = vst [vmem:[#allocation7_spill] sm:$0xff] %v9296_v24  ;;  %v136_v30 = vsel %vm80_vm0, %v9286_v14, 0.0  ;;  %v226_v32 = vmul.f32 %v9143_v37, %v9143_v37  ;;  %p8999_p4 = pnand %p8998_p3, %p8992_p0 }
  0x2f   :  { %v125_v49 = vadd.f32 %v124_v33, %v123_v40  ;;  %v288_v60 = vadd.f32 %v287_v46, %v286_v51  ;;  %v297_v33 = vsel %vm80_vm0, %v224_v11, 0.0  ;;  %v138_v41 = vsel %vm80_vm0, %v9296_v24, 0.0  ;;  %v9316_v46 = vld [vmem:[%s14096_s0 + $0xf8] sm:$0xff] }
  0x30   :  { %v299_v44 = vsel %vm80_vm0, %v225_v21, 0.0  ;;  %14226 = vst [vmem:[#allocation9_spill] sm:$0xff] %v9316_v46  ;;  %v228_v54 = vmul.f32 %v9155_v42, %v9155_v42  ;;  %v142_v62 = vsel %vm80_vm0, %v9316_v46, 0.0 }
  0x31   :  { %v127_v59 = vadd.f32 %v126_v43, %v125_v49  ;;  %v290_v3 = vadd.f32 %v289_v55, %v288_v60  ;;  %v227_v43 = vmul.f32 %v9148_v38, %v9148_v38  ;;  %v301_v55 = vsel %vm80_vm0, %v226_v32, 0.0  ;;  %v9356_v32 = vld [vmem:[%s14096_s0 + $0x118] sm:$0xff] }
  0x32   :  { %14228 = vst [vmem:[#allocation11_spill] sm:$0xff] %v9356_v32 }
  0x33   :  { %v129_v1 = vadd.f32 %v128_v52, %v127_v59  ;;  %v292_v17 = vadd.f32 %v291_v63, %v290_v3  ;;  %v140_v52 = vsel %vm80_vm0, %v9306_v35, 0.0  ;;  %v9326_v59 = vld [vmem:[%s14096_s0 + $0x100] sm:$0xff]  ;;  %v229_v63 = vmul.f32 %v9164_v45, %v9164_v45  ;;  %v9336_v3 = vld [vmem:[%s14096_s0 + $0x108] sm:$0xff] }
  0x35   :  { %v131_v15 = vadd.f32 %v130_v61, %v129_v1  ;;  %v294_v27 = vadd.f32 %v293_v12, %v292_v17  ;;  %v303_v1 = vsel %vm80_vm0, %v227_v43, 0.0  ;;  %v144_v12 = vsel %vm80_vm0, %v9326_v59, 0.0 }
  0x36   :  { %v305_v17 = vsel %vm80_vm0, %v228_v54, 0.0  ;;  %v233_v54 = vmul.f32 %v9190_v56, %v9190_v56 }
  0x37   :  { %v133_v26 = vadd.f32 %v132_v4, %v131_v15  ;;  %v296_v40 = vadd.f32 %v295_v23, %v294_v27  ;;  %v230_v15 = vmul.f32 %v9169_v47, %v9169_v47  ;;  %v231_v27 = vmul.f32 %v9176_v50, %v9176_v50 }
  0x39   :  { %v135_v36 = vadd.f32 %v134_v18, %v133_v26  ;;  %v298_v51 = vadd.f32 %v297_v33, %v296_v40  ;;  %v9346_v18 = vld [vmem:[%s14096_s0 + $0x110] sm:$0xff]  ;;  %v146_v26 = vsel %vm80_vm0, %v9336_v3, 0.0  ;;  %v309_v43 = vsel %vm80_vm0, %v230_v15, 0.0 }
  0x3a   :  { %14227 = vst [vmem:[#allocation10_spill] sm:$0xff] %v9346_v18  ;;  %v148_v40 = vsel %vm80_vm0, %v9346_v18, 0.0 }
  0x3b   :  { %v137_v49 = vadd.f32 %v136_v30, %v135_v36  ;;  %v300_v61 = vadd.f32 %v299_v44, %v298_v51  ;;  %v307_v30 = vsel %vm80_vm0, %v229_v63, 0.0  ;;  %v9366_v44 = vld [vmem:[%s14096_s0 + $0x120] sm:$0xff] }
  0x3c   :  { %14229 = vst [vmem:[#allocation12_spill] sm:$0xff] %v9366_v44  ;;  %v152_v63 = vsel %vm80_vm0, %v9366_v44, 0.0 }
  0x3d   :  { %v139_v60 = vadd.f32 %v138_v41, %v137_v49  ;;  %v302_v11 = vadd.f32 %v301_v55, %v300_v61  ;;  %v232_v41 = vmul.f32 %v9183_v53, %v9183_v53  ;;  %v311_v55 = vsel %vm80_vm0, %v231_v27, 0.0 }
  0x3f   :  { %v141_v4 = vadd.f32 %v140_v52, %v139_v60  ;;  %v304_v23 = vadd.f32 %v303_v1, %v302_v11  ;;  %v150_v52 = vsel %vm80_vm0, %v9356_v32, 0.0  ;;  %v9376_v60 = vld [vmem:[%s14096_s0 + $0x128] sm:$0xff]  ;;  %v234_v1 = vmul.f32 %v9195_v58, %v9195_v58  ;;  %v9386_v11 = vld [vmem:[%s14096_s0 + $0x130] sm:$0xff] }
  0x40   :  { %14230 = vst [vmem:[#allocation13_spill] sm:$0xff] %v9376_v60 }
  0x41   :  { %v143_v21 = vadd.f32 %v142_v62, %v141_v4  ;;  %v306_v36 = vadd.f32 %v305_v17, %v304_v23  ;;  %v313_v4 = vsel %vm80_vm0, %v232_v41, 0.0  ;;  %v154_v17 = vsel %vm80_vm0, %v9376_v60, 0.0  ;;  %v9406_v41 = vld [vmem:[%s14096_s0 + $0x140] sm:$0xff] }
  0x42   :  { %v315_v23 = vsel %vm80_vm0, %v233_v54, 0.0 }
  0x43   :  { %v145_v33 = vadd.f32 %v144_v12, %v143_v21  ;;  %v308_v51 = vadd.f32 %v307_v30, %v306_v36  ;;  %v235_v21 = vmul.f32 %v9214_v10, %v9214_v10  ;;  %v236_v36 = vmul.f32 %v9226_v20, %v9226_v20 }
  0x45   :  { %v147_v49 = vadd.f32 %v146_v26, %v145_v33  ;;  %v310_v62 = vadd.f32 %v309_v43, %v308_v51  ;;  %v9396_v26 = vld [vmem:[%s14096_s0 + $0x138] sm:$0xff]  ;;  %v156_v33 = vsel %vm80_vm0, %v9386_v11, 0.0  ;;  %v319_v54 = vsel %vm80_vm0, %v235_v21, 0.0 }
  0x46   :  { %v158_v51 = vsel %vm80_vm0, %v9396_v26, 0.0 }
  0x47   :  { %v149_v61 = vadd.f32 %v148_v40, %v147_v49  ;;  %v312_v15 = vadd.f32 %v311_v55, %v310_v62  ;;  %v317_v40 = vsel %vm80_vm0, %v234_v1, 0.0  ;;  %v9416_v55 = vld [vmem:[%s14096_s0 + $0x148] sm:$0xff]  ;;  %v238_v1 = vmul.f32 %v9246_v39, %v9246_v39 }
  0x48   :  { %v162_v21 = vsel %vm80_vm0, %v9416_v55, 0.0 }
  0x49   :  { %v151_v12 = vadd.f32 %v150_v52, %v149_v61  ;;  %v314_v30 = vadd.f32 %v313_v4, %v312_v15  ;;  %v237_v52 = vmul.f32 %v9236_v29, %v9236_v29  ;;  %v321_v4 = vsel %vm80_vm0, %v236_v36, 0.0 }
  0x4b   :  { %v153_v27 = vadd.f32 %v152_v63, %v151_v12  ;;  %v316_v49 = vadd.f32 %v315_v23, %v314_v30  ;;  %v160_v63 = vsel %vm80_vm0, %v9406_v41, 0.0  ;;  %v9426_v12 = vld [vmem:[%s14096_s0 + $0x150] sm:$0xff]  ;;  %v239_v23 = vmul.f32 %v9256_v48, %v9256_v48  ;;  %v9436_v30 = vld [vmem:[%s14096_s0 + $0x158] sm:$0xff] }
  0x4c   :  { %14231 = vst [vmem:[#allocation14_spill] sm:$0xff] %v9436_v30 }
  0x4d   :  { %v155_v43 = vadd.f32 %v154_v17, %v153_v27  ;;  %v318_v62 = vadd.f32 %v317_v40, %v316_v49  ;;  %v323_v27 = vsel %vm80_vm0, %v237_v52, 0.0  ;;  %v164_v40 = vsel %vm80_vm0, %v9426_v12, 0.0 }
  0x4e   :  { %v325_v49 = vsel %vm80_vm0, %v238_v1, 0.0 }
  0x4f   :  { %v157_v61 = vadd.f32 %v156_v33, %v155_v43  ;;  %v320_v17 = vadd.f32 %v319_v54, %v318_v62  ;;  %v240_v43 = vmul.f32 %v9266_v57, %v9266_v57  ;;  %v241_v62 = vmul.f32 %v9276_v0, %v9276_v0 }
  0x51   :  { %v159_v15 = vadd.f32 %v158_v51, %v157_v61  ;;  %v322_v36 = vadd.f32 %v321_v4, %v320_v17  ;;  %v9446_v51 = vld [vmem:[%s14096_s0 + $0x160] sm:$0xff]  ;;  %v166_v61 = vsel %vm80_vm0, %v9436_v30, 0.0  ;;  %v9456_v4 = vld [vmem:[%s14096_s0 + $0x168] sm:$0xff] }
  0x52   :  { %14232 = vst [vmem:[#allocation15_spill] sm:$0xff] %v9456_v4  ;;  %v168_v17 = vsel %vm80_vm0, %v9446_v51, 0.0  ;;  %v170_v2 = vsel %vm80_vm0, %v9456_v4, 0.0 }
  0x53   :  { %v161_v33 = vadd.f32 %v160_v63, %v159_v15  ;;  %v324_v54 = vadd.f32 %v323_v27, %v322_v36  ;;  %v327_v63 = vsel %vm80_vm0, %v239_v23, 0.0  ;;  %v329_v27 = vsel %vm80_vm0, %v240_v43, 0.0 }
  0x55   :  { %v163_v52 = vadd.f32 %v162_v21, %v161_v33  ;;  %v326_v15 = vadd.f32 %v325_v49, %v324_v54  ;;  %v242_v21 = vmul.f32 %v9286_v14, %v9286_v14  ;;  %v9466_v33 = vld [vmem:[%s14096_s0 + $0x170] sm:$0xff]  ;;  %v331_v49 = vsel %vm80_vm0, %v241_v62, 0.0 }
  0x56   :  { %v172_v14 = vsel %vm80_vm0, %v9466_v33, 0.0 }
  0x57   :  { %v165_v1 = vadd.f32 %v164_v40, %v163_v52  ;;  %v328_v36 = vadd.f32 %v327_v63, %v326_v15  ;;  %v243_v40 = vmul.f32 %v9296_v24, %v9296_v24  ;;  %v9476_v52 = vld [vmem:[%s14096_s0 + $0x178] sm:$0xff]  ;;  %v333_v63 = vsel %vm80_vm0, %v242_v21, 0.0 }
  0x58   :  { %14233 = vst [vmem:[#allocation16_spill] sm:$0xff] %v9476_v52  ;;  %v174_v24 = vsel %vm80_vm0, %v9476_v52, 0.0 }
  0x59   :  { %v167_v23 = vadd.f32 %v166_v61, %v165_v1  ;;  %v330_v54 = vadd.f32 %v329_v27, %v328_v36  ;;  %v244_v61 = vmul.f32 %v9306_v35, %v9306_v35  ;;  %v9486_v1 = vld [vmem:[%s14096_s0 + $0x180] sm:$0xff]  ;;  %v335_v27 = vsel %vm80_vm0, %v243_v40, 0.0 }
  0x5a   :  { %v176_v35 = vsel %vm80_vm0, %v9486_v1, 0.0 }
  0x5b   :  { %v169_v43 = vadd.f32 %v168_v17, %v167_v23  ;;  %v332_v15 = vadd.f32 %v331_v49, %v330_v54  ;;  %v245_v17 = vmul.f32 %v9316_v46, %v9316_v46  ;;  %v9496_v23 = vld [vmem:[%s14096_s0 + $0x188] sm:$0xff]  ;;  %v337_v49 = vsel %vm80_vm0, %v244_v61, 0.0 }
  0x5c   :  { %14234 = vst [vmem:[#allocation17_spill] sm:$0xff] %v9496_v23  ;;  %v178_v46 = vsel %vm80_vm0, %v9496_v23, 0.0 }
  0x5d   :  { %v171_v62 = vadd.f32 %v170_v2, %v169_v43  ;;  %v334_v36 = vadd.f32 %v333_v63, %v332_v15  ;;  %v246_v2 = vmul.f32 %v9326_v59, %v9326_v59  ;;  %v9506_v43 = vld [vmem:[%s14096_s0 + $0x190] sm:$0xff]  ;;  %v339_v63 = vsel %vm80_vm0, %v245_v17, 0.0  ;;  %v9516_v59 = vld [vmem:[%s14096_s0 + $0x198] sm:$0xff] }
  0x5e   :  { %14235 = vst [vmem:[#allocation18_spill] sm:$0xff] %v9516_v59  ;;  %v180_v15 = vsel %vm80_vm0, %v9506_v43, 0.0 }
  0x5f   :  { %v173_v21 = vadd.f32 %v172_v14, %v171_v62  ;;  %v336_v54 = vadd.f32 %v335_v27, %v334_v36  ;;  %v247_v14 = vmul.f32 %v9336_v3, %v9336_v3  ;;  %v341_v27 = vsel %vm80_vm0, %v246_v2, 0.0  ;;  %v9526_v3 = vld [vmem:[%s14096_s0 + $0x1a0] sm:$0xff] }
  0x60   :  { %14236 = vst [vmem:[#allocation19_spill] sm:$0xff] %v9526_v3  ;;  %v182_v36 = vsel %vm80_vm0, %v9516_v59, 0.0 }
  0x61   :  { %v175_v40 = vadd.f32 %v174_v24, %v173_v21  ;;  %v338_v62 = vadd.f32 %v337_v49, %v336_v54  ;;  %v248_v24 = vmul.f32 %v9346_v18, %v9346_v18  ;;  %v343_v49 = vsel %vm80_vm0, %v247_v14, 0.0 }
  0x62   :  { %v184_v18 = vsel %vm80_vm0, %v9526_v3, 0.0 }
  0x63   :  { %v177_v61 = vadd.f32 %v176_v35, %v175_v40  ;;  %v340_v21 = vadd.f32 %v339_v63, %v338_v62  ;;  %v249_v35 = vmul.f32 %v9356_v32, %v9356_v32  ;;  %v9536_v40 = vld [vmem:[%s14096_s0 + $0x1a8] sm:$0xff]  ;;  %v345_v63 = vsel %vm80_vm0, %v248_v24, 0.0 }
  0x64   :  { %14237 = vst [vmem:[#allocation20_spill] sm:$0xff] %v9536_v40  ;;  %v186_v32 = vsel %vm80_vm0, %v9536_v40, 0.0 }
  0x65   :  { %v179_v17 = vadd.f32 %v178_v46, %v177_v61  ;;  %v342_v54 = vadd.f32 %v341_v27, %v340_v21  ;;  %v250_v46 = vmul.f32 %v9366_v44, %v9366_v44  ;;  %v9546_v61 = vld [vmem:[%s14096_s0 + $0x1b0] sm:$0xff]  ;;  %v347_v27 = vsel %vm80_vm0, %v249_v35, 0.0 }
  0x66   :  { %14238 = vst [vmem:[#allocation21_spill] sm:$0xff] %v9546_v61  ;;  %v188_v44 = vsel %vm80_vm0, %v9546_v61, 0.0 }
  0x67   :  { %v181_v2 = vadd.f32 %v180_v15, %v179_v17  ;;  %v344_v62 = vadd.f32 %v343_v49, %v342_v54  ;;  %v251_v15 = vmul.f32 %v9376_v60, %v9376_v60  ;;  %v9556_v17 = vld [vmem:[%s14096_s0 + $0x1b8] sm:$0xff]  ;;  %v349_v49 = vsel %vm80_vm0, %v250_v46, 0.0 }
  0x68   :  { %v190_v35 = vsel %vm80_vm0, %v9556_v17, 0.0  ;;  %v253_v60 = vmul.f32 %v9396_v26, %v9396_v26  ;;  %v254_v46 = vmul.f32 %v9406_v41, %v9406_v41 }
  0x69   :  { %v183_v14 = vadd.f32 %v182_v36, %v181_v2  ;;  %v346_v21 = vadd.f32 %v345_v63, %v344_v62  ;;  %v252_v36 = vmul.f32 %v9386_v11, %v9386_v11  ;;  %v351_v0 = vsel %vm80_vm0, %v251_v15, 0.0 }
  0x6a   :  { %v255_v15 = vmul.f32 %v9416_v55, %v9416_v55 }
  0x6b   :  { %v185_v24 = vadd.f32 %v184_v18, %v183_v14  ;;  %v348_v54 = vadd.f32 %v347_v27, %v346_v21  ;;  %v9571_v18 = vld [vmem:[%s14096_s0 + $0x1c0] sm:$0xff]  ;;  %v355_v21 = vsel %vm80_vm0, %v253_v60, 0.0 }
  0x6c   :  { %v359_v60 = vsel %vm80_vm0, %v255_v15, 0.0 }
  0x6d   :  { %v187_v2 = vadd.f32 %v186_v32, %v185_v24  ;;  %v350_v14 = vadd.f32 %v349_v49, %v348_v54  ;;  %v353_v32 = vsel %vm80_vm0, %v252_v36, 0.0  ;;  %v192_v24 = vsel %vm80_vm0, %v9571_v18, 0.0 }
  0x6e   :  { %v357_v36 = vsel %vm80_vm0, %v254_v46, 0.0 }
  0x6f   :  { %v189_v63 = vadd.f32 %v188_v44, %v187_v2  ;;  %v352_v27 = vadd.f32 %v351_v0, %v350_v14  ;;  %v9584_v44 = vld [vmem:[%s14096_s0 + $0x1c8] sm:$0xff]  ;;  %v256_v2 = vmul.f32 %v9426_v12, %v9426_v12  ;;  %v9597_v14 = vld [vmem:[%s14096_s0 + $0x1d0] sm:$0xff] }
  0x70   :  { %14239 = vst [vmem:[#allocation22_spill] sm:$0xff] %v9597_v14 }
  0x71   :  { %v191_v62 = vadd.f32 %v190_v35, %v189_v63  ;;  %v354_v49 = vadd.f32 %v353_v32, %v352_v27  ;;  %v194_v35 = vsel %vm80_vm0, %v9584_v44, 0.0  ;;  %v257_v63 = vmul.f32 %v9436_v30, %v9436_v30  ;;  %v9610_v30 = vld [vmem:[%s14096_s0 + $0x1d8] sm:$0xff] }
  0x72   :  { %v258_v27 = vmul.f32 %v9446_v51, %v9446_v51  ;;  %v361_v46 = vsel %vm80_vm0, %v256_v2, 0.0  ;;  %14240 = vst [vmem:[#allocation23_spill] sm:$0xff] %v9610_v30 }
  0x73   :  { %v193_v0 = vadd.f32 %v192_v24, %v191_v62  ;;  %v356_v54 = vadd.f32 %v355_v21, %v354_v49  ;;  %v196_v21 = vsel %vm80_vm0, %v9597_v14, 0.0  ;;  %v259_v49 = vmul.f32 %v9456_v4, %v9456_v4  ;;  %v9623_v4 = vld [vmem:[%s14096_s0 + $0x1e0] sm:$0xff] }
  0x74   :  { %v363_v15 = vsel %vm80_vm0, %v257_v63, 0.0  ;;  %v365_v2 = vsel %vm80_vm0, %v258_v27, 0.0  ;;  %14241 = vst [vmem:[#allocation24_spill] sm:$0xff] %v9623_v4 }
  0x75   :  { %v358_v32 = vadd.f32 %v357_v36, %v356_v54  ;;  %v195_v62 = vadd.f32 %v194_v35, %v193_v0  ;;  %v260_v54 = vmul.f32 %v9466_v33, %v9466_v33  ;;  %v367_v63 = vsel %vm80_vm0, %v259_v49, 0.0 }
  0x77   :  { %v360_v24 = vadd.f32 %v359_v60, %v358_v32  ;;  %v197_v0 = vadd.f32 %v196_v21, %v195_v62  ;;  %v198_v60 = vsel %vm80_vm0, %v9610_v30, 0.0  ;;  %v261_v32 = vmul.f32 %v9476_v52, %v9476_v52  ;;  %v9636_v52 = vld [vmem:[%s14096_s0 + $0x1e8] sm:$0xff] }
  0x78   :  { %v369_v27 = vsel %vm80_vm0, %v260_v54, 0.0  ;;  %14242 = vst [vmem:[#allocation25_spill] sm:$0xff] %v9636_v52 }
  0x79   :  { %v362_v36 = vadd.f32 %v361_v46, %v360_v24  ;;  %v262_v24 = vmul.f32 %v9486_v1, %v9486_v1  ;;  %v199_v62 = vadd.f32 %v198_v60, %v197_v0  ;;  %v371_v49 = vsel %vm80_vm0, %v261_v32, 0.0 }
  0x7b   :  { %v364_v35 = vadd.f32 %v363_v15, %v362_v36  ;;  %v200_v15 = vsel %vm80_vm0, %v9623_v4, 0.0  ;;  %v263_v36 = vmul.f32 %v9496_v23, %v9496_v23  ;;  %v373_v54 = vsel %vm80_vm0, %v262_v24, 0.0  ;;  %v9649_v23 = vld [vmem:[%s14096_s0 + $0x1f0] sm:$0xff] }
  0x7c   :  { %v201_v0 = vadd.f32 %v200_v15, %v199_v62  ;;  %14243 = vst [vmem:[#allocation26_spill] sm:$0xff] %v9649_v23 }
  0x7d   :  { %v366_v46 = vadd.f32 %v365_v2, %v364_v35  ;;  %v264_v35 = vmul.f32 %v9506_v43, %v9506_v43  ;;  %v375_v32 = vsel %vm80_vm0, %v263_v36, 0.0 }
  0x7f   :  { %v368_v21 = vadd.f32 %v367_v63, %v366_v46  ;;  %v202_v63 = vsel %vm80_vm0, %v9636_v52, 0.0  ;;  %v265_v46 = vmul.f32 %v9516_v59, %v9516_v59  ;;  %v377_v24 = vsel %vm80_vm0, %v264_v35, 0.0  ;;  %v9662_v59 = vld [vmem:[%s14096_s0 + $0x1f8] sm:$0xff] }
  0x80   :  { %v203_v62 = vadd.f32 %v202_v63, %v201_v0  ;;  %14244 = vst [vmem:[#allocation27_spill] sm:$0xff] %v9662_v59 }
  0x81   :  { %v370_v2 = vadd.f32 %v369_v27, %v368_v21  ;;  %v266_v21 = vmul.f32 %v9526_v3, %v9526_v3  ;;  %v379_v36 = vsel %vm80_vm0, %v265_v46, 0.0  ;;  %v270_v3 = vmul.f32 %v9571_v18, %v9571_v18 }
  0x83   :  { %v372_v60 = vadd.f32 %v371_v49, %v370_v2  ;;  %v204_v49 = vsel %vm80_vm0, %v9649_v23, 0.0  ;;  %v267_v2 = vmul.f32 %v9536_v40, %v9536_v40  ;;  %v381_v35 = vsel %vm80_vm0, %v266_v21, 0.0 }
  0x84   :  { %v205_v0 = vadd.f32 %v204_v49, %v203_v62  ;;  %v271_v21 = vmul.f32 %v9584_v44, %v9584_v44 }
  0x85   :  { %v374_v27 = vadd.f32 %v373_v54, %v372_v60  ;;  %v268_v60 = vmul.f32 %v9546_v61, %v9546_v61  ;;  %v383_v46 = vsel %vm80_vm0, %v267_v2, 0.0 }
  0x87   :  { %v376_v15 = vadd.f32 %v375_v32, %v374_v27  ;;  %v206_v32 = vsel %vm80_vm0, %v9662_v59, 0.0  ;;  %v269_v27 = vmul.f32 %v9556_v17, %v9556_v17 }
  0x89   :  { %v378_v54 = vadd.f32 %v377_v24, %v376_v15  ;;  %v385_v24 = vsel %vm80_vm0, %v268_v60, 0.0  ;;  %v207_v15 = vadd.f32 %v206_v32, %v205_v0  ;;  %v387_v62 = vsel %vm80_vm0, %v269_v27, 0.0 }
  0x8a   :  { %v391_v60 = vsel %vm80_vm0, %v271_v21, 0.0 }
  0x8b   :  { %v380_v63 = vadd.f32 %v379_v36, %v378_v54  ;;  %v272_v36 = vmul.f32 %v9597_v14, %v9597_v14  ;;  %v389_v54 = vsel %vm80_vm0, %v270_v3, 0.0  ;;  %v208_v2 = vrot.slane %v207_v15, 4 }
  0x8d   :  { %v382_v40 = vadd.f32 %v381_v35, %v380_v63  ;;  %v273_v63 = vmul.f32 %v9610_v30, %v9610_v30  ;;  %v393_v32 = vsel %vm80_vm0, %v272_v36, 0.0  ;;  %v209_v27 = vadd.f32 %v208_v2, %v207_v15 }
  0x8f   :  { %v384_v61 = vadd.f32 %v383_v46, %v382_v40  ;;  %v274_v40 = vmul.f32 %v9623_v4, %v9623_v4  ;;  %v275_v46 = vmul.f32 %v9636_v52, %v9636_v52  ;;  %v395_v3 = vsel %vm80_vm0, %v273_v63, 0.0 }
  0x90   :  { %v210_v21 = vrot.slane %v209_v27, 2 }
  0x91   :  { %v386_v49 = vadd.f32 %v385_v24, %v384_v61  ;;  %v399_v36 = vsel %vm80_vm0, %v275_v46, 0.0 }
  0x93   :  { %v388_v35 = vadd.f32 %v387_v62, %v386_v49  ;;  %v276_v62 = vmul.f32 %v9649_v23, %v9649_v23  ;;  %v397_v49 = vsel %vm80_vm0, %v274_v40, 0.0 }
  0x95   :  { %v390_v0 = vadd.f32 %v389_v54, %v388_v35  ;;  %v277_v35 = vmul.f32 %v9662_v59, %v9662_v59  ;;  %v401_v2 = vsel %vm80_vm0, %v276_v62, 0.0 }
  0x97   :  { %v392_v61 = vadd.f32 %v391_v60, %v390_v0  ;;  %v211_v60 = vadd.f32 %v210_v21, %v209_v27  ;;  %v403_v63 = vsel %vm80_vm0, %v277_v35, 0.0 }
  0x99   :  { %v394_v24 = vadd.f32 %v393_v32, %v392_v61  ;;  %v212_v61 = vrot.slane %v211_v60, 1 }
  0x9b   :  { %v396_v54 = vadd.f32 %v395_v3, %v394_v24  ;;  %v213_v4 = vadd.f32 %v212_v61, %v211_v60 }
  0x9d   :  { %v398_v15 = vadd.f32 %v397_v49, %v396_v54  ;;  %v9698_v24 = vmul.f32 0.001953125, %v213_v4 }
  0x9f   :  { %v400_v0 = vadd.f32 %v399_v36, %v398_v15  ;;  %v413_v46 = vmul.f32 %v9698_v24, %v9698_v24  ;;  %v417_v21 = vsub.f32 %v9060_v6, %v9698_v24  ;;  %v418_v54 = vsub.f32 %v9065_v7, %v9698_v24 }
  0xa0   :  { %v420_v4 = vsub.f32 %v9075_v9, %v9698_v24  ;;  %v423_v6 = vsub.f32 %v9101_v19, %v9698_v24  ;;  %v424_v7 = vsub.f32 %v9108_v22, %v9698_v24  ;;  %v428_v19 = vsub.f32 %v9136_v34, %v9698_v24 }
  0xa1   :  { %v402_v32 = vadd.f32 %v401_v2, %v400_v0 }
  0xa3   :  { %v404_v52 = vadd.f32 %v403_v63, %v402_v32 }
  0xa5   :  { %v405_v23 = vrot.slane %v404_v52, 4 }
  0xa7   :  { %v406_v40 = vadd.f32 %v405_v23, %v404_v52  ;;  %v8880_v52 = vld [vmem:[%s14097_s1 + $0x68] ss:$12 sps:$4 sm:$0xff]   ;;  %v421_v23 = vsub.f32 %v9086_v13, %v9698_v24  ;;  %v426_v13 = vsub.f32 %v9122_v28, %v9698_v24 }
  0xa8   :  { %7761 = vmatprep.subr.bf16.mxu1 %v8880_v52 }
  0xa9   :  { %v407_v30 = vrot.slane %v406_v40, 2  ;;  %7762 = vmatpush3.bf16.msra.mxu1 %v8880_v52 }
  0xab   :  { %v408_v3 = vadd.f32 %v407_v30, %v406_v40  ;;  %v419_v30 = vsub.f32 %v9070_v8, %v9698_v24  ;;  %v8881_v8 = vld [vmem:[%s14097_s1 + $0x80] ss:$12 sps:$4 sm:$0xff]  }
  0xac   :  { %7763 = vmatprep.subr.bf16.mxu1 %v8881_v8 }
  0xad   :  { %v409_v59 = vrot.slane %v408_v3, 1  ;;  %7764 = vmatpush3.bf16.msra.mxu1 %v8881_v8 }
  0xaf   :  { %v410_v14 = vadd.f32 %v409_v59, %v408_v3  ;;  %v422_v59 = vsub.f32 %v9094_v16, %v9698_v24  ;;  %v427_v16 = vsub.f32 %v9129_v31, %v9698_v24 }
  0xb1   :  { %v412_v62 = vmul.f32 0.001953125, %v410_v14  ;;  %v425_v14 = vsub.f32 %v9115_v25, %v9698_v24 }
  0xb3   :  { %v414_v27 = vsub.f32 %v412_v62, %v413_v46 }
  0xb5   :  { %v415_v49 = vadd.f32 1e-05, %v414_v27  ;;  %v8882_v27 = vld [vmem:[%s14097_s1 + $0x50] ss:$12 sps:$4 sm:$0xff]  }
  0xb7   :  { %8921 = vrsqrt.f32 %v415_v49 }
  0xc1   :  { %v9724_v9 = vpop.eup %8921 }
  0xc2   :  { %v481_v22 = vmul.f32 %v9724_v9, %v417_v21  ;;  %v482_v35 = vmul.f32 %v9724_v9, %v418_v54  ;;  %v483_v36 = vmul.f32 %v9724_v9, %v419_v30  ;;  %v484_v15 = vmul.f32 %v9724_v9, %v420_v4 }
  0xc3   :  { %v485_v25 = vmul.f32 %v9724_v9, %v421_v23  ;;  %v486_v28 = vmul.f32 %v9724_v9, %v422_v59  ;;  %v487_v2 = vmul.f32 %v9724_v9, %v423_v6  ;;  %v488_v31 = vmul.f32 %v9724_v9, %v424_v7 }
  0xc4   :  { %v545_v60 = vmax.f32 %v481_v22, 0.0  ;;  %v546_v34 = vmax.f32 %v482_v35, 0.0  ;;  %v547_v0 = vmax.f32 %v483_v36, 0.0  ;;  %v548_v63 = vmax.f32 %v484_v15, 0.0 }
  0xc5   :  { %v549_v32 = vmax.f32 %v485_v25, 0.0  ;;  %v550_v61 = vmax.f32 %v486_v28, 0.0  ;;  %v551_v40 = vmax.f32 %v487_v2, 0.0  ;;  %v552_v3 = vmax.f32 %v488_v31, 0.0 }
  0xc6   :  { %v9742_v46 = vpack.c.bf16 %v546_v34, %v545_v60  ;;  %v9744_v62 = vpack.c.bf16 %v548_v63, %v547_v0  ;;  %v489_v21 = vmul.f32 %v9724_v9, %v425_v14  ;;  %v490_v54 = vmul.f32 %v9724_v9, %v426_v13 }
  0xc7   :  { %v9751_v49 = vpack.c.bf16 %v550_v61, %v549_v32  ;;  %v14248_v30 = vmov 0   ;;  %v9759_v4 = vpack.c.bf16 %v552_v3, %v551_v40  ;;  %v491_v52 = vmul.f32 %v9724_v9, %v427_v16 }
  0xc8   :  { %14245 = vst [vmem:[#allocation28_spill] sm:$0xff] %v9742_v46  ;;  %14246 = vst [vmem:[#allocation29_spill] sm:$0xff] %v9744_v62  ;;  %7067 = vmatmul.mubr.msk.bf16.vlgmr.msra.gmra.mrb[0].mxu0 %vm80_vm0, %v9742_v46  ;;  %7765 = vmatprep.mubr.msk.bf16.mxu1 %vm80_vm0, %v9744_v62  ;;  %v492_v23 = vmul.f32 %v9724_v9, %v428_v19  ;;  %v553_v59 = vmax.f32 %v489_v21, 0.0  ;;  %v554_v6 = vmax.f32 %v490_v54, 0.0 }
  0xc9   :  { %14247 = vst [vmem:[#allocation30_spill] sm:$0xff] %v9751_v49  ;;  %7694 = vmatpush3.bf16.msra.mxu0 %v9055_v5  ;;  %828 = vmatprep.mubr.bf16.mxu0 %v14248_v30  ;;  %14249 = vst [vmem:[#allocation31_spill] sm:$0xff] %v9759_v4  ;;  %v429_v5 = vsub.f32 %v9143_v37, %v9698_v24  ;;  %v430_v7 = vsub.f32 %v9148_v38, %v9698_v24  ;;  %v555_v8 = vmax.f32 %v491_v52, 0.0 }
  0xca   :  { %7695 = vmatprep.subr.bf16.mxu0 %v8882_v27  ;;  %7766 = vmatmul.mubr.msk.bf16.vlgmr.msra.gmra.mrb[0].mxu1 %vm80_vm0, %v9751_v49  ;;  %v556_v14 = vmax.f32 %v492_v23, 0.0  ;;  %v431_v13 = vsub.f32 %v9155_v42, %v9698_v24  ;;  %v432_v16 = vsub.f32 %v9164_v45, %v9698_v24  ;;  %v9777_v19 = vpack.c.bf16 %v554_v6, %v553_v59 }
  0xcb   :  { %7769 = vmatprep.mubr.msk.bf16.mxu1 %vm80_vm0, %v9759_v4  ;;  %v493_v22 = vmul.f32 %v9724_v9, %v429_v5  ;;  %v494_v37 = vmul.f32 %v9724_v9, %v430_v7  ;;  %v433_v15 = vsub.f32 %v9169_v47, %v9698_v24  ;;  %v434_v25 = vsub.f32 %v9176_v50, %v9698_v24 }
  0xcc   :  { %14250 = vst [vmem:[#allocation32_spill] sm:$0xff] %v9777_v19  ;;  %v9782_v38 = vpack.c.bf16 %v556_v14, %v555_v8  ;;  %v495_v35 = vmul.f32 %v9724_v9, %v431_v13  ;;  %v496_v42 = vmul.f32 %v9724_v9, %v432_v16  ;;  %v435_v31 = vsub.f32 %v9183_v53, %v9698_v24  ;;  %v14256_v16 = vld [vmem:[#allocation5_spill] sm:$0xff] }
  0xcd   :  { %7696 = vmatpush3.bf16.msra.mxu0 %v8882_v27  ;;  %v557_v45 = vmax.f32 %v493_v22, 0.0  ;;  %v558_v36 = vmax.f32 %v494_v37, 0.0  ;;  %v436_v60 = vsub.f32 %v9190_v56, %v9698_v24  ;;  %v497_v0 = vmul.f32 %v9724_v9, %v433_v15  ;;  %v14259_v15 = vld [vmem:[#allocation6_spill] sm:$0xff] }
  0xce   :  { %14251 = vst [vmem:[#allocation33_spill] sm:$0xff] %v9782_v38  ;;  %v559_v28 = vmax.f32 %v495_v35, 0.0  ;;  %v560_v2 = vmax.f32 %v496_v42, 0.0  ;;  %v498_v47 = vmul.f32 %v9724_v9, %v434_v25  ;;  %v499_v63 = vmul.f32 %v9724_v9, %v435_v31 }
  0xcf   :  { %v9800_v34 = vpack.c.bf16 %v558_v36, %v557_v45  ;;  %v500_v53 = vmul.f32 %v9724_v9, %v436_v60  ;;  %v561_v56 = vmax.f32 %v497_v0, 0.0  ;;  %v437_v61 = vsub.f32 %v9195_v58, %v9698_v24  ;;  %v14261_v0 = vld [vmem:[#allocation8_spill] sm:$0xff] }
  0xd0   :  { %7068 = vmatmul.mubr.msk.bf16.gmra.mrb[4].mxu0 %vm80_vm0, %v9744_v62  ;;  %v9805_v50 = vpack.c.bf16 %v560_v2, %v559_v28  ;;  %v562_v32 = vmax.f32 %v498_v47, 0.0  ;;  %v438_v40 = vsub.f32 %v9214_v10, %v9698_v24  ;;  %v563_v3 = vmax.f32 %v499_v63, 0.0  ;;  %v14260_v28 = vld [vmem:[#allocation7_spill] sm:$0xff]  ;;  %v14262_v63 = vld [vmem:[#allocation9_spill] sm:$0xff] }
  0xd1   :  { %838 = vmatprep.mubr.bf16.mxu0 %v14248_v30  ;;  %14252 = vst [vmem:[#allocation34_spill] sm:$0xff] %v9800_v34  ;;  %v564_v27 = vmax.f32 %v500_v53, 0.0  ;;  %v439_v21 = vsub.f32 %v9226_v20, %v9698_v24  ;;  %v440_v54 = vsub.f32 %v9236_v29, %v9698_v24  ;;  %v501_v23 = vmul.f32 %v9724_v9, %v437_v61 }
  0xd2   :  { %7770 = vmatmul.mubr.msk.bf16.gmra.mrb[4].mxu1 %vm80_vm0, %v9777_v19  ;;  %14253 = vst [vmem:[#allocation35_spill] sm:$0xff] %v9805_v50  ;;  %v9823_v52 = vpack.c.bf16 %v562_v32, %v561_v56  ;;  %v502_v58 = vmul.f32 %v9724_v9, %v438_v40  ;;  %v441_v5 = vsub.f32 %v9246_v39, %v9698_v24 }
  0xd3   :  { %7773 = vmatprep.mubr.msk.bf16.mxu1 %vm80_vm0, %v9782_v38  ;;  %v9828_v10 = vpack.c.bf16 %v564_v27, %v563_v3  ;;  %v503_v59 = vmul.f32 %v9724_v9, %v439_v21  ;;  %v504_v20 = vmul.f32 %v9724_v9, %v440_v54  ;;  %v565_v29 = vmax.f32 %v501_v23, 0.0 }
  0xd4   :  { %14254 = vst [vmem:[#allocation36_spill] sm:$0xff] %v9823_v52  ;;  %v566_v6 = vmax.f32 %v502_v58, 0.0  ;;  %v442_v7 = vsub.f32 %v9256_v48, %v9698_v24  ;;  %v443_v13 = vsub.f32 %v9266_v57, %v9698_v24  ;;  %v444_v22 = vsub.f32 %v14256_v16, %v9698_v24 }
  0xd5   :  { %14255 = vst [vmem:[#allocation37_spill] sm:$0xff] %v9828_v10  ;;  %v567_v8 = vmax.f32 %v503_v59, 0.0  ;;  %v568_v14 = vmax.f32 %v504_v20, 0.0  ;;  %v505_v35 = vmul.f32 %v9724_v9, %v441_v5  ;;  %v445_v25 = vsub.f32 %v14259_v15, %v9698_v24  ;;  %v14263_v59 = vld [vmem:[#allocation10_spill] sm:$0xff] }
  0xd6   :  { %v9846_v37 = vpack.c.bf16 %v566_v6, %v565_v29  ;;  %v506_v39 = vmul.f32 %v9724_v9, %v442_v7  ;;  %v507_v42 = vmul.f32 %v9724_v9, %v443_v13  ;;  %v508_v57 = vmul.f32 %v9724_v9, %v444_v22  ;;  %v14264_v29 = vld [vmem:[#allocation11_spill] sm:$0xff]  ;;  %v14265_v13 = vld [vmem:[#allocation12_spill] sm:$0xff]  ;;  %v14266_v22 = vld [vmem:[#allocation13_spill] sm:$0xff] }
  0xd7   :  { %v9851_v48 = vpack.c.bf16 %v568_v14, %v567_v8  ;;  %v569_v45 = vmax.f32 %v505_v35, 0.0  ;;  %v446_v2 = vsub.f32 %v14260_v28, %v9698_v24  ;;  %v447_v47 = vsub.f32 %v14261_v0, %v9698_v24 }
  0xd8   :  { %7069 = vmatmul.mubr.msk.bf16.gmra.mrb[8].mxu0 %vm80_vm0, %v9751_v49  ;;  %14257 = vst [vmem:[#allocation5_spill] sm:$0xff] %v9846_v37  ;;  %v570_v36 = vmax.f32 %v506_v39, 0.0  ;;  %v571_v31 = vmax.f32 %v507_v42, 0.0  ;;  %v572_v60 = vmax.f32 %v508_v57, 0.0  ;;  %v448_v53 = vsub.f32 %v14262_v63, %v9698_v24 }
  0xd9   :  { %848 = vmatprep.mubr.bf16.mxu0 %v14248_v30  ;;  %14258 = vst [vmem:[#allocation38_spill] sm:$0xff] %v9851_v48  ;;  %v509_v32 = vmul.f32 %v9724_v9, %v445_v25  ;;  %v510_v61 = vmul.f32 %v9724_v9, %v446_v2  ;;  %v511_v3 = vmul.f32 %v9724_v9, %v447_v47 }
  0xda   :  { %7774 = vmatmul.mubr.msk.bf16.gmra.mrb[8].mxu1 %vm80_vm0, %v9800_v34  ;;  %v9869_v56 = vpack.c.bf16 %v570_v36, %v569_v45  ;;  %v9874_v40 = vpack.c.bf16 %v572_v60, %v571_v31  ;;  %v512_v27 = vmul.f32 %v9724_v9, %v448_v53  ;;  %v451_v20 = vsub.f32 %v14263_v59, %v9698_v24  ;;  %v14267_v53 = vld [vmem:[#allocation14_spill] sm:$0xff] }
  0xdb   :  { %7777 = vmatprep.mubr.msk.bf16.mxu1 %vm80_vm0, %v9805_v50  ;;  %v573_v21 = vmax.f32 %v509_v32, 0.0  ;;  %v574_v54 = vmax.f32 %v510_v61, 0.0  ;;  %v575_v23 = vmax.f32 %v511_v3, 0.0  ;;  %v452_v6 = vsub.f32 %v14264_v29, %v9698_v24 }
  0xdc   :  { %v576_v58 = vmax.f32 %v512_v27, 0.0  ;;  %v515_v8 = vmul.f32 %v9724_v9, %v451_v20  ;;  %v453_v16 = vsub.f32 %v14265_v13, %v9698_v24  ;;  %v454_v35 = vsub.f32 %v14266_v22, %v9698_v24 }
  0xdd   :  { %v9888_v5 = vpack.c.bf16 %v574_v54, %v573_v21  ;;  %v516_v14 = vmul.f32 %v9724_v9, %v452_v6  ;;  %v455_v57 = vsub.f32 %v9386_v11, %v9698_v24  ;;  %v456_v45 = vsub.f32 %v9396_v26, %v9698_v24 }
  0xde   :  { %v9891_v7 = vpack.c.bf16 %v576_v58, %v575_v23  ;;  %v579_v39 = vmax.f32 %v515_v8, 0.0  ;;  %v517_v36 = vmul.f32 %v9724_v9, %v453_v16  ;;  %v518_v15 = vmul.f32 %v9724_v9, %v454_v35  ;;  %v14268_v58 = vld [vmem:[#allocation15_spill] sm:$0xff]  ;;  %v14269_v8 = vld [vmem:[#allocation16_spill] sm:$0xff] }
  0xdf   :  { %v580_v42 = vmax.f32 %v516_v14, 0.0  ;;  %v519_v28 = vmul.f32 %v9724_v9, %v455_v57  ;;  %v520_v2 = vmul.f32 %v9724_v9, %v456_v45  ;;  %v457_v31 = vsub.f32 %v9406_v41, %v9698_v24  ;;  %v14270_v45 = vld [vmem:[#allocation17_spill] sm:$0xff] }
  0xe0   :  { %7070 = vmatmul.mubr.msk.bf16.gmra.mrb[12].mxu0 %vm80_vm0, %v9759_v4  ;;  %v581_v11 = vmax.f32 %v517_v36, 0.0  ;;  %v582_v26 = vmax.f32 %v518_v15, 0.0  ;;  %v458_v60 = vsub.f32 %v9416_v55, %v9698_v24  ;;  %v459_v63 = vsub.f32 %v9426_v12, %v9698_v24 }
  0xe1   :  { %858 = vmatprep.mubr.bf16.mxu0 %v14248_v30  ;;  %v9912_v25 = vpack.c.bf16 %v580_v42, %v579_v39  ;;  %v583_v0 = vmax.f32 %v519_v28, 0.0  ;;  %v584_v47 = vmax.f32 %v520_v2, 0.0  ;;  %v460_v32 = vsub.f32 %v14267_v53, %v9698_v24 }
  0xe2   :  { %7778 = vmatmul.mubr.msk.bf16.gmra.mrb[12].mxu1 %vm80_vm0, %v9823_v52  ;;  %v9929_v61 = vpack.c.bf16 %v582_v26, %v581_v11  ;;  %v521_v3 = vmul.f32 %v9724_v9, %v457_v31  ;;  %v522_v41 = vmul.f32 %v9724_v9, %v458_v60  ;;  %v523_v27 = vmul.f32 %v9724_v9, %v459_v63  ;;  %v14271_v11 = vld [vmem:[#allocation18_spill] sm:$0xff]  ;;  %v14274_v63 = vld [vmem:[#allocation19_spill] sm:$0xff] }
  0xe3   :  { %7781 = vmatprep.mubr.msk.bf16.mxu1 %vm80_vm0, %v9828_v10  ;;  %v9934_v55 = vpack.c.bf16 %v584_v47, %v583_v0  ;;  %v524_v12 = vmul.f32 %v9724_v9, %v460_v32  ;;  %v461_v23 = vsub.f32 %v9446_v51, %v9698_v24  ;;  %v462_v59 = vsub.f32 %v14268_v58, %v9698_v24  ;;  %v14275_v32 = vld [vmem:[#allocation20_spill] sm:$0xff] }
  0xe4   :  { %v585_v21 = vmax.f32 %v521_v3, 0.0  ;;  %v586_v54 = vmax.f32 %v522_v41, 0.0  ;;  %v587_v20 = vmax.f32 %v523_v27, 0.0  ;;  %v463_v6 = vsub.f32 %v9466_v33, %v9698_v24 }
  0xe5   :  { %v588_v29 = vmax.f32 %v524_v12, 0.0  ;;  %v464_v14 = vsub.f32 %v14269_v8, %v9698_v24  ;;  %v525_v16 = vmul.f32 %v9724_v9, %v461_v23  ;;  %v526_v51 = vmul.f32 %v9724_v9, %v462_v59 }
  0xe6   :  { %v9952_v13 = vpack.c.bf16 %v586_v54, %v585_v21  ;;  %v527_v35 = vmul.f32 %v9724_v9, %v463_v6  ;;  %v465_v57 = vsub.f32 %v9486_v1, %v9698_v24  ;;  %v466_v36 = vsub.f32 %v14270_v45, %v9698_v24  ;;  %v14276_v54 = vld [vmem:[#allocation21_spill] sm:$0xff] }
  0xe7   :  { %v9957_v22 = vpack.c.bf16 %v588_v29, %v587_v20  ;;  %v528_v33 = vmul.f32 %v9724_v9, %v464_v14  ;;  %v589_v39 = vmax.f32 %v525_v16, 0.0  ;;  %v590_v42 = vmax.f32 %v526_v51, 0.0 }
  0xe8   :  { %7071 = vmatmul.mubr.msk.bf16.gmra.mrb[16].mxu0 %vm80_vm0, %v9777_v19  ;;  %v591_v15 = vmax.f32 %v527_v35, 0.0  ;;  %v467_v2 = vsub.f32 %v9506_v43, %v9698_v24  ;;  %v468_v26 = vsub.f32 %v14271_v11, %v9698_v24  ;;  %v529_v60 = vmul.f32 %v9724_v9, %v465_v57 }
  0xe9   :  { %868 = vmatprep.mubr.bf16.mxu0 %v14248_v30  ;;  %v592_v28 = vmax.f32 %v528_v33, 0.0  ;;  %v9975_v31 = vpack.c.bf16 %v590_v42, %v589_v39  ;;  %v530_v1 = vmul.f32 %v9724_v9, %v466_v36  ;;  %v469_v53 = vsub.f32 %v14274_v63, %v9698_v24  ;;  %v14280_v36 = vld [vmem:[#allocation22_spill] sm:$0xff]  ;;  %v14284_v63 = vld [vmem:[#allocation24_spill] sm:$0xff] }
  0xea   :  { %7782 = vmatmul.mubr.msk.bf16.gmra.mrb[16].mxu1 %vm80_vm0, %v9846_v37  ;;  %v531_v47 = vmul.f32 %v9724_v9, %v467_v2  ;;  %v532_v43 = vmul.f32 %v9724_v9, %v468_v26  ;;  %v470_v3 = vsub.f32 %v14275_v32, %v9698_v24  ;;  %v593_v41 = vmax.f32 %v529_v60, 0.0  ;;  %v14285_v32 = vld [vmem:[#allocation25_spill] sm:$0xff] }
  0xeb   :  { %7785 = vmatprep.mubr.msk.bf16.mxu1 %vm80_vm0, %v9851_v48  ;;  %14272 = vst [vmem:[#allocation6_spill] sm:$0xff] %v9975_v31  ;;  %v9980_v0 = vpack.c.bf16 %v592_v28, %v591_v15  ;;  %v594_v27 = vmax.f32 %v530_v1, 0.0  ;;  %v471_v23 = vsub.f32 %v14276_v54, %v9698_v24  ;;  %v472_v58 = vsub.f32 %v9556_v17, %v9698_v24  ;;  %v14281_v28 = vld [vmem:[#allocation23_spill] sm:$0xff] }
  0xec   :  { %v595_v12 = vmax.f32 %v531_v47, 0.0  ;;  %v596_v21 = vmax.f32 %v532_v43, 0.0  ;;  %v533_v59 = vmul.f32 %v9724_v9, %v469_v53  ;;  %v534_v20 = vmul.f32 %v9724_v9, %v470_v3 }
  0xed   :  { %14273 = vst [vmem:[#allocation7_spill] sm:$0xff] %v9980_v0  ;;  %v10000_v29 = vpack.c.bf16 %v594_v27, %v593_v41  ;;  %v535_v8 = vmul.f32 %v9724_v9, %v471_v23  ;;  %v536_v14 = vmul.f32 %v9724_v9, %v472_v58  ;;  %v473_v51 = vsub.f32 %v9571_v18, %v9698_v24  ;;  %v14288_v58 = vld [vmem:[#allocation26_spill] sm:$0xff] }
  0xee   :  { %v10003_v6 = vpack.c.bf16 %v596_v21, %v595_v12  ;;  %v597_v17 = vmax.f32 %v533_v59, 0.0  ;;  %v598_v16 = vmax.f32 %v534_v20, 0.0  ;;  %v474_v35 = vsub.f32 %v9584_v44, %v9698_v24  ;;  %v14289_v20 = vld [vmem:[#allocation27_spill] sm:$0xff] }
  0xef   :  { %14277 = vst [vmem:[#allocation8_spill] sm:$0xff] %v10000_v29  ;;  %v599_v33 = vmax.f32 %v535_v8, 0.0  ;;  %v600_v39 = vmax.f32 %v536_v14, 0.0  ;;  %v537_v57 = vmul.f32 %v9724_v9, %v473_v51  ;;  %v475_v15 = vsub.f32 %v14280_v36, %v9698_v24  ;;  %v8925_v14 = vld [vmem:[%s14096_s0 + $0x100] sm:$0xff] }
  0xf0   :  { %7072 = vmatmul.mubr.msk.bf16.gmra.mrb[20].mxu0 %vm80_vm0, %v9782_v38  ;;  %14278 = vst [vmem:[#allocation9_spill] sm:$0xff] %v10003_v6  ;;  %v10015_v42 = vpack.c.bf16 %v598_v16, %v597_v17  ;;  %v538_v45 = vmul.f32 %v9724_v9, %v474_v35  ;;  %v476_v18 = vsub.f32 %v14281_v28, %v9698_v24  ;;  %v8926_v16 = vld [vmem:[%s14096_s0 + $0x108] sm:$0xff] }
  0xf1   :  { %878 = vmatprep.mubr.bf16.mxu0 %v14248_v30  ;;  %v10026_v44 = vpack.c.bf16 %v600_v39, %v599_v33  ;;  %v539_v2 = vmul.f32 %v9724_v9, %v475_v15  ;;  %v601_v26 = vmax.f32 %v537_v57, 0.0  ;;  %v477_v53 = vsub.f32 %v14284_v63, %v9698_v24 }
  0xf2   :  { %7786 = vmatmul.mubr.msk.bf16.gmra.mrb[20].mxu1 %vm80_vm0, %v9869_v56  ;;  %14279 = vst [vmem:[#allocation10_spill] sm:$0xff] %v10015_v42  ;;  %v540_v11 = vmul.f32 %v9724_v9, %v476_v18  ;;  %v602_v60 = vmax.f32 %v538_v45, 0.0  ;;  %v478_v3 = vsub.f32 %v14285_v32, %v9698_v24  ;;  %v479_v59 = vsub.f32 %v14288_v58, %v9698_v24 }
  0xf3   :  { %7789 = vmatprep.mubr.msk.bf16.mxu1 %vm80_vm0, %v9874_v40  ;;  %14282 = vst [vmem:[#allocation11_spill] sm:$0xff] %v10026_v44  ;;  %v603_v1 = vmax.f32 %v539_v2, 0.0  ;;  %v541_v27 = vmul.f32 %v9724_v9, %v477_v53  ;;  %v480_v8 = vsub.f32 %v14289_v20, %v9698_v24  ;;  %v449_v17 = vsub.f32 %v8925_v14, %v9698_v24  ;;  %v8884_v2 = vld [vmem:[%s14097_s1 + $0x20] ss:$12 sps:$4 sm:$0xff]  }
  0xf4   :  { %v604_v47 = vmax.f32 %v540_v11, 0.0  ;;  %v10036_v43 = vpack.c.bf16 %v602_v60, %v601_v26  ;;  %v542_v12 = vmul.f32 %v9724_v9, %v478_v3  ;;  %v450_v51 = vsub.f32 %v8926_v16, %v9698_v24  ;;  %v8883_v24 = vld [vmem:[%s14097_s1 + $0x8] ss:$12 sps:$4 sm:$0xff]   ;;  %v8885_v26 = vld [vmem:[%s14097_s1 + $0x60] ss:$12 sps:$4 sm:$0xff]  }
  0xf5   :  { %v605_v21 = vmax.f32 %v541_v27, 0.0  ;;  %v543_v35 = vmul.f32 %v9724_v9, %v479_v59  ;;  %v544_v33 = vmul.f32 %v9724_v9, %v480_v8  ;;  %v513_v45 = vmul.f32 %v9724_v9, %v449_v17  ;;  %7829 = vmatprep.subr.bf16.mxu1 %v8883_v24  ;;  %v8890_v60 = vld [vmem:[%s14097_s1 + $0x7c] ss:$12 sps:$4 sm:$0xff]  }
  0xf6   :  { %14283 = vst [vmem:[#allocation12_spill] sm:$0xff] %v10036_v43  ;;  %v10043_v41 = vpack.c.bf16 %v604_v47, %v603_v1  ;;  %v606_v54 = vmax.f32 %v542_v12, 0.0  ;;  %v514_v36 = vmul.f32 %v9724_v9, %v450_v51  ;;  %7830 = vmatpush3.bf16.msra.mxu1 %v8883_v24  ;;  %v8887_v9 = vld [vmem:[%s14097_s1 + $0x64] ss:$12 sps:$4 sm:$0xff]  }
  0xf7   :  { %v607_v39 = vmax.f32 %v543_v35, 0.0  ;;  %v608_v57 = vmax.f32 %v544_v33, 0.0  ;;  %v577_v28 = vmax.f32 %v513_v45, 0.0  ;;  %7831 = vmatprep.subr.bf16.mxu1 %v8884_v2  ;;  %1472 = vmatprep.subr.bf16.mxu0 %v8887_v9  ;;  %v8888_v1 = vld [vmem:[%s14097_s1 + $0x78] ss:$12 sps:$4 sm:$0xff]  }
  0xf8   :  { %7073 = vmatmul.mubr.msk.bf16.gmra.mrb[24].mxu0 %vm80_vm0, %v9800_v34  ;;  %14286 = vst [vmem:[#allocation13_spill] sm:$0xff] %v10043_v41  ;;  %v10051_v23 = vpack.c.bf16 %v606_v54, %v605_v21  ;;  %v578_v18 = vmax.f32 %v514_v36, 0.0  ;;  %v8893_v47 = vld [vmem:[%s14097_s1 + $0x4] ss:$12 sps:$4 sm:$0xff]   ;;  %v8891_v45 = vld [vmem:[%s14097_s1] ss:$12 sps:$4 sm:$0xff]  }
  0xf9   :  { %888 = vmatprep.mubr.bf16.mxu0 %v14248_v30  ;;  %v10074_v15 = vpack.c.bf16 %v608_v57, %v607_v39  ;;  %v8896_v9 = vld [vmem:[%s14097_s1 + $0x1c] ss:$12 sps:$4 sm:$0xff]  }
  0xfa   :  { %7790 = vmatmul.mubr.msk.bf16.gmra.mrb[24].mxu1 %vm80_vm0, %v9888_v5  ;;  %14287 = vst [vmem:[#allocation14_spill] sm:$0xff] %v10051_v23  ;;  %v10092_v11 = vpack.c.bf16 %v578_v18, %v577_v28 }
  0xfb   :  { %7793 = vmatprep.mubr.msk.bf16.mxu1 %vm80_vm0, %v9891_v7  ;;  %14290 = vst [vmem:[#allocation15_spill] sm:$0xff] %v10074_v15  ;;  %7832 = vmatpush3.bf16.msra.mxu1 %v8884_v2  ;;  %v8894_v2 = vld [vmem:[%s14097_s1 + $0x18] ss:$12 sps:$4 sm:$0xff]  }
  0xfc   :  { %14291 = vst [vmem:[#allocation16_spill] sm:$0xff] %v10092_v11 }
 0x100   :  { %7074 = vmatmul.mubr.msk.bf16.gmra.mrb[28].mxu0 %vm80_vm0, %v9805_v50 }
 0x101   :  { %898 = vmatprep.mubr.bf16.mxu0 %v14248_v30 }
 0x102   :  { %7794 = vmatmul.mubr.bf16.gmra.mrb[28].mxu1 %v14248_v30 }
 0x103   :  { %7797 = vmatprep.mubr.msk.bf16.mxu1 %vm80_vm0, %v9912_v25 }
 0x108   :  { %7075 = vmatmul.mubr.msk.bf16.gmra.mrb[32].mxu0 %vm80_vm0, %v9823_v52 }
 0x109   :  { %908 = vmatprep.mubr.bf16.mxu0 %v14248_v30 }
 0x10a   :  { %7798 = vmatmul.mubr.msk.bf16.gmra.mrb[32].mxu1 %vm80_vm0, %v9929_v61 }
 0x10b   :  { %7801 = vmatprep.mubr.msk.bf16.mxu1 %vm80_vm0, %v9934_v55 }
 0x110   :  { %7076 = vmatmul.mubr.msk.bf16.gmra.mrb[36].mxu0 %vm80_vm0, %v9828_v10 }
 0x111   :  { %918 = vmatprep.mubr.bf16.mxu0 %v14248_v30 }
 0x112   :  { %7802 = vmatmul.mubr.msk.bf16.gmra.mrb[36].mxu1 %vm80_vm0, %v9952_v13 }
 0x113   :  { %7805 = vmatprep.mubr.msk.bf16.mxu1 %vm80_vm0, %v9957_v22 }
 0x118   :  { %7077 = vmatmul.mubr.msk.bf16.gmra.mrb[40].mxu0 %vm80_vm0, %v9846_v37 }
 0x119   :  { %928 = vmatprep.mubr.bf16.mxu0 %v14248_v30 }
 0x11a   :  { %7806 = vmatmul.mubr.msk.bf16.gmra.mrb[40].mxu1 %vm80_vm0, %v9975_v31 }
 0x11b   :  { %7809 = vmatprep.mubr.msk.bf16.mxu1 %vm80_vm0, %v9980_v0 }
 0x120   :  { %7078 = vmatmul.mubr.msk.bf16.gmra.mrb[44].mxu0 %vm80_vm0, %v9851_v48 }
 0x121   :  { %938 = vmatprep.mubr.bf16.mxu0 %v14248_v30 }
 0x122   :  { %7810 = vmatmul.mubr.msk.bf16.gmra.mrb[44].mxu1 %vm80_vm0, %v10000_v29 }
 0x123   :  { %7813 = vmatprep.mubr.msk.bf16.mxu1 %vm80_vm0, %v10003_v6 }
 0x128   :  { %7079 = vmatmul.mubr.msk.bf16.gmra.mrb[48].mxu0 %vm80_vm0, %v9869_v56 }
 0x129   :  { %948 = vmatprep.mubr.bf16.mxu0 %v14248_v30 }
 0x12a   :  { %7814 = vmatmul.mubr.msk.bf16.gmra.mrb[48].mxu1 %vm80_vm0, %v10015_v42 }
 0x12b   :  { %7817 = vmatprep.mubr.msk.bf16.mxu1 %vm80_vm0, %v10026_v44 }
 0x130   :  { %7080 = vmatmul.mubr.msk.bf16.gmra.mrb[52].mxu0 %vm80_vm0, %v9874_v40 }
 0x131   :  { %958 = vmatprep.mubr.bf16.mxu0 %v14248_v30 }
 0x132   :  { %7818 = vmatmul.mubr.msk.bf16.gmra.mrb[52].mxu1 %vm80_vm0, %v10036_v43 }
 0x133   :  { %7821 = vmatprep.mubr.msk.bf16.mxu1 %vm80_vm0, %v10043_v41 }
 0x138   :  { %7081 = vmatmul.mubr.msk.bf16.gmra.mrb[56].mxu0 %vm80_vm0, %v9888_v5 }
 0x139   :  { %968 = vmatprep.mubr.bf16.mxu0 %v14248_v30 }
 0x13a   :  { %7822 = vmatmul.mubr.msk.bf16.gmra.mrb[56].mxu1 %vm80_vm0, %v10051_v23 }
 0x13b   :  { %7825 = vmatprep.mubr.msk.bf16.mxu1 %vm80_vm0, %v10074_v15 }
 0x140   :  { %7082 = vmatmul.mubr.msk.bf16.gmra.mrb[60].mxu0 %vm80_vm0, %v9891_v7 }
 0x141   :  { %978 = vmatprep.mubr.bf16.mxu0 %v14248_v30 }
 0x142   :  { %7826 = vmatmul.mubr.bf16.gmra.mrb[60].mxu1 %v14248_v30 }
 0x143   :  { %7833 = vmatprep.mubr.bf16.mxu1 %v14248_v30 }
 0x148   :  { %7083 = vmatmul.mubr.msk.bf16.gmra.mrb[64].mxu0 %vm80_vm0, %v10092_v11 }
 0x149   :  { %988 = vmatprep.mubr.bf16.mxu0 %v14248_v30 }
 0x14a   :  { %7834 = vmatmul.mubr.msk.bf16.vlgmr.msra.gmra.mrb[0].mxu1 %vm80_vm0, %v9742_v46 }
 0x14b   :  { %7837 = vmatprep.mubr.msk.bf16.mxu1 %vm80_vm0, %v9744_v62 }
 0x150   :  { %7084 = vmatmul.mubr.msk.bf16.gmra.mrb[68].mxu0 %vm80_vm0, %v9912_v25 }
 0x151   :  { %998 = vmatprep.mubr.bf16.mxu0 %v14248_v30 }
 0x152   :  { %7838 = vmatmul.mubr.msk.bf16.gmra.mrb[4].mxu1 %vm80_vm0, %v9751_v49 }
 0x153   :  { %7841 = vmatprep.mubr.msk.bf16.mxu1 %vm80_vm0, %v9759_v4 }
 0x158   :  { %7085 = vmatmul.mubr.msk.bf16.gmra.mrb[72].mxu0 %vm80_vm0, %v9929_v61 }
 0x159   :  { %1008 = vmatprep.mubr.bf16.mxu0 %v14248_v30 }
 0x15a   :  { %7842 = vmatmul.mubr.msk.bf16.gmra.mrb[8].mxu1 %vm80_vm0, %v9777_v19 }
 0x15b   :  { %7845 = vmatprep.mubr.msk.bf16.mxu1 %vm80_vm0, %v9782_v38 }
 0x160   :  { %7086 = vmatmul.mubr.msk.bf16.gmra.mrb[76].mxu0 %vm80_vm0, %v9934_v55 }
 0x161   :  { %1018 = vmatprep.mubr.bf16.mxu0 %v14248_v30 }
 0x162   :  { %7846 = vmatmul.mubr.msk.bf16.gmra.mrb[12].mxu1 %vm80_vm0, %v9800_v34 }
 0x163   :  { %7849 = vmatprep.mubr.msk.bf16.mxu1 %vm80_vm0, %v9805_v50 }
 0x168   :  { %7087 = vmatmul.mubr.msk.bf16.gmra.mrb[80].mxu0 %vm80_vm0, %v9952_v13 }
 0x169   :  { %1028 = vmatprep.mubr.bf16.mxu0 %v14248_v30 }
 0x16a   :  { %7850 = vmatmul.mubr.msk.bf16.gmra.mrb[16].mxu1 %vm80_vm0, %v9823_v52 }
 0x16b   :  { %7853 = vmatprep.mubr.msk.bf16.mxu1 %vm80_vm0, %v9828_v10 }
 0x170   :  { %7088 = vmatmul.mubr.msk.bf16.gmra.mrb[84].mxu0 %vm80_vm0, %v9957_v22 }
 0x171   :  { %1038 = vmatprep.mubr.bf16.mxu0 %v14248_v30 }
 0x172   :  { %7854 = vmatmul.mubr.msk.bf16.gmra.mrb[20].mxu1 %vm80_vm0, %v9846_v37 }
 0x173   :  { %7857 = vmatprep.mubr.msk.bf16.mxu1 %vm80_vm0, %v9851_v48 }
 0x178   :  { %7089 = vmatmul.mubr.msk.bf16.gmra.mrb[88].mxu0 %vm80_vm0, %v9975_v31 }
 0x179   :  { %1048 = vmatprep.mubr.bf16.mxu0 %v14248_v30 }
 0x17a   :  { %7858 = vmatmul.mubr.msk.bf16.gmra.mrb[24].mxu1 %vm80_vm0, %v9869_v56 }
 0x17b   :  { %7861 = vmatprep.mubr.msk.bf16.mxu1 %vm80_vm0, %v9874_v40 }
 0x180   :  { %7090 = vmatmul.mubr.msk.bf16.gmra.mrb[92].mxu0 %vm80_vm0, %v9980_v0 }
 0x181   :  { %1058 = vmatprep.mubr.bf16.mxu0 %v14248_v30 }
 0x182   :  { %7862 = vmatmul.mubr.msk.bf16.gmra.mrb[28].mxu1 %vm80_vm0, %v9888_v5 }
 0x183   :  { %7865 = vmatprep.mubr.bf16.mxu1 %v14248_v30 }
 0x188   :  { %7091 = vmatmul.mubr.msk.bf16.gmra.mrb[96].mxu0 %vm80_vm0, %v10000_v29 }
 0x189   :  { %1068 = vmatprep.mubr.bf16.mxu0 %v14248_v30 }
 0x18a   :  { %7866 = vmatmul.mubr.msk.bf16.gmra.mrb[32].mxu1 %vm80_vm0, %v10092_v11 }
 0x18b   :  { %7869 = vmatprep.mubr.msk.bf16.mxu1 %vm80_vm0, %v9912_v25 }
 0x190   :  { %7092 = vmatmul.mubr.msk.bf16.gmra.mrb[100].mxu0 %vm80_vm0, %v10003_v6 }
 0x191   :  { %1078 = vmatprep.mubr.bf16.mxu0 %v14248_v30 }
 0x192   :  { %7870 = vmatmul.mubr.msk.bf16.gmra.mrb[36].mxu1 %vm80_vm0, %v9929_v61 }
 0x193   :  { %7873 = vmatprep.mubr.msk.bf16.mxu1 %vm80_vm0, %v9934_v55 }
 0x198   :  { %7093 = vmatmul.mubr.msk.bf16.gmra.mrb[104].mxu0 %vm80_vm0, %v10015_v42 }
 0x199   :  { %1088 = vmatprep.mubr.bf16.mxu0 %v14248_v30 }
 0x19a   :  { %7874 = vmatmul.mubr.msk.bf16.gmra.mrb[40].mxu1 %vm80_vm0, %v9952_v13 }
 0x19b   :  { %7877 = vmatprep.mubr.msk.bf16.mxu1 %vm80_vm0, %v9957_v22 }
 0x1a0   :  { %7094 = vmatmul.mubr.msk.bf16.gmra.mrb[108].mxu0 %vm80_vm0, %v10026_v44 }
 0x1a1   :  { %1098 = vmatprep.mubr.bf16.mxu0 %v14248_v30 }
 0x1a2   :  { %7878 = vmatmul.mubr.msk.bf16.gmra.mrb[44].mxu1 %vm80_vm0, %v9975_v31 }
 0x1a3   :  { %7881 = vmatprep.mubr.msk.bf16.mxu1 %vm80_vm0, %v9980_v0 }
 0x1a8   :  { %7095 = vmatmul.mubr.msk.bf16.gmra.mrb[112].mxu0 %vm80_vm0, %v10036_v43 }
 0x1a9   :  { %1108 = vmatprep.mubr.bf16.mxu0 %v14248_v30 }
 0x1aa   :  { %7882 = vmatmul.mubr.msk.bf16.gmra.mrb[48].mxu1 %vm80_vm0, %v10000_v29 }
 0x1ab   :  { %7885 = vmatprep.mubr.msk.bf16.mxu1 %vm80_vm0, %v10003_v6 }
 0x1b0   :  { %7096 = vmatmul.mubr.msk.bf16.gmra.mrb[116].mxu0 %vm80_vm0, %v10043_v41 }
 0x1b1   :  { %1118 = vmatprep.mubr.bf16.mxu0 %v14248_v30 }
 0x1b2   :  { %7886 = vmatmul.mubr.msk.bf16.gmra.mrb[52].mxu1 %vm80_vm0, %v10015_v42 }
 0x1b3   :  { %7889 = vmatprep.mubr.msk.bf16.mxu1 %vm80_vm0, %v10026_v44 }
 0x1b8   :  { %7097 = vmatmul.mubr.msk.bf16.gmra.mrb[120].mxu0 %vm80_vm0, %v10051_v23 }
 0x1b9   :  { %1128 = vmatprep.mubr.bf16.mxu0 %v14248_v30 }
 0x1ba   :  { %7890 = vmatmul.mubr.msk.bf16.gmra.mrb[56].mxu1 %vm80_vm0, %v10036_v43 }
 0x1bb   :  { %7893 = vmatprep.mubr.msk.bf16.mxu1 %vm80_vm0, %v10043_v41 }
 0x1c0   :  { %7098 = vmatmul.mubr.msk.bf16.gmra.mrb[124].mxu0 %vm80_vm0, %v10074_v15 }
 0x1c1   :  { %7697 = vmatprep.mubr.msk.bf16.mxu0 %vm80_vm0, %v9742_v46 }
 0x1c2   :  { %7894 = vmatmul.mubr.msk.bf16.gmra.mrb[60].mxu1 %vm80_vm0, %v10051_v23 }
 0x1c8   :  { %7698 = vmatmul.mubr.msk.bf16.vlgmr.msra.gmra.mrb[128].mxu0 %vm80_vm0, %v9744_v62 }
 0x1c9   :  { %1473 = vmatpush1.bf16.msra.mxu0 %v8885_v26  ;;  %7701 = vmatprep.mubr.msk.bf16.mxu0 %vm80_vm0, %v9751_v49 }
 0x1ca   :  { %1474 = vmatprep.subr.bf16.mxu0 %v8890_v60 }
 0x1cd   :  { %1475 = vmatpush1.bf16.msra.mxu0 %v8888_v1 }
 0x1ce   :  { %2146 = vmatprep.subr.bf16.mxu0 %v8893_v47 }
 0x1d0   :  { %7702 = vmatmul.mubr.msk.bf16.gmra.mrb[132].mxu0 %vm80_vm0, %v9759_v4 }
 0x1d1   :  { %7705 = vmatprep.mubr.msk.bf16.mxu0 %vm80_vm0, %v9777_v19 }
 0x1d8   :  { %7706 = vmatmul.mubr.msk.bf16.gmra.mrb[136].mxu0 %vm80_vm0, %v9782_v38 }
 0x1d9   :  { %7709 = vmatprep.mubr.msk.bf16.mxu0 %vm80_vm0, %v9800_v34 }
 0x1e0   :  { %7710 = vmatmul.mubr.msk.bf16.gmra.mrb[140].mxu0 %vm80_vm0, %v9805_v50 }
 0x1e1   :  { %7713 = vmatprep.mubr.msk.bf16.mxu0 %vm80_vm0, %v9823_v52 }
 0x1e8   :  { %7714 = vmatmul.mubr.msk.bf16.gmra.mrb[144].mxu0 %vm80_vm0, %v9828_v10 }
 0x1e9   :  { %7717 = vmatprep.mubr.msk.bf16.mxu0 %vm80_vm0, %v9846_v37 }
 0x1f0   :  { %7718 = vmatmul.mubr.msk.bf16.gmra.mrb[148].mxu0 %vm80_vm0, %v9851_v48 }
 0x1f1   :  { %7721 = vmatprep.mubr.msk.bf16.mxu0 %vm80_vm0, %v9869_v56 }
 0x1f8   :  { %7722 = vmatmul.mubr.msk.bf16.gmra.mrb[152].mxu0 %vm80_vm0, %v9874_v40 }
 0x1f9   :  { %7725 = vmatprep.mubr.msk.bf16.mxu0 %vm80_vm0, %v9888_v5 }
 0x200   :  { %7726 = vmatmul.mubr.msk.bf16.gmra.mrb[156].mxu0 %vm80_vm0, %v9891_v7 }
 0x201   :  { %7729 = vmatprep.mubr.msk.bf16.mxu0 %vm80_vm0, %v10092_v11 }
 0x208   :  { %7730 = vmatmul.mubr.msk.bf16.gmra.mrb[160].mxu0 %vm80_vm0, %v9912_v25 }
 0x209   :  { %7733 = vmatprep.mubr.msk.bf16.mxu0 %vm80_vm0, %v9929_v61 }
 0x210   :  { %7734 = vmatmul.mubr.msk.bf16.gmra.mrb[164].mxu0 %vm80_vm0, %v9934_v55 }
 0x211   :  { %7737 = vmatprep.mubr.msk.bf16.mxu0 %vm80_vm0, %v9952_v13 }
 0x218   :  { %7738 = vmatmul.mubr.msk.bf16.gmra.mrb[168].mxu0 %vm80_vm0, %v9957_v22 }
 0x219   :  { %7741 = vmatprep.mubr.msk.bf16.mxu0 %vm80_vm0, %v9975_v31 }
 0x21d   :  { %v10260_v63 = vpop.f32.mrb[0].mxu1 }
 0x21e   :  { %v10262_v53 = vpop.f32.mrb[1].mxu1 }
 0x21f   :  { %v10264_v32 = vpop.f32.mrb[2].mxu1 }
 0x220   :  { %7742 = vmatmul.mubr.msk.bf16.gmra.mrb[172].mxu0 %vm80_vm0, %v9980_v0  ;;  %v10268_v3 = vpop.f32.mrb[3].mxu1 }
 0x221   :  { %7745 = vmatprep.mubr.msk.bf16.mxu0 %vm80_vm0, %v10000_v29 }
 0x225   :  { %v10272_v27 = vpop.f32.mrb[4].mxu1 }
 0x226   :  { %v10274_v12 = vpop.f32.mrb[5].mxu1 }
 0x227   :  { %v10276_v21 = vpop.f32.mrb[6].mxu1 }
 0x228   :  { %7746 = vmatmul.mubr.msk.bf16.gmra.mrb[176].mxu0 %vm80_vm0, %v10003_v6  ;;  %v10280_v54 = vpop.f32.mrb[7].mxu1 }
 0x229   :  { %7749 = vmatprep.mubr.msk.bf16.mxu0 %vm80_vm0, %v10015_v42 }
 0x22d   :  { %v10284_v58 = vpop.f32.mrb[8].mxu1 }
 0x22e   :  { %v10286_v59 = vpop.f32.mrb[9].mxu1 }
 0x22f   :  { %v10288_v20 = vpop.f32.mrb[10].mxu1 }
 0x230   :  { %7750 = vmatmul.mubr.msk.bf16.gmra.mrb[180].mxu0 %vm80_vm0, %v10026_v44  ;;  %v10292_v8 = vpop.f32.mrb[11].mxu1 }
 0x231   :  { %7753 = vmatprep.mubr.msk.bf16.mxu0 %vm80_vm0, %v10036_v43 }
 0x235   :  { %v10296_v14 = vpop.f32.mrb[12].mxu1 }
 0x236   :  { %v10298_v17 = vpop.f32.mrb[13].mxu1 }
 0x237   :  { %v10300_v16 = vpop.f32.mrb[14].mxu1 }
 0x238   :  { %7754 = vmatmul.mubr.msk.bf16.gmra.mrb[184].mxu0 %vm80_vm0, %v10043_v41  ;;  %v10304_v51 = vpop.f32.mrb[15].mxu1 }
 0x239   :  { %7757 = vmatprep.mubr.msk.bf16.mxu0 %vm80_vm0, %v10051_v23 }
 0x23d   :  { %v10308_v35 = vpop.f32.mrb[16].mxu1 }
 0x23e   :  { %v10310_v33 = vpop.f32.mrb[17].mxu1 }
 0x23f   :  { %v10312_v39 = vpop.f32.mrb[18].mxu1 }
 0x240   :  { %7758 = vmatmul.mubr.msk.bf16.gmra.mrb[188].mxu0 %vm80_vm0, %v10074_v15  ;;  %v10316_v57 = vpop.f32.mrb[19].mxu1 }
 0x241   :  { %1504 = vmatprep.mubr.bf16.mxu0 %v14248_v30 }
 0x245   :  { %v10322_v36 = vpop.f32.mrb[20].mxu1 }
 0x246   :  { %v10324_v24 = vpop.f32.mrb[21].mxu1 }
 0x247   :  { %v10326_v28 = vpop.f32.mrb[22].mxu1 }
 0x248   :  { %7145 = vmatmul.mubr.msk.bf16.vlgmr.msra.gmra.mrb[0].mxu0 %vm80_vm0, %v9744_v62  ;;  %v10330_v18 = vpop.f32.mrb[23].mxu1 }
 0x249   :  { %2147 = vmatpush1.bf16.msra.mxu0 %v8891_v45  ;;  %1514 = vmatprep.mubr.bf16.mxu0 %v14248_v30 }
 0x24a   :  { %2148 = vmatprep.subr.bf16.mxu0 %v8896_v9 }
 0x24d   :  { %v10339_v26 = vpop.f32.mrb[24].mxu1  ;;  %2149 = vmatpush1.bf16.msra.mxu0 %v8894_v2 }
 0x24e   :  { %v10341_v60 = vpop.f32.mrb[25].mxu1 }
 0x24f   :  { %v10343_v1 = vpop.f32.mrb[26].mxu1 }
 0x250   :  { %7146 = vmatmul.mubr.msk.bf16.gmra.mrb[4].mxu0 %vm80_vm0, %v9751_v49  ;;  %v10347_v47 = vpop.f32.mrb[27].mxu1 }
 0x251   :  { %1524 = vmatprep.mubr.bf16.mxu0 %v14248_v30 }
 0x255   :  { %v10350_v45 = vpop.f32.mrb[28].mxu1 }
 0x256   :  { %v10352_v11 = vpop.f32.mrb[29].mxu1 }
 0x257   :  { %v10354_v62 = vpop.f32.mrb[30].mxu1 }
 0x258   :  { %7147 = vmatmul.mubr.msk.bf16.gmra.mrb[8].mxu0 %vm80_vm0, %v9759_v4  ;;  %v10358_v2 = vpop.f32.mrb[31].mxu1 }
 0x259   :  { %1534 = vmatprep.mubr.bf16.mxu0 %v14248_v30 }
 0x25d   :  { %v10361_v9 = vpop.f32.mrb[32].mxu1 }
 0x25e   :  { %v10363_v49 = vpop.f32.mrb[33].mxu1 }
 0x25f   :  { %v10365_v46 = vpop.f32.mrb[34].mxu1 }
 0x260   :  { %7148 = vmatmul.mubr.msk.bf16.gmra.mrb[12].mxu0 %vm80_vm0, %v9777_v19  ;;  %v10369_v15 = vpop.f32.mrb[35].mxu1 }
 0x261   :  { %1544 = vmatprep.mubr.bf16.mxu0 %v14248_v30 }
 0x265   :  { %v10372_v23 = vpop.f32.mrb[36].mxu1 }
 0x266   :  { %v10374_v4 = vpop.f32.mrb[37].mxu1 }
 0x267   :  { %v10376_v41 = vpop.f32.mrb[38].mxu1 }
 0x268   :  { %7149 = vmatmul.mubr.msk.bf16.gmra.mrb[16].mxu0 %vm80_vm0, %v9782_v38  ;;  %v10380_v43 = vpop.f32.mrb[39].mxu1 }
 0x269   :  { %1554 = vmatprep.mubr.bf16.mxu0 %v14248_v30 }
 0x26d   :  { %v10383_v44 = vpop.f32.mrb[40].mxu1 }
 0x26e   :  { %v10385_v19 = vpop.f32.mrb[41].mxu1 }
 0x26f   :  { %14292 = vst [vmem:[#allocation17_spill] sm:$0xff] %v10385_v19  ;;  %v10387_v42 = vpop.f32.mrb[42].mxu1 }
 0x270   :  { %14293 = vst [vmem:[#allocation18_spill] sm:$0xff] %v10387_v42  ;;  %7150 = vmatmul.mubr.msk.bf16.gmra.mrb[20].mxu0 %vm80_vm0, %v9800_v34  ;;  %v10391_v6 = vpop.f32.mrb[43].mxu1 }
 0x271   :  { %14294 = vst [vmem:[#allocation19_spill] sm:$0xff] %v10391_v6  ;;  %1564 = vmatprep.mubr.bf16.mxu0 %v14248_v30 }
 0x275   :  { %v10394_v29 = vpop.f32.mrb[44].mxu1 }
 0x276   :  { %14295 = vst [vmem:[#allocation20_spill] sm:$0xff] %v10394_v29  ;;  %v10396_v38 = vpop.f32.mrb[45].mxu1 }
 0x277   :  { %14296 = vst [vmem:[#allocation21_spill] sm:$0xff] %v10396_v38  ;;  %v10398_v0 = vpop.f32.mrb[46].mxu1 }
 0x278   :  { %14297 = vst [vmem:[#allocation22_spill] sm:$0xff] %v10398_v0  ;;  %7151 = vmatmul.mubr.msk.bf16.gmra.mrb[24].mxu0 %vm80_vm0, %v9805_v50  ;;  %v10402_v31 = vpop.f32.mrb[47].mxu1 }
 0x279   :  { %14298 = vst [vmem:[#allocation23_spill] sm:$0xff] %v10402_v31  ;;  %1574 = vmatprep.mubr.bf16.mxu0 %v14248_v30 }
 0x27d   :  { %v10405_v42 = vpop.f32.mrb[48].mxu1 }
 0x27e   :  { %14299 = vst [vmem:[#allocation24_spill] sm:$0xff] %v10405_v42  ;;  %v10407_v34 = vpop.f32.mrb[49].mxu1 }
 0x27f   :  { %14300 = vst [vmem:[#allocation25_spill] sm:$0xff] %v10407_v34  ;;  %v10409_v6 = vpop.f32.mrb[50].mxu1 }
 0x280   :  { %14301 = vst [vmem:[#allocation26_spill] sm:$0xff] %v10409_v6  ;;  %7152 = vmatmul.mubr.msk.bf16.gmra.mrb[28].mxu0 %vm80_vm0, %v9823_v52  ;;  %v10413_v29 = vpop.f32.mrb[51].mxu1 }
 0x281   :  { %14302 = vst [vmem:[#allocation27_spill] sm:$0xff] %v10413_v29  ;;  %1584 = vmatprep.mubr.bf16.mxu0 %v14248_v30 }
 0x285   :  { %v10416_v0 = vpop.f32.mrb[52].mxu1 }
 0x286   :  { %14303 = vst [vmem:[#allocation39_spill] sm:$0xff] %v10416_v0  ;;  %v10418_v50 = vpop.f32.mrb[53].mxu1 }
 0x287   :  { %14304 = vst [vmem:[#allocation40_spill] sm:$0xff] %v10418_v50  ;;  %v10420_v31 = vpop.f32.mrb[54].mxu1 }
 0x288   :  { %14305 = vst [vmem:[#allocation41_spill] sm:$0xff] %v10420_v31  ;;  %7153 = vmatmul.mubr.msk.bf16.gmra.mrb[32].mxu0 %vm80_vm0, %v9828_v10  ;;  %v10424_v42 = vpop.f32.mrb[55].mxu1 }
 0x289   :  { %14306 = vst [vmem:[#allocation42_spill] sm:$0xff] %v10424_v42  ;;  %1594 = vmatprep.mubr.bf16.mxu0 %v14248_v30  ;;  %v2980_v42 = vlaneseq }
 0x28d   :  { %v10427_v6 = vpop.f32.mrb[56].mxu1 }
 0x28e   :  { %14307 = vst [vmem:[#allocation43_spill] sm:$0xff] %v10427_v6  ;;  %v10429_v52 = vpop.f32.mrb[57].mxu1 }
 0x28f   :  { %14308 = vst [vmem:[#allocation44_spill] sm:$0xff] %v10429_v52  ;;  %v10431_v29 = vpop.f32.mrb[58].mxu1 }
 0x290   :  { %14309 = vst [vmem:[#allocation45_spill] sm:$0xff] %v10431_v29  ;;  %7154 = vmatmul.mubr.msk.bf16.gmra.mrb[36].mxu0 %vm80_vm0, %v9846_v37  ;;  %v10435_v0 = vpop.f32.mrb[59].mxu1  ;;  %v10449_v37 = vshrl.u32 %v2980_v42, 7 }
 0x291   :  { %14310 = vst [vmem:[#allocation46_spill] sm:$0xff] %v10435_v0  ;;  %1604 = vmatprep.mubr.bf16.mxu0 %v14248_v30 }
 0x292   :  { %14315 = vst [vmem:[#allocation51_spill] sm:$0xff] %v10449_v37  ;;  %vm3244_vm1 = vcmp.lt.s32.totalorder %v10449_v37, 7  ;;  %vm3049_vm2 = vcmp.lt.s32.totalorder %v10449_v37, 1  ;;  %vm2983_vm3 = vcmp.gt.s32.totalorder %v10449_v37, 0 }
 0x295   :  { %v10438_v31 = vpop.f32.mrb[60].mxu1 }
 0x296   :  { %14311 = vst [vmem:[#allocation47_spill] sm:$0xff] %v10438_v31  ;;  %v10440_v10 = vpop.f32.mrb[61].mxu1 }
 0x297   :  { %14312 = vst [vmem:[#allocation48_spill] sm:$0xff] %v10440_v10  ;;  %v10442_v50 = vpop.f32.mrb[62].mxu1 }
 0x298   :  { %14313 = vst [vmem:[#allocation49_spill] sm:$0xff] %v10442_v50  ;;  %7155 = vmatmul.mubr.msk.bf16.gmra.mrb[40].mxu0 %vm80_vm0, %v9851_v48  ;;  %v10446_v52 = vpop.f32.mrb[63].mxu1 }
 0x299   :  { %14314 = vst [vmem:[#allocation50_spill] sm:$0xff] %v10446_v52  ;;  %1614 = vmatprep.mubr.bf16.mxu0 %v14248_v30 }
 0x29b   :  { %v7699_v29 = vpop.f32.mrb[128].mxu0 }
 0x29c   :  { %v2542_v0 = vadd.f32 %v10260_v63, %v7699_v29  ;;  %v1173_v6 = vpop.f32.mrb[129].mxu0 }
 0x29d   :  { %v2534_v31 = vadd.f32 %v10262_v53, %v1173_v6  ;;  %v7700_v34 = vpop.f32.mrb[130].mxu0 }
 0x29e   :  { %v2545_v10 = vadd.f32 %v10264_v32, %v7700_v34  ;;  %v1176_v38 = vpop.f32.mrb[131].mxu0  ;;  %v3181_v50 = vrot.slane %v2542_v0, 1 }
 0x29f   :  { %v2537_v48 = vadd.f32 %v10268_v3, %v1176_v38  ;;  %v3180_v42 = vrot.slane %v2534_v31, 1 }
 0x2a0   :  { %v3213_v52 = vrot.slane %v2545_v10, 1  ;;  %7156 = vmatmul.mubr.msk.bf16.gmra.mrb[44].mxu0 %vm80_vm0, %v9869_v56 }
 0x2a1   :  { %v3212_v19 = vrot.slane %v2537_v48, 1  ;;  %1624 = vmatprep.mubr.bf16.mxu0 %v14248_v30 }
 0x2a2   :  { %v10461_v29 = vsel %vm3244_vm1, %v3181_v50, %v3213_v52  ;;  %v10465_v34 = vsel %vm3244_vm1, %v3213_v52, %v3181_v50 }
 0x2a3   :  { %14316 = vst [vmem:[#allocation52_spill] sm:$0xff] %v10461_v29  ;;  %14317 = vst [vmem:[#allocation53_spill] sm:$0xff] %v10465_v34  ;;  %v10469_v38 = vsel %vm3244_vm1, %v3180_v42, %v3212_v19  ;;  %v7703_v10 = vpop.f32.mrb[132].mxu0  ;;  %v10473_v0 = vsel %vm3244_vm1, %v3212_v19, %v3180_v42 }
 0x2a4   :  { %v2558_v48 = vadd.f32 %v10272_v27, %v7703_v10  ;;  %v1189_v31 = vpop.f32.mrb[133].mxu0 }
 0x2a5   :  { %v2550_v6 = vadd.f32 %v10274_v12, %v1189_v31  ;;  %v7704_v63 = vpop.f32.mrb[134].mxu0 }
 0x2a6   :  { %v2561_v53 = vadd.f32 %v10276_v21, %v7704_v63  ;;  %v1192_v32 = vpop.f32.mrb[135].mxu0  ;;  %v3183_v52 = vrot.slane %v2558_v48, 1 }
 0x2a7   :  { %v2553_v50 = vadd.f32 %v10280_v54, %v1192_v32  ;;  %v3182_v29 = vrot.slane %v2550_v6, 1 }
 0x2a8   :  { %v3215_v3 = vrot.slane %v2561_v53, 1  ;;  %7157 = vmatmul.mubr.msk.bf16.gmra.mrb[48].mxu0 %vm80_vm0, %v9874_v40 }
 0x2a9   :  { %v3214_v34 = vrot.slane %v2553_v50, 1  ;;  %1634 = vmatprep.mubr.bf16.mxu0 %v14248_v30 }
 0x2aa   :  { %v10484_v19 = vsel %vm3244_vm1, %v3183_v52, %v3215_v3  ;;  %v10488_v27 = vsel %vm3244_vm1, %v3215_v3, %v3183_v52 }
 0x2ab   :  { %v10492_v12 = vsel %vm3244_vm1, %v3182_v29, %v3214_v34  ;;  %v7707_v21 = vpop.f32.mrb[136].mxu0  ;;  %v10496_v54 = vsel %vm3244_vm1, %v3214_v34, %v3182_v29 }
 0x2ac   :  { %v2574_v42 = vadd.f32 %v10284_v58, %v7707_v21  ;;  %v1205_v10 = vpop.f32.mrb[137].mxu0 }
 0x2ad   :  { %v2566_v48 = vadd.f32 %v10286_v59, %v1205_v10  ;;  %v7708_v31 = vpop.f32.mrb[138].mxu0 }
 0x2ae   :  { %v2577_v6 = vadd.f32 %v10288_v20, %v7708_v31  ;;  %v1208_v63 = vpop.f32.mrb[139].mxu0  ;;  %v3185_v32 = vrot.slane %v2574_v42, 1 }
 0x2af   :  { %v2569_v53 = vadd.f32 %v10292_v8, %v1208_v63  ;;  %v3184_v52 = vrot.slane %v2566_v48, 1 }
 0x2b0   :  { %v3217_v50 = vrot.slane %v2577_v6, 1  ;;  %7158 = vmatmul.mubr.msk.bf16.gmra.mrb[52].mxu0 %vm80_vm0, %v9888_v5 }
 0x2b1   :  { %v3216_v3 = vrot.slane %v2569_v53, 1  ;;  %1644 = vmatprep.mubr.bf16.mxu0 %v14248_v30 }
 0x2b2   :  { %v10507_v58 = vsel %vm3244_vm1, %v3185_v32, %v3217_v50  ;;  %v10511_v59 = vsel %vm3244_vm1, %v3217_v50, %v3185_v32 }
 0x2b3   :  { %v10515_v20 = vsel %vm3244_vm1, %v3184_v52, %v3216_v3  ;;  %v7711_v8 = vpop.f32.mrb[140].mxu0  ;;  %v10519_v29 = vsel %vm3244_vm1, %v3216_v3, %v3184_v52 }
 0x2b4   :  { %v2590_v34 = vadd.f32 %v10296_v14, %v7711_v8  ;;  %v1221_v21 = vpop.f32.mrb[141].mxu0 }
 0x2b5   :  { %v2582_v42 = vadd.f32 %v10298_v17, %v1221_v21  ;;  %v7712_v10 = vpop.f32.mrb[142].mxu0 }
 0x2b6   :  { %v2593_v48 = vadd.f32 %v10300_v16, %v7712_v10  ;;  %v1224_v31 = vpop.f32.mrb[143].mxu0  ;;  %v3187_v63 = vrot.slane %v2590_v34, 1 }
 0x2b7   :  { %v2585_v6 = vadd.f32 %v10304_v51, %v1224_v31  ;;  %v3186_v32 = vrot.slane %v2582_v42, 1 }
 0x2b8   :  { %v3219_v53 = vrot.slane %v2593_v48, 1  ;;  %7159 = vmatmul.mubr.msk.bf16.gmra.mrb[56].mxu0 %vm80_vm0, %v9891_v7 }
 0x2b9   :  { %v3218_v50 = vrot.slane %v2585_v6, 1  ;;  %1654 = vmatprep.mubr.bf16.mxu0 %v14248_v30 }
 0x2ba   :  { %v10530_v14 = vsel %vm3244_vm1, %v3187_v63, %v3219_v53  ;;  %v10534_v17 = vsel %vm3244_vm1, %v3219_v53, %v3187_v63 }
 0x2bb   :  { %v10538_v16 = vsel %vm3244_vm1, %v3186_v32, %v3218_v50  ;;  %v7715_v51 = vpop.f32.mrb[144].mxu0  ;;  %v10542_v7 = vsel %vm3244_vm1, %v3218_v50, %v3186_v32 }
 0x2bc   :  { %v2606_v52 = vadd.f32 %v10308_v35, %v7715_v51  ;;  %v1237_v3 = vpop.f32.mrb[145].mxu0 }
 0x2bd   :  { %v2598_v8 = vadd.f32 %v10310_v33, %v1237_v3  ;;  %v7716_v34 = vpop.f32.mrb[146].mxu0 }
 0x2be   :  { %v2609_v21 = vadd.f32 %v10312_v39, %v7716_v34  ;;  %v1240_v42 = vpop.f32.mrb[147].mxu0  ;;  %v3189_v48 = vrot.slane %v2606_v52, 1 }
 0x2bf   :  { %v2601_v10 = vadd.f32 %v10316_v57, %v1240_v42  ;;  %v3188_v6 = vrot.slane %v2598_v8, 1 }
 0x2c0   :  { %v3221_v31 = vrot.slane %v2609_v21, 1  ;;  %1655 = vmatmul.mubr.bf16.gmra.mrb[60].mxu0 %v14248_v30 }
 0x2c1   :  { %v3220_v63 = vrot.slane %v2601_v10, 1  ;;  %1664 = vmatprep.mubr.bf16.mxu0 %v14248_v30 }
 0x2c2   :  { %v10552_v35 = vsel %vm3244_vm1, %v3189_v48, %v3221_v31  ;;  %v10556_v33 = vsel %vm3244_vm1, %v3221_v31, %v3189_v48 }
 0x2c3   :  { %v10560_v39 = vsel %vm3244_vm1, %v3188_v6, %v3220_v63  ;;  %v7719_v57 = vpop.f32.mrb[148].mxu0  ;;  %v10564_v53 = vsel %vm3244_vm1, %v3220_v63, %v3188_v6 }
 0x2c4   :  { %v2622_v32 = vadd.f32 %v10322_v36, %v7719_v57  ;;  %v1253_v50 = vpop.f32.mrb[149].mxu0 }
 0x2c5   :  { %v2614_v51 = vadd.f32 %v10324_v24, %v1253_v50  ;;  %v7720_v52 = vpop.f32.mrb[150].mxu0 }
 0x2c6   :  { %v2625_v3 = vadd.f32 %v10326_v28, %v7720_v52  ;;  %v1256_v8 = vpop.f32.mrb[151].mxu0  ;;  %v3191_v21 = vrot.slane %v2622_v32, 1 }
 0x2c7   :  { %v2617_v34 = vadd.f32 %v10330_v18, %v1256_v8  ;;  %v3190_v10 = vrot.slane %v2614_v51, 1 }
 0x2c8   :  { %v3223_v42 = vrot.slane %v2625_v3, 1  ;;  %7160 = vmatmul.mubr.msk.bf16.gmra.mrb[64].mxu0 %vm80_vm0, %v9912_v25 }
 0x2c9   :  { %v3222_v48 = vrot.slane %v2617_v34, 1  ;;  %1674 = vmatprep.mubr.bf16.mxu0 %v14248_v30 }
 0x2ca   :  { %v10575_v36 = vsel %vm3244_vm1, %v3191_v21, %v3223_v42  ;;  %v10579_v24 = vsel %vm3244_vm1, %v3223_v42, %v3191_v21 }
 0x2cb   :  { %v10583_v28 = vsel %vm3244_vm1, %v3190_v10, %v3222_v48  ;;  %v7723_v18 = vpop.f32.mrb[152].mxu0  ;;  %v10587_v31 = vsel %vm3244_vm1, %v3222_v48, %v3190_v10 }
 0x2cc   :  { %v2638_v6 = vadd.f32 %v10339_v26, %v7723_v18  ;;  %v1269_v63 = vpop.f32.mrb[153].mxu0 }
 0x2cd   :  { %v2630_v57 = vadd.f32 %v10341_v60, %v1269_v63  ;;  %v7724_v32 = vpop.f32.mrb[154].mxu0 }
 0x2ce   :  { %v2641_v50 = vadd.f32 %v10343_v1, %v7724_v32  ;;  %v1272_v51 = vpop.f32.mrb[155].mxu0  ;;  %v3193_v3 = vrot.slane %v2638_v6, 1 }
 0x2cf   :  { %v2633_v52 = vadd.f32 %v10347_v47, %v1272_v51  ;;  %v3192_v34 = vrot.slane %v2630_v57, 1 }
 0x2d0   :  { %v3225_v8 = vrot.slane %v2641_v50, 1  ;;  %7161 = vmatmul.mubr.msk.bf16.gmra.mrb[68].mxu0 %vm80_vm0, %v9929_v61 }
 0x2d1   :  { %v3224_v21 = vrot.slane %v2633_v52, 1  ;;  %1684 = vmatprep.mubr.bf16.mxu0 %v14248_v30 }
 0x2d2   :  { %v10598_v26 = vsel %vm3244_vm1, %v3193_v3, %v3225_v8  ;;  %v10602_v60 = vsel %vm3244_vm1, %v3225_v8, %v3193_v3 }
 0x2d3   :  { %v10606_v1 = vsel %vm3244_vm1, %v3192_v34, %v3224_v21  ;;  %v7727_v47 = vpop.f32.mrb[156].mxu0  ;;  %v10610_v42 = vsel %vm3244_vm1, %v3224_v21, %v3192_v34 }
 0x2d4   :  { %v2654_v10 = vadd.f32 %v10350_v45, %v7727_v47  ;;  %v1285_v48 = vpop.f32.mrb[157].mxu0 }
 0x2d5   :  { %v2646_v18 = vadd.f32 %v10352_v11, %v1285_v48  ;;  %v7728_v6 = vpop.f32.mrb[158].mxu0 }
 0x2d6   :  { %v2657_v63 = vadd.f32 %v10354_v62, %v7728_v6  ;;  %v1288_v57 = vpop.f32.mrb[159].mxu0  ;;  %v3195_v50 = vrot.slane %v2654_v10, 1 }
 0x2d7   :  { %v2649_v32 = vadd.f32 %v10358_v2, %v1288_v57  ;;  %v3194_v52 = vrot.slane %v2646_v18, 1 }
 0x2d8   :  { %v3227_v51 = vrot.slane %v2657_v63, 1  ;;  %7162 = vmatmul.mubr.msk.bf16.gmra.mrb[72].mxu0 %vm80_vm0, %v9934_v55 }
 0x2d9   :  { %v3226_v3 = vrot.slane %v2649_v32, 1  ;;  %1694 = vmatprep.mubr.bf16.mxu0 %v14248_v30 }
 0x2da   :  { %v10621_v45 = vsel %vm3244_vm1, %v3195_v50, %v3227_v51  ;;  %v10625_v11 = vsel %vm3244_vm1, %v3227_v51, %v3195_v50 }
 0x2db   :  { %14318 = vst [vmem:[#allocation54_spill] sm:$0xff] %v10621_v45  ;;  %v10629_v62 = vsel %vm3244_vm1, %v3194_v52, %v3226_v3  ;;  %v7731_v2 = vpop.f32.mrb[160].mxu0  ;;  %v10633_v8 = vsel %vm3244_vm1, %v3226_v3, %v3194_v52 }
 0x2dc   :  { %v2670_v34 = vadd.f32 %v10361_v9, %v7731_v2  ;;  %v1301_v21 = vpop.f32.mrb[161].mxu0 }
 0x2dd   :  { %v2662_v47 = vadd.f32 %v10363_v49, %v1301_v21  ;;  %v7732_v10 = vpop.f32.mrb[162].mxu0 }
 0x2de   :  { %v2673_v48 = vadd.f32 %v10365_v46, %v7732_v10  ;;  %v1304_v18 = vpop.f32.mrb[163].mxu0  ;;  %v3197_v63 = vrot.slane %v2670_v34, 1 }
 0x2df   :  { %v2665_v6 = vadd.f32 %v10369_v15, %v1304_v18  ;;  %v3196_v32 = vrot.slane %v2662_v47, 1 }
 0x2e0   :  { %v3229_v57 = vrot.slane %v2673_v48, 1  ;;  %7163 = vmatmul.mubr.msk.bf16.gmra.mrb[76].mxu0 %vm80_vm0, %v9952_v13 }
 0x2e1   :  { %v3228_v50 = vrot.slane %v2665_v6, 1  ;;  %1704 = vmatprep.mubr.bf16.mxu0 %v14248_v30 }
 0x2e2   :  { %v10644_v9 = vsel %vm3244_vm1, %v3197_v63, %v3229_v57  ;;  %v10648_v49 = vsel %vm3244_vm1, %v3229_v57, %v3197_v63 }
 0x2e3   :  { %14319 = vst [vmem:[#allocation55_spill] sm:$0xff] %v10644_v9  ;;  %14320 = vst [vmem:[#allocation56_spill] sm:$0xff] %v10648_v49  ;;  %v10652_v46 = vsel %vm3244_vm1, %v3196_v32, %v3228_v50  ;;  %v7735_v15 = vpop.f32.mrb[164].mxu0  ;;  %v10656_v51 = vsel %vm3244_vm1, %v3228_v50, %v3196_v32 }
 0x2e4   :  { %14321 = vst [vmem:[#allocation57_spill] sm:$0xff] %v10652_v46  ;;  %14322 = vst [vmem:[#allocation58_spill] sm:$0xff] %v10656_v51  ;;  %v2686_v52 = vadd.f32 %v10372_v23, %v7735_v15  ;;  %v1317_v3 = vpop.f32.mrb[165].mxu0  ;;  %v14327_v15 = vld [vmem:[#allocation17_spill] sm:$0xff] }
 0x2e5   :  { %v2678_v2 = vadd.f32 %v10374_v4, %v1317_v3  ;;  %v7736_v34 = vpop.f32.mrb[166].mxu0 }
 0x2e6   :  { %v2689_v21 = vadd.f32 %v10376_v41, %v7736_v34  ;;  %v1320_v47 = vpop.f32.mrb[167].mxu0  ;;  %v3199_v48 = vrot.slane %v2686_v52, 1 }
 0x2e7   :  { %v2681_v10 = vadd.f32 %v10380_v43, %v1320_v47  ;;  %v3198_v6 = vrot.slane %v2678_v2, 1  ;;  %v14328_v2 = vld [vmem:[#allocation18_spill] sm:$0xff]  ;;  %v14329_v47 = vld [vmem:[#allocation19_spill] sm:$0xff] }
 0x2e8   :  { %v3231_v18 = vrot.slane %v2689_v21, 1  ;;  %7164 = vmatmul.mubr.msk.bf16.gmra.mrb[80].mxu0 %vm80_vm0, %v9957_v22 }
 0x2e9   :  { %v3230_v63 = vrot.slane %v2681_v10, 1  ;;  %1714 = vmatprep.mubr.bf16.mxu0 %v14248_v30 }
 0x2ea   :  { %v10667_v23 = vsel %vm3244_vm1, %v3199_v48, %v3231_v18  ;;  %v10671_v4 = vsel %vm3244_vm1, %v3231_v18, %v3199_v48 }
 0x2eb   :  { %14323 = vst [vmem:[#allocation59_spill] sm:$0xff] %v10667_v23  ;;  %14324 = vst [vmem:[#allocation60_spill] sm:$0xff] %v10671_v4  ;;  %v10675_v43 = vsel %vm3244_vm1, %v3198_v6, %v3230_v63  ;;  %v7739_v41 = vpop.f32.mrb[168].mxu0  ;;  %v10679_v57 = vsel %vm3244_vm1, %v3230_v63, %v3198_v6  ;;  %v14330_v23 = vld [vmem:[#allocation6_spill] sm:$0xff] }
 0x2ec   :  { %14325 = vst [vmem:[#allocation61_spill] sm:$0xff] %v10675_v43  ;;  %14326 = vst [vmem:[#allocation62_spill] sm:$0xff] %v10679_v57  ;;  %v2702_v32 = vadd.f32 %v10383_v44, %v7739_v41  ;;  %v1333_v50 = vpop.f32.mrb[169].mxu0  ;;  %v14339_v57 = vld [vmem:[#allocation7_spill] sm:$0xff] }
 0x2ed   :  { %v2694_v52 = vadd.f32 %v14327_v15, %v1333_v50  ;;  %v7740_v3 = vpop.f32.mrb[170].mxu0  ;;  %v14335_v50 = vld [vmem:[#allocation20_spill] sm:$0xff] }
 0x2ee   :  { %v2705_v34 = vadd.f32 %v14328_v2, %v7740_v3  ;;  %v1336_v21 = vpop.f32.mrb[171].mxu0  ;;  %v3201_v48 = vrot.slane %v2702_v32, 1  ;;  %v14336_v3 = vld [vmem:[#allocation21_spill] sm:$0xff] }
 0x2ef   :  { %v2697_v10 = vadd.f32 %v14329_v47, %v1336_v21  ;;  %v3200_v4 = vrot.slane %v2694_v52, 1  ;;  %v14337_v21 = vld [vmem:[#allocation22_spill] sm:$0xff] }
 0x2f0   :  { %v3233_v18 = vrot.slane %v2705_v34, 1  ;;  %7165 = vmatmul.mubr.msk.bf16.gmra.mrb[84].mxu0 %vm80_vm0, %v14330_v23 }
 0x2f1   :  { %v3232_v43 = vrot.slane %v2697_v10, 1  ;;  %1724 = vmatprep.mubr.bf16.mxu0 %v14248_v30 }
 0x2f2   :  { %v10690_v44 = vsel %vm3244_vm1, %v3201_v48, %v3233_v18  ;;  %v10694_v6 = vsel %vm3244_vm1, %v3233_v18, %v3201_v48  ;;  %v14338_v48 = vld [vmem:[#allocation23_spill] sm:$0xff] }
 0x2f3   :  { %14331 = vst [vmem:[#allocation17_spill] sm:$0xff] %v10690_v44  ;;  %14332 = vst [vmem:[#allocation18_spill] sm:$0xff] %v10694_v6  ;;  %v10698_v63 = vsel %vm3244_vm1, %v3200_v4, %v3232_v43  ;;  %v7743_v41 = vpop.f32.mrb[172].mxu0  ;;  %v10702_v32 = vsel %vm3244_vm1, %v3232_v43, %v3200_v4 }
 0x2f4   :  { %14333 = vst [vmem:[#allocation19_spill] sm:$0xff] %v10698_v63  ;;  %14334 = vst [vmem:[#allocation6_spill] sm:$0xff] %v10702_v32  ;;  %v2718_v15 = vadd.f32 %v14335_v50, %v7743_v41  ;;  %v1349_v52 = vpop.f32.mrb[173].mxu0  ;;  %v14348_v32 = vld [vmem:[#allocation8_spill] sm:$0xff] }
 0x2f5   :  { %v2710_v2 = vadd.f32 %v14336_v3, %v1349_v52  ;;  %v7744_v34 = vpop.f32.mrb[174].mxu0  ;;  %v14344_v52 = vld [vmem:[#allocation24_spill] sm:$0xff] }
 0x2f6   :  { %v2721_v47 = vadd.f32 %v14337_v21, %v7744_v34  ;;  %v1352_v10 = vpop.f32.mrb[175].mxu0  ;;  %v3203_v44 = vrot.slane %v2718_v15, 1  ;;  %v14345_v34 = vld [vmem:[#allocation25_spill] sm:$0xff] }
 0x2f7   :  { %v2713_v18 = vadd.f32 %v14338_v48, %v1352_v10  ;;  %v3202_v63 = vrot.slane %v2710_v2, 1  ;;  %v14346_v10 = vld [vmem:[#allocation26_spill] sm:$0xff] }
 0x2f8   :  { %v3235_v6 = vrot.slane %v2721_v47, 1  ;;  %7166 = vmatmul.mubr.msk.bf16.gmra.mrb[88].mxu0 %vm80_vm0, %v14339_v57 }
 0x2f9   :  { %v3234_v9 = vrot.slane %v2713_v18, 1  ;;  %1734 = vmatprep.mubr.bf16.mxu0 %v14248_v30 }
 0x2fa   :  { %v10713_v4 = vsel %vm3244_vm1, %v3203_v44, %v3235_v6  ;;  %v10717_v43 = vsel %vm3244_vm1, %v3235_v6, %v3203_v44  ;;  %v14347_v44 = vld [vmem:[#allocation27_spill] sm:$0xff] }
 0x2fb   :  { %14340 = vst [vmem:[#allocation20_spill] sm:$0xff] %v10713_v4  ;;  %14341 = vst [vmem:[#allocation21_spill] sm:$0xff] %v10717_v43  ;;  %v10721_v41 = vsel %vm3244_vm1, %v3202_v63, %v3234_v9  ;;  %v7747_v50 = vpop.f32.mrb[176].mxu0  ;;  %v10725_v15 = vsel %vm3244_vm1, %v3234_v9, %v3202_v63 }
 0x2fc   :  { %14342 = vst [vmem:[#allocation22_spill] sm:$0xff] %v10721_v41  ;;  %14343 = vst [vmem:[#allocation23_spill] sm:$0xff] %v10725_v15  ;;  %v2734_v3 = vadd.f32 %v14344_v52, %v7747_v50  ;;  %v1365_v2 = vpop.f32.mrb[177].mxu0  ;;  %v14357_v15 = vld [vmem:[#allocation9_spill] sm:$0xff] }
 0x2fd   :  { %v2726_v21 = vadd.f32 %v14345_v34, %v1365_v2  ;;  %v7748_v47 = vpop.f32.mrb[178].mxu0  ;;  %v14353_v2 = vld [vmem:[#allocation39_spill] sm:$0xff] }
 0x2fe   :  { %v2737_v48 = vadd.f32 %v14346_v10, %v7748_v47  ;;  %v1368_v18 = vpop.f32.mrb[179].mxu0  ;;  %v3205_v4 = vrot.slane %v2734_v3, 1  ;;  %v14354_v47 = vld [vmem:[#allocation40_spill] sm:$0xff] }
 0x2ff   :  { %v2729_v6 = vadd.f32 %v14347_v44, %v1368_v18  ;;  %v3204_v41 = vrot.slane %v2726_v21, 1  ;;  %v14355_v18 = vld [vmem:[#allocation41_spill] sm:$0xff] }
 0x300   :  { %v3237_v43 = vrot.slane %v2737_v48, 1  ;;  %7167 = vmatmul.mubr.msk.bf16.gmra.mrb[92].mxu0 %vm80_vm0, %v14348_v32 }
 0x301   :  { %v3236_v49 = vrot.slane %v2729_v6, 1  ;;  %1744 = vmatprep.mubr.bf16.mxu0 %v14248_v30 }
 0x302   :  { %v10736_v9 = vsel %vm3244_vm1, %v3205_v4, %v3237_v43  ;;  %v10740_v63 = vsel %vm3244_vm1, %v3237_v43, %v3205_v4  ;;  %v14356_v4 = vld [vmem:[#allocation42_spill] sm:$0xff] }
 0x303   :  { %14349 = vst [vmem:[#allocation7_spill] sm:$0xff] %v10736_v9  ;;  %14350 = vst [vmem:[#allocation24_spill] sm:$0xff] %v10740_v63  ;;  %v10744_v50 = vsel %vm3244_vm1, %v3204_v41, %v3236_v49  ;;  %v7751_v52 = vpop.f32.mrb[180].mxu0  ;;  %v10748_v3 = vsel %vm3244_vm1, %v3236_v49, %v3204_v41 }
 0x304   :  { %14351 = vst [vmem:[#allocation25_spill] sm:$0xff] %v10744_v50  ;;  %14352 = vst [vmem:[#allocation26_spill] sm:$0xff] %v10748_v3  ;;  %v2750_v34 = vadd.f32 %v14353_v2, %v7751_v52  ;;  %v1381_v21 = vpop.f32.mrb[181].mxu0  ;;  %v14366_v3 = vld [vmem:[#allocation10_spill] sm:$0xff] }
 0x305   :  { %v2742_v10 = vadd.f32 %v14354_v47, %v1381_v21  ;;  %v7752_v48 = vpop.f32.mrb[182].mxu0  ;;  %v14362_v21 = vld [vmem:[#allocation43_spill] sm:$0xff] }
 0x306   :  { %v2753_v44 = vadd.f32 %v14355_v18, %v7752_v48  ;;  %v1384_v6 = vpop.f32.mrb[183].mxu0  ;;  %v3207_v9 = vrot.slane %v2750_v34, 1  ;;  %v14363_v48 = vld [vmem:[#allocation44_spill] sm:$0xff] }
 0x307   :  { %v2745_v43 = vadd.f32 %v14356_v4, %v1384_v6  ;;  %v3206_v50 = vrot.slane %v2742_v10, 1  ;;  %v14364_v6 = vld [vmem:[#allocation45_spill] sm:$0xff] }
 0x308   :  { %v3239_v63 = vrot.slane %v2753_v44, 1  ;;  %7168 = vmatmul.mubr.msk.bf16.gmra.mrb[96].mxu0 %vm80_vm0, %v14357_v15 }
 0x309   :  { %v3238_v46 = vrot.slane %v2745_v43, 1  ;;  %1754 = vmatprep.mubr.bf16.mxu0 %v14248_v30 }
 0x30a   :  { %v10759_v49 = vsel %vm3244_vm1, %v3207_v9, %v3239_v63  ;;  %v10763_v41 = vsel %vm3244_vm1, %v3239_v63, %v3207_v9  ;;  %v14365_v9 = vld [vmem:[#allocation46_spill] sm:$0xff] }
 0x30b   :  { %14358 = vst [vmem:[#allocation27_spill] sm:$0xff] %v10759_v49  ;;  %14359 = vst [vmem:[#allocation8_spill] sm:$0xff] %v10763_v41  ;;  %v10767_v52 = vsel %vm3244_vm1, %v3206_v50, %v3238_v46  ;;  %v7755_v2 = vpop.f32.mrb[184].mxu0  ;;  %v10771_v34 = vsel %vm3244_vm1, %v3238_v46, %v3206_v50 }
 0x30c   :  { %14360 = vst [vmem:[#allocation39_spill] sm:$0xff] %v10767_v52  ;;  %14361 = vst [vmem:[#allocation40_spill] sm:$0xff] %v10771_v34  ;;  %v2766_v47 = vadd.f32 %v14362_v21, %v7755_v2  ;;  %v1397_v10 = vpop.f32.mrb[185].mxu0  ;;  %v14374_v34 = vld [vmem:[#allocation11_spill] sm:$0xff] }
 0x30d   :  { %v2758_v18 = vadd.f32 %v14363_v48, %v1397_v10  ;;  %v7756_v44 = vpop.f32.mrb[186].mxu0  ;;  %v14370_v10 = vld [vmem:[#allocation47_spill] sm:$0xff] }
 0x30e   :  { %v2769_v4 = vadd.f32 %v14364_v6, %v7756_v44  ;;  %v1400_v43 = vpop.f32.mrb[187].mxu0  ;;  %v3209_v49 = vrot.slane %v2766_v47, 1  ;;  %v14371_v44 = vld [vmem:[#allocation48_spill] sm:$0xff] }
 0x30f   :  { %v2761_v63 = vadd.f32 %v14365_v9, %v1400_v43  ;;  %v3208_v52 = vrot.slane %v2758_v18, 1  ;;  %v14372_v43 = vld [vmem:[#allocation49_spill] sm:$0xff] }
 0x310   :  { %v3241_v41 = vrot.slane %v2769_v4, 1  ;;  %7169 = vmatmul.mubr.msk.bf16.gmra.mrb[100].mxu0 %vm80_vm0, %v14366_v3 }
 0x311   :  { %v3240_v51 = vrot.slane %v2761_v63, 1  ;;  %1764 = vmatprep.mubr.bf16.mxu0 %v14248_v30 }
 0x312   :  { %v10782_v46 = vsel %vm3244_vm1, %v3209_v49, %v3241_v41  ;;  %v10786_v50 = vsel %vm3244_vm1, %v3241_v41, %v3209_v49  ;;  %v14373_v49 = vld [vmem:[#allocation50_spill] sm:$0xff] }
 0x313   :  { %14367 = vst [vmem:[#allocation41_spill] sm:$0xff] %v10782_v46  ;;  %14368 = vst [vmem:[#allocation42_spill] sm:$0xff] %v10786_v50  ;;  %v10790_v2 = vsel %vm3244_vm1, %v3208_v52, %v3240_v51  ;;  %v7759_v21 = vpop.f32.mrb[188].mxu0  ;;  %v10794_v47 = vsel %vm3244_vm1, %v3240_v51, %v3208_v52 }
 0x314   :  { %14369 = vst [vmem:[#allocation9_spill] sm:$0xff] %v10790_v2  ;;  %v2782_v48 = vadd.f32 %v14370_v10, %v7759_v21  ;;  %v1413_v18 = vpop.f32.mrb[189].mxu0 }
 0x315   :  { %v2774_v6 = vadd.f32 %v14371_v44, %v1413_v18  ;;  %v7760_v4 = vpop.f32.mrb[190].mxu0  ;;  %v14376_v18 = vld [vmem:[#allocation13_spill] sm:$0xff]  ;;  %v14381_v44 = vld [vmem:[#allocation30_spill] sm:$0xff] }
 0x316   :  { %v2785_v9 = vadd.f32 %v14372_v43, %v7760_v4  ;;  %v1416_v63 = vpop.f32.mrb[191].mxu0  ;;  %v3211_v46 = vrot.slane %v2782_v48, 1  ;;  %v14375_v48 = vld [vmem:[#allocation12_spill] sm:$0xff]  ;;  %v14384_v43 = vld [vmem:[#allocation33_spill] sm:$0xff] }
 0x317   :  { %v2777_v41 = vadd.f32 %v14373_v49, %v1416_v63  ;;  %v3210_v2 = vrot.slane %v2774_v6, 1  ;;  %v14382_v6 = vld [vmem:[#allocation31_spill] sm:$0xff]  ;;  %v14383_v4 = vld [vmem:[#allocation32_spill] sm:$0xff] }
 0x318   :  { %v3243_v50 = vrot.slane %v2785_v9, 1  ;;  %7170 = vmatmul.mubr.msk.bf16.gmra.mrb[104].mxu0 %vm80_vm0, %v14374_v34  ;;  %v14385_v9 = vld [vmem:[#allocation34_spill] sm:$0xff]  ;;  %v14386_v63 = vld [vmem:[#allocation35_spill] sm:$0xff]  ;;  %v14387_v49 = vld [vmem:[#allocation36_spill] sm:$0xff] }
 0x319   :  { %v3242_v45 = vrot.slane %v2777_v41, 1  ;;  %1774 = vmatprep.mubr.bf16.mxu0 %v14248_v30  ;;  %v14388_v41 = vld [vmem:[#allocation37_spill] sm:$0xff] }
 0x31a   :  { %v10805_v51 = vsel %vm3244_vm1, %v3211_v46, %v3243_v50  ;;  %v10809_v52 = vsel %vm3244_vm1, %v3243_v50, %v3211_v46  ;;  %v14377_v46 = vld [vmem:[#allocation14_spill] sm:$0xff]  ;;  %v14378_v50 = vld [vmem:[#allocation15_spill] sm:$0xff] }
 0x31b   :  { %v10813_v21 = vsel %vm3244_vm1, %v3210_v2, %v3242_v45  ;;  %v10817_v10 = vsel %vm3244_vm1, %v3242_v45, %v3210_v2  ;;  %v14379_v45 = vld [vmem:[#allocation28_spill] sm:$0xff]  ;;  %v14380_v2 = vld [vmem:[#allocation29_spill] sm:$0xff] }
 0x320   :  { %7171 = vmatmul.mubr.msk.bf16.gmra.mrb[108].mxu0 %vm80_vm0, %v14375_v48 }
 0x321   :  { %1784 = vmatprep.mubr.bf16.mxu0 %v14248_v30 }
 0x328   :  { %7172 = vmatmul.mubr.msk.bf16.gmra.mrb[112].mxu0 %vm80_vm0, %v14376_v18 }
 0x329   :  { %1794 = vmatprep.mubr.bf16.mxu0 %v14248_v30 }
 0x330   :  { %7173 = vmatmul.mubr.msk.bf16.gmra.mrb[116].mxu0 %vm80_vm0, %v14377_v46 }
 0x331   :  { %1804 = vmatprep.mubr.bf16.mxu0 %v14248_v30 }
 0x338   :  { %7174 = vmatmul.mubr.msk.bf16.gmra.mrb[120].mxu0 %vm80_vm0, %v14378_v50  ;;  %v14389_v50 = vld [vmem:[#allocation5_spill] sm:$0xff] }
 0x339   :  { %1814 = vmatprep.mubr.bf16.mxu0 %v14248_v30 }
 0x340   :  { %1815 = vmatmul.mubr.bf16.gmra.mrb[124].mxu0 %v14248_v30 }
 0x341   :  { %2178 = vmatprep.mubr.bf16.mxu0 %v14248_v30 }
 0x348   :  { %2179 = vmatmul.mubr.bf16.vlgmr.msra.gmra.mrb[0].mxu0 %v14248_v30 }
 0x349   :  { %2188 = vmatprep.mubr.bf16.mxu0 %v14248_v30 }
 0x350   :  { %7211 = vmatmul.mubr.msk.bf16.gmra.mrb[4].mxu0 %vm80_vm0, %v14379_v45  ;;  %v14390_v45 = vld [vmem:[#allocation38_spill] sm:$0xff] }
 0x351   :  { %2198 = vmatprep.mubr.bf16.mxu0 %v14248_v30 }
 0x358   :  { %7212 = vmatmul.mubr.msk.bf16.gmra.mrb[8].mxu0 %vm80_vm0, %v14380_v2  ;;  %v14391_v2 = vld [vmem:[#allocation16_spill] sm:$0xff] }
 0x359   :  { %2208 = vmatprep.mubr.bf16.mxu0 %v14248_v30 }
 0x360   :  { %7213 = vmatmul.mubr.msk.bf16.gmra.mrb[12].mxu0 %vm80_vm0, %v14381_v44 }
 0x361   :  { %2218 = vmatprep.mubr.bf16.mxu0 %v14248_v30 }
 0x368   :  { %7214 = vmatmul.mubr.msk.bf16.gmra.mrb[16].mxu0 %vm80_vm0, %v14382_v6 }
 0x369   :  { %2228 = vmatprep.mubr.bf16.mxu0 %v14248_v30 }
 0x370   :  { %7215 = vmatmul.mubr.msk.bf16.gmra.mrb[20].mxu0 %vm80_vm0, %v14383_v4 }
 0x371   :  { %2238 = vmatprep.mubr.bf16.mxu0 %v14248_v30 }
 0x378   :  { %7216 = vmatmul.mubr.msk.bf16.gmra.mrb[24].mxu0 %vm80_vm0, %v14384_v43 }
 0x379   :  { %2248 = vmatprep.mubr.bf16.mxu0 %v14248_v30 }
 0x380   :  { %7217 = vmatmul.mubr.msk.bf16.gmra.mrb[28].mxu0 %vm80_vm0, %v14385_v9 }
 0x381   :  { %2258 = vmatprep.mubr.bf16.mxu0 %v14248_v30 }
 0x388   :  { %7218 = vmatmul.mubr.msk.bf16.gmra.mrb[32].mxu0 %vm80_vm0, %v14386_v63 }
 0x389   :  { %2268 = vmatprep.mubr.bf16.mxu0 %v14248_v30 }
 0x390   :  { %7219 = vmatmul.mubr.msk.bf16.gmra.mrb[36].mxu0 %vm80_vm0, %v14387_v49 }
 0x391   :  { %2278 = vmatprep.mubr.bf16.mxu0 %v14248_v30 }
 0x398   :  { %7220 = vmatmul.mubr.msk.bf16.gmra.mrb[40].mxu0 %vm80_vm0, %v14388_v41 }
 0x399   :  { %2288 = vmatprep.mubr.bf16.mxu0 %v14248_v30 }
 0x3a0   :  { %7221 = vmatmul.mubr.msk.bf16.gmra.mrb[44].mxu0 %vm80_vm0, %v14389_v50 }
 0x3a1   :  { %2298 = vmatprep.mubr.bf16.mxu0 %v14248_v30 }
 0x3a8   :  { %7222 = vmatmul.mubr.msk.bf16.gmra.mrb[48].mxu0 %vm80_vm0, %v14390_v45 }
 0x3a9   :  { %2308 = vmatprep.mubr.bf16.mxu0 %v14248_v30 }
 0x3b0   :  { %7223 = vmatmul.mubr.msk.bf16.gmra.mrb[52].mxu0 %vm80_vm0, %v9869_v56 }
 0x3b1   :  { %2318 = vmatprep.mubr.bf16.mxu0 %v14248_v30 }
 0x3b8   :  { %7224 = vmatmul.mubr.msk.bf16.gmra.mrb[56].mxu0 %vm80_vm0, %v9874_v40  ;;  %v10913_v40 = vadd.s32 8, %v10449_v37 }
 0x3b9   :  { %2328 = vmatprep.mubr.bf16.mxu0 %v14248_v30 }
 0x3ba   :  { %14392 = vst [vmem:[#allocation43_spill] sm:$0xff] %v10913_v40  ;;  %vm3179_vm4 = vcmp.lt.s32.totalorder %v10913_v40, 15 }
 0x3bb   :  { %v3310_v44 = vsel %vm3179_vm4, %v10473_v0, 0.0 }
 0x3c0   :  { %7225 = vmatmul.mubr.msk.bf16.gmra.mrb[60].mxu0 %vm80_vm0, %v9888_v5 }
 0x3c1   :  { %2338 = vmatprep.mubr.bf16.mxu0 %v14248_v30 }
 0x3c8   :  { %2339 = vmatmul.mubr.bf16.gmra.mrb[64].mxu0 %v14248_v30 }
 0x3c9   :  { %2348 = vmatprep.mubr.bf16.mxu0 %v14248_v30 }
 0x3d0   :  { %7226 = vmatmul.mubr.msk.bf16.gmra.mrb[68].mxu0 %vm80_vm0, %v14391_v2 }
 0x3d1   :  { %2358 = vmatprep.mubr.bf16.mxu0 %v14248_v30 }
 0x3d8   :  { %7227 = vmatmul.mubr.msk.bf16.gmra.mrb[72].mxu0 %vm80_vm0, %v9912_v25 }
 0x3d9   :  { %2368 = vmatprep.mubr.bf16.mxu0 %v14248_v30 }
 0x3e0   :  { %7228 = vmatmul.mubr.msk.bf16.gmra.mrb[76].mxu0 %vm80_vm0, %v9929_v61 }
 0x3e1   :  { %2378 = vmatprep.mubr.bf16.mxu0 %v14248_v30 }
 0x3e8   :  { %7229 = vmatmul.mubr.msk.bf16.gmra.mrb[80].mxu0 %vm80_vm0, %v9934_v55 }
 0x3e9   :  { %2388 = vmatprep.mubr.bf16.mxu0 %v14248_v30 }
 0x3f0   :  { %7230 = vmatmul.mubr.msk.bf16.gmra.mrb[84].mxu0 %vm80_vm0, %v9952_v13 }
 0x3f1   :  { %2398 = vmatprep.mubr.bf16.mxu0 %v14248_v30 }
 0x3f8   :  { %7231 = vmatmul.mubr.msk.bf16.gmra.mrb[88].mxu0 %vm80_vm0, %v9957_v22 }
 0x3f9   :  { %2408 = vmatprep.mubr.bf16.mxu0 %v14248_v30 }
 0x400   :  { %7232 = vmatmul.mubr.msk.bf16.gmra.mrb[92].mxu0 %vm80_vm0, %v14330_v23 }
 0x401   :  { %2418 = vmatprep.mubr.bf16.mxu0 %v14248_v30 }
 0x408   :  { %7233 = vmatmul.mubr.msk.bf16.gmra.mrb[96].mxu0 %vm80_vm0, %v14339_v57 }
 0x409   :  { %2428 = vmatprep.mubr.bf16.mxu0 %v14248_v30 }
 0x410   :  { %7234 = vmatmul.mubr.msk.bf16.gmra.mrb[100].mxu0 %vm80_vm0, %v14348_v32 }
 0x411   :  { %2438 = vmatprep.mubr.bf16.mxu0 %v14248_v30 }
 0x418   :  { %7235 = vmatmul.mubr.msk.bf16.gmra.mrb[104].mxu0 %vm80_vm0, %v14357_v15 }
 0x419   :  { %2448 = vmatprep.mubr.bf16.mxu0 %v14248_v30 }
 0x41b   :  { %v2180_v56 = vpop.f32.mrb[0].mxu0 }
 0x41c   :  { %v2182_v5 = vpop.f32.mrb[1].mxu0  ;;  %v2985_v61 = vrot.slane %v2180_v56, 7  ;;  %v14393_v56 = vld [vmem:[#allocation53_spill] sm:$0xff] }
 0x41d   :  { %v2184_v25 = vpop.f32.mrb[2].mxu0 }
 0x41e   :  { %v3017_v55 = vrot.slane %v2184_v25, 7  ;;  %v2186_v13 = vpop.f32.mrb[3].mxu0 }
 0x420   :  { %v3082_v22 = vsel %vm3049_vm2, %v3017_v55, %v2985_v61  ;;  %v3050_v23 = vsel %vm3049_vm2, %v2985_v61, %v3017_v55  ;;  %7236 = vmatmul.mubr.msk.bf16.gmra.mrb[108].mxu0 %vm80_vm0, %v14366_v3  ;;  %v14394_v55 = vld [vmem:[#allocation52_spill] sm:$0xff] }
 0x421   :  { %v3114_v57 = vsel %vm2983_vm3, %v3082_v22, 0.0  ;;  %v3374_v32 = vadd.f32 %v3050_v23, %v2186_v13  ;;  %2458 = vmatprep.mubr.bf16.mxu0 %v14248_v30 }
 0x422   :  { %v3373_v15 = vadd.f32 %v3114_v57, %v2182_v5  ;;  %v3312_v5 = vsel %vm3179_vm4, %v14393_v56, 0.0 }
 0x423   :  { %v10930_v6 = vadd.f32 %v3374_v32, %v3310_v44  ;;  %v2190_v4 = vpop.f32.mrb[4].mxu0 }
 0x424   :  { %v10933_v43 = vadd.f32 %v3373_v15, %v10469_v38  ;;  %v2192_v9 = vpop.f32.mrb[5].mxu0  ;;  %v2986_v3 = vrot.slane %v2190_v4, 7 }
 0x425   :  { %v2194_v63 = vpop.f32.mrb[6].mxu0 }
 0x426   :  { %v3018_v49 = vrot.slane %v2194_v63, 7  ;;  %v2196_v41 = vpop.f32.mrb[7].mxu0 }
 0x428   :  { %v3083_v50 = vsel %vm3049_vm2, %v3018_v49, %v2986_v3  ;;  %v3051_v45 = vsel %vm3049_vm2, %v2986_v3, %v3018_v49  ;;  %7237 = vmatmul.mubr.msk.bf16.gmra.mrb[112].mxu0 %vm80_vm0, %v14374_v34  ;;  %v3314_v3 = vsel %vm3179_vm4, %v10496_v54, 0.0 }
 0x429   :  { %v3116_v0 = vsel %vm2983_vm3, %v3083_v50, 0.0  ;;  %v3376_v2 = vadd.f32 %v3051_v45, %v2196_v41  ;;  %2468 = vmatprep.mubr.bf16.mxu0 %v14248_v30 }
 0x42a   :  { %v3375_v38 = vadd.f32 %v3116_v0, %v2192_v9 }
 0x42b   :  { %v10947_v25 = vadd.f32 %v3376_v2, %v3312_v5  ;;  %v2200_v61 = vpop.f32.mrb[8].mxu0 }
 0x42c   :  { %v10950_v13 = vadd.f32 %v3375_v38, %v14394_v55  ;;  %v2202_v22 = vpop.f32.mrb[9].mxu0  ;;  %v2987_v34 = vrot.slane %v2200_v61, 7  ;;  %v3316_v55 = vsel %vm3179_vm4, %v10488_v27, 0.0 }
 0x42d   :  { %v2204_v23 = vpop.f32.mrb[10].mxu0 }
 0x42e   :  { %v3019_v57 = vrot.slane %v2204_v23, 7  ;;  %v2206_v32 = vpop.f32.mrb[11].mxu0 }
 0x430   :  { %v3084_v15 = vsel %vm3049_vm2, %v3019_v57, %v2987_v34  ;;  %v3052_v44 = vsel %vm3049_vm2, %v2987_v34, %v3019_v57  ;;  %7238 = vmatmul.mubr.msk.bf16.gmra.mrb[116].mxu0 %vm80_vm0, %v14375_v48 }
 0x431   :  { %v3118_v4 = vsel %vm2983_vm3, %v3084_v15, 0.0  ;;  %v3378_v9 = vadd.f32 %v3052_v44, %v2206_v32  ;;  %2478 = vmatprep.mubr.bf16.mxu0 %v14248_v30 }
 0x432   :  { %v3377_v63 = vadd.f32 %v3118_v4, %v2202_v22 }
 0x433   :  { %v10964_v49 = vadd.f32 %v3378_v9, %v3314_v3  ;;  %v2210_v41 = vpop.f32.mrb[12].mxu0  ;;  %v3318_v3 = vsel %vm3179_vm4, %v10519_v29, 0.0 }
 0x434   :  { %v10967_v50 = vadd.f32 %v3377_v63, %v10492_v12  ;;  %v2212_v45 = vpop.f32.mrb[13].mxu0  ;;  %v2988_v48 = vrot.slane %v2210_v41, 7 }
 0x435   :  { %v2214_v0 = vpop.f32.mrb[14].mxu0 }
 0x436   :  { %v3020_v2 = vrot.slane %v2214_v0, 7  ;;  %v2216_v38 = vpop.f32.mrb[15].mxu0 }
 0x438   :  { %v3085_v56 = vsel %vm3049_vm2, %v3020_v2, %v2988_v48  ;;  %v3053_v5 = vsel %vm3049_vm2, %v2988_v48, %v3020_v2  ;;  %7239 = vmatmul.mubr.msk.bf16.gmra.mrb[120].mxu0 %vm80_vm0, %v14376_v18 }
 0x439   :  { %v3120_v54 = vsel %vm2983_vm3, %v3085_v56, 0.0  ;;  %v3380_v61 = vadd.f32 %v3053_v5, %v2216_v38  ;;  %2488 = vmatprep.mubr.bf16.mxu0 %v14248_v30 }
 0x43a   :  { %v3379_v12 = vadd.f32 %v3120_v54, %v2212_v45 }
 0x43b   :  { %v10981_v22 = vadd.f32 %v3380_v61, %v3316_v55  ;;  %v2220_v23 = vpop.f32.mrb[16].mxu0 }
 0x43c   :  { %v10984_v34 = vadd.f32 %v3379_v12, %v10484_v19  ;;  %v2222_v57 = vpop.f32.mrb[17].mxu0  ;;  %v2989_v18 = vrot.slane %v2220_v23, 7 }
 0x43d   :  { %v2224_v32 = vpop.f32.mrb[18].mxu0 }
 0x43e   :  { %v3021_v15 = vrot.slane %v2224_v32, 7  ;;  %v2226_v44 = vpop.f32.mrb[19].mxu0 }
 0x440   :  { %v3086_v4 = vsel %vm3049_vm2, %v3021_v15, %v2989_v18  ;;  %v3054_v9 = vsel %vm3049_vm2, %v2989_v18, %v3021_v15  ;;  %7240 = vmatmul.mubr.msk.bf16.gmra.mrb[124].mxu0 %vm80_vm0, %v14377_v46 }
 0x441   :  { %v3122_v27 = vsel %vm2983_vm3, %v3086_v4, 0.0  ;;  %v3382_v63 = vadd.f32 %v3054_v9, %v2226_v44  ;;  %4238 = vmatprep.mubr.bf16.mxu0 %v14248_v30 }
 0x442   :  { %v3381_v19 = vadd.f32 %v3122_v27, %v2222_v57 }
 0x443   :  { %v10998_v41 = vadd.f32 %v3382_v63, %v3318_v3  ;;  %v2230_v45 = vpop.f32.mrb[20].mxu0 }
 0x444   :  { %v11001_v0 = vadd.f32 %v3381_v19, %v10515_v20  ;;  %v2232_v48 = vpop.f32.mrb[21].mxu0  ;;  %v2990_v46 = vrot.slane %v2230_v45, 7  ;;  %v3320_v20 = vsel %vm3179_vm4, %v10511_v59, 0.0 }
 0x445   :  { %v2234_v2 = vpop.f32.mrb[22].mxu0 }
 0x446   :  { %v3022_v38 = vrot.slane %v2234_v2, 7  ;;  %v2236_v56 = vpop.f32.mrb[23].mxu0 }
 0x448   :  { %v3087_v5 = vsel %vm3049_vm2, %v3022_v38, %v2990_v46  ;;  %v3055_v54 = vsel %vm3049_vm2, %v2990_v46, %v3022_v38 }
 0x449   :  { %v3124_v29 = vsel %vm2983_vm3, %v3087_v5, 0.0  ;;  %v3384_v61 = vadd.f32 %v3055_v54, %v2236_v56 }
 0x44a   :  { %v3383_v12 = vadd.f32 %v3124_v29, %v2232_v48  ;;  %v8897_v48 = vld [vmem:[%s14098_s2 + $0x38] ss:$12 sps:$4 sm:$0xff]  }
 0x44b   :  { %v11012_v55 = vadd.f32 %v3384_v61, %v3320_v20  ;;  %v2240_v23 = vpop.f32.mrb[24].mxu0  ;;  %7897 = vmatprep.subr.bf16.mxu1 %v8897_v48 }
 0x44c   :  { %v11015_v57 = vadd.f32 %v3383_v12, %v10507_v58  ;;  %v2242_v32 = vpop.f32.mrb[25].mxu0  ;;  %v2991_v15 = vrot.slane %v2240_v23, 7  ;;  %v3322_v58 = vsel %vm3179_vm4, %v10542_v7, 0.0  ;;  %7898 = vmatpush3.bf16.msra.mxu1 %v8897_v48 }
 0x44d   :  { %v2244_v18 = vpop.f32.mrb[26].mxu0 }
 0x44e   :  { %v3023_v44 = vrot.slane %v2244_v18, 7  ;;  %v2246_v4 = vpop.f32.mrb[27].mxu0 }
 0x450   :  { %v3088_v9 = vsel %vm3049_vm2, %v3023_v44, %v2991_v15  ;;  %v3056_v27 = vsel %vm3049_vm2, %v2991_v15, %v3023_v44  ;;  %v3634_v44 = vmul.f32 %v10933_v43, %v10933_v43 }
 0x451   :  { %v3126_v59 = vsel %vm2983_vm3, %v3088_v9, 0.0  ;;  %v3386_v63 = vadd.f32 %v3056_v27, %v2246_v4  ;;  %v3635_v4 = vmul.f32 %v10930_v6, %v10930_v6 }
 0x452   :  { %v3385_v19 = vadd.f32 %v3126_v59, %v2242_v32  ;;  %v3698_v48 = vsel %vm80_vm0, %v3634_v44, 0.0 }
 0x453   :  { %v11026_v3 = vadd.f32 %v3386_v63, %v3322_v58  ;;  %v2250_v45 = vpop.f32.mrb[28].mxu0 }
 0x454   :  { %v11032_v2 = vadd.f32 %v3385_v19, %v10538_v16  ;;  %v2252_v46 = vpop.f32.mrb[29].mxu0  ;;  %v2992_v56 = vrot.slane %v2250_v45, 7  ;;  %v3324_v16 = vsel %vm3179_vm4, %v10534_v17, 0.0  ;;  %v3636_v17 = vmul.f32 %v10950_v13, %v10950_v13 }
 0x455   :  { %v2254_v38 = vpop.f32.mrb[30].mxu0  ;;  %v3501_v19 = vsel %vm80_vm0, %v10933_v43, 0.0 }
 0x456   :  { %v3024_v5 = vrot.slane %v2254_v38, 7  ;;  %v2256_v54 = vpop.f32.mrb[31].mxu0 }
 0x458   :  { %v3089_v7 = vsel %vm3049_vm2, %v3024_v5, %v2992_v56  ;;  %v3057_v29 = vsel %vm3049_vm2, %v2992_v56, %v3024_v5  ;;  %v3504_v5 = vsel %vm80_vm0, %v10950_v13, 0.0 }
 0x459   :  { %v3128_v61 = vsel %vm2983_vm3, %v3089_v7, 0.0  ;;  %v3388_v12 = vadd.f32 %v3057_v29, %v2256_v54  ;;  %v3326_v7 = vsel %vm3179_vm4, %v10564_v53, 0.0 }
 0x45a   :  { %v3387_v20 = vadd.f32 %v3128_v61, %v2252_v46  ;;  %v3699_v46 = vsel %vm80_vm0, %v3635_v4, 0.0  ;;  %v3701_v61 = vsel %vm80_vm0, %v3636_v17, 0.0 }
 0x45b   :  { %v11043_v23 = vadd.f32 %v3388_v12, %v3324_v16  ;;  %v2260_v32 = vpop.f32.mrb[32].mxu0  ;;  %v3700_v16 = vadd.f32 %v3699_v46, %v3698_v48 }
 0x45c   :  { %v11046_v18 = vadd.f32 %v3387_v20, %v10530_v14  ;;  %v2262_v15 = vpop.f32.mrb[33].mxu0  ;;  %v2993_v27 = vrot.slane %v2260_v32, 7  ;;  %v3502_v14 = vsel %vm80_vm0, %v10930_v6, 0.0  ;;  %v3637_v32 = vmul.f32 %v10947_v25, %v10947_v25 }
 0x45d   :  { %v2264_v9 = vpop.f32.mrb[34].mxu0  ;;  %v3503_v29 = vadd.f32 %v3502_v14, %v3501_v19  ;;  %v3702_v53 = vadd.f32 %v3701_v61, %v3700_v16  ;;  %v3506_v19 = vsel %vm80_vm0, %v10947_v25, 0.0  ;;  %v3639_v61 = vmul.f32 %v10964_v49, %v10964_v49 }
 0x45e   :  { %v3025_v59 = vrot.slane %v2264_v9, 7  ;;  %v2266_v63 = vpop.f32.mrb[35].mxu0  ;;  %v3703_v14 = vsel %vm80_vm0, %v3637_v32, 0.0 }
 0x45f   :  { %v3505_v9 = vadd.f32 %v3504_v5, %v3503_v29  ;;  %v3704_v5 = vadd.f32 %v3703_v14, %v3702_v53  ;;  %v3510_v53 = vsel %vm80_vm0, %v10964_v49, 0.0  ;;  %v3707_v14 = vsel %vm80_vm0, %v3639_v61, 0.0 }
 0x460   :  { %v3090_v58 = vsel %vm3049_vm2, %v3025_v59, %v2993_v27  ;;  %v3058_v45 = vsel %vm3049_vm2, %v2993_v27, %v3025_v59 }
 0x461   :  { %v3130_v38 = vsel %vm2983_vm3, %v3090_v58, 0.0  ;;  %v3390_v56 = vadd.f32 %v3058_v45, %v2266_v63  ;;  %v3508_v58 = vsel %vm80_vm0, %v10967_v50, 0.0  ;;  %v3507_v48 = vadd.f32 %v3506_v19, %v3505_v9 }
 0x462   :  { %v3389_v54 = vadd.f32 %v3130_v38, %v2262_v15  ;;  %v3638_v15 = vmul.f32 %v10967_v50, %v10967_v50 }
 0x463   :  { %v11072_v12 = vadd.f32 %v3390_v56, %v3326_v7  ;;  %v2270_v20 = vpop.f32.mrb[36].mxu0  ;;  %v3328_v7 = vsel %vm3179_vm4, %v10556_v33, 0.0  ;;  %v3509_v29 = vadd.f32 %v3508_v58, %v3507_v48  ;;  %v3512_v33 = vsel %vm80_vm0, %v10984_v34, 0.0 }
 0x464   :  { %v11077_v44 = vadd.f32 %v3389_v54, %v10560_v39  ;;  %v2272_v4 = vpop.f32.mrb[37].mxu0  ;;  %v2994_v59 = vrot.slane %v2270_v20, 7  ;;  %v3705_v46 = vsel %vm80_vm0, %v3638_v15, 0.0  ;;  %v3640_v20 = vmul.f32 %v10984_v34, %v10984_v34 }
 0x465   :  { %v2274_v27 = vpop.f32.mrb[38].mxu0  ;;  %v3706_v9 = vadd.f32 %v3705_v46, %v3704_v5  ;;  %v3511_v19 = vadd.f32 %v3510_v53, %v3509_v29  ;;  %v3330_v29 = vsel %vm3179_vm4, %v10587_v31, 0.0 }
 0x466   :  { %v3026_v63 = vrot.slane %v2274_v27, 7  ;;  %v2276_v17 = vpop.f32.mrb[39].mxu0  ;;  %v3709_v58 = vsel %vm80_vm0, %v3640_v20, 0.0 }
 0x467   :  { %v3513_v46 = vadd.f32 %v3512_v33, %v3511_v19 }
 0x468   :  { %v3091_v39 = vsel %vm3049_vm2, %v3026_v63, %v2994_v59  ;;  %v3059_v45 = vsel %vm3049_vm2, %v2994_v59, %v3026_v63 }
 0x469   :  { %v3132_v38 = vsel %vm2983_vm3, %v3091_v39, 0.0  ;;  %v3392_v56 = vadd.f32 %v3059_v45, %v2276_v17  ;;  %v3708_v39 = vadd.f32 %v3707_v14, %v3706_v9  ;;  %v3516_v9 = vsel %vm80_vm0, %v11001_v0, 0.0 }
 0x46a   :  { %v3391_v54 = vadd.f32 %v3132_v38, %v2272_v4  ;;  %v3642_v38 = vmul.f32 %v11001_v0, %v11001_v0 }
 0x46b   :  { %v11100_v16 = vadd.f32 %v3392_v56, %v3328_v7  ;;  %v2280_v32 = vpop.f32.mrb[40].mxu0 }
 0x46c   :  { %v11103_v15 = vadd.f32 %v3391_v54, %v10552_v35  ;;  %v2282_v27 = vpop.f32.mrb[41].mxu0  ;;  %v2995_v59 = vrot.slane %v2280_v32, 7  ;;  %v3641_v35 = vmul.f32 %v10981_v22, %v10981_v22  ;;  %v3710_v54 = vadd.f32 %v3709_v58, %v3708_v39 }
 0x46d   :  { %v2284_v4 = vpop.f32.mrb[42].mxu0  ;;  %v3514_v32 = vsel %vm80_vm0, %v10981_v22, 0.0  ;;  %v3643_v39 = vmul.f32 %v10998_v41, %v10998_v41 }
 0x46e   :  { %v3027_v63 = vrot.slane %v2284_v4, 7  ;;  %v2286_v17 = vpop.f32.mrb[43].mxu0  ;;  %v3515_v33 = vadd.f32 %v3514_v32, %v3513_v46 }
 0x470   :  { %v3092_v45 = vsel %vm3049_vm2, %v3027_v63, %v2995_v59  ;;  %v3060_v48 = vsel %vm3049_vm2, %v2995_v59, %v3027_v63  ;;  %v3713_v59 = vsel %vm80_vm0, %v3642_v38, 0.0  ;;  %v3517_v58 = vadd.f32 %v3516_v9, %v3515_v33 }
 0x471   :  { %v3134_v56 = vsel %vm2983_vm3, %v3092_v45, 0.0  ;;  %v3394_v5 = vadd.f32 %v3060_v48, %v2286_v17  ;;  %v3644_v45 = vmul.f32 %v11015_v57, %v11015_v57 }
 0x472   :  { %v3393_v7 = vadd.f32 %v3134_v56, %v2282_v27  ;;  %v3711_v27 = vsel %vm80_vm0, %v3641_v35, 0.0  ;;  %v3518_v56 = vsel %vm80_vm0, %v10998_v41, 0.0 }
 0x473   :  { %v11124_v61 = vadd.f32 %v3394_v5, %v3330_v29  ;;  %v2290_v20 = vpop.f32.mrb[44].mxu0  ;;  %v3712_v31 = vadd.f32 %v3711_v27, %v3710_v54  ;;  %v3520_v5 = vsel %vm80_vm0, %v11015_v57, 0.0  ;;  %v3519_v29 = vadd.f32 %v3518_v56, %v3517_v58 }
 0x474   :  { %v11131_v4 = vadd.f32 %v3393_v7, %v10583_v28  ;;  %v2292_v53 = vpop.f32.mrb[45].mxu0  ;;  %v2996_v17 = vrot.slane %v2290_v20, 7  ;;  %v3332_v7 = vsel %vm3179_vm4, %v10579_v24, 0.0  ;;  %v3715_v20 = vsel %vm80_vm0, %v3643_v39, 0.0 }
 0x475   :  { %v2294_v63 = vpop.f32.mrb[46].mxu0  ;;  %v3714_v28 = vadd.f32 %v3713_v59, %v3712_v31  ;;  %v3717_v32 = vsel %vm80_vm0, %v3644_v45, 0.0  ;;  %v3645_v59 = vmul.f32 %v11012_v55, %v11012_v55  ;;  %v3521_v31 = vadd.f32 %v3520_v5, %v3519_v29 }
 0x476   :  { %v3028_v19 = vrot.slane %v2294_v63, 7  ;;  %v2296_v14 = vpop.f32.mrb[47].mxu0  ;;  %v3646_v24 = vmul.f32 %v11032_v2, %v11032_v2  ;;  %v3522_v45 = vsel %vm80_vm0, %v11012_v55, 0.0  ;;  %v3334_v29 = vsel %vm3179_vm4, %v10610_v42, 0.0 }
 0x477   :  { %v3716_v27 = vadd.f32 %v3715_v20, %v3714_v28  ;;  %v3719_v28 = vsel %vm80_vm0, %v3645_v59, 0.0  ;;  %v3528_v42 = vsel %vm80_vm0, %v11046_v18, 0.0 }
 0x478   :  { %v3093_v48 = vsel %vm3049_vm2, %v3028_v19, %v2996_v17  ;;  %v3061_v35 = vsel %vm3049_vm2, %v2996_v17, %v3028_v19 }
 0x479   :  { %v3136_v46 = vsel %vm2983_vm3, %v3093_v48, 0.0  ;;  %v3396_v38 = vadd.f32 %v3061_v35, %v2296_v14  ;;  %v3718_v19 = vadd.f32 %v3717_v32, %v3716_v27  ;;  %v3524_v48 = vsel %vm80_vm0, %v11032_v2, 0.0 }
 0x47a   :  { %v3395_v54 = vadd.f32 %v3136_v46, %v2292_v53  ;;  %v3523_v46 = vadd.f32 %v3522_v45, %v3521_v31  ;;  %v3647_v32 = vmul.f32 %v11026_v3, %v11026_v3 }
 0x47b   :  { %v11154_v9 = vadd.f32 %v3396_v38, %v3332_v7  ;;  %v2300_v33 = vpop.f32.mrb[48].mxu0  ;;  %v3721_v38 = vsel %vm80_vm0, %v3646_v24, 0.0 }
 0x47c   :  { %v11159_v63 = vadd.f32 %v3395_v54, %v10575_v36  ;;  %v2302_v53 = vpop.f32.mrb[49].mxu0  ;;  %v2997_v14 = vrot.slane %v2300_v33, 7  ;;  %v3720_v54 = vadd.f32 %v3719_v28, %v3718_v19  ;;  %v3525_v20 = vadd.f32 %v3524_v48, %v3523_v46 }
 0x47d   :  { %v2304_v17 = vpop.f32.mrb[50].mxu0  ;;  %v3648_v33 = vmul.f32 %v11046_v18, %v11046_v18  ;;  %v3526_v19 = vsel %vm80_vm0, %v11026_v3, 0.0  ;;  %v3723_v28 = vsel %vm80_vm0, %v3647_v32, 0.0 }
 0x47e   :  { %v3029_v58 = vrot.slane %v2304_v17, 7  ;;  %v2306_v39 = vpop.f32.mrb[51].mxu0  ;;  %v3722_v31 = vadd.f32 %v3721_v38, %v3720_v54  ;;  %v3527_v45 = vadd.f32 %v3526_v19, %v3525_v20  ;;  %v3336_v20 = vsel %vm3179_vm4, %v10602_v60, 0.0 }
 0x47f   :  { %v3725_v48 = vsel %vm80_vm0, %v3648_v33, 0.0 }
 0x480   :  { %v3094_v36 = vsel %vm3049_vm2, %v3029_v58, %v2997_v14  ;;  %v3062_v35 = vsel %vm3049_vm2, %v2997_v14, %v3029_v58  ;;  %v3529_v38 = vadd.f32 %v3528_v42, %v3527_v45 }
 0x481   :  { %v3138_v56 = vsel %vm2983_vm3, %v3094_v36, 0.0  ;;  %v3398_v5 = vadd.f32 %v3062_v35, %v2306_v39  ;;  %v3724_v36 = vadd.f32 %v3723_v28, %v3722_v31  ;;  %v3532_v31 = vsel %vm80_vm0, %v11077_v44, 0.0 }
 0x482   :  { %v3397_v7 = vadd.f32 %v3138_v56, %v2302_v53  ;;  %v3650_v56 = vmul.f32 %v11077_v44, %v11077_v44 }
 0x483   :  { %v11182_v27 = vadd.f32 %v3398_v5, %v3334_v29  ;;  %v2310_v59 = vpop.f32.mrb[52].mxu0 }
 0x484   :  { %v11185_v24 = vadd.f32 %v3397_v7, %v10606_v1  ;;  %v2312_v17 = vpop.f32.mrb[53].mxu0  ;;  %v2998_v14 = vrot.slane %v2310_v59, 7  ;;  %v3649_v1 = vmul.f32 %v11043_v23, %v11043_v23  ;;  %v3726_v7 = vadd.f32 %v3725_v48, %v3724_v36 }
 0x485   :  { %v2314_v53 = vpop.f32.mrb[54].mxu0  ;;  %v3530_v59 = vsel %vm80_vm0, %v11043_v23, 0.0  ;;  %v3651_v36 = vmul.f32 %v11072_v12, %v11072_v12 }
 0x486   :  { %v3030_v58 = vrot.slane %v2314_v53, 7  ;;  %v2316_v39 = vpop.f32.mrb[55].mxu0  ;;  %v3531_v42 = vadd.f32 %v3530_v59, %v3529_v38 }
 0x488   :  { %v3095_v35 = vsel %vm3049_vm2, %v3030_v58, %v2998_v14  ;;  %v3063_v46 = vsel %vm3049_vm2, %v2998_v14, %v3030_v58  ;;  %v3729_v14 = vsel %vm80_vm0, %v3650_v56, 0.0  ;;  %v3533_v48 = vadd.f32 %v3532_v31, %v3531_v42 }
 0x489   :  { %v3140_v5 = vsel %vm2983_vm3, %v3095_v35, 0.0  ;;  %v3400_v54 = vadd.f32 %v3063_v46, %v2316_v39  ;;  %v3652_v35 = vmul.f32 %v11103_v15, %v11103_v15 }
 0x48a   :  { %v3399_v29 = vadd.f32 %v3140_v5, %v2312_v17  ;;  %v3727_v17 = vsel %vm80_vm0, %v3649_v1, 0.0  ;;  %v3534_v5 = vsel %vm80_vm0, %v11072_v12, 0.0 }
 0x48b   :  { %v11206_v32 = vadd.f32 %v3400_v54, %v3336_v20  ;;  %v2320_v33 = vpop.f32.mrb[56].mxu0  ;;  %v3728_v60 = vadd.f32 %v3727_v17, %v3726_v7  ;;  %v3536_v54 = vsel %vm80_vm0, %v11103_v15, 0.0  ;;  %v3535_v20 = vadd.f32 %v3534_v5, %v3533_v48  ;;  %v8898_v17 = vld [vmem:[%s14098_s2 + $0x50] ss:$12 sps:$4 sm:$0xff]  }
 0x48c   :  { %v11213_v53 = vadd.f32 %v3399_v29, %v10598_v26  ;;  %v2322_v19 = vpop.f32.mrb[57].mxu0  ;;  %v2999_v39 = vrot.slane %v2320_v33, 7  ;;  %v3338_v29 = vsel %vm3179_vm4, %v10633_v8, 0.0  ;;  %v3731_v33 = vsel %vm80_vm0, %v3651_v36, 0.0  ;;  %7899 = vmatprep.subr.bf16.mxu1 %v8898_v17 }
 0x48d   :  { %v2324_v58 = vpop.f32.mrb[58].mxu0  ;;  %v3730_v26 = vadd.f32 %v3729_v14, %v3728_v60  ;;  %v3733_v59 = vsel %vm80_vm0, %v3652_v35, 0.0  ;;  %v3537_v60 = vadd.f32 %v3536_v54, %v3535_v20  ;;  %7900 = vmatpush3.bf16.msra.mxu1 %v8898_v17  ;;  %v3656_v17 = vmul.f32 %v11159_v63, %v11159_v63 }
 0x48e   :  { %v3031_v45 = vrot.slane %v2324_v58, 7  ;;  %v2326_v28 = vpop.f32.mrb[59].mxu0 }
 0x48f   :  { %v3732_v14 = vadd.f32 %v3731_v33, %v3730_v26  ;;  %v3538_v26 = vsel %vm80_vm0, %v11100_v16, 0.0  ;;  %v3340_v33 = vsel %vm3179_vm4, %v10625_v11, 0.0  ;;  %v3544_v11 = vsel %vm80_vm0, %v11159_v63, 0.0 }
 0x490   :  { %v3096_v46 = vsel %vm3049_vm2, %v3031_v45, %v2999_v39  ;;  %v3064_v1 = vsel %vm3049_vm2, %v2999_v39, %v3031_v45  ;;  %v3654_v39 = vmul.f32 %v11131_v4, %v11131_v4 }
 0x491   :  { %v3142_v38 = vsel %vm2983_vm3, %v3096_v46, 0.0  ;;  %v3402_v56 = vadd.f32 %v3064_v1, %v2326_v28  ;;  %v3734_v28 = vadd.f32 %v3733_v59, %v3732_v14 }
 0x492   :  { %v3401_v7 = vadd.f32 %v3142_v38, %v2322_v19  ;;  %v3653_v19 = vmul.f32 %v11100_v16, %v11100_v16  ;;  %v3737_v5 = vsel %vm80_vm0, %v3654_v39, 0.0  ;;  %v14397_v39 = vld [vmem:[#allocation54_spill] sm:$0xff] }
 0x493   :  { %v11236_v31 = vadd.f32 %v3402_v56, %v3338_v29  ;;  %v2330_v42 = vpop.f32.mrb[60].mxu0  ;;  %v3539_v56 = vadd.f32 %v3538_v26, %v3537_v60 }
 0x494   :  { %v11244_v58 = vadd.f32 %v3401_v7, %v10629_v62  ;;  %v2332_v8 = vpop.f32.mrb[61].mxu0  ;;  %v3000_v48 = vrot.slane %v2330_v42, 7  ;;  %v3735_v46 = vsel %vm80_vm0, %v3653_v19, 0.0  ;;  %v3540_v62 = vsel %vm80_vm0, %v11131_v4, 0.0 }
 0x495   :  { %v2334_v45 = vpop.f32.mrb[62].mxu0  ;;  %v3736_v29 = vadd.f32 %v3735_v46, %v3734_v28  ;;  %v3541_v59 = vadd.f32 %v3540_v62, %v3539_v56  ;;  %v3655_v42 = vmul.f32 %v11124_v61, %v11124_v61  ;;  %v3657_v56 = vmul.f32 %v11154_v9, %v11154_v9 }
 0x496   :  { %14395 = vst [vmem:[#allocation44_spill] sm:$0xff] %v11244_v58  ;;  %v3032_v36 = vrot.slane %v2334_v45, 7  ;;  %v2336_v35 = vpop.f32.mrb[63].mxu0 }
 0x497   :  { %v3738_v60 = vadd.f32 %v3737_v5, %v3736_v29  ;;  %v3739_v62 = vsel %vm80_vm0, %v3655_v42, 0.0  ;;  %v3658_v29 = vmul.f32 %v11185_v24, %v11185_v24 }
 0x498   :  { %v3097_v1 = vsel %vm3049_vm2, %v3032_v36, %v3000_v48  ;;  %v3065_v38 = vsel %vm3049_vm2, %v3000_v48, %v3032_v36  ;;  %v3542_v48 = vsel %vm80_vm0, %v11124_v61, 0.0 }
 0x499   :  { %v3144_v54 = vsel %vm2983_vm3, %v3097_v1, 0.0  ;;  %v3404_v7 = vadd.f32 %v3065_v38, %v2336_v35  ;;  %v3543_v46 = vadd.f32 %v3542_v48, %v3541_v59  ;;  %v3741_v1 = vsel %vm80_vm0, %v3656_v17, 0.0  ;;  %v14399_v17 = vld [vmem:[#allocation58_spill] sm:$0xff] }
 0x49a   :  { %v3403_v20 = vadd.f32 %v3144_v54, %v2332_v8  ;;  %v3740_v38 = vadd.f32 %v3739_v62, %v3738_v60  ;;  %v3548_v48 = vsel %vm80_vm0, %v11185_v24, 0.0 }
 0x49b   :  { %v11267_v14 = vadd.f32 %v3404_v7, %v3340_v33  ;;  %v2340_v19 = vpop.f32.mrb[64].mxu0  ;;  %v3545_v7 = vadd.f32 %v3544_v11, %v3543_v46  ;;  %v14400_v11 = vld [vmem:[#allocation57_spill] sm:$0xff]  ;;  %v3745_v46 = vsel %vm80_vm0, %v3658_v29, 0.0 }
 0x49c   :  { %v11270_v45 = vadd.f32 %v3403_v20, %v14397_v39  ;;  %v2342_v28 = vpop.f32.mrb[65].mxu0  ;;  %v3001_v36 = vrot.slane %v2340_v19, 7  ;;  %v3742_v59 = vadd.f32 %v3741_v1, %v3740_v38  ;;  %v3342_v19 = vsel %vm3179_vm4, %v14399_v17, 0.0 }
 0x49d   :  { %14396 = vst [vmem:[#allocation45_spill] sm:$0xff] %v11267_v14  ;;  %v2344_v8 = vpop.f32.mrb[66].mxu0  ;;  %v3660_v17 = vmul.f32 %v11213_v53, %v11213_v53 }
 0x49e   :  { %14398 = vst [vmem:[#allocation46_spill] sm:$0xff] %v11270_v45  ;;  %v3033_v35 = vrot.slane %v2344_v8, 7  ;;  %v2346_v26 = vpop.f32.mrb[67].mxu0  ;;  %v3546_v8 = vsel %vm80_vm0, %v11154_v9, 0.0 }
 0x4a0   :  { %v3098_v5 = vsel %vm3049_vm2, %v3033_v35, %v3001_v36  ;;  %v3066_v54 = vsel %vm3049_vm2, %v3001_v36, %v3033_v35 }
 0x4a1   :  { %v3146_v20 = vsel %vm2983_vm3, %v3098_v5, 0.0  ;;  %v3406_v33 = vadd.f32 %v3066_v54, %v2346_v26  ;;  %v3547_v26 = vadd.f32 %v3546_v8, %v3545_v7 }
 0x4a2   :  { %v3405_v42 = vadd.f32 %v3146_v20, %v2342_v28  ;;  %v3743_v28 = vsel %vm80_vm0, %v3657_v56, 0.0 }
 0x4a3   :  { %v11291_v60 = vadd.f32 %v3406_v33, %v3342_v19  ;;  %v2350_v39 = vpop.f32.mrb[68].mxu0  ;;  %v3744_v1 = vadd.f32 %v3743_v28, %v3742_v59  ;;  %v3549_v20 = vadd.f32 %v3548_v48, %v3547_v26  ;;  %v3659_v33 = vmul.f32 %v11182_v27, %v11182_v27  ;;  %v14402_v48 = vld [vmem:[#allocation56_spill] sm:$0xff] }
 0x4a4   :  { %v11298_v36 = vadd.f32 %v3405_v42, %v14400_v11  ;;  %v2352_v35 = vpop.f32.mrb[69].mxu0  ;;  %v3002_v38 = vrot.slane %v2350_v39, 7  ;;  %v3550_v19 = vsel %vm80_vm0, %v11182_v27, 0.0  ;;  %v3552_v39 = vsel %vm80_vm0, %v11213_v53, 0.0 }
 0x4a5   :  { %v2354_v62 = vpop.f32.mrb[70].mxu0  ;;  %v3746_v42 = vadd.f32 %v3745_v46, %v3744_v1  ;;  %v3344_v11 = vsel %vm3179_vm4, %v14402_v48, 0.0  ;;  %v3551_v26 = vadd.f32 %v3550_v19, %v3549_v20  ;;  %v3747_v28 = vsel %vm80_vm0, %v3659_v33, 0.0 }
 0x4a6   :  { %14401 = vst [vmem:[#allocation10_spill] sm:$0xff] %v11298_v36  ;;  %v3034_v5 = vrot.slane %v2354_v62, 7  ;;  %v2356_v54 = vpop.f32.mrb[71].mxu0  ;;  %v3749_v46 = vsel %vm80_vm0, %v3660_v17, 0.0 }
 0x4a8   :  { %v3099_v7 = vsel %vm3049_vm2, %v3034_v5, %v3002_v38  ;;  %v3067_v56 = vsel %vm3049_vm2, %v3002_v38, %v3034_v5  ;;  %v3748_v38 = vadd.f32 %v3747_v28, %v3746_v42  ;;  %v3661_v5 = vmul.f32 %v11206_v32, %v11206_v32 }
 0x4a9   :  { %v3148_v29 = vsel %vm2983_vm3, %v3099_v7, 0.0  ;;  %v3408_v59 = vadd.f32 %v3067_v56, %v2356_v54  ;;  %v14404_v54 = vld [vmem:[#allocation55_spill] sm:$0xff]  ;;  %v3553_v56 = vadd.f32 %v3552_v39, %v3551_v26 }
 0x4aa   :  { %v3407_v8 = vadd.f32 %v3148_v29, %v2352_v35  ;;  %v3662_v29 = vmul.f32 %v11244_v58, %v11244_v58  ;;  %v3750_v19 = vadd.f32 %v3749_v46, %v3748_v38  ;;  %v3751_v42 = vsel %vm80_vm0, %v3661_v5, 0.0 }
 0x4ab   :  { %v11321_v62 = vadd.f32 %v3408_v59, %v3344_v11  ;;  %v2360_v1 = vpop.f32.mrb[72].mxu0  ;;  %v3554_v59 = vsel %vm80_vm0, %v11206_v32, 0.0  ;;  %v3556_v11 = vsel %vm80_vm0, %v11244_v58, 0.0  ;;  %v3663_v58 = vmul.f32 %v11236_v31, %v11236_v31 }
 0x4ac   :  { %v11326_v7 = vadd.f32 %v3407_v8, %v14404_v54  ;;  %v2362_v35 = vpop.f32.mrb[73].mxu0  ;;  %v3003_v33 = vrot.slane %v2360_v1, 7  ;;  %v3555_v26 = vadd.f32 %v3554_v59, %v3553_v56  ;;  %v3753_v28 = vsel %vm80_vm0, %v3662_v29, 0.0  ;;  %v14407_v59 = vld [vmem:[#allocation61_spill] sm:$0xff] }
 0x4ad   :  { %14403 = vst [vmem:[#allocation47_spill] sm:$0xff] %v11321_v62  ;;  %v2364_v20 = vpop.f32.mrb[74].mxu0  ;;  %v3752_v38 = vadd.f32 %v3751_v42, %v3750_v19  ;;  %v3560_v42 = vsel %vm80_vm0, %v11270_v45, 0.0 }
 0x4ae   :  { %14405 = vst [vmem:[#allocation48_spill] sm:$0xff] %v11326_v7  ;;  %v3035_v48 = vrot.slane %v2364_v20, 7  ;;  %v2366_v17 = vpop.f32.mrb[75].mxu0  ;;  %v14406_v20 = vld [vmem:[#allocation62_spill] sm:$0xff]  ;;  %v3557_v30 = vadd.f32 %v3556_v11, %v3555_v26 }
 0x4af   :  { %v3346_v5 = vsel %vm3179_vm4, %v14406_v20, 0.0 }
 0x4b0   :  { %v3100_v8 = vsel %vm3049_vm2, %v3035_v48, %v3003_v33  ;;  %v3068_v39 = vsel %vm3049_vm2, %v3003_v33, %v3035_v48  ;;  %v3664_v33 = vmul.f32 %v11270_v45, %v11270_v45  ;;  %v3754_v48 = vadd.f32 %v3753_v28, %v3752_v38 }
 0x4b1   :  { %v3150_v46 = vsel %vm2983_vm3, %v3100_v8, 0.0  ;;  %v3410_v1 = vadd.f32 %v3068_v39, %v2366_v17  ;;  %v3558_v17 = vsel %vm80_vm0, %v11236_v31, 0.0  ;;  %v3665_v38 = vmul.f32 %v11267_v14, %v11267_v14 }
 0x4b2   :  { %v3409_v54 = vadd.f32 %v3150_v46, %v2362_v35  ;;  %v3559_v46 = vadd.f32 %v3558_v17, %v3557_v30  ;;  %v3757_v20 = vsel %vm80_vm0, %v3664_v33, 0.0 }
 0x4b3   :  { %v11349_v56 = vadd.f32 %v3410_v1, %v3346_v5  ;;  %v2370_v29 = vpop.f32.mrb[76].mxu0  ;;  %v3755_v1 = vsel %vm80_vm0, %v3663_v58, 0.0 }
 0x4b4   :  { %v11352_v8 = vadd.f32 %v3409_v54, %v14407_v59  ;;  %v2372_v19 = vpop.f32.mrb[77].mxu0  ;;  %v3004_v11 = vrot.slane %v2370_v29, 7  ;;  %v3756_v28 = vadd.f32 %v3755_v1, %v3754_v48  ;;  %v3561_v59 = vadd.f32 %v3560_v42, %v3559_v46  ;;  %v14409_v48 = vld [vmem:[#allocation60_spill] sm:$0xff] }
 0x4b5   :  { %v2374_v35 = vpop.f32.mrb[78].mxu0  ;;  %v3666_v29 = vmul.f32 %v11298_v36, %v11298_v36  ;;  %v3348_v17 = vsel %vm3179_vm4, %v14409_v48, 0.0  ;;  %v3564_v42 = vsel %vm80_vm0, %v11298_v36, 0.0  ;;  %v3668_v36 = vmul.f32 %v11326_v7, %v11326_v7 }
 0x4b6   :  { %14408 = vst [vmem:[#allocation49_spill] sm:$0xff] %v11352_v8  ;;  %v3036_v39 = vrot.slane %v2374_v35, 7  ;;  %v2376_v26 = vpop.f32.mrb[79].mxu0  ;;  %v3758_v35 = vadd.f32 %v3757_v20, %v3756_v28 }
 0x4b7   :  { %v3761_v20 = vsel %vm80_vm0, %v3666_v29, 0.0 }
 0x4b8   :  { %v3101_v54 = vsel %vm3049_vm2, %v3036_v39, %v3004_v11  ;;  %v3069_v5 = vsel %vm3049_vm2, %v3004_v11, %v3036_v39  ;;  %v3562_v11 = vsel %vm80_vm0, %v11267_v14, 0.0  ;;  %v14411_v39 = vld [vmem:[#allocation59_spill] sm:$0xff]  ;;  %v3667_v14 = vmul.f32 %v11291_v60, %v11291_v60 }
 0x4b9   :  { %v3152_v30 = vsel %vm2983_vm3, %v3101_v54, 0.0  ;;  %v3412_v58 = vadd.f32 %v3069_v5, %v2376_v26  ;;  %v3563_v26 = vadd.f32 %v3562_v11, %v3561_v59  ;;  %v3568_v11 = vsel %vm80_vm0, %v11326_v7, 0.0 }
 0x4ba   :  { %v3411_v33 = vadd.f32 %v3152_v30, %v2372_v19  ;;  %v3759_v19 = vsel %vm80_vm0, %v3665_v38, 0.0 }
 0x4bb   :  { %v11373_v1 = vadd.f32 %v3412_v58, %v3348_v17  ;;  %v2380_v45 = vpop.f32.mrb[80].mxu0  ;;  %v3760_v5 = vadd.f32 %v3759_v19, %v3758_v35  ;;  %v3565_v17 = vadd.f32 %v3564_v42, %v3563_v26  ;;  %v3566_v35 = vsel %vm80_vm0, %v11291_v60, 0.0 }
 0x4bc   :  { %v11380_v46 = vadd.f32 %v3411_v33, %v14411_v39  ;;  %v2382_v54 = vpop.f32.mrb[81].mxu0  ;;  %v3005_v30 = vrot.slane %v2380_v45, 7  ;;  %v14413_v39 = vld [vmem:[#allocation6_spill] sm:$0xff] }
 0x4bd   :  { %14410 = vst [vmem:[#allocation50_spill] sm:$0xff] %v11373_v1  ;;  %v2384_v28 = vpop.f32.mrb[82].mxu0  ;;  %v3762_v33 = vadd.f32 %v3761_v20, %v3760_v5  ;;  %v3350_v26 = vsel %vm3179_vm4, %v14413_v39, 0.0  ;;  %v3567_v19 = vadd.f32 %v3566_v35, %v3565_v17  ;;  %v3763_v20 = vsel %vm80_vm0, %v3667_v14, 0.0 }
 0x4be   :  { %14412 = vst [vmem:[#allocation11_spill] sm:$0xff] %v11380_v46  ;;  %v3037_v58 = vrot.slane %v2384_v28, 7  ;;  %v2386_v48 = vpop.f32.mrb[83].mxu0  ;;  %v3765_v28 = vsel %vm80_vm0, %v3668_v36, 0.0  ;;  %v3670_v39 = vmul.f32 %v11352_v8, %v11352_v8 }
 0x4c0   :  { %v3102_v59 = vsel %vm3049_vm2, %v3037_v58, %v3005_v30  ;;  %v3070_v38 = vsel %vm3049_vm2, %v3005_v30, %v3037_v58  ;;  %v3764_v58 = vadd.f32 %v3763_v20, %v3762_v33  ;;  %v3769_v20 = vsel %vm80_vm0, %v3670_v39, 0.0 }
 0x4c1   :  { %v3154_v29 = vsel %vm2983_vm3, %v3102_v59, 0.0  ;;  %v3414_v45 = vadd.f32 %v3070_v38, %v2386_v48  ;;  %v3669_v48 = vmul.f32 %v11321_v62, %v11321_v62  ;;  %v14415_v59 = vld [vmem:[#allocation19_spill] sm:$0xff] }
 0x4c2   :  { %v3413_v42 = vadd.f32 %v3154_v29, %v2382_v54  ;;  %v3569_v29 = vadd.f32 %v3568_v11, %v3567_v19  ;;  %v3766_v35 = vadd.f32 %v3765_v28, %v3764_v58 }
 0x4c3   :  { %v11403_v5 = vadd.f32 %v3414_v45, %v3350_v26  ;;  %v2390_v30 = vpop.f32.mrb[84].mxu0  ;;  %v3570_v45 = vsel %vm80_vm0, %v11321_v62, 0.0  ;;  %v3767_v33 = vsel %vm80_vm0, %v3669_v48, 0.0  ;;  %v3572_v26 = vsel %vm80_vm0, %v11352_v8, 0.0 }
 0x4c4   :  { %v11408_v38 = vadd.f32 %v3413_v42, %v14415_v59  ;;  %v2392_v54 = vpop.f32.mrb[85].mxu0  ;;  %v3006_v14 = vrot.slane %v2390_v30, 7  ;;  %v3571_v19 = vadd.f32 %v3570_v45, %v3569_v29  ;;  %v3768_v58 = vadd.f32 %v3767_v33, %v3766_v35  ;;  %v14419_v45 = vld [vmem:[#allocation17_spill] sm:$0xff] }
 0x4c5   :  { %14414 = vst [vmem:[#allocation12_spill] sm:$0xff] %v11403_v5  ;;  %v2394_v17 = vpop.f32.mrb[86].mxu0  ;;  %v3671_v62 = vmul.f32 %v11349_v56, %v11349_v56  ;;  %v3576_v33 = vsel %vm80_vm0, %v11380_v46, 0.0 }
 0x4c6   :  { %14416 = vst [vmem:[#allocation13_spill] sm:$0xff] %v11408_v38  ;;  %v3038_v7 = vrot.slane %v2394_v17, 7  ;;  %v2396_v36 = vpop.f32.mrb[87].mxu0  ;;  %v14417_v17 = vld [vmem:[#allocation18_spill] sm:$0xff]  ;;  %v3573_v8 = vadd.f32 %v3572_v26, %v3571_v19 }
 0x4c7   :  { %v3352_v48 = vsel %vm3179_vm4, %v14417_v17, 0.0 }
 0x4c8   :  { %v3103_v42 = vsel %vm3049_vm2, %v3038_v7, %v3006_v14  ;;  %v3071_v11 = vsel %vm3049_vm2, %v3006_v14, %v3038_v7  ;;  %v3672_v7 = vmul.f32 %v11380_v46, %v11380_v46  ;;  %v3770_v14 = vadd.f32 %v3769_v20, %v3768_v58 }
 0x4c9   :  { %v3156_v28 = vsel %vm2983_vm3, %v3103_v42, 0.0  ;;  %v3416_v30 = vadd.f32 %v3071_v11, %v2396_v36  ;;  %v3574_v36 = vsel %vm80_vm0, %v11349_v56, 0.0  ;;  %v3673_v58 = vmul.f32 %v11373_v1, %v11373_v1 }
 0x4ca   :  { %v3415_v59 = vadd.f32 %v3156_v28, %v2392_v54  ;;  %v3575_v28 = vadd.f32 %v3574_v36, %v3573_v8  ;;  %v3773_v17 = vsel %vm80_vm0, %v3672_v7, 0.0 }
 0x4cb   :  { %v11431_v29 = vadd.f32 %v3416_v30, %v3352_v48  ;;  %v2400_v39 = vpop.f32.mrb[88].mxu0  ;;  %v3771_v30 = vsel %vm80_vm0, %v3671_v62, 0.0 }
 0x4cc   :  { %v11434_v42 = vadd.f32 %v3415_v59, %v14419_v45  ;;  %v2402_v35 = vpop.f32.mrb[89].mxu0  ;;  %v3007_v26 = vrot.slane %v2400_v39, 7  ;;  %v3772_v20 = vadd.f32 %v3771_v30, %v3770_v14  ;;  %v3577_v45 = vadd.f32 %v3576_v33, %v3575_v28  ;;  %v14421_v14 = vld [vmem:[#allocation23_spill] sm:$0xff] }
 0x4cd   :  { %14418 = vst [vmem:[#allocation14_spill] sm:$0xff] %v11431_v29  ;;  %v2404_v54 = vpop.f32.mrb[90].mxu0  ;;  %v3674_v39 = vmul.f32 %v11408_v38, %v11408_v38  ;;  %v3354_v36 = vsel %vm3179_vm4, %v14421_v14, 0.0  ;;  %v3580_v33 = vsel %vm80_vm0, %v11408_v38, 0.0 }
 0x4ce   :  { %14420 = vst [vmem:[#allocation15_spill] sm:$0xff] %v11434_v42  ;;  %v3039_v11 = vrot.slane %v2404_v54, 7  ;;  %v2406_v19 = vpop.f32.mrb[91].mxu0  ;;  %v3774_v54 = vadd.f32 %v3773_v17, %v3772_v20  ;;  %v3676_v38 = vmul.f32 %v11434_v42, %v11434_v42 }
 0x4cf   :  { %v3777_v17 = vsel %vm80_vm0, %v3674_v39, 0.0 }
 0x4d0   :  { %v3104_v59 = vsel %vm3049_vm2, %v3039_v11, %v3007_v26  ;;  %v3072_v48 = vsel %vm3049_vm2, %v3007_v26, %v3039_v11  ;;  %v3578_v26 = vsel %vm80_vm0, %v11373_v1, 0.0  ;;  %v14423_v11 = vld [vmem:[#allocation22_spill] sm:$0xff]  ;;  %v3675_v1 = vmul.f32 %v11403_v5, %v11403_v5 }
 0x4d1   :  { %v3158_v8 = vsel %vm2983_vm3, %v3104_v59, 0.0  ;;  %v3418_v62 = vadd.f32 %v3072_v48, %v2406_v19  ;;  %v3579_v19 = vadd.f32 %v3578_v26, %v3577_v45  ;;  %v3584_v26 = vsel %vm80_vm0, %v11434_v42, 0.0 }
 0x4d2   :  { %v3417_v7 = vadd.f32 %v3158_v8, %v2402_v35  ;;  %v3775_v35 = vsel %vm80_vm0, %v3673_v58, 0.0 }
 0x4d3   :  { %v11455_v30 = vadd.f32 %v3418_v62, %v3354_v36  ;;  %v2410_v46 = vpop.f32.mrb[92].mxu0  ;;  %v3776_v48 = vadd.f32 %v3775_v35, %v3774_v54  ;;  %v3581_v36 = vadd.f32 %v3580_v33, %v3579_v19  ;;  %v3582_v54 = vsel %vm80_vm0, %v11403_v5, 0.0  ;;  %v8904_v5 = vld [vmem:[%s14098_s2 + $0x4c] ss:$12 sps:$4 sm:$0xff]  }
 0x4d4   :  { %v11462_v28 = vadd.f32 %v3417_v7, %v14423_v11  ;;  %v2412_v59 = vpop.f32.mrb[93].mxu0  ;;  %v3008_v8 = vrot.slane %v2410_v46, 7  ;;  %v14425_v11 = vld [vmem:[#allocation21_spill] sm:$0xff] }
 0x4d5   :  { %14422 = vst [vmem:[#allocation28_spill] sm:$0xff] %v11455_v30  ;;  %v2414_v20 = vpop.f32.mrb[94].mxu0  ;;  %v3778_v7 = vadd.f32 %v3777_v17, %v3776_v48  ;;  %v3356_v19 = vsel %vm3179_vm4, %v14425_v11, 0.0  ;;  %v3583_v35 = vadd.f32 %v3582_v54, %v3581_v36  ;;  %v3779_v17 = vsel %vm80_vm0, %v3675_v1, 0.0 }
 0x4d6   :  { %14424 = vst [vmem:[#allocation29_spill] sm:$0xff] %v11462_v28  ;;  %v3040_v62 = vrot.slane %v2414_v20, 7  ;;  %v2416_v14 = vpop.f32.mrb[95].mxu0  ;;  %v3781_v20 = vsel %vm80_vm0, %v3676_v38, 0.0  ;;  %v3678_v11 = vmul.f32 %v11462_v28, %v11462_v28 }
 0x4d8   :  { %v3105_v45 = vsel %vm3049_vm2, %v3040_v62, %v3008_v8  ;;  %v3073_v58 = vsel %vm3049_vm2, %v3008_v8, %v3040_v62  ;;  %v3780_v62 = vadd.f32 %v3779_v17, %v3778_v7  ;;  %v8901_v7 = vld [vmem:[%s14098_s2 + $0x34] ss:$12 sps:$4 sm:$0xff]  }
 0x4d9   :  { %v3160_v39 = vsel %vm2983_vm3, %v3105_v45, 0.0  ;;  %v3420_v46 = vadd.f32 %v3073_v58, %v2416_v14  ;;  %v3677_v14 = vmul.f32 %v11431_v29, %v11431_v29  ;;  %v14427_v45 = vld [vmem:[#allocation20_spill] sm:$0xff]  ;;  %4206 = vmatprep.subr.bf16.mxu0 %v8901_v7 }
 0x4da   :  { %v3419_v33 = vadd.f32 %v3160_v39, %v2412_v59  ;;  %v3585_v39 = vadd.f32 %v3584_v26, %v3583_v35  ;;  %v3782_v54 = vadd.f32 %v3781_v20, %v3780_v62 }
 0x4db   :  { %v11485_v48 = vadd.f32 %v3420_v46, %v3356_v19  ;;  %v2420_v8 = vpop.f32.mrb[96].mxu0  ;;  %v3586_v46 = vsel %vm80_vm0, %v11431_v29, 0.0  ;;  %v3783_v26 = vsel %vm80_vm0, %v3677_v14, 0.0  ;;  %v3588_v19 = vsel %vm80_vm0, %v11462_v28, 0.0  ;;  %v14429_v29 = vld [vmem:[#allocation26_spill] sm:$0xff] }
 0x4dc   :  { %v11490_v58 = vadd.f32 %v3419_v33, %v14427_v45  ;;  %v2422_v59 = vpop.f32.mrb[97].mxu0  ;;  %v3009_v1 = vrot.slane %v2420_v8, 7  ;;  %v8899_v33 = vld [vmem:[%s14098_s2 + $0x30] ss:$12 sps:$4 sm:$0xff]   ;;  %v3587_v20 = vadd.f32 %v3586_v46, %v3585_v39  ;;  %v3785_v8 = vsel %vm80_vm0, %v3678_v11, 0.0 }
 0x4dd   :  { %14426 = vst [vmem:[#allocation30_spill] sm:$0xff] %v11485_v48  ;;  %v2424_v36 = vpop.f32.mrb[98].mxu0  ;;  %4207 = vmatpush1.bf16.msra.mxu0 %v8899_v33  ;;  %v3358_v28 = vsel %vm3179_vm4, %v14429_v29, 0.0  ;;  %v3679_v39 = vmul.f32 %v11455_v30, %v11455_v30  ;;  %v14431_v29 = vld [vmem:[#allocation25_spill] sm:$0xff] }
 0x4de   :  { %14428 = vst [vmem:[#allocation31_spill] sm:$0xff] %v11490_v58  ;;  %v3041_v42 = vrot.slane %v2424_v36, 7  ;;  %v2426_v38 = vpop.f32.mrb[99].mxu0  ;;  %v3784_v36 = vadd.f32 %v3783_v26, %v3782_v54  ;;  %v3680_v11 = vmul.f32 %v11490_v58, %v11490_v58  ;;  %4208 = vmatprep.subr.bf16.mxu0 %v8904_v5  ;;  %v3590_v26 = vsel %vm80_vm0, %v11455_v30, 0.0  ;;  %v8907_v5 = vld [vmem:[%s14098_s2 + $0x64] ss:$12 sps:$4 sm:$0xff]  }
 0x4df   :  { %4889 = vmatprep.subr.bf16.mxu1 %v8907_v5 }
 0x4e0   :  { %v3106_v35 = vsel %vm3049_vm2, %v3041_v42, %v3009_v1  ;;  %v3074_v17 = vsel %vm3049_vm2, %v3009_v1, %v3041_v42  ;;  %v3589_v42 = vadd.f32 %v3588_v19, %v3587_v20  ;;  %v3786_v54 = vadd.f32 %v3785_v8, %v3784_v36 }
 0x4e1   :  { %v3162_v62 = vsel %vm2983_vm3, %v3106_v35, 0.0  ;;  %v3422_v45 = vadd.f32 %v3074_v17, %v2426_v38  ;;  %v3789_v8 = vsel %vm80_vm0, %v3680_v11, 0.0  ;;  %v3681_v36 = vmul.f32 %v11485_v48, %v11485_v48 }
 0x4e2   :  { %v3421_v14 = vadd.f32 %v3162_v62, %v2422_v59  ;;  %v8902_v59 = vld [vmem:[%s14098_s2 + $0x48] ss:$12 sps:$4 sm:$0xff]   ;;  %v3591_v20 = vadd.f32 %v3590_v26, %v3589_v42  ;;  %v3787_v62 = vsel %vm80_vm0, %v3679_v39, 0.0 }
 0x4e3   :  { %v11522_v1 = vadd.f32 %v3422_v45, %v3358_v28  ;;  %v2430_v38 = vpop.f32.mrb[100].mxu0  ;;  %4209 = vmatpush1.bf16.msra.mxu0 %v8902_v59  ;;  %v3592_v28 = vsel %vm80_vm0, %v11490_v58, 0.0  ;;  %v3788_v45 = vadd.f32 %v3787_v62, %v3786_v54 }
 0x4e4   :  { %v11528_v7 = vadd.f32 %v3421_v14, %v14431_v29  ;;  %v2432_v46 = vpop.f32.mrb[101].mxu0  ;;  %v3010_v19 = vrot.slane %v2430_v38, 7  ;;  %v3593_v59 = vadd.f32 %v3592_v28, %v3591_v20  ;;  %v3594_v28 = vsel %vm80_vm0, %v11485_v48, 0.0 }
 0x4e5   :  { %14430 = vst [vmem:[#allocation32_spill] sm:$0xff] %v11522_v1  ;;  %v2434_v33 = vpop.f32.mrb[102].mxu0  ;;  %v3790_v29 = vadd.f32 %v3789_v8, %v3788_v45 }
 0x4e6   :  { %14432 = vst [vmem:[#allocation33_spill] sm:$0xff] %v11528_v7  ;;  %v3042_v35 = vrot.slane %v2434_v33, 7  ;;  %v2436_v17 = vpop.f32.mrb[103].mxu0  ;;  %v3682_v42 = vmul.f32 %v11528_v7, %v11528_v7  ;;  %v14433_v33 = vld [vmem:[#allocation24_spill] sm:$0xff]  ;;  %v3595_v5 = vadd.f32 %v3594_v28, %v3593_v59 }
 0x4e7   :  { %v3360_v26 = vsel %vm3179_vm4, %v14433_v33, 0.0 }
 0x4e8   :  { %v3107_v14 = vsel %vm3049_vm2, %v3042_v35, %v3010_v19  ;;  %v3075_v38 = vsel %vm3049_vm2, %v3010_v19, %v3042_v35  ;;  %v3596_v19 = vsel %vm80_vm0, %v11528_v7, 0.0  ;;  %v14435_v35 = vld [vmem:[#allocation7_spill] sm:$0xff]  ;;  %v3793_v8 = vsel %vm80_vm0, %v3682_v42, 0.0 }
 0x4e9   :  { %v3164_v39 = vsel %vm2983_vm3, %v3107_v14, 0.0  ;;  %v3424_v11 = vadd.f32 %v3075_v38, %v2436_v17  ;;  %v3597_v33 = vadd.f32 %v3596_v19, %v3595_v5 }
 0x4ea   :  { %v3423_v54 = vadd.f32 %v3164_v39, %v2432_v46  ;;  %v3791_v46 = vsel %vm80_vm0, %v3681_v36, 0.0 }
 0x4eb   :  { %v11552_v62 = vadd.f32 %v3424_v11, %v3360_v26  ;;  %v2440_v58 = vpop.f32.mrb[104].mxu0  ;;  %v3792_v14 = vadd.f32 %v3791_v46, %v3790_v29  ;;  %v3683_v26 = vmul.f32 %v11522_v1, %v11522_v1  ;;  %v3598_v29 = vsel %vm80_vm0, %v11522_v1, 0.0 }
 0x4ec   :  { %v11559_v20 = vadd.f32 %v3423_v54, %v14435_v35  ;;  %v2442_v17 = vpop.f32.mrb[105].mxu0  ;;  %v3011_v38 = vrot.slane %v2440_v58, 7  ;;  %v14437_v35 = vld [vmem:[#allocation40_spill] sm:$0xff]  ;;  %v3599_v46 = vadd.f32 %v3598_v29, %v3597_v33 }
 0x4ed   :  { %14434 = vst [vmem:[#allocation34_spill] sm:$0xff] %v11552_v62  ;;  %v2444_v45 = vpop.f32.mrb[106].mxu0  ;;  %v3794_v54 = vadd.f32 %v3793_v8, %v3792_v14  ;;  %v3362_v5 = vsel %vm3179_vm4, %v14437_v35, 0.0  ;;  %v3795_v8 = vsel %vm80_vm0, %v3683_v26, 0.0 }
 0x4ee   :  { %14436 = vst [vmem:[#allocation35_spill] sm:$0xff] %v11559_v20  ;;  %v3043_v39 = vrot.slane %v2444_v45, 7  ;;  %v2446_v11 = vpop.f32.mrb[107].mxu0  ;;  %v3684_v7 = vmul.f32 %v11559_v20, %v11559_v20  ;;  %v3600_v28 = vsel %vm80_vm0, %v11559_v20, 0.0 }
 0x4f0   :  { %v3108_v59 = vsel %vm3049_vm2, %v3043_v39, %v3011_v38  ;;  %v3076_v36 = vsel %vm3049_vm2, %v3011_v38, %v3043_v39  ;;  %v3797_v45 = vsel %vm80_vm0, %v3684_v7, 0.0  ;;  %v3796_v39 = vadd.f32 %v3795_v8, %v3794_v54 }
 0x4f1   :  { %v3166_v42 = vsel %vm2983_vm3, %v3108_v59, 0.0  ;;  %v3426_v58 = vadd.f32 %v3076_v36, %v2446_v11  ;;  %v3685_v11 = vmul.f32 %v11552_v62, %v11552_v62  ;;  %v14438_v59 = vld [vmem:[#allocation39_spill] sm:$0xff] }
 0x4f2   :  { %v3425_v19 = vadd.f32 %v3166_v42, %v2442_v17  ;;  %v3601_v42 = vadd.f32 %v3600_v28, %v3599_v46  ;;  %v3798_v1 = vadd.f32 %v3797_v45, %v3796_v39  ;;  %v14440_v39 = vld [vmem:[#allocation8_spill] sm:$0xff] }
 0x4f3   :  { %v11582_v14 = vadd.f32 %v3426_v58, %v3362_v5  ;;  %v2450_v38 = vpop.f32.mrb[108].mxu0  ;;  %v3602_v58 = vsel %vm80_vm0, %v11552_v62, 0.0  ;;  %v3799_v54 = vsel %vm80_vm0, %v3685_v11, 0.0  ;;  %v3364_v11 = vsel %vm3179_vm4, %v14440_v39, 0.0 }
 0x4f4   :  { %v11587_v36 = vadd.f32 %v3425_v19, %v14438_v59  ;;  %v2452_v17 = vpop.f32.mrb[109].mxu0  ;;  %v3012_v26 = vrot.slane %v2450_v38, 7  ;;  %v3603_v5 = vadd.f32 %v3602_v58, %v3601_v42  ;;  %v3800_v45 = vadd.f32 %v3799_v54, %v3798_v1 }
 0x4f5   :  { %v2454_v20 = vpop.f32.mrb[110].mxu0  ;;  %v3606_v1 = vsel %vm80_vm0, %v11582_v14, 0.0 }
 0x4f6   :  { %14439 = vst [vmem:[#allocation36_spill] sm:$0xff] %v11587_v36  ;;  %v3686_v33 = vmul.f32 %v11587_v36, %v11587_v36  ;;  %v3044_v29 = vrot.slane %v2454_v20, 7  ;;  %v2456_v7 = vpop.f32.mrb[111].mxu0  ;;  %v3604_v35 = vsel %vm80_vm0, %v11587_v36, 0.0  ;;  %v3687_v36 = vmul.f32 %v11582_v14, %v11582_v14 }
 0x4f7   :  { %v3605_v59 = vadd.f32 %v3604_v35, %v3603_v5 }
 0x4f8   :  { %v3109_v19 = vsel %vm3049_vm2, %v3044_v29, %v3012_v26  ;;  %v3077_v28 = vsel %vm3049_vm2, %v3012_v26, %v3044_v29  ;;  %v3801_v46 = vsel %vm80_vm0, %v3686_v33, 0.0  ;;  %v14442_v29 = vld [vmem:[#allocation27_spill] sm:$0xff] }
 0x4f9   :  { %v3168_v20 = vsel %vm2983_vm3, %v3109_v19, 0.0  ;;  %v3428_v8 = vadd.f32 %v3077_v28, %v2456_v7  ;;  %v3802_v42 = vadd.f32 %v3801_v46, %v3800_v45  ;;  %v3607_v5 = vadd.f32 %v3606_v1, %v3605_v59 }
 0x4fa   :  { %v3427_v38 = vadd.f32 %v3168_v20, %v2452_v17  ;;  %v3803_v46 = vsel %vm80_vm0, %v3687_v36, 0.0  ;;  %v3366_v36 = vsel %vm3179_vm4, %v10794_v47, 0.0 }
 0x4fb   :  { %v11608_v62 = vadd.f32 %v3428_v8, %v3364_v11  ;;  %v2460_v26 = vpop.f32.mrb[112].mxu0  ;;  %v3804_v20 = vadd.f32 %v3803_v46, %v3802_v42 }
 0x4fc   :  { %v11611_v33 = vadd.f32 %v3427_v38, %v14442_v29  ;;  %v2462_v58 = vpop.f32.mrb[113].mxu0  ;;  %v3013_v35 = vrot.slane %v2460_v26, 7 }
 0x4fd   :  { %14441 = vst [vmem:[#allocation37_spill] sm:$0xff] %v11608_v62  ;;  %v2464_v17 = vpop.f32.mrb[114].mxu0  ;;  %v3689_v11 = vmul.f32 %v11608_v62, %v11608_v62 }
 0x4fe   :  { %14443 = vst [vmem:[#allocation5_spill] sm:$0xff] %v11611_v33  ;;  %v3688_v7 = vmul.f32 %v11611_v33, %v11611_v33  ;;  %v3608_v54 = vsel %vm80_vm0, %v11611_v33, 0.0  ;;  %v3045_v19 = vrot.slane %v2464_v17, 7  ;;  %v2466_v28 = vpop.f32.mrb[115].mxu0 }
 0x4ff   :  { %v3609_v39 = vadd.f32 %v3608_v54, %v3607_v5  ;;  %v14445_v54 = vld [vmem:[#allocation9_spill] sm:$0xff]  ;;  %v3807_v46 = vsel %vm80_vm0, %v3689_v11, 0.0 }
 0x500   :  { %v3805_v8 = vsel %vm80_vm0, %v3688_v7, 0.0  ;;  %v3110_v45 = vsel %vm3049_vm2, %v3045_v19, %v3013_v35  ;;  %v3078_v38 = vsel %vm3049_vm2, %v3013_v35, %v3045_v19  ;;  %v3610_v7 = vsel %vm80_vm0, %v11608_v62, 0.0  ;;  %v14448_v62 = vld [vmem:[#allocation41_spill] sm:$0xff] }
 0x501   :  { %v3170_v26 = vsel %vm2983_vm3, %v3110_v45, 0.0  ;;  %v3430_v29 = vadd.f32 %v3078_v38, %v2466_v28  ;;  %v3806_v42 = vadd.f32 %v3805_v8, %v3804_v20  ;;  %v3611_v5 = vadd.f32 %v3610_v7, %v3609_v39 }
 0x502   :  { %v3429_v59 = vadd.f32 %v3170_v26, %v2462_v58 }
 0x503   :  { %v11632_v1 = vadd.f32 %v3430_v29, %v3366_v36  ;;  %v2470_v17 = vpop.f32.mrb[116].mxu0  ;;  %v3808_v26 = vadd.f32 %v3807_v46, %v3806_v42  ;;  %v14447_v46 = vld [vmem:[#allocation42_spill] sm:$0xff] }
 0x504   :  { %v11637_v35 = vadd.f32 %v3429_v59, %v14445_v54  ;;  %v2472_v19 = vpop.f32.mrb[117].mxu0  ;;  %v3014_v28 = vrot.slane %v2470_v17, 7 }
 0x505   :  { %14444 = vst [vmem:[#allocation38_spill] sm:$0xff] %v11632_v1  ;;  %v2474_v58 = vpop.f32.mrb[118].mxu0  ;;  %v3691_v20 = vmul.f32 %v11632_v1, %v11632_v1  ;;  %v3614_v39 = vsel %vm80_vm0, %v11632_v1, 0.0 }
 0x506   :  { %14446 = vst [vmem:[#allocation16_spill] sm:$0xff] %v11637_v35  ;;  %v3690_v45 = vmul.f32 %v11637_v35, %v11637_v35  ;;  %v3612_v47 = vsel %vm80_vm0, %v11637_v35, 0.0  ;;  %v3046_v8 = vrot.slane %v2474_v58, 7  ;;  %v2476_v38 = vpop.f32.mrb[119].mxu0 }
 0x507   :  { %v3613_v29 = vadd.f32 %v3612_v47, %v3611_v5  ;;  %v3811_v42 = vsel %vm80_vm0, %v3691_v20, 0.0  ;;  %v3368_v47 = vsel %vm3179_vm4, %v14447_v46, 0.0  ;;  %v3370_v46 = vsel %vm3179_vm4, %v10817_v10, 0.0 }
 0x508   :  { %v3809_v11 = vsel %vm80_vm0, %v3690_v45, 0.0  ;;  %v3111_v59 = vsel %vm3049_vm2, %v3046_v8, %v3014_v28  ;;  %v3079_v36 = vsel %vm3049_vm2, %v3014_v28, %v3046_v8 }
 0x509   :  { %v3615_v17 = vadd.f32 %v3614_v39, %v3613_v29  ;;  %v3810_v7 = vadd.f32 %v3809_v11, %v3808_v26  ;;  %v3172_v54 = vsel %vm2983_vm3, %v3111_v59, 0.0  ;;  %v3432_v58 = vadd.f32 %v3079_v36, %v2476_v38 }
 0x50a   :  { %v3431_v5 = vadd.f32 %v3172_v54, %v2472_v19 }
 0x50b   :  { %v3812_v45 = vadd.f32 %v3811_v42, %v3810_v7  ;;  %v11659_v1 = vadd.f32 %v3432_v58, %v3368_v47  ;;  %v2480_v35 = vpop.f32.mrb[120].mxu0 }
 0x50c   :  { %v11662_v33 = vadd.f32 %v3431_v5, %v14448_v62  ;;  %v2482_v28 = vpop.f32.mrb[121].mxu0  ;;  %v3015_v8 = vrot.slane %v2480_v35, 7  ;;  %v14473_v37 = vld [vmem:[#allocation38_spill] sm:$0xff] }
 0x50d   :  { %v2484_v26 = vpop.f32.mrb[122].mxu0  ;;  %v3693_v20 = vmul.f32 %v11659_v1, %v11659_v1  ;;  %v3618_v59 = vsel %vm80_vm0, %v11659_v1, 0.0 }
 0x50e   :  { %14449 = vst [vmem:[#allocation53_spill] sm:$0xff] %v11662_v33  ;;  %v3692_v38 = vmul.f32 %v11662_v33, %v11662_v33  ;;  %v3616_v19 = vsel %vm80_vm0, %v11662_v33, 0.0  ;;  %v3047_v29 = vrot.slane %v2484_v26, 7  ;;  %v2486_v39 = vpop.f32.mrb[123].mxu0 }
 0x50f   :  { %v3617_v11 = vadd.f32 %v3616_v19, %v3615_v17  ;;  %v3815_v5 = vsel %vm80_vm0, %v3693_v20, 0.0 }
 0x510   :  { %v3813_v62 = vsel %vm80_vm0, %v3692_v38, 0.0  ;;  %v3112_v35 = vsel %vm3049_vm2, %v3047_v29, %v3015_v8  ;;  %v3080_v36 = vsel %vm3049_vm2, %v3015_v8, %v3047_v29 }
 0x511   :  { %v3619_v7 = vadd.f32 %v3618_v59, %v3617_v11  ;;  %v3814_v54 = vadd.f32 %v3813_v62, %v3812_v45  ;;  %v3174_v58 = vsel %vm2983_vm3, %v3112_v35, 0.0  ;;  %v3434_v42 = vadd.f32 %v3080_v36, %v2486_v39 }
 0x512   :  { %v3433_v17 = vadd.f32 %v3174_v58, %v2482_v28 }
 0x513   :  { %v3816_v47 = vadd.f32 %v3815_v5, %v3814_v54  ;;  %v11683_v26 = vadd.f32 %v3434_v42, %v3370_v46  ;;  %v2490_v38 = vpop.f32.mrb[124].mxu0  ;;  %v3372_v46 = vsel %vm3179_vm4, %v10809_v52, 0.0 }
 0x514   :  { %v11686_v19 = vadd.f32 %v3433_v17, %v10813_v21  ;;  %v2492_v8 = vpop.f32.mrb[125].mxu0  ;;  %v3016_v45 = vrot.slane %v2490_v38, 7 }
 0x515   :  { %v2494_v29 = vpop.f32.mrb[126].mxu0  ;;  %v3695_v20 = vmul.f32 %v11683_v26, %v11683_v26  ;;  %v3622_v62 = vsel %vm80_vm0, %v11683_v26, 0.0 }
 0x516   :  { %v3694_v39 = vmul.f32 %v11686_v19, %v11686_v19  ;;  %v3620_v28 = vsel %vm80_vm0, %v11686_v19, 0.0  ;;  %v3048_v10 = vrot.slane %v2494_v29, 7  ;;  %v2496_v11 = vpop.f32.mrb[127].mxu0 }
 0x517   :  { %v3621_v59 = vadd.f32 %v3620_v28, %v3619_v7  ;;  %v3819_v17 = vsel %vm80_vm0, %v3695_v20, 0.0 }
 0x518   :  { %v3817_v21 = vsel %vm80_vm0, %v3694_v39, 0.0  ;;  %v3113_v35 = vsel %vm3049_vm2, %v3048_v10, %v3016_v45  ;;  %v3081_v36 = vsel %vm3049_vm2, %v3016_v45, %v3048_v10 }
 0x519   :  { %v3623_v54 = vadd.f32 %v3622_v62, %v3621_v59  ;;  %v3818_v58 = vadd.f32 %v3817_v21, %v3816_v47  ;;  %v3176_v42 = vsel %vm2983_vm3, %v3113_v35, 0.0  ;;  %v3436_v5 = vadd.f32 %v3081_v36, %v2496_v11 }
 0x51a   :  { %v3435_v7 = vadd.f32 %v3176_v42, %v2492_v8 }
 0x51b   :  { %v3820_v38 = vadd.f32 %v3819_v17, %v3818_v58  ;;  %v11707_v29 = vadd.f32 %v3436_v5, %v3372_v46 }
 0x51c   :  { %v11710_v39 = vadd.f32 %v3435_v7, %v10805_v51 }
 0x51d   :  { %v3697_v28 = vmul.f32 %v11707_v29, %v11707_v29  ;;  %v3626_v20 = vsel %vm80_vm0, %v11707_v29, 0.0 }
 0x51e   :  { %14450 = vst [vmem:[#allocation52_spill] sm:$0xff] %v11710_v39  ;;  %v3696_v47 = vmul.f32 %v11710_v39, %v11710_v39  ;;  %v3624_v45 = vsel %vm80_vm0, %v11710_v39, 0.0 }
 0x51f   :  { %v3625_v8 = vadd.f32 %v3624_v45, %v3623_v54  ;;  %v3823_v51 = vsel %vm80_vm0, %v3697_v28, 0.0 }
 0x520   :  { %v3821_v52 = vsel %vm80_vm0, %v3696_v47, 0.0 }
 0x521   :  { %v3627_v10 = vadd.f32 %v3626_v20, %v3625_v8  ;;  %v3822_v11 = vadd.f32 %v3821_v52, %v3820_v38  ;;  %v14468_v52 = vld [vmem:[#allocation34_spill] sm:$0xff]  ;;  %v14471_v8 = vld [vmem:[#allocation37_spill] sm:$0xff] }
 0x523   :  { %v3628_v59 = vrot.slane %v3627_v10, 4  ;;  %v3824_v62 = vadd.f32 %v3823_v51, %v3822_v11 }
 0x525   :  { %v3629_v21 = vadd.f32 %v3628_v59, %v3627_v10  ;;  %v3825_v35 = vrot.slane %v3824_v62, 4 }
 0x527   :  { %v3630_v36 = vrot.slane %v3629_v21, 2  ;;  %v3826_v58 = vadd.f32 %v3825_v35, %v3824_v62  ;;  %v14470_v62 = vld [vmem:[#allocation5_spill] sm:$0xff] }
 0x529   :  { %v3631_v42 = vadd.f32 %v3630_v36, %v3629_v21  ;;  %v3827_v5 = vrot.slane %v3826_v58, 2  ;;  %v14462_v36 = vld [vmem:[#allocation14_spill] sm:$0xff]  ;;  %v14464_v21 = vld [vmem:[#allocation31_spill] sm:$0xff] }
 0x52b   :  { %v3632_v17 = vrot.slane %v3631_v42, 1  ;;  %v3828_v7 = vadd.f32 %v3827_v5, %v3826_v58  ;;  %v14461_v58 = vld [vmem:[#allocation15_spill] sm:$0xff] }
 0x52d   :  { %v3633_v54 = vadd.f32 %v3632_v17, %v3631_v42  ;;  %v3829_v46 = vrot.slane %v3828_v7, 1  ;;  %v14458_v17 = vld [vmem:[#allocation50_spill] sm:$0xff]  ;;  %v14460_v42 = vld [vmem:[#allocation12_spill] sm:$0xff] }
 0x52f   :  { %v3830_v45 = vadd.f32 %v3829_v46, %v3828_v7  ;;  %v11722_v40 = vmul.f32 0.001953125, %v3633_v54  ;;  %v14452_v54 = vld [vmem:[#allocation44_spill] sm:$0xff]  ;;  %v14456_v7 = vld [vmem:[#allocation49_spill] sm:$0xff]  ;;  %v14457_v46 = vld [vmem:[#allocation11_spill] sm:$0xff] }
 0x531   :  { %14451 = vst [vmem:[#allocation54_spill] sm:$0xff] %v11722_v40  ;;  %v3832_v47 = vmul.f32 0.001953125, %v3830_v45  ;;  %v3833_v38 = vmul.f32 %v11722_v40, %v11722_v40  ;;  %v14453_v45 = vld [vmem:[#allocation45_spill] sm:$0xff]  ;;  %v14477_v39 = vsub.f32 %v11707_v29, %v11722_v40  ;;  %v14479_v30 = vsub.f32 %v10933_v43, %v11722_v40 }
 0x532   :  { %v14480_v59 = vsub.f32 %v10930_v6, %v11722_v40  ;;  %v14481_v10 = vsub.f32 %v10950_v13, %v11722_v40 }
 0x533   :  { %v3834_v51 = vsub.f32 %v3832_v47, %v3833_v38  ;;  %v14459_v47 = vld [vmem:[#allocation13_spill] sm:$0xff] }
 0x534   :  { %v14463_v38 = vld [vmem:[#allocation29_spill] sm:$0xff] }
 0x535   :  { %v3835_v5 = vadd.f32 1e-05, %v3834_v51  ;;  %v14455_v51 = vld [vmem:[#allocation47_spill] sm:$0xff] }
 0x537   :  { %8923 = vrsqrt.f32 %v3835_v5  ;;  %v14454_v5 = vld [vmem:[#allocation48_spill] sm:$0xff] }
 0x541   :  { %v11844_v35 = vpop.eup %8923 }
 0x542   :  { %14474 = vst [vmem:[#allocation58_spill] sm:$0xff] %v11844_v35  ;;  %v11858_v33 = vmul.f32 %v11844_v35, %v14477_v39  ;;  %v11864_v48 = vmul.f32 %v11844_v35, %v14479_v30  ;;  %v11870_v11 = vmul.f32 %v11844_v35, %v14480_v59  ;;  %v11876_v29 = vmul.f32 %v11844_v35, %v14481_v10 }
 0x543   :  { %v14482_v39 = vsub.f32 %v10947_v25, %v11722_v40  ;;  %v14483_v30 = vsub.f32 %v10967_v50, %v11722_v40  ;;  %v14484_v59 = vsub.f32 %v10964_v49, %v11722_v40  ;;  %v14485_v10 = vsub.f32 %v10984_v34, %v11722_v40 }
 0x544   :  { %14478 = vst [vmem:[#allocation57_spill] sm:$0xff] %v11858_v33 }
 0x545   :  { %v11882_v43 = vmul.f32 %v11844_v35, %v14482_v39  ;;  %v11888_v6 = vmul.f32 %v11844_v35, %v14483_v30  ;;  %v11894_v13 = vmul.f32 %v11844_v35, %v14484_v59  ;;  %v11900_v25 = vmul.f32 %v11844_v35, %v14485_v10 }
 0x546   :  { %v14486_v39 = vsub.f32 %v10981_v22, %v11722_v40  ;;  %v14487_v30 = vsub.f32 %v11001_v0, %v11722_v40  ;;  %v14488_v59 = vsub.f32 %v10998_v41, %v11722_v40  ;;  %v14489_v10 = vsub.f32 %v11015_v57, %v11722_v40 }
 0x548   :  { %v11906_v50 = vmul.f32 %v11844_v35, %v14486_v39  ;;  %v11912_v49 = vmul.f32 %v11844_v35, %v14487_v30  ;;  %v11918_v34 = vmul.f32 %v11844_v35, %v14488_v59  ;;  %v11924_v22 = vmul.f32 %v11844_v35, %v14489_v10 }
 0x549   :  { %v14490_v39 = vsub.f32 %v11012_v55, %v11722_v40  ;;  %v14491_v30 = vsub.f32 %v11032_v2, %v11722_v40  ;;  %v14492_v59 = vsub.f32 %v11026_v3, %v11722_v40  ;;  %v14493_v10 = vsub.f32 %v11046_v18, %v11722_v40 }
 0x54b   :  { %v11930_v0 = vmul.f32 %v11844_v35, %v14490_v39  ;;  %v11936_v41 = vmul.f32 %v11844_v35, %v14491_v30  ;;  %v11942_v57 = vmul.f32 %v11844_v35, %v14492_v59  ;;  %v11948_v55 = vmul.f32 %v11844_v35, %v14493_v10 }
 0x54c   :  { %v14494_v39 = vsub.f32 %v11043_v23, %v11722_v40  ;;  %v14495_v30 = vsub.f32 %v11077_v44, %v11722_v40  ;;  %v14496_v59 = vsub.f32 %v11072_v12, %v11722_v40  ;;  %v14497_v10 = vsub.f32 %v11103_v15, %v11722_v40 }
 0x54e   :  { %v11954_v2 = vmul.f32 %v11844_v35, %v14494_v39  ;;  %v11960_v3 = vmul.f32 %v11844_v35, %v14495_v30  ;;  %v11966_v18 = vmul.f32 %v11844_v35, %v14496_v59  ;;  %v11972_v23 = vmul.f32 %v11844_v35, %v14497_v10 }
 0x54f   :  { %v14498_v39 = vsub.f32 %v11100_v16, %v11722_v40  ;;  %v14499_v30 = vsub.f32 %v11131_v4, %v11722_v40  ;;  %v14500_v59 = vsub.f32 %v11124_v61, %v11722_v40  ;;  %v14501_v10 = vsub.f32 %v11159_v63, %v11722_v40 }
 0x551   :  { %v11978_v44 = vmul.f32 %v11844_v35, %v14498_v39  ;;  %v11984_v12 = vmul.f32 %v11844_v35, %v14499_v30  ;;  %v11990_v15 = vmul.f32 %v11844_v35, %v14500_v59  ;;  %v11996_v16 = vmul.f32 %v11844_v35, %v14501_v10 }
 0x552   :  { %v14502_v39 = vsub.f32 %v11154_v9, %v11722_v40  ;;  %v14503_v30 = vsub.f32 %v11185_v24, %v11722_v40  ;;  %v14504_v59 = vsub.f32 %v11182_v27, %v11722_v40  ;;  %v14505_v10 = vsub.f32 %v11213_v53, %v11722_v40 }
 0x554   :  { %v12002_v4 = vmul.f32 %v11844_v35, %v14502_v39  ;;  %v12008_v61 = vmul.f32 %v11844_v35, %v14503_v30  ;;  %v12014_v63 = vmul.f32 %v11844_v35, %v14504_v59  ;;  %v12020_v9 = vmul.f32 %v11844_v35, %v14505_v10 }
 0x555   :  { %v14506_v39 = vsub.f32 %v11206_v32, %v11722_v40  ;;  %v14507_v30 = vsub.f32 %v14452_v54, %v11722_v40  ;;  %v14508_v59 = vsub.f32 %v11236_v31, %v11722_v40  ;;  %v14509_v10 = vsub.f32 %v14453_v45, %v11722_v40 }
 0x557   :  { %v12026_v24 = vmul.f32 %v11844_v35, %v14506_v39  ;;  %v12032_v27 = vmul.f32 %v11844_v35, %v14507_v30  ;;  %v12038_v53 = vmul.f32 %v11844_v35, %v14508_v59  ;;  %v12044_v32 = vmul.f32 %v11844_v35, %v14509_v10 }
 0x558   :  { %v14511_v39 = vsub.f32 %v11291_v60, %v11722_v40  ;;  %v14513_v30 = vsub.f32 %v14454_v5, %v11722_v40  ;;  %v14514_v59 = vsub.f32 %v14455_v51, %v11722_v40  ;;  %v14515_v10 = vsub.f32 %v14456_v7, %v11722_v40 }
 0x559   :  { %14510 = vst [vmem:[#allocation56_spill] sm:$0xff] %v12044_v32 }
 0x55a   :  { %v12050_v54 = vmul.f32 %v11844_v35, %v14511_v39  ;;  %v12056_v31 = vmul.f32 %v11844_v35, %v14513_v30  ;;  %v12062_v45 = vmul.f32 %v11844_v35, %v14514_v59  ;;  %v12068_v60 = vmul.f32 %v11844_v35, %v14515_v10 }
 0x55b   :  { %v14516_v39 = vsub.f32 %v11349_v56, %v11722_v40  ;;  %v14517_v30 = vsub.f32 %v14457_v46, %v11722_v40  ;;  %v14518_v59 = vsub.f32 %v14458_v17, %v11722_v40  ;;  %v14519_v10 = vsub.f32 %v14459_v47, %v11722_v40 }
 0x55c   :  { %14512 = vst [vmem:[#allocation55_spill] sm:$0xff] %v12050_v54 }
 0x55d   :  { %v12074_v5 = vmul.f32 %v11844_v35, %v14516_v39  ;;  %v12080_v51 = vmul.f32 %v11844_v35, %v14517_v30  ;;  %v12086_v7 = vmul.f32 %v11844_v35, %v14518_v59  ;;  %v12092_v56 = vmul.f32 %v11844_v35, %v14519_v10 }
 0x55e   :  { %v14520_v39 = vsub.f32 %v14460_v42, %v11722_v40  ;;  %v14521_v30 = vsub.f32 %v14461_v58, %v11722_v40  ;;  %v14522_v59 = vsub.f32 %v14462_v36, %v11722_v40  ;;  %v14523_v10 = vsub.f32 %v14463_v38, %v11722_v40 }
 0x560   :  { %v12098_v46 = vmul.f32 %v11844_v35, %v14520_v39  ;;  %v12104_v17 = vmul.f32 %v11844_v35, %v14521_v30  ;;  %v12110_v47 = vmul.f32 %v11844_v35, %v14522_v59  ;;  %v12116_v42 = vmul.f32 %v11844_v35, %v14523_v10  ;;  %v14524_v39 = vld [vmem:[#allocation28_spill] sm:$0xff]  ;;  %v14527_v59 = vld [vmem:[#allocation30_spill] sm:$0xff]  ;;  %v14529_v10 = vld [vmem:[#allocation33_spill] sm:$0xff] }
 0x561   :  { %v14525_v33 = vsub.f32 %v14524_v39, %v11722_v40  ;;  %v14526_v30 = vsub.f32 %v14464_v21, %v11722_v40  ;;  %v14528_v54 = vsub.f32 %v14527_v59, %v11722_v40  ;;  %v14530_v28 = vsub.f32 %v14529_v10, %v11722_v40 }
 0x563   :  { %v12122_v58 = vmul.f32 %v11844_v35, %v14525_v33  ;;  %v12128_v36 = vmul.f32 %v11844_v35, %v14526_v30  ;;  %v12134_v38 = vmul.f32 %v11844_v35, %v14528_v54  ;;  %v12140_v39 = vmul.f32 %v11844_v35, %v14530_v28  ;;  %v14532_v33 = vld [vmem:[#allocation32_spill] sm:$0xff]  ;;  %v14534_v30 = vld [vmem:[#allocation35_spill] sm:$0xff] }
 0x564   :  { %v14533_v32 = vsub.f32 %v14532_v33, %v11722_v40  ;;  %v14535_v20 = vsub.f32 %v14534_v30, %v11722_v40  ;;  %v14536_v54 = vsub.f32 %v14468_v52, %v11722_v40  ;;  %v14537_v28 = vld [vmem:[#allocation36_spill] sm:$0xff] }
 0x565   :  { %14531 = vst [vmem:[#allocation62_spill] sm:$0xff] %v12140_v39  ;;  %v14538_v39 = vsub.f32 %v14537_v28, %v11722_v40 }
 0x566   :  { %v12146_v21 = vmul.f32 %v11844_v35, %v14533_v32  ;;  %v12152_v59 = vmul.f32 %v11844_v35, %v14535_v20  ;;  %v12158_v10 = vmul.f32 %v11844_v35, %v14536_v54  ;;  %v14540_v32 = vsub.f32 %v11582_v14, %v11722_v40 }
 0x567   :  { %v12164_v33 = vmul.f32 %v11844_v35, %v14538_v39  ;;  %v14541_v20 = vsub.f32 %v14470_v62, %v11722_v40  ;;  %v14543_v54 = vsub.f32 %v14471_v8, %v11722_v40  ;;  %v14544_v39 = vld [vmem:[#allocation16_spill] sm:$0xff] }
 0x568   :  { %v12170_v30 = vmul.f32 %v11844_v35, %v14540_v32  ;;  %v14546_v32 = vsub.f32 %v14473_v37, %v11722_v40 }
 0x569   :  { %14539 = vst [vmem:[#allocation61_spill] sm:$0xff] %v12164_v33  ;;  %v12176_v52 = vmul.f32 %v11844_v35, %v14541_v20  ;;  %v12182_v28 = vmul.f32 %v11844_v35, %v14543_v54  ;;  %v14545_v33 = vsub.f32 %v14544_v39, %v11722_v40  ;;  %v14547_v20 = vld [vmem:[#allocation53_spill] sm:$0xff]  ;;  %v14550_v54 = vsub.f32 %v11659_v1, %v11722_v40 }
 0x56a   :  { %v12194_v62 = vmul.f32 %v11844_v35, %v14546_v32  ;;  %v14554_v32 = vsub.f32 %v11683_v26, %v11722_v40  ;;  %v3967_v1 = vmax.f32 %v11876_v29, 0.0  ;;  %v3973_v26 = vmax.f32 %v11912_v49, 0.0 }
 0x56b   :  { %14542 = vst [vmem:[#allocation60_spill] sm:$0xff] %v12176_v52  ;;  %v12188_v14 = vmul.f32 %v11844_v35, %v14545_v33  ;;  %v14548_v52 = vsub.f32 %v14547_v20, %v11722_v40  ;;  %v12206_v39 = vmul.f32 %v11844_v35, %v14550_v54  ;;  %v14552_v33 = vsub.f32 %v11686_v19, %v11722_v40 }
 0x56c   :  { %v12218_v20 = vmul.f32 %v11844_v35, %v14554_v32  ;;  %v3968_v54 = vmax.f32 %v11882_v43, 0.0  ;;  %v3970_v19 = vmax.f32 %v11894_v13, 0.0  ;;  %v3974_v32 = vmax.f32 %v11918_v34, 0.0 }
 0x56d   :  { %v12200_v8 = vmul.f32 %v11844_v35, %v14548_v52  ;;  %14551 = vst [vmem:[#allocation6_spill] sm:$0xff] %v12206_v39  ;;  %v12212_v37 = vmul.f32 %v11844_v35, %v14552_v33  ;;  %v3965_v52 = vmax.f32 %v11864_v48, 0.0  ;;  %v3969_v39 = vmax.f32 %v11888_v6, 0.0  ;;  %v14556_v35 = vld [vmem:[#allocation62_spill] sm:$0xff] }
 0x56e   :  { %14555 = vst [vmem:[#allocation18_spill] sm:$0xff] %v12218_v20  ;;  %v3971_v33 = vmax.f32 %v11900_v25, 0.0  ;;  %v3975_v48 = vmax.f32 %v11924_v22, 0.0  ;;  %v3977_v29 = vmax.f32 %v11936_v41, 0.0  ;;  %v3978_v43 = vmax.f32 %v11942_v57, 0.0 }
 0x56f   :  { %14549 = vst [vmem:[#allocation59_spill] sm:$0xff] %v12200_v8  ;;  %14553 = vst [vmem:[#allocation19_spill] sm:$0xff] %v12212_v37  ;;  %v3966_v8 = vmax.f32 %v11870_v11, 0.0  ;;  %v3972_v37 = vmax.f32 %v11906_v50, 0.0  ;;  %v3976_v11 = vmax.f32 %v11930_v0, 0.0  ;;  %v3979_v6 = vmax.f32 %v11948_v55, 0.0 }
 0x570   :  { %v3980_v13 = vmax.f32 %v11954_v2, 0.0  ;;  %v3981_v25 = vmax.f32 %v11960_v3, 0.0  ;;  %v3982_v50 = vmax.f32 %v11966_v18, 0.0  ;;  %v3983_v49 = vmax.f32 %v11972_v23, 0.0  ;;  %v14557_v40 = vld [vmem:[#allocation61_spill] sm:$0xff] }
 0x571   :  { %v3984_v34 = vmax.f32 %v11978_v44, 0.0  ;;  %v3985_v22 = vmax.f32 %v11984_v12, 0.0  ;;  %v3986_v0 = vmax.f32 %v11990_v15, 0.0  ;;  %v3987_v41 = vmax.f32 %v11996_v16, 0.0 }
 0x572   :  { %v3988_v57 = vmax.f32 %v12002_v4, 0.0  ;;  %v3989_v55 = vmax.f32 %v12008_v61, 0.0  ;;  %v3990_v2 = vmax.f32 %v12014_v63, 0.0  ;;  %v3991_v3 = vmax.f32 %v12020_v9, 0.0  ;;  %v14558_v20 = vld [vmem:[#allocation60_spill] sm:$0xff] }
 0x573   :  { %v3992_v18 = vmax.f32 %v12026_v24, 0.0  ;;  %v3993_v23 = vmax.f32 %v12032_v27, 0.0  ;;  %v3994_v44 = vmax.f32 %v12038_v53, 0.0  ;;  %v3999_v12 = vmax.f32 %v12056_v31, 0.0 }
 0x574   :  { %v4000_v15 = vmax.f32 %v12062_v45, 0.0  ;;  %v4001_v16 = vmax.f32 %v12068_v60, 0.0  ;;  %v4002_v4 = vmax.f32 %v12074_v5, 0.0  ;;  %v4003_v61 = vmax.f32 %v12080_v51, 0.0 }
 0x575   :  { %v4004_v63 = vmax.f32 %v12086_v7, 0.0  ;;  %v4005_v9 = vmax.f32 %v12092_v56, 0.0  ;;  %v4006_v24 = vmax.f32 %v12098_v46, 0.0  ;;  %v4007_v27 = vmax.f32 %v12104_v17, 0.0 }
 0x576   :  { %v4008_v53 = vmax.f32 %v12110_v47, 0.0  ;;  %v4009_v31 = vmax.f32 %v12116_v42, 0.0  ;;  %v4010_v45 = vmax.f32 %v12122_v58, 0.0  ;;  %v4011_v60 = vmax.f32 %v12128_v36, 0.0 }
 0x577   :  { %v4012_v5 = vmax.f32 %v12134_v38, 0.0  ;;  %v4013_v51 = vmax.f32 %v14556_v35, 0.0  ;;  %v4014_v7 = vmax.f32 %v12146_v21, 0.0  ;;  %v4015_v56 = vmax.f32 %v12152_v59, 0.0  ;;  %v14559_v35 = vld [vmem:[#allocation59_spill] sm:$0xff]  ;;  %v14560_v59 = vld [vmem:[#allocation6_spill] sm:$0xff] }
 0x578   :  { %v4016_v46 = vmax.f32 %v12158_v10, 0.0  ;;  %v4017_v17 = vmax.f32 %v14557_v40, 0.0  ;;  %v4018_v47 = vmax.f32 %v12170_v30, 0.0  ;;  %v4019_v42 = vmax.f32 %v14558_v20, 0.0  ;;  %v14561_v40 = vld [vmem:[#allocation19_spill] sm:$0xff]  ;;  %v14562_v20 = vld [vmem:[#allocation18_spill] sm:$0xff] }
 0x579   :  { %v4020_v58 = vmax.f32 %v12182_v28, 0.0  ;;  %v4021_v36 = vmax.f32 %v12188_v14, 0.0  ;;  %v4022_v38 = vmax.f32 %v12194_v62, 0.0  ;;  %v4023_v21 = vmax.f32 %v14559_v35, 0.0 }
 0x57a   :  { %v4024_v10 = vmax.f32 %v14560_v59, 0.0  ;;  %v4025_v30 = vmax.f32 %v14561_v40, 0.0  ;;  %v4026_v28 = vmax.f32 %v14562_v20, 0.0  ;;  %v12278_v14 = vpack.c.bf16 %v3966_v8, %v3965_v52  ;;  %v8905_v20 = vld [vmem:[%s14098_s2 + $0x60] ss:$12 sps:$4 sm:$0xff]  }
 0x57b   :  { %v12280_v62 = vpack.c.bf16 %v3968_v54, %v3967_v1  ;;  %v12282_v35 = vpack.c.bf16 %v3970_v19, %v3969_v39  ;;  %v12284_v59 = vpack.c.bf16 %v3972_v37, %v3971_v33  ;;  %v12286_v40 = vpack.c.bf16 %v3974_v32, %v3973_v26 }
 0x57c   :  { %14563 = vst [vmem:[#allocation17_spill] sm:$0xff] %v12278_v14  ;;  %v12291_v8 = vpack.c.bf16 %v3976_v11, %v3975_v48  ;;  %v12293_v52 = vpack.c.bf16 %v3978_v43, %v3977_v29  ;;  %v12295_v14 = vpack.c.bf16 %v3980_v13, %v3979_v6  ;;  %v12297_v1 = vpack.c.bf16 %v3982_v50, %v3981_v25  ;;  %v8910_v29 = vld [vmem:[%s14098_s2 + $0x7c] ss:$12 sps:$4 sm:$0xff]   ;;  %v8908_v50 = vld [vmem:[%s14098_s2 + $0x78] ss:$12 sps:$4 sm:$0xff]  }
 0x57d   :  { %v12301_v39 = vpack.c.bf16 %v3984_v34, %v3983_v49  ;;  %v12303_v37 = vpack.c.bf16 %v3986_v0, %v3985_v22  ;;  %v12305_v19 = vpack.c.bf16 %v3988_v57, %v3987_v41  ;;  %v12307_v33 = vpack.c.bf16 %v3990_v2, %v3989_v55  ;;  %v12348_v41 = vld [vmem:[%s14098_s2 + $0x68] ss:$12 sps:$4 sm:$0xff]  }
 0x57e   :  { %v12311_v26 = vpack.c.bf16 %v3992_v18, %v3991_v3  ;;  %v12313_v32 = vpack.c.bf16 %v3994_v44, %v3993_v23  ;;  %v12315_v48 = vpack.c.bf16 %v4000_v15, %v3999_v12  ;;  %v12317_v11 = vpack.c.bf16 %v4002_v4, %v4001_v16  ;;  %v14569_v23 = vld [vmem:[#allocation46_spill] sm:$0xff]  ;;  %v14573_v4 = vld [vmem:[#allocation56_spill] sm:$0xff] }
 0x57f   :  { %v12324_v43 = vpack.c.bf16 %v4004_v63, %v4003_v61  ;;  %v12326_v6 = vpack.c.bf16 %v4006_v24, %v4005_v9  ;;  %v12328_v13 = vpack.c.bf16 %v4008_v53, %v4007_v27  ;;  %v12330_v25 = vpack.c.bf16 %v4010_v45, %v4009_v31  ;;  %v14570_v44 = vld [vmem:[#allocation54_spill] sm:$0xff]  ;;  %v14576_v27 = vld [vmem:[#allocation55_spill] sm:$0xff]  ;;  %v14577_v31 = vld [vmem:[#allocation52_spill] sm:$0xff] }
 0x580   :  { %v12335_v49 = vpack.c.bf16 %v4012_v5, %v4011_v60  ;;  %v12337_v34 = vpack.c.bf16 %v4014_v7, %v4013_v51  ;;  %v12339_v22 = vpack.c.bf16 %v4016_v46, %v4015_v56  ;;  %v12341_v0 = vpack.c.bf16 %v4018_v47, %v4017_v17  ;;  %v14572_v15 = vld [vmem:[#allocation58_spill] sm:$0xff]  ;;  %v14578_v7 = vld [vmem:[#allocation57_spill] sm:$0xff] }
 0x581   :  { %v12350_v57 = vpack.c.bf16 %v4020_v58, %v4019_v42  ;;  %v12352_v55 = vpack.c.bf16 %v4022_v38, %v4021_v36  ;;  %v12354_v2 = vpack.c.bf16 %v4024_v10, %v4023_v21  ;;  %v12356_v3 = vpack.c.bf16 %v4026_v28, %v4025_v30  ;;  %v14574_v63 = vld [vmem:[#allocation10_spill] sm:$0xff] }
 0x582   :  { %14565 = vst [vmem:[#allocation23_spill] sm:$0xff] %v12337_v34  ;;  %14566 = vst [vmem:[#allocation22_spill] sm:$0xff] %v12339_v22  ;;  %v14568_v18 = vmov 0   ;;  %v14571_v12 = vsub.f32 %v14569_v23, %v14570_v44  ;;  %v3996_v61 = vmax.f32 %v14573_v4, 0.0  ;;  %v14575_v9 = vsub.f32 %v14574_v63, %v14570_v44  ;;  %v8912_v58 = vld [vmem:[%s14098_s2 + $0x80] ss:$12 sps:$4 sm:$0xff]  }
 0x583   :  { %v14564_v54 = vld [vmem:[#allocation17_spill] sm:$0xff]  ;;  %14567 = vst [vmem:[#allocation21_spill] sm:$0xff] %v12341_v0  ;;  %v3998_v53 = vmax.f32 %v14576_v27, 0.0  ;;  %v3899_v45 = vsub.f32 %v14577_v31, %v14570_v44  ;;  %v4028_v56 = vmax.f32 %v14578_v7, 0.0 }
 0x584   :  { %7285 = vmatmul.mubr.msk.bf16.vlgmr.msra.gmra.mrb[192].mxu0 %vm80_vm0, %v14564_v54  ;;  %7901 = vmatprep.mubr.msk.bf16.mxu1 %vm80_vm0, %v14564_v54  ;;  %v3931_v16 = vmul.f32 %v14572_v15, %v14571_v12  ;;  %v3933_v24 = vmul.f32 %v14572_v15, %v14575_v9 }
 0x585   :  { %7902 = vmatmul.mubr.msk.bf16.vlgmr.msra.gmra.mrb[64].mxu1 %vm80_vm0, %v12280_v62  ;;  %4248 = vmatprep.mubr.bf16.mxu0 %v14568_v18  ;;  %v3963_v51 = vmul.f32 %v14572_v15, %v3899_v45 }
 0x586   :  { %4890 = vmatpush1.bf16.msra.mxu1 %v8905_v20  ;;  %7905 = vmatprep.mubr.msk.bf16.mxu1 %vm80_vm0, %v12282_v35  ;;  %v3995_v60 = vmax.f32 %v3931_v16, 0.0  ;;  %v3997_v5 = vmax.f32 %v3933_v24, 0.0 }
 0x587   :  { %4891 = vmatprep.subr.bf16.mxu1 %v8910_v29  ;;  %v4027_v47 = vmax.f32 %v3963_v51, 0.0 }
 0x588   :  { %v12379_v46 = vpack.c.bf16 %v3996_v61, %v3995_v60  ;;  %v12381_v17 = vpack.c.bf16 %v3998_v53, %v3997_v5  ;;  %v8915_v60 = vld [vmem:[%s14098_s2 + $0x4] ss:$12 sps:$4 sm:$0xff]  }
 0x589   :  { %v12385_v42 = vpack.c.bf16 %v4028_v56, %v4027_v47 }
 0x58a   :  { %4892 = vmatpush1.bf16.msra.mxu1 %v8908_v50 }
 0x58b   :  { %7965 = vmatprep.subr.bf16.mxu1 %v12348_v41 }
 0x58c   :  { %7286 = vmatmul.mubr.msk.bf16.gmra.mrb[196].mxu0 %vm80_vm0, %v12280_v62 }
 0x58d   :  { %4258 = vmatprep.mubr.bf16.mxu0 %v14568_v18  ;;  %7906 = vmatmul.mubr.msk.bf16.gmra.mrb[68].mxu1 %vm80_vm0, %v12284_v59 }
 0x58e   :  { %7909 = vmatprep.mubr.msk.bf16.mxu1 %vm80_vm0, %v12286_v40 }
 0x594   :  { %7287 = vmatmul.mubr.msk.bf16.gmra.mrb[200].mxu0 %vm80_vm0, %v12282_v35 }
 0x595   :  { %4268 = vmatprep.mubr.bf16.mxu0 %v14568_v18  ;;  %7910 = vmatmul.mubr.msk.bf16.gmra.mrb[72].mxu1 %vm80_vm0, %v12291_v8 }
 0x596   :  { %7913 = vmatprep.mubr.msk.bf16.mxu1 %vm80_vm0, %v12293_v52 }
 0x59c   :  { %7288 = vmatmul.mubr.msk.bf16.gmra.mrb[204].mxu0 %vm80_vm0, %v12284_v59 }
 0x59d   :  { %4278 = vmatprep.mubr.bf16.mxu0 %v14568_v18  ;;  %7914 = vmatmul.mubr.msk.bf16.gmra.mrb[76].mxu1 %vm80_vm0, %v12295_v14 }
 0x59e   :  { %7917 = vmatprep.mubr.msk.bf16.mxu1 %vm80_vm0, %v12297_v1 }
 0x5a4   :  { %7289 = vmatmul.mubr.msk.bf16.gmra.mrb[208].mxu0 %vm80_vm0, %v12286_v40 }
 0x5a5   :  { %4288 = vmatprep.mubr.bf16.mxu0 %v14568_v18  ;;  %7918 = vmatmul.mubr.msk.bf16.gmra.mrb[80].mxu1 %vm80_vm0, %v12301_v39 }
 0x5a6   :  { %7921 = vmatprep.mubr.msk.bf16.mxu1 %vm80_vm0, %v12303_v37 }
 0x5ac   :  { %7290 = vmatmul.mubr.msk.bf16.gmra.mrb[212].mxu0 %vm80_vm0, %v12291_v8 }
 0x5ad   :  { %4298 = vmatprep.mubr.bf16.mxu0 %v14568_v18  ;;  %7922 = vmatmul.mubr.msk.bf16.gmra.mrb[84].mxu1 %vm80_vm0, %v12305_v19 }
 0x5ae   :  { %7925 = vmatprep.mubr.msk.bf16.mxu1 %vm80_vm0, %v12307_v33 }
 0x5b4   :  { %7291 = vmatmul.mubr.msk.bf16.gmra.mrb[216].mxu0 %vm80_vm0, %v12293_v52 }
 0x5b5   :  { %4308 = vmatprep.mubr.bf16.mxu0 %v14568_v18  ;;  %7926 = vmatmul.mubr.msk.bf16.gmra.mrb[88].mxu1 %vm80_vm0, %v12311_v26 }
 0x5b6   :  { %7929 = vmatprep.mubr.msk.bf16.mxu1 %vm80_vm0, %v12313_v32 }
 0x5bc   :  { %7292 = vmatmul.mubr.msk.bf16.gmra.mrb[220].mxu0 %vm80_vm0, %v12295_v14 }
 0x5bd   :  { %4318 = vmatprep.mubr.bf16.mxu0 %v14568_v18  ;;  %7930 = vmatmul.mubr.msk.bf16.gmra.mrb[92].mxu1 %vm80_vm0, %v12379_v46 }
 0x5be   :  { %7933 = vmatprep.mubr.msk.bf16.mxu1 %vm80_vm0, %v12381_v17 }
 0x5c4   :  { %7293 = vmatmul.mubr.msk.bf16.gmra.mrb[224].mxu0 %vm80_vm0, %v12297_v1 }
 0x5c5   :  { %4328 = vmatprep.mubr.bf16.mxu0 %v14568_v18  ;;  %7934 = vmatmul.mubr.msk.bf16.gmra.mrb[96].mxu1 %vm80_vm0, %v12315_v48 }
 0x5c6   :  { %7937 = vmatprep.mubr.msk.bf16.mxu1 %vm80_vm0, %v12317_v11 }
 0x5cc   :  { %7294 = vmatmul.mubr.msk.bf16.gmra.mrb[228].mxu0 %vm80_vm0, %v12301_v39 }
 0x5cd   :  { %4338 = vmatprep.mubr.bf16.mxu0 %v14568_v18  ;;  %7938 = vmatmul.mubr.msk.bf16.gmra.mrb[100].mxu1 %vm80_vm0, %v12324_v43 }
 0x5ce   :  { %7941 = vmatprep.mubr.msk.bf16.mxu1 %vm80_vm0, %v12326_v6 }
 0x5d4   :  { %7295 = vmatmul.mubr.msk.bf16.gmra.mrb[232].mxu0 %vm80_vm0, %v12303_v37 }
 0x5d5   :  { %4348 = vmatprep.mubr.bf16.mxu0 %v14568_v18  ;;  %7942 = vmatmul.mubr.msk.bf16.gmra.mrb[104].mxu1 %vm80_vm0, %v12328_v13 }
 0x5d6   :  { %7945 = vmatprep.mubr.msk.bf16.mxu1 %vm80_vm0, %v12330_v25 }
 0x5dc   :  { %7296 = vmatmul.mubr.msk.bf16.gmra.mrb[236].mxu0 %vm80_vm0, %v12305_v19 }
 0x5dd   :  { %4358 = vmatprep.mubr.bf16.mxu0 %v14568_v18  ;;  %7946 = vmatmul.mubr.msk.bf16.gmra.mrb[108].mxu1 %vm80_vm0, %v12335_v49 }
 0x5de   :  { %7949 = vmatprep.mubr.msk.bf16.mxu1 %vm80_vm0, %v12337_v34 }
 0x5e4   :  { %7297 = vmatmul.mubr.msk.bf16.gmra.mrb[240].mxu0 %vm80_vm0, %v12307_v33 }
 0x5e5   :  { %4368 = vmatprep.mubr.bf16.mxu0 %v14568_v18  ;;  %7950 = vmatmul.mubr.msk.bf16.gmra.mrb[112].mxu1 %vm80_vm0, %v12339_v22 }
 0x5e6   :  { %7953 = vmatprep.mubr.msk.bf16.mxu1 %vm80_vm0, %v12341_v0 }
 0x5ec   :  { %7298 = vmatmul.mubr.msk.bf16.gmra.mrb[244].mxu0 %vm80_vm0, %v12311_v26 }
 0x5ed   :  { %4378 = vmatprep.mubr.bf16.mxu0 %v14568_v18  ;;  %7954 = vmatmul.mubr.msk.bf16.gmra.mrb[116].mxu1 %vm80_vm0, %v12350_v57 }
 0x5ee   :  { %7957 = vmatprep.mubr.msk.bf16.mxu1 %vm80_vm0, %v12352_v55 }
 0x5f4   :  { %7299 = vmatmul.mubr.msk.bf16.gmra.mrb[248].mxu0 %vm80_vm0, %v12313_v32 }
 0x5f5   :  { %4388 = vmatprep.mubr.bf16.mxu0 %v14568_v18  ;;  %7958 = vmatmul.mubr.msk.bf16.gmra.mrb[120].mxu1 %vm80_vm0, %v12354_v2 }
 0x5f6   :  { %7961 = vmatprep.mubr.msk.bf16.mxu1 %vm80_vm0, %v12356_v3 }
 0x5fc   :  { %7300 = vmatmul.mubr.msk.bf16.gmra.mrb[252].mxu0 %vm80_vm0, %v12379_v46 }
 0x5fd   :  { %4398 = vmatprep.mubr.bf16.mxu0 %v14568_v18  ;;  %7962 = vmatmul.mubr.msk.bf16.gmra.mrb[124].mxu1 %vm80_vm0, %v12385_v42 }
 0x5fe   :  { %4921 = vmatprep.mubr.bf16.mxu1 %v14568_v18 }
 0x604   :  { %7301 = vmatmul.mubr.msk.bf16.gmra.mrb[128].mxu0 %vm80_vm0, %v12381_v17 }
 0x605   :  { %4408 = vmatprep.mubr.bf16.mxu0 %v14568_v18  ;;  %7363 = vmatmul.mubr.msk.bf16.vlgmr.msra.gmra.mrb[128].mxu1 %vm80_vm0, %v12280_v62 }
 0x606   :  { %7966 = vmatpush3.bf16.msra.mxu1 %v12348_v41  ;;  %4931 = vmatprep.mubr.bf16.mxu1 %v14568_v18 }
 0x607   :  { %7967 = vmatprep.subr.bf16.mxu1 %v8912_v58 }
 0x60a   :  { %7968 = vmatpush3.bf16.msra.mxu1 %v8912_v58 }
 0x60b   :  { %5563 = vmatprep.subr.bf16.mxu1 %v8915_v60 }
 0x60c   :  { %7302 = vmatmul.mubr.msk.bf16.gmra.mrb[132].mxu0 %vm80_vm0, %v12315_v48 }
 0x60d   :  { %4418 = vmatprep.mubr.bf16.mxu0 %v14568_v18  ;;  %7364 = vmatmul.mubr.msk.bf16.gmra.mrb[132].mxu1 %vm80_vm0, %v12282_v35 }
 0x60e   :  { %4941 = vmatprep.mubr.bf16.mxu1 %v14568_v18 }
 0x614   :  { %7303 = vmatmul.mubr.msk.bf16.gmra.mrb[136].mxu0 %vm80_vm0, %v12317_v11 }
 0x615   :  { %4428 = vmatprep.mubr.bf16.mxu0 %v14568_v18  ;;  %7365 = vmatmul.mubr.msk.bf16.gmra.mrb[136].mxu1 %vm80_vm0, %v12284_v59 }
 0x616   :  { %4951 = vmatprep.mubr.bf16.mxu1 %v14568_v18 }
 0x61c   :  { %7304 = vmatmul.mubr.msk.bf16.gmra.mrb[140].mxu0 %vm80_vm0, %v12324_v43 }
 0x61d   :  { %4438 = vmatprep.mubr.bf16.mxu0 %v14568_v18  ;;  %7366 = vmatmul.mubr.msk.bf16.gmra.mrb[140].mxu1 %vm80_vm0, %v12286_v40 }
 0x61e   :  { %4961 = vmatprep.mubr.bf16.mxu1 %v14568_v18 }
 0x624   :  { %7305 = vmatmul.mubr.msk.bf16.gmra.mrb[144].mxu0 %vm80_vm0, %v12326_v6 }
 0x625   :  { %4448 = vmatprep.mubr.bf16.mxu0 %v14568_v18  ;;  %7367 = vmatmul.mubr.msk.bf16.gmra.mrb[144].mxu1 %vm80_vm0, %v12291_v8 }
 0x626   :  { %4971 = vmatprep.mubr.bf16.mxu1 %v14568_v18 }
 0x62c   :  { %7306 = vmatmul.mubr.msk.bf16.gmra.mrb[148].mxu0 %vm80_vm0, %v12328_v13 }
 0x62d   :  { %4458 = vmatprep.mubr.bf16.mxu0 %v14568_v18  ;;  %7368 = vmatmul.mubr.msk.bf16.gmra.mrb[148].mxu1 %vm80_vm0, %v12293_v52 }
 0x62e   :  { %4981 = vmatprep.mubr.bf16.mxu1 %v14568_v18 }
 0x634   :  { %7307 = vmatmul.mubr.msk.bf16.gmra.mrb[152].mxu0 %vm80_vm0, %v12330_v25 }
 0x635   :  { %4468 = vmatprep.mubr.bf16.mxu0 %v14568_v18  ;;  %7369 = vmatmul.mubr.msk.bf16.gmra.mrb[152].mxu1 %vm80_vm0, %v12295_v14 }
 0x636   :  { %4991 = vmatprep.mubr.bf16.mxu1 %v14568_v18 }
 0x63c   :  { %7308 = vmatmul.mubr.msk.bf16.gmra.mrb[156].mxu0 %vm80_vm0, %v12335_v49 }
 0x63d   :  { %4478 = vmatprep.mubr.bf16.mxu0 %v14568_v18  ;;  %7370 = vmatmul.mubr.msk.bf16.gmra.mrb[156].mxu1 %vm80_vm0, %v12297_v1 }
 0x63e   :  { %5001 = vmatprep.mubr.bf16.mxu1 %v14568_v18 }
 0x644   :  { %7309 = vmatmul.mubr.msk.bf16.gmra.mrb[160].mxu0 %vm80_vm0, %v12337_v34 }
 0x645   :  { %4488 = vmatprep.mubr.bf16.mxu0 %v14568_v18  ;;  %7371 = vmatmul.mubr.msk.bf16.gmra.mrb[160].mxu1 %vm80_vm0, %v12301_v39 }
 0x646   :  { %5011 = vmatprep.mubr.bf16.mxu1 %v14568_v18 }
 0x64c   :  { %7310 = vmatmul.mubr.msk.bf16.gmra.mrb[164].mxu0 %vm80_vm0, %v12339_v22 }
 0x64d   :  { %4498 = vmatprep.mubr.bf16.mxu0 %v14568_v18  ;;  %7372 = vmatmul.mubr.msk.bf16.gmra.mrb[164].mxu1 %vm80_vm0, %v12303_v37 }
 0x64e   :  { %5021 = vmatprep.mubr.bf16.mxu1 %v14568_v18 }
 0x654   :  { %7311 = vmatmul.mubr.msk.bf16.gmra.mrb[168].mxu0 %vm80_vm0, %v12341_v0 }
 0x655   :  { %4508 = vmatprep.mubr.bf16.mxu0 %v14568_v18  ;;  %7373 = vmatmul.mubr.msk.bf16.gmra.mrb[168].mxu1 %vm80_vm0, %v12305_v19 }
 0x656   :  { %5031 = vmatprep.mubr.bf16.mxu1 %v14568_v18 }
 0x657   :  { %v12553_v36 = vpop.f32.mrb[192].mxu0 }
 0x658   :  { %v12556_v38 = vpop.f32.mrb[193].mxu0 }
 0x659   :  { %v12558_v21 = vpop.f32.mrb[194].mxu0 }
 0x65a   :  { %v12560_v10 = vpop.f32.mrb[195].mxu0 }
 0x65c   :  { %7312 = vmatmul.mubr.msk.bf16.gmra.mrb[172].mxu0 %vm80_vm0, %v12350_v57 }
 0x65d   :  { %4518 = vmatprep.mubr.bf16.mxu0 %v14568_v18  ;;  %7374 = vmatmul.mubr.msk.bf16.gmra.mrb[172].mxu1 %vm80_vm0, %v12307_v33 }
 0x65e   :  { %5041 = vmatprep.mubr.bf16.mxu1 %v14568_v18 }
 0x65f   :  { %v12567_v30 = vpop.f32.mrb[196].mxu0 }
 0x660   :  { %v12570_v28 = vpop.f32.mrb[197].mxu0 }
 0x661   :  { %v12572_v20 = vpop.f32.mrb[198].mxu0 }
 0x662   :  { %v12574_v29 = vpop.f32.mrb[199].mxu0 }
 0x664   :  { %7313 = vmatmul.mubr.msk.bf16.gmra.mrb[176].mxu0 %vm80_vm0, %v12352_v55 }
 0x665   :  { %4528 = vmatprep.mubr.bf16.mxu0 %v14568_v18  ;;  %7375 = vmatmul.mubr.msk.bf16.gmra.mrb[176].mxu1 %vm80_vm0, %v12311_v26 }
 0x666   :  { %5051 = vmatprep.mubr.bf16.mxu1 %v14568_v18 }
 0x667   :  { %v12581_v50 = vpop.f32.mrb[200].mxu0 }
 0x668   :  { %v12584_v41 = vpop.f32.mrb[201].mxu0 }
 0x669   :  { %v12586_v23 = vpop.f32.mrb[202].mxu0 }
 0x66a   :  { %v12588_v44 = vpop.f32.mrb[203].mxu0 }
 0x66c   :  { %7314 = vmatmul.mubr.msk.bf16.gmra.mrb[180].mxu0 %vm80_vm0, %v12354_v2 }
 0x66d   :  { %4538 = vmatprep.mubr.bf16.mxu0 %v14568_v18  ;;  %7376 = vmatmul.mubr.msk.bf16.gmra.mrb[180].mxu1 %vm80_vm0, %v12313_v32 }
 0x66e   :  { %5061 = vmatprep.mubr.bf16.mxu1 %v14568_v18 }
 0x66f   :  { %v12595_v12 = vpop.f32.mrb[204].mxu0 }
 0x670   :  { %v12598_v15 = vpop.f32.mrb[205].mxu0 }
 0x671   :  { %v12600_v16 = vpop.f32.mrb[206].mxu0 }
 0x672   :  { %v12602_v4 = vpop.f32.mrb[207].mxu0 }
 0x674   :  { %7315 = vmatmul.mubr.msk.bf16.gmra.mrb[184].mxu0 %vm80_vm0, %v12356_v3 }
 0x675   :  { %4548 = vmatprep.mubr.bf16.mxu0 %v14568_v18  ;;  %7377 = vmatmul.mubr.msk.bf16.gmra.mrb[184].mxu1 %vm80_vm0, %v12379_v46 }
 0x676   :  { %5071 = vmatprep.mubr.bf16.mxu1 %v14568_v18 }
 0x677   :  { %v12609_v61 = vpop.f32.mrb[208].mxu0 }
 0x678   :  { %v12612_v63 = vpop.f32.mrb[209].mxu0 }
 0x679   :  { %v12614_v9 = vpop.f32.mrb[210].mxu0 }
 0x67a   :  { %v12616_v24 = vpop.f32.mrb[211].mxu0 }
 0x67c   :  { %7316 = vmatmul.mubr.msk.bf16.gmra.mrb[188].mxu0 %vm80_vm0, %v12385_v42 }
 0x67d   :  { %5072 = vmatmul.mubr.bf16.gmra.mrb[188].mxu1 %v14568_v18 }
 0x67e   :  { %5081 = vmatprep.mubr.bf16.mxu1 %v14568_v18 }
 0x67f   :  { %v12621_v27 = vpop.f32.mrb[212].mxu0 }
 0x680   :  { %v12624_v53 = vpop.f32.mrb[213].mxu0 }
 0x681   :  { %v12626_v31 = vpop.f32.mrb[214].mxu0 }
 0x682   :  { %14579 = vst [vmem:[#allocation20_spill] sm:$0xff] %v12626_v31  ;;  %v12628_v45 = vpop.f32.mrb[215].mxu0 }
 0x683   :  { %14580 = vst [vmem:[#allocation26_spill] sm:$0xff] %v12628_v45 }
 0x685   :  { %7378 = vmatmul.mubr.msk.bf16.gmra.mrb[192].mxu1 %vm80_vm0, %v12315_v48 }
 0x686   :  { %5091 = vmatprep.mubr.bf16.mxu1 %v14568_v18 }
 0x687   :  { %v12635_v5 = vpop.f32.mrb[216].mxu0 }
 0x688   :  { %14581 = vst [vmem:[#allocation25_spill] sm:$0xff] %v12635_v5  ;;  %v12638_v51 = vpop.f32.mrb[217].mxu0 }
 0x689   :  { %14582 = vst [vmem:[#allocation24_spill] sm:$0xff] %v12638_v51  ;;  %v12640_v7 = vpop.f32.mrb[218].mxu0 }
 0x68a   :  { %14583 = vst [vmem:[#allocation7_spill] sm:$0xff] %v12640_v7  ;;  %v12642_v56 = vpop.f32.mrb[219].mxu0 }
 0x68b   :  { %14584 = vst [vmem:[#allocation40_spill] sm:$0xff] %v12642_v56 }
 0x68d   :  { %7379 = vmatmul.mubr.msk.bf16.gmra.mrb[196].mxu1 %vm80_vm0, %v12317_v11 }
 0x68e   :  { %5101 = vmatprep.mubr.bf16.mxu1 %v14568_v18 }
 0x68f   :  { %v12646_v47 = vpop.f32.mrb[220].mxu0 }
 0x690   :  { %14585 = vst [vmem:[#allocation39_spill] sm:$0xff] %v12646_v47  ;;  %v12649_v58 = vpop.f32.mrb[221].mxu0 }
 0x691   :  { %14586 = vst [vmem:[#allocation8_spill] sm:$0xff] %v12649_v58  ;;  %v12651_v60 = vpop.f32.mrb[222].mxu0 }
 0x692   :  { %14587 = vst [vmem:[#allocation27_spill] sm:$0xff] %v12651_v60  ;;  %v12653_v5 = vpop.f32.mrb[223].mxu0 }
 0x693   :  { %14588 = vst [vmem:[#allocation9_spill] sm:$0xff] %v12653_v5 }
 0x695   :  { %7380 = vmatmul.mubr.msk.bf16.gmra.mrb[200].mxu1 %vm80_vm0, %v12324_v43 }
 0x696   :  { %5111 = vmatprep.mubr.bf16.mxu1 %v14568_v18 }
 0x697   :  { %v12657_v51 = vpop.f32.mrb[224].mxu0 }
 0x698   :  { %14589 = vst [vmem:[#allocation42_spill] sm:$0xff] %v12657_v51  ;;  %v12660_v56 = vpop.f32.mrb[225].mxu0 }
 0x699   :  { %14590 = vst [vmem:[#allocation41_spill] sm:$0xff] %v12660_v56  ;;  %v12662_v7 = vpop.f32.mrb[226].mxu0 }
 0x69a   :  { %14591 = vst [vmem:[#allocation44_spill] sm:$0xff] %v12662_v7  ;;  %v12664_v47 = vpop.f32.mrb[227].mxu0 }
 0x69b   :  { %14592 = vst [vmem:[#allocation45_spill] sm:$0xff] %v12664_v47 }
 0x69d   :  { %7381 = vmatmul.mubr.msk.bf16.gmra.mrb[204].mxu1 %vm80_vm0, %v12326_v6 }
 0x69e   :  { %5121 = vmatprep.mubr.bf16.mxu1 %v14568_v18 }
 0x69f   :  { %v12668_v58 = vpop.f32.mrb[228].mxu0 }
 0x6a0   :  { %14593 = vst [vmem:[#allocation48_spill] sm:$0xff] %v12668_v58  ;;  %v12671_v5 = vpop.f32.mrb[229].mxu0 }
 0x6a1   :  { %14594 = vst [vmem:[#allocation47_spill] sm:$0xff] %v12671_v5  ;;  %v12673_v60 = vpop.f32.mrb[230].mxu0 }
 0x6a2   :  { %14595 = vst [vmem:[#allocation49_spill] sm:$0xff] %v12673_v60  ;;  %v12675_v51 = vpop.f32.mrb[231].mxu0 }
 0x6a3   :  { %14596 = vst [vmem:[#allocation11_spill] sm:$0xff] %v12675_v51 }
 0x6a5   :  { %7382 = vmatmul.mubr.msk.bf16.gmra.mrb[208].mxu1 %vm80_vm0, %v12328_v13 }
 0x6a6   :  { %5131 = vmatprep.mubr.bf16.mxu1 %v14568_v18 }
 0x6a7   :  { %v12679_v56 = vpop.f32.mrb[232].mxu0 }
 0x6a8   :  { %14597 = vst [vmem:[#allocation50_spill] sm:$0xff] %v12679_v56  ;;  %v12682_v47 = vpop.f32.mrb[233].mxu0 }
 0x6a9   :  { %14598 = vst [vmem:[#allocation13_spill] sm:$0xff] %v12682_v47  ;;  %v12684_v7 = vpop.f32.mrb[234].mxu0 }
 0x6aa   :  { %14599 = vst [vmem:[#allocation12_spill] sm:$0xff] %v12684_v7  ;;  %v12686_v58 = vpop.f32.mrb[235].mxu0 }
 0x6ab   :  { %14600 = vst [vmem:[#allocation15_spill] sm:$0xff] %v12686_v58 }
 0x6ad   :  { %7383 = vmatmul.mubr.msk.bf16.gmra.mrb[212].mxu1 %vm80_vm0, %v12330_v25 }
 0x6ae   :  { %5141 = vmatprep.mubr.bf16.mxu1 %v14568_v18 }
 0x6af   :  { %v12690_v5 = vpop.f32.mrb[236].mxu0 }
 0x6b0   :  { %14601 = vst [vmem:[#allocation14_spill] sm:$0xff] %v12690_v5  ;;  %v12693_v51 = vpop.f32.mrb[237].mxu0 }
 0x6b1   :  { %14602 = vst [vmem:[#allocation29_spill] sm:$0xff] %v12693_v51  ;;  %v12695_v60 = vpop.f32.mrb[238].mxu0 }
 0x6b2   :  { %14603 = vst [vmem:[#allocation31_spill] sm:$0xff] %v12695_v60  ;;  %v12697_v56 = vpop.f32.mrb[239].mxu0 }
 0x6b3   :  { %14604 = vst [vmem:[#allocation34_spill] sm:$0xff] %v12697_v56 }
 0x6b5   :  { %7384 = vmatmul.mubr.msk.bf16.gmra.mrb[216].mxu1 %vm80_vm0, %v12335_v49 }
 0x6b6   :  { %5151 = vmatprep.mubr.bf16.mxu1 %v14568_v18 }
 0x6b7   :  { %v12701_v47 = vpop.f32.mrb[240].mxu0 }
 0x6b8   :  { %14605 = vst [vmem:[#allocation5_spill] sm:$0xff] %v12701_v47  ;;  %v12704_v58 = vpop.f32.mrb[241].mxu0 }
 0x6b9   :  { %14606 = vst [vmem:[#allocation37_spill] sm:$0xff] %v12704_v58  ;;  %v12706_v7 = vpop.f32.mrb[242].mxu0 }
 0x6ba   :  { %14607 = vst [vmem:[#allocation38_spill] sm:$0xff] %v12706_v7  ;;  %v12708_v5 = vpop.f32.mrb[243].mxu0 }
 0x6bb   :  { %14608 = vst [vmem:[#allocation28_spill] sm:$0xff] %v12708_v5 }
 0x6bd   :  { %7385 = vmatmul.mubr.msk.bf16.gmra.mrb[220].mxu1 %vm80_vm0, %v12337_v34 }
 0x6be   :  { %5161 = vmatprep.mubr.bf16.mxu1 %v14568_v18 }
 0x6bf   :  { %v12712_v51 = vpop.f32.mrb[244].mxu0 }
 0x6c0   :  { %14609 = vst [vmem:[#allocation30_spill] sm:$0xff] %v12712_v51  ;;  %v12715_v56 = vpop.f32.mrb[245].mxu0 }
 0x6c1   :  { %14610 = vst [vmem:[#allocation33_spill] sm:$0xff] %v12715_v56  ;;  %v12717_v60 = vpop.f32.mrb[246].mxu0 }
 0x6c2   :  { %14611 = vst [vmem:[#allocation32_spill] sm:$0xff] %v12717_v60  ;;  %v12719_v47 = vpop.f32.mrb[247].mxu0 }
 0x6c3   :  { %14612 = vst [vmem:[#allocation35_spill] sm:$0xff] %v12719_v47 }
 0x6c5   :  { %7386 = vmatmul.mubr.msk.bf16.gmra.mrb[224].mxu1 %vm80_vm0, %v12339_v22 }
 0x6c6   :  { %5171 = vmatprep.mubr.bf16.mxu1 %v14568_v18 }
 0x6c7   :  { %v12723_v58 = vpop.f32.mrb[248].mxu0 }
 0x6c8   :  { %14613 = vst [vmem:[#allocation36_spill] sm:$0xff] %v12723_v58  ;;  %v12726_v5 = vpop.f32.mrb[249].mxu0 }
 0x6c9   :  { %14614 = vst [vmem:[#allocation16_spill] sm:$0xff] %v12726_v5  ;;  %v12728_v7 = vpop.f32.mrb[250].mxu0 }
 0x6ca   :  { %14615 = vst [vmem:[#allocation53_spill] sm:$0xff] %v12728_v7  ;;  %v12730_v51 = vpop.f32.mrb[251].mxu0 }
 0x6cb   :  { %14616 = vst [vmem:[#allocation62_spill] sm:$0xff] %v12730_v51 }
 0x6cd   :  { %7387 = vmatmul.mubr.msk.bf16.gmra.mrb[228].mxu1 %vm80_vm0, %v12341_v0 }
 0x6ce   :  { %5181 = vmatprep.mubr.bf16.mxu1 %v14568_v18 }
 0x6cf   :  { %v12734_v56 = vpop.f32.mrb[252].mxu0 }
 0x6d0   :  { %14617 = vst [vmem:[#allocation61_spill] sm:$0xff] %v12734_v56  ;;  %v12737_v47 = vpop.f32.mrb[253].mxu0 }
 0x6d1   :  { %14618 = vst [vmem:[#allocation60_spill] sm:$0xff] %v12737_v47  ;;  %v12739_v60 = vpop.f32.mrb[254].mxu0 }
 0x6d2   :  { %14619 = vst [vmem:[#allocation59_spill] sm:$0xff] %v12739_v60  ;;  %v12741_v58 = vpop.f32.mrb[255].mxu0 }
 0x6d3   :  { %14620 = vst [vmem:[#allocation6_spill] sm:$0xff] %v12741_v58 }
 0x6d5   :  { %7388 = vmatmul.mubr.msk.bf16.gmra.mrb[232].mxu1 %vm80_vm0, %v12350_v57 }
 0x6d6   :  { %5191 = vmatprep.mubr.bf16.mxu1 %v14568_v18 }
 0x6d7   :  { %v12745_v5 = vpop.f32.mrb[128].mxu0 }
 0x6d8   :  { %14621 = vst [vmem:[#allocation19_spill] sm:$0xff] %v12745_v5  ;;  %v12748_v51 = vpop.f32.mrb[129].mxu0 }
 0x6d9   :  { %14622 = vst [vmem:[#allocation18_spill] sm:$0xff] %v12748_v51  ;;  %v12750_v7 = vpop.f32.mrb[130].mxu0 }
 0x6da   :  { %14623 = vst [vmem:[#allocation17_spill] sm:$0xff] %v12750_v7  ;;  %v12752_v56 = vpop.f32.mrb[131].mxu0 }
 0x6db   :  { %14624 = vst [vmem:[#allocation46_spill] sm:$0xff] %v12752_v56 }
 0x6dd   :  { %7389 = vmatmul.mubr.msk.bf16.gmra.mrb[236].mxu1 %vm80_vm0, %v12352_v55 }
 0x6de   :  { %5201 = vmatprep.mubr.bf16.mxu1 %v14568_v18 }
 0x6df   :  { %v12756_v47 = vpop.f32.mrb[132].mxu0 }
 0x6e0   :  { %14625 = vst [vmem:[#allocation54_spill] sm:$0xff] %v12756_v47  ;;  %v12759_v58 = vpop.f32.mrb[133].mxu0 }
 0x6e1   :  { %14626 = vst [vmem:[#allocation58_spill] sm:$0xff] %v12759_v58  ;;  %v12761_v60 = vpop.f32.mrb[134].mxu0 }
 0x6e2   :  { %14627 = vst [vmem:[#allocation56_spill] sm:$0xff] %v12761_v60  ;;  %v12763_v5 = vpop.f32.mrb[135].mxu0 }
 0x6e3   :  { %14628 = vst [vmem:[#allocation10_spill] sm:$0xff] %v12763_v5 }
 0x6e5   :  { %7390 = vmatmul.mubr.msk.bf16.gmra.mrb[240].mxu1 %vm80_vm0, %v12354_v2 }
 0x6e6   :  { %5211 = vmatprep.mubr.bf16.mxu1 %v14568_v18 }
 0x6e7   :  { %v12767_v51 = vpop.f32.mrb[136].mxu0 }
 0x6e8   :  { %14629 = vst [vmem:[#allocation55_spill] sm:$0xff] %v12767_v51  ;;  %v12770_v56 = vpop.f32.mrb[137].mxu0 }
 0x6e9   :  { %14630 = vst [vmem:[#allocation52_spill] sm:$0xff] %v12770_v56  ;;  %v12772_v7 = vpop.f32.mrb[138].mxu0 }
 0x6ea   :  { %14631 = vst [vmem:[#allocation57_spill] sm:$0xff] %v12772_v7  ;;  %v12774_v47 = vpop.f32.mrb[139].mxu0 }
 0x6eb   :  { %14632 = vst [vmem:[#allocation63_spill] sm:$0xff] %v12774_v47 }
 0x6ed   :  { %7391 = vmatmul.mubr.msk.bf16.gmra.mrb[244].mxu1 %vm80_vm0, %v12356_v3 }
 0x6ee   :  { %5221 = vmatprep.mubr.bf16.mxu1 %v14568_v18 }
 0x6ef   :  { %v12778_v58 = vpop.f32.mrb[140].mxu0 }
 0x6f0   :  { %14633 = vst [vmem:[#allocation64_spill] sm:$0xff] %v12778_v58  ;;  %v12781_v5 = vpop.f32.mrb[141].mxu0 }
 0x6f1   :  { %14634 = vst [vmem:[#allocation65_spill] sm:$0xff] %v12781_v5  ;;  %v12783_v60 = vpop.f32.mrb[142].mxu0 }
 0x6f2   :  { %14635 = vst [vmem:[#allocation66_spill] sm:$0xff] %v12783_v60  ;;  %v12785_v51 = vpop.f32.mrb[143].mxu0 }
 0x6f3   :  { %14636 = vst [vmem:[#allocation67_spill] sm:$0xff] %v12785_v51 }
 0x6f5   :  { %7392 = vmatmul.mubr.msk.bf16.gmra.mrb[248].mxu1 %vm80_vm0, %v12385_v42 }
 0x6f6   :  { %5231 = vmatprep.mubr.bf16.mxu1 %v14568_v18 }
 0x6f7   :  { %v12789_v56 = vpop.f32.mrb[144].mxu0 }
 0x6f8   :  { %14637 = vst [vmem:[#allocation68_spill] sm:$0xff] %v12789_v56  ;;  %v12792_v47 = vpop.f32.mrb[145].mxu0 }
 0x6f9   :  { %14638 = vst [vmem:[#allocation69_spill] sm:$0xff] %v12792_v47  ;;  %v12794_v7 = vpop.f32.mrb[146].mxu0  ;;  %v8913_v47 = vld [vmem:[%s14098_s2] ss:$12 sps:$4 sm:$0xff]  }
 0x6fa   :  { %14639 = vst [vmem:[#allocation70_spill] sm:$0xff] %v12794_v7  ;;  %v12796_v58 = vpop.f32.mrb[147].mxu0 }
 0x6fb   :  { %14640 = vst [vmem:[#allocation71_spill] sm:$0xff] %v12796_v58  ;;  %v8918_v58 = vld [vmem:[%s14098_s2 + $0x1c] ss:$12 sps:$4 sm:$0xff]  }
 0x6fd   :  { %5232 = vmatmul.mubr.bf16.gmra.mrb[252].mxu1 %v14568_v18 }
 0x6fe   :  { %7969 = vmatprep.mubr.msk.bf16.mxu1 %vm80_vm0, %v12280_v62 }
 0x6ff   :  { %v12801_v60 = vpop.f32.mrb[148].mxu0 }
 0x700   :  { %14641 = vst [vmem:[#allocation72_spill] sm:$0xff] %v12801_v60  ;;  %v12803_v51 = vpop.f32.mrb[149].mxu0  ;;  %v12829_v60 = vld [vmem:[%s14098_s2 + $0x8] ss:$12 sps:$4 sm:$0xff]  }
 0x701   :  { %14642 = vst [vmem:[#allocation73_spill] sm:$0xff] %v12803_v51  ;;  %v12805_v5 = vpop.f32.mrb[150].mxu0 }
 0x702   :  { %14643 = vst [vmem:[#allocation74_spill] sm:$0xff] %v12805_v5  ;;  %v12807_v56 = vpop.f32.mrb[151].mxu0 }
 0x703   :  { %14644 = vst [vmem:[#allocation75_spill] sm:$0xff] %v12807_v56  ;;  %v8916_v56 = vld [vmem:[%s14098_s2 + $0x18] ss:$12 sps:$4 sm:$0xff]  }
 0x705   :  { %7970 = vmatmul.mubr.msk.bf16.vlgmr.msra.gmra.mrb[64].mxu1 %vm80_vm0, %v12282_v35 }
 0x706   :  { %5564 = vmatpush1.bf16.msra.mxu1 %v8913_v47  ;;  %7973 = vmatprep.mubr.msk.bf16.mxu1 %vm80_vm0, %v12284_v59 }
 0x707   :  { %v12819_v51 = vpop.f32.mrb[152].mxu0  ;;  %5565 = vmatprep.subr.bf16.mxu1 %v8918_v58 }
 0x708   :  { %14645 = vst [vmem:[#allocation76_spill] sm:$0xff] %v12819_v51  ;;  %v12824_v5 = vpop.f32.mrb[153].mxu0 }
 0x709   :  { %14646 = vst [vmem:[#allocation77_spill] sm:$0xff] %v12824_v5  ;;  %v12831_v7 = vpop.f32.mrb[154].mxu0 }
 0x70a   :  { %14647 = vst [vmem:[#allocation78_spill] sm:$0xff] %v12831_v7  ;;  %v12833_v47 = vpop.f32.mrb[155].mxu0  ;;  %5566 = vmatpush1.bf16.msra.mxu1 %v8916_v56 }
 0x70b   :  { %14648 = vst [vmem:[#allocation79_spill] sm:$0xff] %v12833_v47  ;;  %8033 = vmatprep.subr.bf16.mxu1 %v12829_v60 }
 0x70d   :  { %7974 = vmatmul.mubr.msk.bf16.gmra.mrb[68].mxu1 %vm80_vm0, %v12286_v40 }
 0x70e   :  { %7977 = vmatprep.mubr.msk.bf16.mxu1 %vm80_vm0, %v12291_v8 }
 0x70f   :  { %v12840_v5 = vpop.f32.mrb[156].mxu0 }
 0x710   :  { %14649 = vst [vmem:[#allocation80_spill] sm:$0xff] %v12840_v5  ;;  %v12842_v58 = vpop.f32.mrb[157].mxu0 }
 0x711   :  { %14650 = vst [vmem:[#allocation81_spill] sm:$0xff] %v12842_v58  ;;  %v12844_v51 = vpop.f32.mrb[158].mxu0 }
 0x712   :  { %14651 = vst [vmem:[#allocation82_spill] sm:$0xff] %v12844_v51  ;;  %v12846_v45 = vpop.f32.mrb[159].mxu0 }
 0x713   :  { %14652 = vst [vmem:[#allocation83_spill] sm:$0xff] %v12846_v45 }
 0x715   :  { %7978 = vmatmul.mubr.msk.bf16.gmra.mrb[72].mxu1 %vm80_vm0, %v12293_v52 }
 0x716   :  { %7981 = vmatprep.mubr.msk.bf16.mxu1 %vm80_vm0, %v12295_v14 }
 0x717   :  { %v12852_v56 = vpop.f32.mrb[160].mxu0 }
 0x718   :  { %14653 = vst [vmem:[#allocation84_spill] sm:$0xff] %v12852_v56  ;;  %v12854_v47 = vpop.f32.mrb[161].mxu0 }
 0x719   :  { %14654 = vst [vmem:[#allocation85_spill] sm:$0xff] %v12854_v47  ;;  %v12856_v7 = vpop.f32.mrb[162].mxu0 }
 0x71a   :  { %14655 = vst [vmem:[#allocation86_spill] sm:$0xff] %v12856_v7  ;;  %v12858_v31 = vpop.f32.mrb[163].mxu0 }
 0x71b   :  { %14656 = vst [vmem:[#allocation87_spill] sm:$0xff] %v12858_v31 }
 0x71d   :  { %7982 = vmatmul.mubr.msk.bf16.gmra.mrb[76].mxu1 %vm80_vm0, %v12297_v1 }
 0x71e   :  { %7985 = vmatprep.mubr.msk.bf16.mxu1 %vm80_vm0, %v12301_v39 }
 0x71f   :  { %v12864_v45 = vpop.f32.mrb[164].mxu0 }
 0x720   :  { %14657 = vst [vmem:[#allocation88_spill] sm:$0xff] %v12864_v45  ;;  %v12866_v51 = vpop.f32.mrb[165].mxu0 }
 0x721   :  { %14658 = vst [vmem:[#allocation89_spill] sm:$0xff] %v12866_v51  ;;  %v12868_v58 = vpop.f32.mrb[166].mxu0 }
 0x722   :  { %14659 = vst [vmem:[#allocation90_spill] sm:$0xff] %v12868_v58  ;;  %v12870_v5 = vpop.f32.mrb[167].mxu0 }
 0x723   :  { %14660 = vst [vmem:[#allocation91_spill] sm:$0xff] %v12870_v5 }
 0x725   :  { %7986 = vmatmul.mubr.msk.bf16.gmra.mrb[80].mxu1 %vm80_vm0, %v12303_v37 }
 0x726   :  { %7989 = vmatprep.mubr.msk.bf16.mxu1 %vm80_vm0, %v12305_v19 }
 0x727   :  { %v12876_v31 = vpop.f32.mrb[168].mxu0 }
 0x728   :  { %14661 = vst [vmem:[#allocation92_spill] sm:$0xff] %v12876_v31  ;;  %v12878_v7 = vpop.f32.mrb[169].mxu0 }
 0x729   :  { %14662 = vst [vmem:[#allocation93_spill] sm:$0xff] %v12878_v7  ;;  %v12880_v47 = vpop.f32.mrb[170].mxu0 }
 0x72a   :  { %14663 = vst [vmem:[#allocation94_spill] sm:$0xff] %v12880_v47  ;;  %v12882_v56 = vpop.f32.mrb[171].mxu0 }
 0x72b   :  { %14664 = vst [vmem:[#allocation95_spill] sm:$0xff] %v12882_v56 }
 0x72d   :  { %7990 = vmatmul.mubr.msk.bf16.gmra.mrb[84].mxu1 %vm80_vm0, %v12307_v33 }
 0x72e   :  { %7993 = vmatprep.mubr.msk.bf16.mxu1 %vm80_vm0, %v12311_v26 }
 0x72f   :  { %v12888_v5 = vpop.f32.mrb[172].mxu0 }
 0x730   :  { %14665 = vst [vmem:[#allocation96_spill] sm:$0xff] %v12888_v5  ;;  %v12890_v58 = vpop.f32.mrb[173].mxu0  ;;  %v8988_v5 = vld [vmem:[%s14096_s0 + $0x1f8] sm:$0xff] }
 0x731   :  { %14666 = vst [vmem:[#allocation97_spill] sm:$0xff] %v12890_v58  ;;  %v12892_v51 = vpop.f32.mrb[174].mxu0 }
 0x732   :  { %14667 = vst [vmem:[#allocation98_spill] sm:$0xff] %v12892_v51  ;;  %v12894_v45 = vpop.f32.mrb[175].mxu0 }
 0x733   :  { %14668 = vst [vmem:[#allocation99_spill] sm:$0xff] %v12894_v45 }
 0x735   :  { %7994 = vmatmul.mubr.msk.bf16.gmra.mrb[88].mxu1 %vm80_vm0, %v12313_v32 }
 0x736   :  { %7997 = vmatprep.mubr.msk.bf16.mxu1 %vm80_vm0, %v12379_v46 }
 0x737   :  { %v12900_v56 = vpop.f32.mrb[176].mxu0 }
 0x738   :  { %14669 = vst [vmem:[#allocation100_spill] sm:$0xff] %v12900_v56  ;;  %v12902_v47 = vpop.f32.mrb[177].mxu0 }
 0x739   :  { %14670 = vst [vmem:[#allocation101_spill] sm:$0xff] %v12902_v47  ;;  %v12904_v7 = vpop.f32.mrb[178].mxu0 }
 0x73a   :  { %14671 = vst [vmem:[#allocation102_spill] sm:$0xff] %v12904_v7  ;;  %v12906_v31 = vpop.f32.mrb[179].mxu0 }
 0x73b   :  { %14672 = vst [vmem:[#allocation103_spill] sm:$0xff] %v12906_v31 }
 0x73d   :  { %7998 = vmatmul.mubr.bf16.gmra.mrb[92].mxu1 %v14568_v18 }
 0x73e   :  { %8001 = vmatprep.mubr.msk.bf16.mxu1 %vm80_vm0, %v12315_v48 }
 0x73f   :  { %v12911_v45 = vpop.f32.mrb[180].mxu0 }
 0x740   :  { %14673 = vst [vmem:[#allocation104_spill] sm:$0xff] %v12911_v45  ;;  %v12913_v51 = vpop.f32.mrb[181].mxu0 }
 0x741   :  { %14674 = vst [vmem:[#allocation105_spill] sm:$0xff] %v12913_v51  ;;  %v12915_v58 = vpop.f32.mrb[182].mxu0 }
 0x742   :  { %14675 = vst [vmem:[#allocation106_spill] sm:$0xff] %v12915_v58  ;;  %v12917_v46 = vpop.f32.mrb[183].mxu0 }
 0x743   :  { %14676 = vst [vmem:[#allocation107_spill] sm:$0xff] %v12917_v46 }
 0x745   :  { %8002 = vmatmul.mubr.msk.bf16.gmra.mrb[96].mxu1 %vm80_vm0, %v12317_v11 }
 0x746   :  { %8005 = vmatprep.mubr.msk.bf16.mxu1 %vm80_vm0, %v12324_v43 }
 0x747   :  { %v12923_v31 = vpop.f32.mrb[184].mxu0 }
 0x748   :  { %14677 = vst [vmem:[#allocation108_spill] sm:$0xff] %v12923_v31  ;;  %v12925_v7 = vpop.f32.mrb[185].mxu0 }
 0x749   :  { %14678 = vst [vmem:[#allocation109_spill] sm:$0xff] %v12925_v7  ;;  %v12927_v47 = vpop.f32.mrb[186].mxu0 }
 0x74a   :  { %14679 = vst [vmem:[#allocation110_spill] sm:$0xff] %v12927_v47  ;;  %v12929_v56 = vpop.f32.mrb[187].mxu0 }
 0x74b   :  { %14680 = vst [vmem:[#allocation111_spill] sm:$0xff] %v12929_v56 }
 0x74d   :  { %8006 = vmatmul.mubr.msk.bf16.gmra.mrb[100].mxu1 %vm80_vm0, %v12326_v6 }
 0x74e   :  { %8009 = vmatprep.mubr.msk.bf16.mxu1 %vm80_vm0, %v12328_v13 }
 0x74f   :  { %v12935_v46 = vpop.f32.mrb[188].mxu0 }
 0x750   :  { %14681 = vst [vmem:[#allocation112_spill] sm:$0xff] %v12935_v46  ;;  %v12937_v58 = vpop.f32.mrb[189].mxu0 }
 0x751   :  { %14682 = vst [vmem:[#allocation113_spill] sm:$0xff] %v12937_v58  ;;  %v12939_v51 = vpop.f32.mrb[190].mxu0 }
 0x752   :  { %14683 = vst [vmem:[#allocation114_spill] sm:$0xff] %v12939_v51  ;;  %v12941_v45 = vpop.f32.mrb[191].mxu0 }
 0x753   :  { %14684 = vst [vmem:[#allocation115_spill] sm:$0xff] %v12941_v45  ;;  %v8920_v45 = vld [vmem:[%s14098_s2 + $0x20] ss:$12 sps:$4 sm:$0xff]  }
 0x755   :  { %8010 = vmatmul.mubr.msk.bf16.gmra.mrb[104].mxu1 %vm80_vm0, %v12330_v25 }
 0x756   :  { %8013 = vmatprep.mubr.msk.bf16.mxu1 %vm80_vm0, %v12335_v49 }
 0x75d   :  { %8014 = vmatmul.mubr.msk.bf16.gmra.mrb[108].mxu1 %vm80_vm0, %v12337_v34 }
 0x75e   :  { %8017 = vmatprep.mubr.msk.bf16.mxu1 %vm80_vm0, %v12339_v22 }
 0x765   :  { %8018 = vmatmul.mubr.msk.bf16.gmra.mrb[112].mxu1 %vm80_vm0, %v12341_v0 }
 0x766   :  { %8021 = vmatprep.mubr.msk.bf16.mxu1 %vm80_vm0, %v12350_v57 }
 0x76d   :  { %8022 = vmatmul.mubr.msk.bf16.gmra.mrb[116].mxu1 %vm80_vm0, %v12352_v55 }
 0x76e   :  { %8025 = vmatprep.mubr.msk.bf16.mxu1 %vm80_vm0, %v12354_v2 }
 0x775   :  { %8026 = vmatmul.mubr.msk.bf16.gmra.mrb[120].mxu1 %vm80_vm0, %v12356_v3 }
 0x776   :  { %8029 = vmatprep.mubr.msk.bf16.mxu1 %vm80_vm0, %v12385_v42 }
 0x77d   :  { %8030 = vmatmul.mubr.bf16.gmra.mrb[124].mxu1 %v14568_v18 }
 0x77e   :  { %5595 = vmatprep.mubr.bf16.mxu1 %v14568_v18 }
 0x785   :  { %5596 = vmatmul.mubr.bf16.vlgmr.msra.gmra.mrb[128].mxu1 %v14568_v18 }
 0x786   :  { %8034 = vmatpush3.bf16.msra.mxu1 %v12829_v60  ;;  %5605 = vmatprep.mubr.bf16.mxu1 %v14568_v18 }
 0x787   :  { %8035 = vmatprep.subr.bf16.mxu1 %v8920_v45 }
 0x78a   :  { %8036 = vmatpush3.bf16.msra.mxu1 %v8920_v45 }
 0x78d   :  { %7429 = vmatmul.mubr.msk.bf16.gmra.mrb[132].mxu1 %vm80_vm0, %v14564_v54 }
 0x78e   :  { %5615 = vmatprep.mubr.bf16.mxu1 %v14568_v18 }
 0x795   :  { %7430 = vmatmul.mubr.msk.bf16.gmra.mrb[136].mxu1 %vm80_vm0, %v12280_v62 }
 0x796   :  { %5625 = vmatprep.mubr.bf16.mxu1 %v14568_v18 }
 0x79d   :  { %7431 = vmatmul.mubr.msk.bf16.gmra.mrb[140].mxu1 %vm80_vm0, %v12282_v35 }
 0x79e   :  { %5635 = vmatprep.mubr.bf16.mxu1 %v14568_v18 }
 0x7a5   :  { %7432 = vmatmul.mubr.msk.bf16.gmra.mrb[144].mxu1 %vm80_vm0, %v12284_v59 }
 0x7a6   :  { %5645 = vmatprep.mubr.bf16.mxu1 %v14568_v18 }
 0x7ad   :  { %7433 = vmatmul.mubr.msk.bf16.gmra.mrb[148].mxu1 %vm80_vm0, %v12286_v40 }
 0x7ae   :  { %5655 = vmatprep.mubr.bf16.mxu1 %v14568_v18 }
 0x7b5   :  { %7434 = vmatmul.mubr.msk.bf16.gmra.mrb[152].mxu1 %vm80_vm0, %v12291_v8 }
 0x7b6   :  { %5665 = vmatprep.mubr.bf16.mxu1 %v14568_v18 }
 0x7bd   :  { %7435 = vmatmul.mubr.msk.bf16.gmra.mrb[156].mxu1 %vm80_vm0, %v12293_v52 }
 0x7be   :  { %5675 = vmatprep.mubr.bf16.mxu1 %v14568_v18 }
 0x7c5   :  { %7436 = vmatmul.mubr.msk.bf16.gmra.mrb[160].mxu1 %vm80_vm0, %v12295_v14 }
 0x7c6   :  { %5685 = vmatprep.mubr.bf16.mxu1 %v14568_v18 }
 0x7cd   :  { %7437 = vmatmul.mubr.msk.bf16.gmra.mrb[164].mxu1 %vm80_vm0, %v12297_v1 }
 0x7ce   :  { %5695 = vmatprep.mubr.bf16.mxu1 %v14568_v18 }
 0x7d5   :  { %7438 = vmatmul.mubr.msk.bf16.gmra.mrb[168].mxu1 %vm80_vm0, %v12301_v39 }
 0x7d6   :  { %5705 = vmatprep.mubr.bf16.mxu1 %v14568_v18 }
 0x7dd   :  { %7439 = vmatmul.mubr.msk.bf16.gmra.mrb[172].mxu1 %vm80_vm0, %v12303_v37 }
 0x7de   :  { %5715 = vmatprep.mubr.bf16.mxu1 %v14568_v18 }
 0x7e5   :  { %7440 = vmatmul.mubr.msk.bf16.gmra.mrb[176].mxu1 %vm80_vm0, %v12305_v19 }
 0x7e6   :  { %5725 = vmatprep.mubr.bf16.mxu1 %v14568_v18 }
 0x7ed   :  { %7441 = vmatmul.mubr.msk.bf16.gmra.mrb[180].mxu1 %vm80_vm0, %v12307_v33 }
 0x7ee   :  { %5735 = vmatprep.mubr.bf16.mxu1 %v14568_v18 }
 0x7f5   :  { %7442 = vmatmul.mubr.msk.bf16.gmra.mrb[184].mxu1 %vm80_vm0, %v12311_v26 }
 0x7f6   :  { %5745 = vmatprep.mubr.bf16.mxu1 %v14568_v18 }
 0x7fd   :  { %7443 = vmatmul.mubr.msk.bf16.gmra.mrb[188].mxu1 %vm80_vm0, %v12313_v32 }
 0x7fe   :  { %5755 = vmatprep.mubr.bf16.mxu1 %v14568_v18 }
 0x805   :  { %5756 = vmatmul.mubr.bf16.gmra.mrb[192].mxu1 %v14568_v18 }
 0x806   :  { %5765 = vmatprep.mubr.bf16.mxu1 %v14568_v18 }
 0x80d   :  { %7444 = vmatmul.mubr.msk.bf16.gmra.mrb[196].mxu1 %vm80_vm0, %v12381_v17 }
 0x80e   :  { %5775 = vmatprep.mubr.bf16.mxu1 %v14568_v18 }
 0x815   :  { %7445 = vmatmul.mubr.msk.bf16.gmra.mrb[200].mxu1 %vm80_vm0, %v12315_v48 }
 0x816   :  { %5785 = vmatprep.mubr.bf16.mxu1 %v14568_v18 }
 0x81d   :  { %7446 = vmatmul.mubr.msk.bf16.gmra.mrb[204].mxu1 %vm80_vm0, %v12317_v11 }
 0x81e   :  { %5795 = vmatprep.mubr.bf16.mxu1 %v14568_v18 }
 0x825   :  { %7447 = vmatmul.mubr.msk.bf16.gmra.mrb[208].mxu1 %vm80_vm0, %v12324_v43 }
 0x826   :  { %5805 = vmatprep.mubr.bf16.mxu1 %v14568_v18 }
 0x82d   :  { %7448 = vmatmul.mubr.msk.bf16.gmra.mrb[212].mxu1 %vm80_vm0, %v12326_v6 }
 0x82e   :  { %5815 = vmatprep.mubr.bf16.mxu1 %v14568_v18 }
 0x835   :  { %7449 = vmatmul.mubr.msk.bf16.gmra.mrb[216].mxu1 %vm80_vm0, %v12328_v13 }
 0x836   :  { %5825 = vmatprep.mubr.bf16.mxu1 %v14568_v18 }
 0x83d   :  { %7450 = vmatmul.mubr.msk.bf16.gmra.mrb[220].mxu1 %vm80_vm0, %v12330_v25 }
 0x83e   :  { %5835 = vmatprep.mubr.bf16.mxu1 %v14568_v18 }
 0x845   :  { %7451 = vmatmul.mubr.msk.bf16.gmra.mrb[224].mxu1 %vm80_vm0, %v12335_v49 }
 0x846   :  { %5845 = vmatprep.mubr.bf16.mxu1 %v14568_v18 }
 0x84d   :  { %7452 = vmatmul.mubr.msk.bf16.gmra.mrb[228].mxu1 %vm80_vm0, %v12337_v34 }
 0x84e   :  { %5855 = vmatprep.mubr.bf16.mxu1 %v14568_v18 }
 0x855   :  { %7453 = vmatmul.mubr.msk.bf16.gmra.mrb[232].mxu1 %vm80_vm0, %v12339_v22 }
 0x856   :  { %5865 = vmatprep.mubr.bf16.mxu1 %v14568_v18 }
 0x858   :  { %v5597_v42 = vpop.f32.mrb[128].mxu1 }
 0x859   :  { %v5598_v45 = vadd.f32 %v5597_v42, %v12553_v36  ;;  %v5599_v60 = vpop.f32.mrb[129].mxu1 }
 0x85a   :  { %v5600_v51 = vadd.f32 %v5599_v60, %v12556_v38  ;;  %v5601_v58 = vpop.f32.mrb[130].mxu1 }
 0x85b   :  { %v5602_v46 = vadd.f32 %v5601_v58, %v12558_v21  ;;  %v5603_v56 = vpop.f32.mrb[131].mxu1  ;;  %v6397_v7 = vrot.slane %v5598_v45, 7 }
 0x85c   :  { %v5604_v47 = vadd.f32 %v5603_v56, %v12560_v10 }
 0x85d   :  { %v6429_v31 = vrot.slane %v5602_v46, 7  ;;  %7454 = vmatmul.mubr.msk.bf16.gmra.mrb[236].mxu1 %vm80_vm0, %v12341_v0 }
 0x85e   :  { %5875 = vmatprep.mubr.bf16.mxu1 %v14568_v18 }
 0x85f   :  { %v6493_v22 = vsel %vm3049_vm2, %v6429_v31, %v6397_v7  ;;  %v6461_v36 = vsel %vm3049_vm2, %v6397_v7, %v6429_v31 }
 0x860   :  { %v6525_v38 = vsel %vm2983_vm3, %v6493_v22, 0.0  ;;  %v13061_v21 = vadd.f32 %v6461_v36, %v5604_v47  ;;  %v5607_v58 = vpop.f32.mrb[132].mxu1 }
 0x861   :  { %v13063_v10 = vadd.f32 %v6525_v38, %v5600_v51  ;;  %v5608_v56 = vadd.f32 %v5607_v58, %v12567_v30  ;;  %v5609_v46 = vpop.f32.mrb[133].mxu1 }
 0x862   :  { %v5610_v42 = vadd.f32 %v5609_v46, %v12570_v28  ;;  %v5611_v45 = vpop.f32.mrb[134].mxu1 }
 0x863   :  { %v5612_v60 = vadd.f32 %v5611_v45, %v12572_v20  ;;  %v5613_v0 = vpop.f32.mrb[135].mxu1  ;;  %v6398_v31 = vrot.slane %v5608_v56, 7 }
 0x864   :  { %v5614_v34 = vadd.f32 %v5613_v0, %v12574_v29 }
 0x865   :  { %v6430_v7 = vrot.slane %v5612_v60, 7  ;;  %7455 = vmatmul.mubr.msk.bf16.gmra.mrb[240].mxu1 %vm80_vm0, %v12350_v57 }
 0x866   :  { %5885 = vmatprep.mubr.bf16.mxu1 %v14568_v18 }
 0x867   :  { %v6494_v22 = vsel %vm3049_vm2, %v6430_v7, %v6398_v31  ;;  %v6462_v30 = vsel %vm3049_vm2, %v6398_v31, %v6430_v7 }
 0x868   :  { %v6527_v28 = vsel %vm2983_vm3, %v6494_v22, 0.0  ;;  %v13078_v20 = vadd.f32 %v6462_v30, %v5614_v34  ;;  %v5617_v51 = vpop.f32.mrb[136].mxu1 }
 0x869   :  { %v13080_v0 = vadd.f32 %v6527_v28, %v5610_v42  ;;  %v5618_v29 = vadd.f32 %v5617_v51, %v12581_v50  ;;  %v5619_v47 = vpop.f32.mrb[137].mxu1 }
 0x86a   :  { %v5620_v36 = vadd.f32 %v5619_v47, %v12584_v41  ;;  %v5621_v38 = vpop.f32.mrb[138].mxu1 }
 0x86b   :  { %v5622_v58 = vadd.f32 %v5621_v38, %v12586_v23  ;;  %v5623_v56 = vpop.f32.mrb[139].mxu1  ;;  %v6399_v45 = vrot.slane %v5618_v29, 7 }
 0x86c   :  { %v5624_v46 = vadd.f32 %v5623_v56, %v12588_v44 }
 0x86d   :  { %v6431_v60 = vrot.slane %v5622_v58, 7  ;;  %7456 = vmatmul.mubr.msk.bf16.gmra.mrb[244].mxu1 %vm80_vm0, %v12352_v55 }
 0x86e   :  { %5895 = vmatprep.mubr.bf16.mxu1 %v14568_v18 }
 0x86f   :  { %v6495_v34 = vsel %vm3049_vm2, %v6431_v60, %v6399_v45  ;;  %v6463_v50 = vsel %vm3049_vm2, %v6399_v45, %v6431_v60 }
 0x870   :  { %v6529_v41 = vsel %vm2983_vm3, %v6495_v34, 0.0  ;;  %v13095_v23 = vadd.f32 %v6463_v50, %v5624_v46  ;;  %v5627_v42 = vpop.f32.mrb[140].mxu1 }
 0x871   :  { %v13097_v44 = vadd.f32 %v6529_v41, %v5620_v36  ;;  %v5628_v31 = vadd.f32 %v5627_v42, %v12595_v12  ;;  %v5629_v7 = vpop.f32.mrb[141].mxu1 }
 0x872   :  { %v5630_v22 = vadd.f32 %v5629_v7, %v12598_v15  ;;  %v5631_v30 = vpop.f32.mrb[142].mxu1 }
 0x873   :  { %v5632_v28 = vadd.f32 %v5631_v30, %v12600_v16  ;;  %v5633_v51 = vpop.f32.mrb[143].mxu1  ;;  %v6400_v47 = vrot.slane %v5628_v31, 7 }
 0x874   :  { %v5634_v29 = vadd.f32 %v5633_v51, %v12602_v4 }
 0x875   :  { %v6432_v38 = vrot.slane %v5632_v28, 7  ;;  %7457 = vmatmul.mubr.msk.bf16.gmra.mrb[248].mxu1 %vm80_vm0, %v12354_v2 }
 0x876   :  { %5905 = vmatprep.mubr.bf16.mxu1 %v14568_v18 }
 0x877   :  { %v6496_v36 = vsel %vm3049_vm2, %v6432_v38, %v6400_v47  ;;  %v6464_v12 = vsel %vm3049_vm2, %v6400_v47, %v6432_v38  ;;  %v14686_v47 = vld [vmem:[#allocation20_spill] sm:$0xff] }
 0x878   :  { %v6531_v15 = vsel %vm2983_vm3, %v6496_v36, 0.0  ;;  %v13112_v16 = vadd.f32 %v6464_v12, %v5634_v29  ;;  %v5637_v58 = vpop.f32.mrb[144].mxu1  ;;  %v14687_v12 = vld [vmem:[#allocation26_spill] sm:$0xff] }
 0x879   :  { %v13114_v4 = vadd.f32 %v6531_v15, %v5630_v22  ;;  %v5638_v56 = vadd.f32 %v5637_v58, %v12609_v61  ;;  %v5639_v46 = vpop.f32.mrb[145].mxu1 }
 0x87a   :  { %v5640_v45 = vadd.f32 %v5639_v46, %v12612_v63  ;;  %v5641_v60 = vpop.f32.mrb[146].mxu1 }
 0x87b   :  { %v5642_v34 = vadd.f32 %v5641_v60, %v12614_v9  ;;  %v5643_v50 = vpop.f32.mrb[147].mxu1  ;;  %v6401_v42 = vrot.slane %v5638_v56, 7 }
 0x87c   :  { %v5644_v41 = vadd.f32 %v5643_v50, %v12616_v24  ;;  %v14688_v50 = vld [vmem:[#allocation25_spill] sm:$0xff] }
 0x87d   :  { %v6433_v31 = vrot.slane %v5642_v34, 7  ;;  %7458 = vmatmul.mubr.msk.bf16.gmra.mrb[252].mxu1 %vm80_vm0, %v12356_v3 }
 0x87e   :  { %8037 = vmatprep.mubr.bf16.mxu1 %v14568_v18 }
 0x87f   :  { %v6497_v7 = vsel %vm3049_vm2, %v6433_v31, %v6401_v42  ;;  %v6465_v61 = vsel %vm3049_vm2, %v6401_v42, %v6433_v31  ;;  %v14689_v42 = vld [vmem:[#allocation24_spill] sm:$0xff] }
 0x880   :  { %v6533_v63 = vsel %vm2983_vm3, %v6497_v7, 0.0  ;;  %v13129_v9 = vadd.f32 %v6465_v61, %v5644_v41  ;;  %v5647_v22 = vpop.f32.mrb[148].mxu1  ;;  %v14690_v7 = vld [vmem:[#allocation7_spill] sm:$0xff] }
 0x881   :  { %v13131_v24 = vadd.f32 %v6533_v63, %v5640_v45  ;;  %v5648_v30 = vadd.f32 %v5647_v22, %v12621_v27  ;;  %v5649_v28 = vpop.f32.mrb[149].mxu1  ;;  %v14691_v22 = vld [vmem:[#allocation40_spill] sm:$0xff] }
 0x882   :  { %v5650_v51 = vadd.f32 %v5649_v28, %v12624_v53  ;;  %v5651_v29 = vpop.f32.mrb[150].mxu1 }
 0x883   :  { %v5652_v38 = vadd.f32 %v5651_v29, %v14686_v47  ;;  %v5653_v36 = vpop.f32.mrb[151].mxu1  ;;  %v6402_v58 = vrot.slane %v5648_v30, 7 }
 0x884   :  { %v5654_v15 = vadd.f32 %v5653_v36, %v14687_v12 }
 0x885   :  { %v6434_v56 = vrot.slane %v5652_v38, 7  ;;  %8038 = vmatmul.mubr.msk.bf16.vlgmr.msra.gmra.mrb[64].mxu1 %vm80_vm0, %v14564_v54 }
 0x886   :  { %8041 = vmatprep.mubr.msk.bf16.mxu1 %vm80_vm0, %v12280_v62 }
 0x887   :  { %v6498_v27 = vsel %vm3049_vm2, %v6434_v56, %v6402_v58  ;;  %v6466_v53 = vsel %vm3049_vm2, %v6402_v58, %v6434_v56  ;;  %v14692_v58 = vld [vmem:[#allocation39_spill] sm:$0xff] }
 0x888   :  { %v6535_v46 = vsel %vm2983_vm3, %v6498_v27, 0.0  ;;  %v13147_v45 = vadd.f32 %v6466_v53, %v5654_v15  ;;  %v5657_v60 = vpop.f32.mrb[152].mxu1  ;;  %v14693_v27 = vld [vmem:[#allocation8_spill] sm:$0xff] }
 0x889   :  { %v13149_v34 = vadd.f32 %v6535_v46, %v5650_v51  ;;  %v5658_v41 = vadd.f32 %v5657_v60, %v14688_v50  ;;  %v5659_v54 = vpop.f32.mrb[153].mxu1  ;;  %v14694_v46 = vld [vmem:[#allocation27_spill] sm:$0xff] }
 0x88a   :  { %v5660_v31 = vadd.f32 %v5659_v54, %v14689_v42  ;;  %v5661_v62 = vpop.f32.mrb[154].mxu1 }
 0x88b   :  { %v5662_v61 = vadd.f32 %v5661_v62, %v14690_v7  ;;  %v5663_v63 = vpop.f32.mrb[155].mxu1  ;;  %v6403_v28 = vrot.slane %v5658_v41, 7  ;;  %v14695_v41 = vld [vmem:[#allocation9_spill] sm:$0xff] }
 0x88c   :  { %v5664_v30 = vadd.f32 %v5663_v63, %v14691_v22 }
 0x88d   :  { %v6435_v29 = vrot.slane %v5662_v61, 7  ;;  %8042 = vmatmul.mubr.msk.bf16.gmra.mrb[68].mxu1 %vm80_vm0, %v12282_v35 }
 0x88e   :  { %8045 = vmatprep.mubr.msk.bf16.mxu1 %vm80_vm0, %v12284_v59 }
 0x88f   :  { %v6499_v51 = vsel %vm3049_vm2, %v6435_v29, %v6403_v28  ;;  %v6467_v47 = vsel %vm3049_vm2, %v6403_v28, %v6435_v29  ;;  %v14696_v28 = vld [vmem:[#allocation42_spill] sm:$0xff] }
 0x890   :  { %v6537_v38 = vsel %vm2983_vm3, %v6499_v51, 0.0  ;;  %v13165_v36 = vadd.f32 %v6467_v47, %v5664_v30  ;;  %v5667_v12 = vpop.f32.mrb[156].mxu1  ;;  %v14697_v51 = vld [vmem:[#allocation41_spill] sm:$0xff] }
 0x891   :  { %v13167_v15 = vadd.f32 %v6537_v38, %v5660_v31  ;;  %v5668_v56 = vadd.f32 %v5667_v12, %v14692_v58  ;;  %v5669_v35 = vpop.f32.mrb[157].mxu1  ;;  %v14698_v38 = vld [vmem:[#allocation44_spill] sm:$0xff] }
 0x892   :  { %v5670_v53 = vadd.f32 %v5669_v35, %v14693_v27  ;;  %v5671_v59 = vpop.f32.mrb[158].mxu1 }
 0x893   :  { %v5672_v60 = vadd.f32 %v5671_v59, %v14694_v46  ;;  %v5673_v50 = vpop.f32.mrb[159].mxu1  ;;  %v6404_v42 = vrot.slane %v5668_v56, 7  ;;  %v14699_v56 = vld [vmem:[#allocation45_spill] sm:$0xff] }
 0x894   :  { %v5674_v54 = vadd.f32 %v5673_v50, %v14695_v41 }
 0x895   :  { %v6436_v62 = vrot.slane %v5672_v60, 7  ;;  %8046 = vmatmul.mubr.msk.bf16.gmra.mrb[72].mxu1 %vm80_vm0, %v12286_v40 }
 0x896   :  { %8049 = vmatprep.mubr.msk.bf16.mxu1 %vm80_vm0, %v12291_v8 }
 0x897   :  { %v6500_v31 = vsel %vm3049_vm2, %v6436_v62, %v6404_v42  ;;  %v6468_v7 = vsel %vm3049_vm2, %v6404_v42, %v6436_v62  ;;  %v14700_v42 = vld [vmem:[#allocation48_spill] sm:$0xff] }
 0x898   :  { %v6539_v61 = vsel %vm2983_vm3, %v6500_v31, 0.0  ;;  %v13183_v63 = vadd.f32 %v6468_v7, %v5674_v54  ;;  %v5677_v22 = vpop.f32.mrb[160].mxu1  ;;  %v14701_v31 = vld [vmem:[#allocation47_spill] sm:$0xff] }
 0x899   :  { %v13185_v30 = vadd.f32 %v6539_v61, %v5670_v53  ;;  %v5678_v29 = vadd.f32 %v5677_v22, %v14696_v28  ;;  %v5679_v40 = vpop.f32.mrb[161].mxu1  ;;  %v14702_v61 = vld [vmem:[#allocation49_spill] sm:$0xff] }
 0x89a   :  { %v5680_v47 = vadd.f32 %v5679_v40, %v14697_v51  ;;  %v5681_v8 = vpop.f32.mrb[162].mxu1 }
 0x89b   :  { %v5682_v12 = vadd.f32 %v5681_v8, %v14698_v38  ;;  %v5683_v58 = vpop.f32.mrb[163].mxu1  ;;  %v6405_v27 = vrot.slane %v5678_v29, 7  ;;  %v14703_v29 = vld [vmem:[#allocation11_spill] sm:$0xff] }
 0x89c   :  { %v5684_v35 = vadd.f32 %v5683_v58, %v14699_v56 }
 0x89d   :  { %v6437_v59 = vrot.slane %v5682_v12, 7  ;;  %8050 = vmatmul.mubr.msk.bf16.gmra.mrb[76].mxu1 %vm80_vm0, %v12293_v52 }
 0x89e   :  { %8053 = vmatprep.mubr.msk.bf16.mxu1 %vm80_vm0, %v12295_v14 }
 0x89f   :  { %v6501_v53 = vsel %vm3049_vm2, %v6437_v59, %v6405_v27  ;;  %v6469_v46 = vsel %vm3049_vm2, %v6405_v27, %v6437_v59  ;;  %v14704_v27 = vld [vmem:[#allocation50_spill] sm:$0xff] }
 0x8a0   :  { %v6541_v60 = vsel %vm2983_vm3, %v6501_v53, 0.0  ;;  %v13201_v50 = vadd.f32 %v6469_v46, %v5684_v35  ;;  %v5687_v41 = vpop.f32.mrb[164].mxu1  ;;  %v14705_v53 = vld [vmem:[#allocation13_spill] sm:$0xff] }
 0x8a1   :  { %v13203_v54 = vadd.f32 %v6541_v60, %v5680_v47  ;;  %v5688_v62 = vadd.f32 %v5687_v41, %v14700_v42  ;;  %v5689_v52 = vpop.f32.mrb[165].mxu1  ;;  %v14706_v60 = vld [vmem:[#allocation12_spill] sm:$0xff] }
 0x8a2   :  { %v5690_v7 = vadd.f32 %v5689_v52, %v14701_v31  ;;  %v5691_v14 = vpop.f32.mrb[166].mxu1 }
 0x8a3   :  { %v5692_v22 = vadd.f32 %v5691_v14, %v14702_v61  ;;  %v5693_v28 = vpop.f32.mrb[167].mxu1  ;;  %v6406_v51 = vrot.slane %v5688_v62, 7  ;;  %v14707_v62 = vld [vmem:[#allocation15_spill] sm:$0xff] }
 0x8a4   :  { %v5694_v40 = vadd.f32 %v5693_v28, %v14703_v29 }
 0x8a5   :  { %v6438_v8 = vrot.slane %v5692_v22, 7  ;;  %8054 = vmatmul.mubr.msk.bf16.gmra.mrb[80].mxu1 %vm80_vm0, %v12297_v1 }
 0x8a6   :  { %8057 = vmatprep.mubr.msk.bf16.mxu1 %vm80_vm0, %v12301_v39 }
 0x8a7   :  { %v6502_v47 = vsel %vm3049_vm2, %v6438_v8, %v6406_v51  ;;  %v6470_v38 = vsel %vm3049_vm2, %v6406_v51, %v6438_v8  ;;  %v14708_v51 = vld [vmem:[#allocation14_spill] sm:$0xff] }
 0x8a8   :  { %v6543_v12 = vsel %vm2983_vm3, %v6502_v47, 0.0  ;;  %v13219_v58 = vadd.f32 %v6470_v38, %v5694_v40  ;;  %v5697_v56 = vpop.f32.mrb[168].mxu1  ;;  %v14709_v47 = vld [vmem:[#allocation29_spill] sm:$0xff] }
 0x8a9   :  { %v13221_v35 = vadd.f32 %v6543_v12, %v5690_v7  ;;  %v5698_v59 = vadd.f32 %v5697_v56, %v14704_v27  ;;  %v5699_v1 = vpop.f32.mrb[169].mxu1  ;;  %v14710_v12 = vld [vmem:[#allocation31_spill] sm:$0xff] }
 0x8aa   :  { %v5700_v46 = vadd.f32 %v5699_v1, %v14705_v53  ;;  %v5701_v39 = vpop.f32.mrb[170].mxu1 }
 0x8ab   :  { %v5702_v41 = vadd.f32 %v5701_v39, %v14706_v60  ;;  %v5703_v42 = vpop.f32.mrb[171].mxu1  ;;  %v6407_v31 = vrot.slane %v5698_v59, 7  ;;  %v14711_v59 = vld [vmem:[#allocation34_spill] sm:$0xff] }
 0x8ac   :  { %v5704_v52 = vadd.f32 %v5703_v42, %v14707_v62 }
 0x8ad   :  { %v6439_v14 = vrot.slane %v5702_v41, 7  ;;  %8058 = vmatmul.mubr.msk.bf16.gmra.mrb[84].mxu1 %vm80_vm0, %v12303_v37 }
 0x8ae   :  { %8061 = vmatprep.mubr.msk.bf16.mxu1 %vm80_vm0, %v12305_v19 }
 0x8af   :  { %v6503_v7 = vsel %vm3049_vm2, %v6439_v14, %v6407_v31  ;;  %v6471_v61 = vsel %vm3049_vm2, %v6407_v31, %v6439_v14  ;;  %v14712_v31 = vld [vmem:[#allocation5_spill] sm:$0xff] }
 0x8b0   :  { %v6545_v22 = vsel %vm2983_vm3, %v6503_v7, 0.0  ;;  %v13237_v28 = vadd.f32 %v6471_v61, %v5704_v52  ;;  %v5707_v29 = vpop.f32.mrb[172].mxu1  ;;  %v14713_v7 = vld [vmem:[#allocation37_spill] sm:$0xff] }
 0x8b1   :  { %v13239_v40 = vadd.f32 %v6545_v22, %v5700_v46  ;;  %v5708_v8 = vadd.f32 %v5707_v29, %v14708_v51  ;;  %v5709_v37 = vpop.f32.mrb[173].mxu1  ;;  %v14714_v22 = vld [vmem:[#allocation38_spill] sm:$0xff] }
 0x8b2   :  { %v5710_v38 = vadd.f32 %v5709_v37, %v14709_v47  ;;  %v5711_v19 = vpop.f32.mrb[174].mxu1 }
 0x8b3   :  { %v5712_v56 = vadd.f32 %v5711_v19, %v14710_v12  ;;  %v5713_v27 = vpop.f32.mrb[175].mxu1  ;;  %v6408_v53 = vrot.slane %v5708_v8, 7  ;;  %v14715_v8 = vld [vmem:[#allocation28_spill] sm:$0xff] }
 0x8b4   :  { %v5714_v1 = vadd.f32 %v5713_v27, %v14711_v59 }
 0x8b5   :  { %v6440_v39 = vrot.slane %v5712_v56, 7  ;;  %8062 = vmatmul.mubr.msk.bf16.gmra.mrb[88].mxu1 %vm80_vm0, %v12307_v33 }
 0x8b6   :  { %8065 = vmatprep.mubr.msk.bf16.mxu1 %vm80_vm0, %v12311_v26 }
 0x8b7   :  { %v6504_v46 = vsel %vm3049_vm2, %v6440_v39, %v6408_v53  ;;  %v6472_v60 = vsel %vm3049_vm2, %v6408_v53, %v6440_v39  ;;  %v14716_v53 = vld [vmem:[#allocation30_spill] sm:$0xff] }
 0x8b8   :  { %v6547_v41 = vsel %vm2983_vm3, %v6504_v46, 0.0  ;;  %v13255_v42 = vadd.f32 %v6472_v60, %v5714_v1  ;;  %v5717_v62 = vpop.f32.mrb[176].mxu1 }
 0x8b9   :  { %v13257_v52 = vadd.f32 %v6547_v41, %v5710_v38  ;;  %v5718_v14 = vadd.f32 %v5717_v62, %v14712_v31  ;;  %v5719_v33 = vpop.f32.mrb[177].mxu1  ;;  %v14718_v41 = vld [vmem:[#allocation32_spill] sm:$0xff] }
 0x8ba   :  { %v5720_v61 = vadd.f32 %v5719_v33, %v14713_v7  ;;  %v5721_v26 = vpop.f32.mrb[178].mxu1 }
 0x8bb   :  { %v5722_v29 = vadd.f32 %v5721_v26, %v14714_v22  ;;  %v5723_v51 = vpop.f32.mrb[179].mxu1  ;;  %v6409_v47 = vrot.slane %v5718_v14, 7  ;;  %v14719_v14 = vld [vmem:[#allocation35_spill] sm:$0xff] }
 0x8bc   :  { %v5724_v37 = vadd.f32 %v5723_v51, %v14715_v8 }
 0x8bd   :  { %v6441_v19 = vrot.slane %v5722_v29, 7  ;;  %8066 = vmatmul.mubr.msk.bf16.gmra.mrb[92].mxu1 %vm80_vm0, %v12313_v32  ;;  %v14717_v32 = vld [vmem:[#allocation33_spill] sm:$0xff] }
 0x8be   :  { %8069 = vmatprep.mubr.bf16.mxu1 %v14568_v18 }
 0x8bf   :  { %v6505_v38 = vsel %vm3049_vm2, %v6441_v19, %v6409_v47  ;;  %v6473_v12 = vsel %vm3049_vm2, %v6409_v47, %v6441_v19  ;;  %v14720_v47 = vld [vmem:[#allocation36_spill] sm:$0xff] }
 0x8c0   :  { %v6549_v56 = vsel %vm2983_vm3, %v6505_v38, 0.0  ;;  %v13272_v27 = vadd.f32 %v6473_v12, %v5724_v37  ;;  %v5727_v59 = vpop.f32.mrb[180].mxu1  ;;  %v14721_v38 = vld [vmem:[#allocation16_spill] sm:$0xff] }
 0x8c1   :  { %v13274_v1 = vadd.f32 %v6549_v56, %v5720_v61  ;;  %v5728_v39 = vadd.f32 %v5727_v59, %v14716_v53  ;;  %v5729_v46 = vpop.f32.mrb[181].mxu1  ;;  %v14722_v56 = vld [vmem:[#allocation53_spill] sm:$0xff] }
 0x8c2   :  { %v5730_v60 = vadd.f32 %v5729_v46, %v14717_v32  ;;  %v5731_v18 = vpop.f32.mrb[182].mxu1 }
 0x8c3   :  { %v5732_v62 = vadd.f32 %v5731_v18, %v14718_v41  ;;  %v5733_v31 = vpop.f32.mrb[183].mxu1  ;;  %v6410_v7 = vrot.slane %v5728_v39, 7  ;;  %v14723_v39 = vld [vmem:[#allocation62_spill] sm:$0xff] }
 0x8c4   :  { %v5734_v33 = vadd.f32 %v5733_v31, %v14719_v14 }
 0x8c5   :  { %v6442_v26 = vrot.slane %v5732_v62, 7  ;;  %8070 = vmatmul.mubr.msk.bf16.gmra.mrb[96].mxu1 %vm80_vm0, %v12381_v17 }
 0x8c6   :  { %8073 = vmatprep.mubr.msk.bf16.mxu1 %vm80_vm0, %v12315_v48 }
 0x8c7   :  { %v6506_v61 = vsel %vm3049_vm2, %v6442_v26, %v6410_v7  ;;  %v6474_v22 = vsel %vm3049_vm2, %v6410_v7, %v6442_v26  ;;  %v14724_v7 = vld [vmem:[#allocation61_spill] sm:$0xff] }
 0x8c8   :  { %v6551_v29 = vsel %vm2983_vm3, %v6506_v61, 0.0  ;;  %v13290_v51 = vadd.f32 %v6474_v22, %v5734_v33  ;;  %v5737_v8 = vpop.f32.mrb[184].mxu1  ;;  %v14725_v61 = vld [vmem:[#allocation60_spill] sm:$0xff] }
 0x8c9   :  { %v13292_v37 = vadd.f32 %v6551_v29, %v5730_v60  ;;  %v5738_v19 = vadd.f32 %v5737_v8, %v14720_v47  ;;  %v5739_v17 = vpop.f32.mrb[185].mxu1  ;;  %v14726_v29 = vld [vmem:[#allocation59_spill] sm:$0xff] }
 0x8ca   :  { %v5740_v12 = vadd.f32 %v5739_v17, %v14721_v38  ;;  %v5741_v48 = vpop.f32.mrb[186].mxu1 }
 0x8cb   :  { %v5742_v59 = vadd.f32 %v5741_v48, %v14722_v56  ;;  %v5743_v53 = vpop.f32.mrb[187].mxu1  ;;  %v6411_v32 = vrot.slane %v5738_v19, 7  ;;  %v14727_v19 = vld [vmem:[#allocation6_spill] sm:$0xff] }
 0x8cc   :  { %v5744_v46 = vadd.f32 %v5743_v53, %v14723_v39 }
 0x8cd   :  { %v6443_v18 = vrot.slane %v5742_v59, 7  ;;  %8074 = vmatmul.mubr.msk.bf16.gmra.mrb[100].mxu1 %vm80_vm0, %v12317_v11 }
 0x8ce   :  { %8077 = vmatprep.mubr.msk.bf16.mxu1 %vm80_vm0, %v12324_v43 }
 0x8cf   :  { %v6507_v60 = vsel %vm3049_vm2, %v6443_v18, %v6411_v32  ;;  %v6475_v41 = vsel %vm3049_vm2, %v6411_v32, %v6443_v18  ;;  %v14728_v32 = vld [vmem:[#allocation19_spill] sm:$0xff] }
 0x8d0   :  { %v6553_v62 = vsel %vm2983_vm3, %v6507_v60, 0.0  ;;  %v13308_v31 = vadd.f32 %v6475_v41, %v5744_v46  ;;  %v5747_v14 = vpop.f32.mrb[188].mxu1  ;;  %v14729_v60 = vld [vmem:[#allocation18_spill] sm:$0xff] }
 0x8d1   :  { %v13310_v33 = vadd.f32 %v6553_v62, %v5740_v12  ;;  %v5748_v26 = vadd.f32 %v5747_v14, %v14724_v7  ;;  %v5749_v11 = vpop.f32.mrb[189].mxu1  ;;  %v14730_v62 = vld [vmem:[#allocation17_spill] sm:$0xff] }
 0x8d2   :  { %v5750_v22 = vadd.f32 %v5749_v11, %v14725_v61  ;;  %v5751_v43 = vpop.f32.mrb[190].mxu1 }
 0x8d3   :  { %v5752_v8 = vadd.f32 %v5751_v43, %v14726_v29  ;;  %v5753_v47 = vpop.f32.mrb[191].mxu1  ;;  %v6412_v38 = vrot.slane %v5748_v26, 7  ;;  %v14731_v26 = vld [vmem:[#allocation46_spill] sm:$0xff] }
 0x8d4   :  { %v5754_v17 = vadd.f32 %v5753_v47, %v14727_v19 }
 0x8d5   :  { %v6444_v48 = vrot.slane %v5752_v8, 7  ;;  %8078 = vmatmul.mubr.msk.bf16.gmra.mrb[104].mxu1 %vm80_vm0, %v12326_v6 }
 0x8d6   :  { %8081 = vmatprep.mubr.msk.bf16.mxu1 %vm80_vm0, %v12328_v13 }
 0x8d7   :  { %v6508_v12 = vsel %vm3049_vm2, %v6444_v48, %v6412_v38  ;;  %v6476_v56 = vsel %vm3049_vm2, %v6412_v38, %v6444_v48  ;;  %v14732_v38 = vld [vmem:[#allocation54_spill] sm:$0xff] }
 0x8d8   :  { %v6555_v59 = vsel %vm2983_vm3, %v6508_v12, 0.0  ;;  %v13326_v53 = vadd.f32 %v6476_v56, %v5754_v17  ;;  %v5757_v39 = vpop.f32.mrb[192].mxu1  ;;  %v14733_v12 = vld [vmem:[#allocation58_spill] sm:$0xff] }
 0x8d9   :  { %v13328_v46 = vadd.f32 %v6555_v59, %v5750_v22  ;;  %v5758_v18 = vadd.f32 %v5757_v39, %v14728_v32  ;;  %v5759_v6 = vpop.f32.mrb[193].mxu1  ;;  %v14734_v59 = vld [vmem:[#allocation56_spill] sm:$0xff] }
 0x8da   :  { %v5760_v41 = vadd.f32 %v5759_v6, %v14729_v60  ;;  %v5761_v13 = vpop.f32.mrb[194].mxu1 }
 0x8db   :  { %v5762_v14 = vadd.f32 %v5761_v13, %v14730_v62  ;;  %v5763_v7 = vpop.f32.mrb[195].mxu1  ;;  %v6413_v61 = vrot.slane %v5758_v18, 7  ;;  %v14735_v18 = vld [vmem:[#allocation10_spill] sm:$0xff]  ;;  %v14736_v62 = vld [vmem:[#allocation23_spill] sm:$0xff] }
 0x8dc   :  { %v5764_v11 = vadd.f32 %v5763_v7, %v14731_v26 }
 0x8dd   :  { %v6445_v43 = vrot.slane %v5762_v14, 7  ;;  %8082 = vmatmul.mubr.msk.bf16.gmra.mrb[108].mxu1 %vm80_vm0, %v12330_v25  ;;  %v14737_v14 = vld [vmem:[#allocation22_spill] sm:$0xff] }
 0x8de   :  { %8085 = vmatprep.mubr.msk.bf16.mxu1 %vm80_vm0, %v12335_v49 }
 0x8df   :  { %v6509_v22 = vsel %vm3049_vm2, %v6445_v43, %v6413_v61  ;;  %v6477_v29 = vsel %vm3049_vm2, %v6413_v61, %v6445_v43 }
 0x8e0   :  { %v6557_v8 = vsel %vm2983_vm3, %v6509_v22, 0.0  ;;  %v13344_v47 = vadd.f32 %v6477_v29, %v5764_v11  ;;  %v5767_v19 = vpop.f32.mrb[196].mxu1  ;;  %v14738_v22 = vld [vmem:[#allocation55_spill] sm:$0xff] }
 0x8e1   :  { %v13346_v17 = vadd.f32 %v6557_v8, %v5760_v41  ;;  %v5768_v48 = vadd.f32 %v5767_v19, %v14732_v38  ;;  %v5769_v25 = vpop.f32.mrb[197].mxu1  ;;  %v14739_v19 = vld [vmem:[#allocation52_spill] sm:$0xff] }
 0x8e2   :  { %v5770_v56 = vadd.f32 %v5769_v25, %v14733_v12  ;;  %v5771_v49 = vpop.f32.mrb[198].mxu1  ;;  %v14740_v25 = vld [vmem:[#allocation57_spill] sm:$0xff] }
 0x8e3   :  { %v5772_v39 = vadd.f32 %v5771_v49, %v14734_v59  ;;  %v5773_v32 = vpop.f32.mrb[199].mxu1  ;;  %v6414_v60 = vrot.slane %v5768_v48, 7  ;;  %v14741_v59 = vld [vmem:[#allocation63_spill] sm:$0xff] }
 0x8e4   :  { %v5774_v6 = vadd.f32 %v5773_v32, %v14735_v18 }
 0x8e5   :  { %v6446_v13 = vrot.slane %v5772_v39, 7  ;;  %8086 = vmatmul.mubr.msk.bf16.gmra.mrb[112].mxu1 %vm80_vm0, %v14736_v62 }
 0x8e6   :  { %8089 = vmatprep.mubr.msk.bf16.mxu1 %vm80_vm0, %v14737_v14 }
 0x8e7   :  { %v6510_v41 = vsel %vm3049_vm2, %v6446_v13, %v6414_v60  ;;  %v6478_v7 = vsel %vm3049_vm2, %v6414_v60, %v6446_v13  ;;  %v14742_v60 = vld [vmem:[#allocation21_spill] sm:$0xff] }
 0x8e8   :  { %v6559_v26 = vsel %vm2983_vm3, %v6510_v41, 0.0  ;;  %v13362_v11 = vadd.f32 %v6478_v7, %v5774_v6  ;;  %v5777_v61 = vpop.f32.mrb[200].mxu1  ;;  %v14743_v7 = vld [vmem:[#allocation64_spill] sm:$0xff] }
 0x8e9   :  { %v13364_v43 = vadd.f32 %v6559_v26, %v5770_v56  ;;  %v5778_v29 = vadd.f32 %v5777_v61, %v14738_v22  ;;  %v5779_v8 = vpop.f32.mrb[201].mxu1  ;;  %v14744_v22 = vld [vmem:[#allocation65_spill] sm:$0xff] }
 0x8ea   :  { %v5780_v38 = vadd.f32 %v5779_v8, %v14739_v19  ;;  %v5781_v48 = vpop.f32.mrb[202].mxu1  ;;  %v14745_v8 = vld [vmem:[#allocation66_spill] sm:$0xff] }
 0x8eb   :  { %v5782_v12 = vadd.f32 %v5781_v48, %v14740_v25  ;;  %v5783_v49 = vpop.f32.mrb[203].mxu1  ;;  %v6415_v32 = vrot.slane %v5778_v29, 7  ;;  %v14746_v25 = vld [vmem:[#allocation67_spill] sm:$0xff] }
 0x8ec   :  { %v5784_v39 = vadd.f32 %v5783_v49, %v14741_v59 }
 0x8ed   :  { %v6447_v18 = vrot.slane %v5782_v12, 7  ;;  %8090 = vmatmul.mubr.msk.bf16.gmra.mrb[116].mxu1 %vm80_vm0, %v14742_v60 }
 0x8ee   :  { %8093 = vmatprep.mubr.msk.bf16.mxu1 %vm80_vm0, %v12350_v57 }
 0x8ef   :  { %v6511_v56 = vsel %vm3049_vm2, %v6447_v18, %v6415_v32  ;;  %v6479_v6 = vsel %vm3049_vm2, %v6415_v32, %v6447_v18 }
 0x8f0   :  { %v6561_v13 = vsel %vm2983_vm3, %v6511_v56, 0.0  ;;  %v13380_v62 = vadd.f32 %v6479_v6, %v5784_v39  ;;  %v5787_v14 = vpop.f32.mrb[204].mxu1  ;;  %v14747_v6 = vld [vmem:[#allocation68_spill] sm:$0xff] }
 0x8f1   :  { %v13382_v41 = vadd.f32 %v6561_v13, %v5780_v38  ;;  %v5788_v26 = vadd.f32 %v5787_v14, %v14743_v7  ;;  %v5789_v61 = vpop.f32.mrb[205].mxu1  ;;  %v14748_v14 = vld [vmem:[#allocation69_spill] sm:$0xff] }
 0x8f2   :  { %v5790_v29 = vadd.f32 %v5789_v61, %v14744_v22  ;;  %v5791_v57 = vpop.f32.mrb[206].mxu1 }
 0x8f3   :  { %v5792_v19 = vadd.f32 %v5791_v57, %v14745_v8  ;;  %v5793_v48 = vpop.f32.mrb[207].mxu1  ;;  %v6416_v49 = vrot.slane %v5788_v26, 7  ;;  %v14749_v26 = vld [vmem:[#allocation70_spill] sm:$0xff]  ;;  %v14750_v57 = vld [vmem:[#allocation71_spill] sm:$0xff] }
 0x8f4   :  { %v5794_v12 = vadd.f32 %v5793_v48, %v14746_v25 }
 0x8f5   :  { %v6448_v59 = vrot.slane %v5792_v19, 7  ;;  %8094 = vmatmul.mubr.msk.bf16.gmra.mrb[120].mxu1 %vm80_vm0, %v12352_v55 }
 0x8f6   :  { %8097 = vmatprep.mubr.msk.bf16.mxu1 %vm80_vm0, %v12354_v2 }
 0x8f7   :  { %v6512_v38 = vsel %vm3049_vm2, %v6448_v59, %v6416_v49  ;;  %v6480_v39 = vsel %vm3049_vm2, %v6416_v49, %v6448_v59 }
 0x8f8   :  { %v6563_v32 = vsel %vm2983_vm3, %v6512_v38, 0.0  ;;  %v13398_v18 = vadd.f32 %v6480_v39, %v5794_v12  ;;  %v5797_v60 = vpop.f32.mrb[208].mxu1  ;;  %v14753_v39 = vld [vmem:[#allocation72_spill] sm:$0xff] }
 0x8f9   :  { %v13400_v56 = vadd.f32 %v6563_v32, %v5790_v29  ;;  %v5798_v13 = vadd.f32 %v5797_v60, %v14747_v6  ;;  %v5799_v55 = vpop.f32.mrb[209].mxu1  ;;  %v14754_v6 = vld [vmem:[#allocation73_spill] sm:$0xff] }
 0x8fa   :  { %v5800_v7 = vadd.f32 %v5799_v55, %v14748_v14  ;;  %v5801_v2 = vpop.f32.mrb[210].mxu1  ;;  %v14755_v55 = vld [vmem:[#allocation74_spill] sm:$0xff] }
 0x8fb   :  { %v5802_v61 = vadd.f32 %v5801_v2, %v14749_v26  ;;  %v5803_v22 = vpop.f32.mrb[211].mxu1  ;;  %v6417_v19 = vrot.slane %v5798_v13, 7  ;;  %v14756_v26 = vld [vmem:[#allocation75_spill] sm:$0xff] }
 0x8fc   :  { %v5804_v8 = vadd.f32 %v5803_v22, %v14750_v57 }
 0x8fd   :  { %v6449_v48 = vrot.slane %v5802_v61, 7  ;;  %8098 = vmatmul.mubr.msk.bf16.gmra.mrb[124].mxu1 %vm80_vm0, %v12356_v3 }
 0x8ff   :  { %v6513_v29 = vsel %vm3049_vm2, %v6449_v48, %v6417_v19  ;;  %v6481_v25 = vsel %vm3049_vm2, %v6417_v19, %v6449_v48 }
 0x900   :  { %v6565_v12 = vsel %vm2983_vm3, %v6513_v29, 0.0  ;;  %v13414_v49 = vadd.f32 %v6481_v25, %v5804_v8  ;;  %v5807_v59 = vpop.f32.mrb[212].mxu1 }
 0x901   :  { %v13416_v38 = vadd.f32 %v6565_v12, %v5800_v7  ;;  %v5808_v32 = vadd.f32 %v5807_v59, %v14753_v39  ;;  %v5809_v60 = vpop.f32.mrb[213].mxu1  ;;  %v14757_v12 = vld [vmem:[#allocation76_spill] sm:$0xff] }
 0x902   :  { %14751 = vst [vmem:[#allocation51_spill] sm:$0xff] %v13414_v49  ;;  %v5810_v13 = vadd.f32 %v5809_v60, %v14754_v6  ;;  %v5811_v3 = vpop.f32.mrb[214].mxu1  ;;  %v14758_v60 = vld [vmem:[#allocation77_spill] sm:$0xff]  ;;  %v14766_v49 = vld [vmem:[#allocation83_spill] sm:$0xff] }
 0x903   :  { %14752 = vst [vmem:[#allocation20_spill] sm:$0xff] %v13416_v38  ;;  %v5812_v14 = vadd.f32 %v5811_v3, %v14755_v55  ;;  %v5813_v2 = vpop.f32.mrb[215].mxu1  ;;  %v6418_v22 = vrot.slane %v5808_v32, 7  ;;  %v14759_v3 = vld [vmem:[#allocation78_spill] sm:$0xff] }
 0x904   :  { %v5814_v61 = vadd.f32 %v5813_v2, %v14756_v26  ;;  %v14760_v2 = vld [vmem:[#allocation79_spill] sm:$0xff] }
 0x905   :  { %v6450_v57 = vrot.slane %v5812_v14, 7 }
 0x907   :  { %v6514_v8 = vsel %vm3049_vm2, %v6450_v57, %v6418_v22  ;;  %v6482_v7 = vsel %vm3049_vm2, %v6418_v22, %v6450_v57 }
 0x908   :  { %v6567_v19 = vsel %vm2983_vm3, %v6514_v8, 0.0  ;;  %v13428_v48 = vadd.f32 %v6482_v7, %v5814_v61  ;;  %v5817_v29 = vpop.f32.mrb[216].mxu1 }
 0x909   :  { %v13430_v25 = vadd.f32 %v6567_v19, %v5810_v13  ;;  %v5818_v59 = vadd.f32 %v5817_v29, %v14757_v12  ;;  %v5819_v39 = vpop.f32.mrb[217].mxu1  ;;  %v14763_v12 = vld [vmem:[#allocation80_spill] sm:$0xff] }
 0x90a   :  { %v5820_v32 = vadd.f32 %v5819_v39, %v14758_v60  ;;  %v5821_v6 = vpop.f32.mrb[218].mxu1 }
 0x90b   :  { %v5822_v55 = vadd.f32 %v5821_v6, %v14759_v3  ;;  %v5823_v14 = vpop.f32.mrb[219].mxu1  ;;  %v6419_v22 = vrot.slane %v5818_v59, 7  ;;  %v14764_v6 = vld [vmem:[#allocation81_spill] sm:$0xff] }
 0x90c   :  { %v5824_v26 = vadd.f32 %v5823_v14, %v14760_v2 }
 0x90d   :  { %v6451_v57 = vrot.slane %v5822_v55, 7  ;;  %v14765_v55 = vld [vmem:[#allocation82_spill] sm:$0xff] }
 0x90f   :  { %v6515_v61 = vsel %vm3049_vm2, %v6451_v57, %v6419_v22  ;;  %v6483_v13 = vsel %vm3049_vm2, %v6419_v22, %v6451_v57 }
 0x910   :  { %v6569_v8 = vsel %vm2983_vm3, %v6515_v61, 0.0  ;;  %v13442_v7 = vadd.f32 %v6483_v13, %v5824_v26  ;;  %v5827_v19 = vpop.f32.mrb[220].mxu1 }
 0x911   :  { %v13444_v29 = vadd.f32 %v6569_v8, %v5820_v32  ;;  %v5828_v39 = vadd.f32 %v5827_v19, %v14763_v12  ;;  %v5829_v60 = vpop.f32.mrb[221].mxu1  ;;  %v14769_v12 = vld [vmem:[#allocation84_spill] sm:$0xff] }
 0x912   :  { %14761 = vst [vmem:[#allocation26_spill] sm:$0xff] %v13442_v7  ;;  %v5830_v59 = vadd.f32 %v5829_v60, %v14764_v6  ;;  %v5831_v3 = vpop.f32.mrb[222].mxu1  ;;  %v14772_v7 = vld [vmem:[#allocation87_spill] sm:$0xff] }
 0x913   :  { %14762 = vst [vmem:[#allocation25_spill] sm:$0xff] %v13444_v29  ;;  %v5832_v14 = vadd.f32 %v5831_v3, %v14765_v55  ;;  %v5833_v2 = vpop.f32.mrb[223].mxu1  ;;  %v6420_v22 = vrot.slane %v5828_v39, 7  ;;  %v14771_v55 = vld [vmem:[#allocation86_spill] sm:$0xff] }
 0x914   :  { %v5834_v38 = vadd.f32 %v5833_v2, %v14766_v49  ;;  %v14770_v49 = vld [vmem:[#allocation85_spill] sm:$0xff] }
 0x915   :  { %v6452_v57 = vrot.slane %v5832_v14, 7 }
 0x917   :  { %v6516_v26 = vsel %vm3049_vm2, %v6452_v57, %v6420_v22  ;;  %v6484_v32 = vsel %vm3049_vm2, %v6420_v22, %v6452_v57 }
 0x918   :  { %v6571_v61 = vsel %vm2983_vm3, %v6516_v26, 0.0  ;;  %v13456_v13 = vadd.f32 %v6484_v32, %v5834_v38  ;;  %v5837_v8 = vpop.f32.mrb[224].mxu1 }
 0x919   :  { %v13458_v19 = vadd.f32 %v6571_v61, %v5830_v59  ;;  %v5838_v60 = vadd.f32 %v5837_v8, %v14769_v12  ;;  %v5839_v6 = vpop.f32.mrb[225].mxu1  ;;  %v14775_v12 = vld [vmem:[#allocation88_spill] sm:$0xff] }
 0x91a   :  { %14767 = vst [vmem:[#allocation24_spill] sm:$0xff] %v13456_v13  ;;  %v5840_v39 = vadd.f32 %v5839_v6, %v14770_v49  ;;  %v5841_v3 = vpop.f32.mrb[226].mxu1  ;;  %v14778_v13 = vld [vmem:[#allocation91_spill] sm:$0xff] }
 0x91b   :  { %14768 = vst [vmem:[#allocation7_spill] sm:$0xff] %v13458_v19  ;;  %v5842_v14 = vadd.f32 %v5841_v3, %v14771_v55  ;;  %v5843_v2 = vpop.f32.mrb[227].mxu1  ;;  %v6421_v22 = vrot.slane %v5838_v60, 7  ;;  %v14777_v55 = vld [vmem:[#allocation90_spill] sm:$0xff] }
 0x91c   :  { %v5844_v29 = vadd.f32 %v5843_v2, %v14772_v7  ;;  %v14776_v7 = vld [vmem:[#allocation89_spill] sm:$0xff] }
 0x91d   :  { %v6453_v57 = vrot.slane %v5842_v14, 7 }
 0x91f   :  { %v6517_v38 = vsel %vm3049_vm2, %v6453_v57, %v6421_v22  ;;  %v6485_v59 = vsel %vm3049_vm2, %v6421_v22, %v6453_v57 }
 0x920   :  { %v6573_v26 = vsel %vm2983_vm3, %v6517_v38, 0.0  ;;  %v13470_v32 = vadd.f32 %v6485_v59, %v5844_v29  ;;  %v5847_v61 = vpop.f32.mrb[228].mxu1 }
 0x921   :  { %v13472_v8 = vadd.f32 %v6573_v26, %v5840_v39  ;;  %v5848_v6 = vadd.f32 %v5847_v61, %v14775_v12  ;;  %v5849_v49 = vpop.f32.mrb[229].mxu1  ;;  %v14781_v12 = vld [vmem:[#allocation92_spill] sm:$0xff] }
 0x922   :  { %14773 = vst [vmem:[#allocation40_spill] sm:$0xff] %v13470_v32  ;;  %v5850_v60 = vadd.f32 %v5849_v49, %v14776_v7  ;;  %v5851_v3 = vpop.f32.mrb[230].mxu1  ;;  %v14784_v32 = vld [vmem:[#allocation95_spill] sm:$0xff] }
 0x923   :  { %14774 = vst [vmem:[#allocation39_spill] sm:$0xff] %v13472_v8  ;;  %v5852_v14 = vadd.f32 %v5851_v3, %v14777_v55  ;;  %v5853_v2 = vpop.f32.mrb[231].mxu1  ;;  %v6422_v22 = vrot.slane %v5848_v6, 7  ;;  %v14783_v55 = vld [vmem:[#allocation94_spill] sm:$0xff] }
 0x924   :  { %v5854_v19 = vadd.f32 %v5853_v2, %v14778_v13  ;;  %v14782_v13 = vld [vmem:[#allocation93_spill] sm:$0xff] }
 0x925   :  { %v6454_v57 = vrot.slane %v5852_v14, 7 }
 0x927   :  { %v6518_v29 = vsel %vm3049_vm2, %v6454_v57, %v6422_v22  ;;  %v6486_v39 = vsel %vm3049_vm2, %v6422_v22, %v6454_v57 }
 0x928   :  { %v6575_v38 = vsel %vm2983_vm3, %v6518_v29, 0.0  ;;  %v13484_v59 = vadd.f32 %v6486_v39, %v5854_v19  ;;  %v5857_v26 = vpop.f32.mrb[232].mxu1 }
 0x929   :  { %v13486_v61 = vadd.f32 %v6575_v38, %v5850_v60  ;;  %v5858_v49 = vadd.f32 %v5857_v26, %v14781_v12  ;;  %v5859_v7 = vpop.f32.mrb[233].mxu1  ;;  %v14787_v12 = vld [vmem:[#allocation96_spill] sm:$0xff] }
 0x92a   :  { %14779 = vst [vmem:[#allocation8_spill] sm:$0xff] %v13484_v59  ;;  %v5860_v6 = vadd.f32 %v5859_v7, %v14782_v13  ;;  %v5861_v3 = vpop.f32.mrb[234].mxu1  ;;  %v14790_v59 = vld [vmem:[#allocation99_spill] sm:$0xff] }
 0x92b   :  { %14780 = vst [vmem:[#allocation27_spill] sm:$0xff] %v13486_v61  ;;  %v5862_v14 = vadd.f32 %v5861_v3, %v14783_v55  ;;  %v5863_v2 = vpop.f32.mrb[235].mxu1  ;;  %v6423_v22 = vrot.slane %v5858_v49, 7  ;;  %v14789_v55 = vld [vmem:[#allocation98_spill] sm:$0xff] }
 0x92c   :  { %v5864_v8 = vadd.f32 %v5863_v2, %v14784_v32  ;;  %v14788_v32 = vld [vmem:[#allocation97_spill] sm:$0xff] }
 0x92d   :  { %v6455_v57 = vrot.slane %v5862_v14, 7 }
 0x92f   :  { %v6519_v19 = vsel %vm3049_vm2, %v6455_v57, %v6423_v22  ;;  %v6487_v60 = vsel %vm3049_vm2, %v6423_v22, %v6455_v57 }
 0x930   :  { %v6577_v29 = vsel %vm2983_vm3, %v6519_v19, 0.0  ;;  %v13498_v39 = vadd.f32 %v6487_v60, %v5864_v8  ;;  %v5867_v38 = vpop.f32.mrb[236].mxu1 }
 0x931   :  { %v13500_v26 = vadd.f32 %v6577_v29, %v5860_v6  ;;  %v5868_v7 = vadd.f32 %v5867_v38, %v14787_v12  ;;  %v5869_v13 = vpop.f32.mrb[237].mxu1  ;;  %v14793_v12 = vld [vmem:[#allocation100_spill] sm:$0xff] }
 0x932   :  { %14785 = vst [vmem:[#allocation9_spill] sm:$0xff] %v13498_v39  ;;  %v5870_v49 = vadd.f32 %v5869_v13, %v14788_v32  ;;  %v5871_v3 = vpop.f32.mrb[238].mxu1  ;;  %v14796_v39 = vld [vmem:[#allocation103_spill] sm:$0xff] }
 0x933   :  { %14786 = vst [vmem:[#allocation42_spill] sm:$0xff] %v13500_v26  ;;  %v5872_v14 = vadd.f32 %v5871_v3, %v14789_v55  ;;  %v5873_v2 = vpop.f32.mrb[239].mxu1  ;;  %v6424_v22 = vrot.slane %v5868_v7, 7  ;;  %v14795_v55 = vld [vmem:[#allocation102_spill] sm:$0xff] }
 0x934   :  { %v5874_v61 = vadd.f32 %v5873_v2, %v14790_v59  ;;  %v14794_v59 = vld [vmem:[#allocation101_spill] sm:$0xff] }
 0x935   :  { %v6456_v57 = vrot.slane %v5872_v14, 7 }
 0x937   :  { %v6520_v8 = vsel %vm3049_vm2, %v6456_v57, %v6424_v22  ;;  %v6488_v6 = vsel %vm3049_vm2, %v6424_v22, %v6456_v57 }
 0x938   :  { %v6579_v19 = vsel %vm2983_vm3, %v6520_v8, 0.0  ;;  %v13512_v60 = vadd.f32 %v6488_v6, %v5874_v61  ;;  %v5877_v29 = vpop.f32.mrb[240].mxu1 }
 0x939   :  { %v13514_v38 = vadd.f32 %v6579_v19, %v5870_v49  ;;  %v5878_v13 = vadd.f32 %v5877_v29, %v14793_v12  ;;  %v5879_v32 = vpop.f32.mrb[241].mxu1  ;;  %v14799_v12 = vld [vmem:[#allocation104_spill] sm:$0xff] }
 0x93a   :  { %14791 = vst [vmem:[#allocation41_spill] sm:$0xff] %v13512_v60  ;;  %v5880_v7 = vadd.f32 %v5879_v32, %v14794_v59  ;;  %v5881_v3 = vpop.f32.mrb[242].mxu1  ;;  %v14802_v60 = vld [vmem:[#allocation107_spill] sm:$0xff] }
 0x93b   :  { %14792 = vst [vmem:[#allocation44_spill] sm:$0xff] %v13514_v38  ;;  %v5882_v14 = vadd.f32 %v5881_v3, %v14795_v55  ;;  %v5883_v2 = vpop.f32.mrb[243].mxu1  ;;  %v6425_v22 = vrot.slane %v5878_v13, 7  ;;  %v14801_v55 = vld [vmem:[#allocation106_spill] sm:$0xff] }
 0x93c   :  { %v5884_v26 = vadd.f32 %v5883_v2, %v14796_v39  ;;  %v14800_v39 = vld [vmem:[#allocation105_spill] sm:$0xff] }
 0x93d   :  { %v6457_v57 = vrot.slane %v5882_v14, 7 }
 0x93f   :  { %v6521_v61 = vsel %vm3049_vm2, %v6457_v57, %v6425_v22  ;;  %v6489_v49 = vsel %vm3049_vm2, %v6425_v22, %v6457_v57 }
 0x940   :  { %v6581_v8 = vsel %vm2983_vm3, %v6521_v61, 0.0  ;;  %v13526_v6 = vadd.f32 %v6489_v49, %v5884_v26  ;;  %v5887_v19 = vpop.f32.mrb[244].mxu1 }
 0x941   :  { %v13528_v29 = vadd.f32 %v6581_v8, %v5880_v7  ;;  %v5888_v32 = vadd.f32 %v5887_v19, %v14799_v12  ;;  %v5889_v59 = vpop.f32.mrb[245].mxu1  ;;  %v14805_v12 = vld [vmem:[#allocation108_spill] sm:$0xff] }
 0x942   :  { %14797 = vst [vmem:[#allocation45_spill] sm:$0xff] %v13526_v6  ;;  %v5890_v13 = vadd.f32 %v5889_v59, %v14800_v39  ;;  %v5891_v3 = vpop.f32.mrb[246].mxu1  ;;  %v14808_v6 = vld [vmem:[#allocation111_spill] sm:$0xff] }
 0x943   :  { %14798 = vst [vmem:[#allocation48_spill] sm:$0xff] %v13528_v29  ;;  %v5892_v14 = vadd.f32 %v5891_v3, %v14801_v55  ;;  %v5893_v2 = vpop.f32.mrb[247].mxu1  ;;  %v6426_v22 = vrot.slane %v5888_v32, 7  ;;  %v14807_v55 = vld [vmem:[#allocation110_spill] sm:$0xff] }
 0x944   :  { %v5894_v38 = vadd.f32 %v5893_v2, %v14802_v60  ;;  %v14806_v60 = vld [vmem:[#allocation109_spill] sm:$0xff] }
 0x945   :  { %v6458_v57 = vrot.slane %v5892_v14, 7 }
 0x947   :  { %v6522_v26 = vsel %vm3049_vm2, %v6458_v57, %v6426_v22  ;;  %v6490_v7 = vsel %vm3049_vm2, %v6426_v22, %v6458_v57 }
 0x948   :  { %v6583_v61 = vsel %vm2983_vm3, %v6522_v26, 0.0  ;;  %v13540_v49 = vadd.f32 %v6490_v7, %v5894_v38  ;;  %v5897_v8 = vpop.f32.mrb[248].mxu1 }
 0x949   :  { %v13542_v19 = vadd.f32 %v6583_v61, %v5890_v13  ;;  %v5898_v59 = vadd.f32 %v5897_v8, %v14805_v12  ;;  %v5899_v39 = vpop.f32.mrb[249].mxu1  ;;  %v14809_v8 = vld [vmem:[#allocation112_spill] sm:$0xff] }
 0x94a   :  { %14803 = vst [vmem:[#allocation47_spill] sm:$0xff] %v13540_v49  ;;  %v5900_v32 = vadd.f32 %v5899_v39, %v14806_v60  ;;  %v5901_v3 = vpop.f32.mrb[250].mxu1  ;;  %v14812_v49 = vld [vmem:[#allocation115_spill] sm:$0xff] }
 0x94b   :  { %14804 = vst [vmem:[#allocation49_spill] sm:$0xff] %v13542_v19  ;;  %v5902_v14 = vadd.f32 %v5901_v3, %v14807_v55  ;;  %v5903_v2 = vpop.f32.mrb[251].mxu1  ;;  %v6427_v22 = vrot.slane %v5898_v59, 7  ;;  %v14811_v55 = vld [vmem:[#allocation114_spill] sm:$0xff] }
 0x94c   :  { %v5904_v29 = vadd.f32 %v5903_v2, %v14808_v6  ;;  %v14810_v6 = vld [vmem:[#allocation113_spill] sm:$0xff] }
 0x94d   :  { %v6459_v57 = vrot.slane %v5902_v14, 7 }
 0x94f   :  { %v6523_v38 = vsel %vm3049_vm2, %v6459_v57, %v6427_v22  ;;  %v6491_v13 = vsel %vm3049_vm2, %v6427_v22, %v6459_v57 }
 0x950   :  { %v6585_v26 = vsel %vm2983_vm3, %v6523_v38, 0.0  ;;  %v13554_v7 = vadd.f32 %v6491_v13, %v5904_v29  ;;  %v5907_v61 = vpop.f32.mrb[252].mxu1 }
 0x951   :  { %v5908_v12 = vadd.f32 %v5907_v61, %v14809_v8  ;;  %v5909_v39 = vpop.f32.mrb[253].mxu1  ;;  %v13557_v60 = vadd.f32 %v6585_v26, %v5900_v32 }
 0x952   :  { %v5910_v59 = vadd.f32 %v5909_v39, %v14810_v6  ;;  %v5911_v3 = vpop.f32.mrb[254].mxu1 }
 0x953   :  { %v5912_v14 = vadd.f32 %v5911_v3, %v14811_v55  ;;  %v5913_v2 = vpop.f32.mrb[255].mxu1  ;;  %v6428_v22 = vrot.slane %v5908_v12, 7 }
 0x954   :  { %v5914_v19 = vadd.f32 %v5913_v2, %v14812_v49 }
 0x955   :  { %v6460_v57 = vrot.slane %v5912_v14, 7 }
 0x957   :  { %v6524_v29 = vsel %vm3049_vm2, %v6460_v57, %v6428_v22  ;;  %v6492_v38 = vsel %vm3049_vm2, %v6428_v22, %v6460_v57 }
 0x958   :  { %v6587_v32 = vsel %vm2983_vm3, %v6524_v29, 0.0  ;;  %v13568_v13 = vadd.f32 %v6492_v38, %v5914_v19  ;;  %v8039_v26 = vpop.f32.mrb[64].mxu1 }
 0x959   :  { %v13570_v61 = vadd.f32 %v6587_v32, %v5910_v59  ;;  %v5950_v8 = vpop.f32.mrb[65].mxu1  ;;  %v6590_v6 = vrot.slane %v8039_v26, 1 }
 0x95a   :  { %v8040_v39 = vpop.f32.mrb[66].mxu1  ;;  %v6589_v3 = vrot.slane %v5950_v8, 1  ;;  %v8927_v8 = vld [vmem:[%s14096_s0 + $0x10] sm:$0xff] }
 0x95b   :  { %v6622_v49 = vrot.slane %v8040_v39, 1  ;;  %v5953_v12 = vpop.f32.mrb[67].mxu1 }
 0x95c   :  { %v6621_v55 = vrot.slane %v5953_v12, 1 }
 0x95d   :  { %v6654_v14 = vsel %vm3244_vm1, %v6590_v6, %v6622_v49  ;;  %v6686_v2 = vsel %vm3244_vm1, %v6622_v49, %v6590_v6  ;;  %v8928_v49 = vld [vmem:[%s14096_s0 + $0x18] sm:$0xff] }
 0x95e   :  { %v6720_v19 = vsel %vm3179_vm4, %v6686_v2, 0.0  ;;  %v6847_v57 = vadd.f32 %v13080_v0, %v6654_v14  ;;  %v6653_v59 = vsel %vm3244_vm1, %v6589_v3, %v6621_v55  ;;  %v6685_v29 = vsel %vm3244_vm1, %v6621_v55, %v6589_v3 }
 0x95f   :  { %v6848_v38 = vadd.f32 %v13078_v20, %v6720_v19  ;;  %v6718_v32 = vsel %vm3179_vm4, %v6685_v29, 0.0  ;;  %v6845_v26 = vadd.f32 %v13063_v10, %v6653_v59  ;;  %v8929_v20 = vld [vmem:[%s14096_s0] sm:$0xff]  ;;  %v8930_v10 = vld [vmem:[%s14096_s0 + $0x8] sm:$0xff] }
 0x960   :  { %v6911_v39 = vadd.f32 %v8927_v8, %v6847_v57  ;;  %v6846_v0 = vadd.f32 %v13061_v21, %v6718_v32  ;;  %v8043_v6 = vpop.f32.mrb[68].mxu1 }
 0x961   :  { %v6912_v12 = vadd.f32 %v8928_v49, %v6848_v38  ;;  %v6909_v3 = vadd.f32 %v8929_v20, %v6845_v26  ;;  %v5966_v55 = vpop.f32.mrb[69].mxu1  ;;  %v6592_v2 = vrot.slane %v8043_v6, 1  ;;  %v8931_v20 = vld [vmem:[%s14096_s0 + $0x30] sm:$0xff] }
 0x962   :  { %6975 = vst.msk [vmem:[#allocation2 + $0x10] sm:$0xff] %vm80_vm0, %v6911_v39  ;;  %v6910_v14 = vadd.f32 %v8930_v10, %v6846_v0  ;;  %v8044_v21 = vpop.f32.mrb[70].mxu1  ;;  %v6591_v59 = vrot.slane %v5966_v55, 1  ;;  %v8932_v10 = vld [vmem:[%s14096_s0 + $0x38] sm:$0xff] }
 0x963   :  { %6976 = vst.msk [vmem:[#allocation2 + $0x18] sm:$0xff] %vm80_vm0, %v6912_v12  ;;  %6973 = vst.msk [vmem:[#allocation2] sm:$0xff] %vm80_vm0, %v6909_v3  ;;  %v6624_v19 = vrot.slane %v8044_v21, 1  ;;  %v5969_v57 = vpop.f32.mrb[71].mxu1 }
 0x964   :  { %6974 = vst.msk [vmem:[#allocation2 + $0x8] sm:$0xff] %vm80_vm0, %v6910_v14  ;;  %v6623_v29 = vrot.slane %v5969_v57, 1 }
 0x965   :  { %v6656_v38 = vsel %vm3244_vm1, %v6592_v2, %v6624_v19  ;;  %v6688_v32 = vsel %vm3244_vm1, %v6624_v19, %v6592_v2 }
 0x966   :  { %v6724_v26 = vsel %vm3179_vm4, %v6688_v32, 0.0  ;;  %v6851_v8 = vadd.f32 %v13114_v4, %v6656_v38  ;;  %v6655_v39 = vsel %vm3244_vm1, %v6591_v59, %v6623_v29  ;;  %v6687_v0 = vsel %vm3244_vm1, %v6623_v29, %v6591_v59 }
 0x967   :  { %v6852_v6 = vadd.f32 %v13112_v16, %v6724_v26  ;;  %v6722_v49 = vsel %vm3179_vm4, %v6687_v0, 0.0  ;;  %v6849_v12 = vadd.f32 %v13097_v44, %v6655_v39  ;;  %v8933_v16 = vld [vmem:[%s14096_s0 + $0x20] sm:$0xff]  ;;  %v8934_v44 = vld [vmem:[%s14096_s0 + $0x28] sm:$0xff] }
 0x968   :  { %v6915_v3 = vadd.f32 %v8931_v20, %v6851_v8  ;;  %v6850_v4 = vadd.f32 %v13095_v23, %v6722_v49  ;;  %v8047_v55 = vpop.f32.mrb[72].mxu1 }
 0x969   :  { %v6916_v14 = vadd.f32 %v8932_v10, %v6852_v6  ;;  %v6913_v21 = vadd.f32 %v8933_v16, %v6849_v12  ;;  %v5982_v2 = vpop.f32.mrb[73].mxu1  ;;  %v6594_v57 = vrot.slane %v8047_v55, 1 }
 0x96a   :  { %6979 = vst.msk [vmem:[#allocation2 + $0x30] sm:$0xff] %vm80_vm0, %v6915_v3  ;;  %v6914_v19 = vadd.f32 %v8934_v44, %v6850_v4  ;;  %v8048_v23 = vpop.f32.mrb[74].mxu1  ;;  %v6593_v38 = vrot.slane %v5982_v2, 1  ;;  %v8935_v4 = vld [vmem:[%s14096_s0 + $0x50] sm:$0xff] }
 0x96b   :  { %6980 = vst.msk [vmem:[#allocation2 + $0x38] sm:$0xff] %vm80_vm0, %v6916_v14  ;;  %6977 = vst.msk [vmem:[#allocation2 + $0x20] sm:$0xff] %vm80_vm0, %v6913_v21  ;;  %v6626_v59 = vrot.slane %v8048_v23, 1  ;;  %v5985_v29 = vpop.f32.mrb[75].mxu1  ;;  %v8936_v14 = vld [vmem:[%s14096_s0 + $0x58] sm:$0xff] }
 0x96c   :  { %6978 = vst.msk [vmem:[#allocation2 + $0x28] sm:$0xff] %vm80_vm0, %v6914_v19  ;;  %v6625_v32 = vrot.slane %v5985_v29, 1 }
 0x96d   :  { %v6658_v26 = vsel %vm3244_vm1, %v6594_v57, %v6626_v59  ;;  %v6690_v8 = vsel %vm3244_vm1, %v6626_v59, %v6594_v57 }
 0x96e   :  { %v6728_v39 = vsel %vm3179_vm4, %v6690_v8, 0.0  ;;  %v6855_v0 = vadd.f32 %v13149_v34, %v6658_v26  ;;  %v6657_v6 = vsel %vm3244_vm1, %v6593_v38, %v6625_v32  ;;  %v6689_v49 = vsel %vm3244_vm1, %v6625_v32, %v6593_v38 }
 0x96f   :  { %v6856_v12 = vadd.f32 %v13147_v45, %v6728_v39  ;;  %v6726_v20 = vsel %vm3179_vm4, %v6689_v49, 0.0  ;;  %v6853_v3 = vadd.f32 %v13131_v24, %v6657_v6  ;;  %v8937_v45 = vld [vmem:[%s14096_s0 + $0x40] sm:$0xff]  ;;  %v8938_v24 = vld [vmem:[%s14096_s0 + $0x48] sm:$0xff] }
 0x970   :  { %v6919_v55 = vadd.f32 %v8935_v4, %v6855_v0  ;;  %v6854_v34 = vadd.f32 %v13129_v9, %v6726_v20  ;;  %v8051_v10 = vpop.f32.mrb[76].mxu1  ;;  %v8939_v20 = vld [vmem:[%s14096_s0 + $0x70] sm:$0xff] }
 0x971   :  { %v6920_v16 = vadd.f32 %v8936_v14, %v6856_v12  ;;  %v6917_v21 = vadd.f32 %v8937_v45, %v6853_v3  ;;  %v5998_v2 = vpop.f32.mrb[77].mxu1  ;;  %v6596_v19 = vrot.slane %v8051_v10, 1 }
 0x972   :  { %6983 = vst.msk [vmem:[#allocation2 + $0x50] sm:$0xff] %vm80_vm0, %v6919_v55  ;;  %v6918_v44 = vadd.f32 %v8938_v24, %v6854_v34  ;;  %v8052_v9 = vpop.f32.mrb[78].mxu1  ;;  %v6595_v59 = vrot.slane %v5998_v2, 1  ;;  %v8940_v55 = vld [vmem:[%s14096_s0 + $0x78] sm:$0xff] }
 0x973   :  { %6984 = vst.msk [vmem:[#allocation2 + $0x58] sm:$0xff] %vm80_vm0, %v6920_v16  ;;  %6981 = vst.msk [vmem:[#allocation2 + $0x40] sm:$0xff] %vm80_vm0, %v6917_v21  ;;  %v6628_v23 = vrot.slane %v8052_v9, 1  ;;  %v6001_v57 = vpop.f32.mrb[79].mxu1 }
 0x974   :  { %6982 = vst.msk [vmem:[#allocation2 + $0x48] sm:$0xff] %vm80_vm0, %v6918_v44  ;;  %v6627_v29 = vrot.slane %v6001_v57, 1 }
 0x975   :  { %v6660_v38 = vsel %vm3244_vm1, %v6596_v19, %v6628_v23  ;;  %v6692_v32 = vsel %vm3244_vm1, %v6628_v23, %v6596_v19 }
 0x976   :  { %v6732_v26 = vsel %vm3179_vm4, %v6692_v32, 0.0  ;;  %v6859_v8 = vadd.f32 %v13185_v30, %v6660_v38  ;;  %v6659_v39 = vsel %vm3244_vm1, %v6595_v59, %v6627_v29  ;;  %v6691_v0 = vsel %vm3244_vm1, %v6627_v29, %v6595_v59 }
 0x977   :  { %v6860_v6 = vadd.f32 %v13183_v63, %v6732_v26  ;;  %v6730_v49 = vsel %vm3179_vm4, %v6691_v0, 0.0  ;;  %v6857_v12 = vadd.f32 %v13167_v15, %v6659_v39  ;;  %v8941_v63 = vld [vmem:[%s14096_s0 + $0x60] sm:$0xff]  ;;  %v8942_v15 = vld [vmem:[%s14096_s0 + $0x68] sm:$0xff] }
 0x978   :  { %v6923_v3 = vadd.f32 %v8939_v20, %v6859_v8  ;;  %v6858_v30 = vadd.f32 %v13165_v36, %v6730_v49  ;;  %v8055_v4 = vpop.f32.mrb[80].mxu1  ;;  %v8943_v8 = vld [vmem:[%s14096_s0 + $0x90] sm:$0xff] }
 0x979   :  { %v6924_v34 = vadd.f32 %v8940_v55, %v6860_v6  ;;  %v6921_v10 = vadd.f32 %v8941_v63, %v6857_v12  ;;  %v6014_v14 = vpop.f32.mrb[81].mxu1  ;;  %v6598_v45 = vrot.slane %v8055_v4, 1  ;;  %v8944_v6 = vld [vmem:[%s14096_s0 + $0x98] sm:$0xff] }
 0x97a   :  { %6987 = vst.msk [vmem:[#allocation2 + $0x70] sm:$0xff] %vm80_vm0, %v6923_v3  ;;  %v6922_v16 = vadd.f32 %v8942_v15, %v6858_v30  ;;  %v8056_v36 = vpop.f32.mrb[82].mxu1  ;;  %v6597_v24 = vrot.slane %v6014_v14, 1 }
 0x97b   :  { %6988 = vst.msk [vmem:[#allocation2 + $0x78] sm:$0xff] %vm80_vm0, %v6924_v34  ;;  %6985 = vst.msk [vmem:[#allocation2 + $0x60] sm:$0xff] %vm80_vm0, %v6921_v10  ;;  %v6630_v21 = vrot.slane %v8056_v36, 1  ;;  %v6017_v2 = vpop.f32.mrb[83].mxu1 }
 0x97c   :  { %6986 = vst.msk [vmem:[#allocation2 + $0x68] sm:$0xff] %vm80_vm0, %v6922_v16  ;;  %v6629_v44 = vrot.slane %v6017_v2, 1 }
 0x97d   :  { %v6662_v9 = vsel %vm3244_vm1, %v6598_v45, %v6630_v21  ;;  %v6694_v19 = vsel %vm3244_vm1, %v6630_v21, %v6598_v45 }
 0x97e   :  { %v6736_v23 = vsel %vm3179_vm4, %v6694_v19, 0.0  ;;  %v6863_v57 = vadd.f32 %v13221_v35, %v6662_v9  ;;  %v6661_v59 = vsel %vm3244_vm1, %v6597_v24, %v6629_v44  ;;  %v6693_v29 = vsel %vm3244_vm1, %v6629_v44, %v6597_v24  ;;  %v8947_v44 = vld [vmem:[%s14096_s0 + $0xb0] sm:$0xff] }
 0x97f   :  { %v6864_v38 = vadd.f32 %v13219_v58, %v6736_v23  ;;  %v6734_v32 = vsel %vm3179_vm4, %v6693_v29, 0.0  ;;  %v6861_v26 = vadd.f32 %v13203_v54, %v6661_v59  ;;  %v8945_v58 = vld [vmem:[%s14096_s0 + $0x80] sm:$0xff]  ;;  %v8946_v54 = vld [vmem:[%s14096_s0 + $0x88] sm:$0xff]  ;;  %v8948_v23 = vld [vmem:[%s14096_s0 + $0xb8] sm:$0xff] }
 0x980   :  { %v6927_v39 = vadd.f32 %v8943_v8, %v6863_v57  ;;  %v6862_v35 = vadd.f32 %v13201_v50, %v6734_v32  ;;  %v8059_v0 = vpop.f32.mrb[84].mxu1 }
 0x981   :  { %v6928_v49 = vadd.f32 %v8944_v6, %v6864_v38  ;;  %v6925_v12 = vadd.f32 %v8945_v58, %v6861_v26  ;;  %v6030_v20 = vpop.f32.mrb[85].mxu1  ;;  %v6600_v30 = vrot.slane %v8059_v0, 1 }
 0x982   :  { %6991 = vst.msk [vmem:[#allocation2 + $0x90] sm:$0xff] %vm80_vm0, %v6927_v39  ;;  %v6926_v3 = vadd.f32 %v8946_v54, %v6862_v35  ;;  %v8060_v50 = vpop.f32.mrb[86].mxu1  ;;  %v6599_v34 = vrot.slane %v6030_v20, 1 }
 0x983   :  { %6992 = vst.msk [vmem:[#allocation2 + $0x98] sm:$0xff] %vm80_vm0, %v6928_v49  ;;  %6989 = vst.msk [vmem:[#allocation2 + $0x80] sm:$0xff] %vm80_vm0, %v6925_v12  ;;  %v6632_v4 = vrot.slane %v8060_v50, 1  ;;  %v6033_v55 = vpop.f32.mrb[87].mxu1 }
 0x984   :  { %6990 = vst.msk [vmem:[#allocation2 + $0x88] sm:$0xff] %vm80_vm0, %v6926_v3  ;;  %v6631_v63 = vrot.slane %v6033_v55, 1 }
 0x985   :  { %v6664_v10 = vsel %vm3244_vm1, %v6600_v30, %v6632_v4  ;;  %v6696_v14 = vsel %vm3244_vm1, %v6632_v4, %v6600_v30  ;;  %v8951_v30 = vld [vmem:[%s14096_s0 + $0xd0] sm:$0xff] }
 0x986   :  { %v6740_v15 = vsel %vm3179_vm4, %v6696_v14, 0.0  ;;  %v6867_v16 = vadd.f32 %v13257_v52, %v6664_v10  ;;  %v6663_v36 = vsel %vm3244_vm1, %v6599_v34, %v6631_v63  ;;  %v6695_v45 = vsel %vm3244_vm1, %v6631_v63, %v6599_v34  ;;  %v8952_v34 = vld [vmem:[%s14096_s0 + $0xd8] sm:$0xff] }
 0x987   :  { %v6868_v21 = vadd.f32 %v13255_v42, %v6740_v15  ;;  %v6738_v2 = vsel %vm3179_vm4, %v6695_v45, 0.0  ;;  %v6865_v24 = vadd.f32 %v13239_v40, %v6663_v36  ;;  %v8949_v42 = vld [vmem:[%s14096_s0 + $0xa0] sm:$0xff]  ;;  %v8950_v40 = vld [vmem:[%s14096_s0 + $0xa8] sm:$0xff] }
 0x988   :  { %v6931_v9 = vadd.f32 %v8947_v44, %v6867_v16  ;;  %v6866_v52 = vadd.f32 %v13237_v28, %v6738_v2  ;;  %v8063_v19 = vpop.f32.mrb[88].mxu1 }
 0x989   :  { %v6932_v57 = vadd.f32 %v8948_v23, %v6868_v21  ;;  %v6929_v59 = vadd.f32 %v8949_v42, %v6865_v24  ;;  %v6046_v29 = vpop.f32.mrb[89].mxu1  ;;  %v6602_v32 = vrot.slane %v8063_v19, 1 }
 0x98a   :  { %6995 = vst.msk [vmem:[#allocation2 + $0xb0] sm:$0xff] %vm80_vm0, %v6931_v9  ;;  %v6930_v38 = vadd.f32 %v8950_v40, %v6866_v52  ;;  %v8064_v28 = vpop.f32.mrb[90].mxu1  ;;  %v6601_v39 = vrot.slane %v6046_v29, 1  ;;  %v8955_v29 = vld [vmem:[%s14096_s0 + $0xf0] sm:$0xff] }
 0x98b   :  { %6996 = vst.msk [vmem:[#allocation2 + $0xb8] sm:$0xff] %vm80_vm0, %v6932_v57  ;;  %6993 = vst.msk [vmem:[#allocation2 + $0xa0] sm:$0xff] %vm80_vm0, %v6929_v59  ;;  %v6634_v26 = vrot.slane %v8064_v28, 1  ;;  %v6049_v8 = vpop.f32.mrb[91].mxu1  ;;  %v8956_v28 = vld [vmem:[%s14096_s0 + $0xf8] sm:$0xff] }
 0x98c   :  { %6994 = vst.msk [vmem:[#allocation2 + $0xa8] sm:$0xff] %vm80_vm0, %v6930_v38  ;;  %v6633_v35 = vrot.slane %v6049_v8, 1 }
 0x98d   :  { %v6666_v0 = vsel %vm3244_vm1, %v6602_v32, %v6634_v26  ;;  %v6698_v6 = vsel %vm3244_vm1, %v6634_v26, %v6602_v32 }
 0x98e   :  { %v6744_v49 = vsel %vm3179_vm4, %v6698_v6, 0.0  ;;  %v6871_v58 = vadd.f32 %v13292_v37, %v6666_v0  ;;  %v6665_v12 = vsel %vm3244_vm1, %v6601_v39, %v6633_v35  ;;  %v6697_v20 = vsel %vm3244_vm1, %v6633_v35, %v6601_v39 }
 0x98f   :  { %v6872_v54 = vadd.f32 %v13290_v51, %v6744_v49  ;;  %v6742_v3 = vsel %vm3179_vm4, %v6697_v20, 0.0  ;;  %v6869_v50 = vadd.f32 %v13274_v1, %v6665_v12  ;;  %v8953_v51 = vld [vmem:[%s14096_s0 + $0xc0] sm:$0xff]  ;;  %v8954_v1 = vld [vmem:[%s14096_s0 + $0xc8] sm:$0xff] }
 0x990   :  { %v6935_v4 = vadd.f32 %v8951_v30, %v6871_v58  ;;  %v6870_v37 = vadd.f32 %v13272_v27, %v6742_v3  ;;  %v8067_v55 = vpop.f32.mrb[92].mxu1 }
 0x991   :  { %v6936_v63 = vadd.f32 %v8952_v34, %v6872_v54  ;;  %v6933_v10 = vadd.f32 %v8953_v51, %v6869_v50  ;;  %v6062_v14 = vpop.f32.mrb[93].mxu1  ;;  %v6604_v16 = vrot.slane %v8067_v55, 1  ;;  %v8959_v34 = vld [vmem:[%s14096_s0 + $0x110] sm:$0xff] }
 0x992   :  { %6999 = vst.msk [vmem:[#allocation2 + $0xd0] sm:$0xff] %vm80_vm0, %v6935_v4  ;;  %v6934_v15 = vadd.f32 %v8954_v1, %v6870_v37  ;;  %v8068_v27 = vpop.f32.mrb[94].mxu1  ;;  %v6603_v21 = vrot.slane %v6062_v14, 1 }
 0x993   :  { %7000 = vst.msk [vmem:[#allocation2 + $0xd8] sm:$0xff] %vm80_vm0, %v6936_v63  ;;  %6997 = vst.msk [vmem:[#allocation2 + $0xc0] sm:$0xff] %vm80_vm0, %v6933_v10  ;;  %v6636_v36 = vrot.slane %v8068_v27, 1  ;;  %v6065_v45 = vpop.f32.mrb[95].mxu1  ;;  %v8960_v10 = vld [vmem:[%s14096_s0 + $0x118] sm:$0xff] }
 0x994   :  { %6998 = vst.msk [vmem:[#allocation2 + $0xc8] sm:$0xff] %vm80_vm0, %v6934_v15  ;;  %v6635_v2 = vrot.slane %v6065_v45, 1 }
 0x995   :  { %v6668_v24 = vsel %vm3244_vm1, %v6604_v16, %v6636_v36  ;;  %v6700_v44 = vsel %vm3244_vm1, %v6636_v36, %v6604_v16 }
 0x996   :  { %v6748_v9 = vsel %vm3179_vm4, %v6700_v44, 0.0  ;;  %v6875_v52 = vadd.f32 %v13328_v46, %v6668_v24  ;;  %v6667_v19 = vsel %vm3244_vm1, %v6603_v21, %v6635_v2  ;;  %v6699_v23 = vsel %vm3244_vm1, %v6635_v2, %v6603_v21 }
 0x997   :  { %v6876_v57 = vadd.f32 %v13326_v53, %v6748_v9  ;;  %v6746_v42 = vsel %vm3179_vm4, %v6699_v23, 0.0  ;;  %v6873_v59 = vadd.f32 %v13310_v33, %v6667_v19  ;;  %v8957_v53 = vld [vmem:[%s14096_s0 + $0xe0] sm:$0xff]  ;;  %v8958_v33 = vld [vmem:[%s14096_s0 + $0xe8] sm:$0xff] }
 0x998   :  { %v6939_v40 = vadd.f32 %v8955_v29, %v6875_v52  ;;  %v6874_v46 = vadd.f32 %v13308_v31, %v6746_v42  ;;  %v8071_v38 = vpop.f32.mrb[96].mxu1  ;;  %v8963_v29 = vld [vmem:[%s14096_s0 + $0x130] sm:$0xff] }
 0x999   :  { %v6940_v32 = vadd.f32 %v8956_v28, %v6876_v57  ;;  %v6937_v26 = vadd.f32 %v8957_v53, %v6873_v59  ;;  %v6078_v8 = vpop.f32.mrb[97].mxu1  ;;  %v6606_v35 = vrot.slane %v8071_v38, 1  ;;  %v8964_v38 = vld [vmem:[%s14096_s0 + $0x138] sm:$0xff] }
 0x99a   :  { %7003 = vst.msk [vmem:[#allocation2 + $0xf0] sm:$0xff] %vm80_vm0, %v6939_v40  ;;  %v6938_v39 = vadd.f32 %v8958_v33, %v6874_v46  ;;  %v8072_v31 = vpop.f32.mrb[98].mxu1  ;;  %v6605_v49 = vrot.slane %v6078_v8, 1 }
 0x99b   :  { %7004 = vst.msk [vmem:[#allocation2 + $0xf8] sm:$0xff] %vm80_vm0, %v6940_v32  ;;  %7001 = vst.msk [vmem:[#allocation2 + $0xe0] sm:$0xff] %vm80_vm0, %v6937_v26  ;;  %v6638_v0 = vrot.slane %v8072_v31, 1  ;;  %v6081_v6 = vpop.f32.mrb[99].mxu1 }
 0x99c   :  { %7002 = vst.msk [vmem:[#allocation2 + $0xe8] sm:$0xff] %vm80_vm0, %v6938_v39  ;;  %v6637_v58 = vrot.slane %v6081_v6, 1 }
 0x99d   :  { %v6670_v12 = vsel %vm3244_vm1, %v6606_v35, %v6638_v0  ;;  %v6702_v20 = vsel %vm3244_vm1, %v6638_v0, %v6606_v35 }
 0x99e   :  { %v6752_v54 = vsel %vm3179_vm4, %v6702_v20, 0.0  ;;  %v6879_v3 = vadd.f32 %v13364_v43, %v6670_v12  ;;  %v6669_v50 = vsel %vm3244_vm1, %v6605_v49, %v6637_v58  ;;  %v6701_v30 = vsel %vm3244_vm1, %v6637_v58, %v6605_v49 }
 0x99f   :  { %v6880_v4 = vadd.f32 %v13362_v11, %v6752_v54  ;;  %v6750_v37 = vsel %vm3179_vm4, %v6701_v30, 0.0  ;;  %v6877_v55 = vadd.f32 %v13346_v17, %v6669_v50  ;;  %v8961_v11 = vld [vmem:[%s14096_s0 + $0x100] sm:$0xff]  ;;  %v8962_v17 = vld [vmem:[%s14096_s0 + $0x108] sm:$0xff]  ;;  %v14814_v50 = vld [vmem:[#allocation20_spill] sm:$0xff] }
 0x9a0   :  { %v6943_v63 = vadd.f32 %v8959_v34, %v6879_v3  ;;  %v6878_v43 = vadd.f32 %v13344_v47, %v6750_v37  ;;  %v8075_v51 = vpop.f32.mrb[100].mxu1 }
 0x9a1   :  { %v6944_v14 = vadd.f32 %v8960_v10, %v6880_v4  ;;  %v6941_v1 = vadd.f32 %v8961_v11, %v6877_v55  ;;  %v6094_v15 = vpop.f32.mrb[101].mxu1  ;;  %v6608_v16 = vrot.slane %v8075_v51, 1  ;;  %v8967_v4 = vld [vmem:[%s14096_s0 + $0x150] sm:$0xff] }
 0x9a2   :  { %7007 = vst.msk [vmem:[#allocation2 + $0x110] sm:$0xff] %vm80_vm0, %v6943_v63  ;;  %v6942_v27 = vadd.f32 %v8962_v17, %v6878_v43  ;;  %v8076_v47 = vpop.f32.mrb[102].mxu1  ;;  %v6607_v21 = vrot.slane %v6094_v15, 1  ;;  %v14815_v55 = vld [vmem:[#allocation51_spill] sm:$0xff]  ;;  %v8968_v63 = vld [vmem:[%s14096_s0 + $0x158] sm:$0xff] }
 0x9a3   :  { %7008 = vst.msk [vmem:[#allocation2 + $0x118] sm:$0xff] %vm80_vm0, %v6944_v14  ;;  %7005 = vst.msk [vmem:[#allocation2 + $0x100] sm:$0xff] %vm80_vm0, %v6941_v1  ;;  %v6640_v36 = vrot.slane %v8076_v47, 1  ;;  %v6097_v45 = vpop.f32.mrb[103].mxu1  ;;  %v8970_v14 = vld [vmem:[%s14096_s0 + $0x148] sm:$0xff] }
 0x9a4   :  { %7006 = vst.msk [vmem:[#allocation2 + $0x108] sm:$0xff] %vm80_vm0, %v6942_v27  ;;  %v6639_v2 = vrot.slane %v6097_v45, 1 }
 0x9a5   :  { %v6672_v24 = vsel %vm3244_vm1, %v6608_v16, %v6640_v36  ;;  %v6704_v44 = vsel %vm3244_vm1, %v6640_v36, %v6608_v16 }
 0x9a6   :  { %v6756_v9 = vsel %vm3179_vm4, %v6704_v44, 0.0  ;;  %v6883_v52 = vadd.f32 %v13400_v56, %v6672_v24  ;;  %v6671_v19 = vsel %vm3244_vm1, %v6607_v21, %v6639_v2  ;;  %v6703_v23 = vsel %vm3244_vm1, %v6639_v2, %v6607_v21  ;;  %v14816_v2 = vld [vmem:[#allocation7_spill] sm:$0xff] }
 0x9a7   :  { %v6884_v57 = vadd.f32 %v13398_v18, %v6756_v9  ;;  %v6754_v42 = vsel %vm3179_vm4, %v6703_v23, 0.0  ;;  %v6881_v59 = vadd.f32 %v13382_v41, %v6671_v19  ;;  %v8965_v18 = vld [vmem:[%s14096_s0 + $0x120] sm:$0xff]  ;;  %v8966_v41 = vld [vmem:[%s14096_s0 + $0x128] sm:$0xff] }
 0x9a8   :  { %v6947_v40 = vadd.f32 %v8963_v29, %v6883_v52  ;;  %v6882_v56 = vadd.f32 %v13380_v62, %v6754_v42  ;;  %v8079_v46 = vpop.f32.mrb[104].mxu1  ;;  %v14817_v52 = vld [vmem:[#allocation24_spill] sm:$0xff] }
 0x9a9   :  { %v6948_v28 = vadd.f32 %v8964_v38, %v6884_v57  ;;  %v6945_v32 = vadd.f32 %v8965_v18, %v6881_v59  ;;  %v6110_v53 = vpop.f32.mrb[105].mxu1  ;;  %v6610_v8 = vrot.slane %v8079_v46, 1  ;;  %v14818_v57 = vld [vmem:[#allocation25_spill] sm:$0xff]  ;;  %v8971_v59 = vld [vmem:[%s14096_s0 + $0x170] sm:$0xff]  ;;  %v8972_v38 = vld [vmem:[%s14096_s0 + $0x178] sm:$0xff] }
 0x9aa   :  { %7011 = vst.msk [vmem:[#allocation2 + $0x130] sm:$0xff] %vm80_vm0, %v6947_v40  ;;  %v6946_v26 = vadd.f32 %v8966_v41, %v6882_v56  ;;  %v8080_v62 = vpop.f32.mrb[106].mxu1  ;;  %v6609_v31 = vrot.slane %v6110_v53, 1  ;;  %v14819_v40 = vld [vmem:[#allocation26_spill] sm:$0xff]  ;;  %v8973_v18 = vld [vmem:[%s14096_s0 + $0x160] sm:$0xff] }
 0x9ab   :  { %7012 = vst.msk [vmem:[#allocation2 + $0x138] sm:$0xff] %vm80_vm0, %v6948_v28  ;;  %7009 = vst.msk [vmem:[#allocation2 + $0x120] sm:$0xff] %vm80_vm0, %v6945_v32  ;;  %v6642_v33 = vrot.slane %v8080_v62, 1  ;;  %v6113_v39 = vpop.f32.mrb[107].mxu1  ;;  %v8974_v41 = vld [vmem:[%s14096_s0 + $0x168] sm:$0xff] }
 0x9ac   :  { %7010 = vst.msk [vmem:[#allocation2 + $0x128] sm:$0xff] %vm80_vm0, %v6946_v26  ;;  %v6641_v35 = vrot.slane %v6113_v39, 1 }
 0x9ad   :  { %v6674_v0 = vsel %vm3244_vm1, %v6610_v8, %v6642_v33  ;;  %v6706_v6 = vsel %vm3244_vm1, %v6642_v33, %v6610_v8 }
 0x9ae   :  { %v6760_v49 = vsel %vm3179_vm4, %v6706_v6, 0.0  ;;  %v6887_v58 = vadd.f32 %v13430_v25, %v6674_v0  ;;  %v6673_v12 = vsel %vm3244_vm1, %v6609_v31, %v6641_v35  ;;  %v6705_v20 = vsel %vm3244_vm1, %v6641_v35, %v6609_v31 }
 0x9af   :  { %v6888_v54 = vadd.f32 %v13428_v48, %v6760_v49  ;;  %v6758_v3 = vsel %vm3179_vm4, %v6705_v20, 0.0  ;;  %v6885_v30 = vadd.f32 %v14814_v50, %v6673_v12  ;;  %v8969_v48 = vld [vmem:[%s14096_s0 + $0x140] sm:$0xff] }
 0x9b0   :  { %v6951_v37 = vadd.f32 %v8967_v4, %v6887_v58  ;;  %v6886_v25 = vadd.f32 %v14815_v55, %v6758_v3  ;;  %v8083_v34 = vpop.f32.mrb[108].mxu1  ;;  %v14820_v58 = vld [vmem:[#allocation27_spill] sm:$0xff]  ;;  %v14821_v3 = vld [vmem:[#allocation8_spill] sm:$0xff] }
 0x9b1   :  { %v6952_v43 = vadd.f32 %v8968_v63, %v6888_v54  ;;  %v6949_v51 = vadd.f32 %v8969_v48, %v6885_v30  ;;  %v6126_v10 = vpop.f32.mrb[109].mxu1  ;;  %v6612_v15 = vrot.slane %v8083_v34, 1  ;;  %v14822_v4 = vld [vmem:[#allocation39_spill] sm:$0xff]  ;;  %v14823_v34 = vld [vmem:[#allocation40_spill] sm:$0xff] }
 0x9b2   :  { %7015 = vst.msk [vmem:[#allocation2 + $0x150] sm:$0xff] %vm80_vm0, %v6951_v37  ;;  %v6950_v11 = vadd.f32 %v8970_v14, %v6886_v25  ;;  %v8084_v1 = vpop.f32.mrb[110].mxu1  ;;  %v6611_v47 = vrot.slane %v6126_v10, 1  ;;  %v8975_v55 = vld [vmem:[%s14096_s0 + $0x190] sm:$0xff]  ;;  %v8976_v48 = vld [vmem:[%s14096_s0 + $0x198] sm:$0xff]  ;;  %v8977_v10 = vld [vmem:[%s14096_s0 + $0x180] sm:$0xff] }
 0x9b3   :  { %7016 = vst.msk [vmem:[#allocation2 + $0x158] sm:$0xff] %vm80_vm0, %v6952_v43  ;;  %7013 = vst.msk [vmem:[#allocation2 + $0x140] sm:$0xff] %vm80_vm0, %v6949_v51  ;;  %v6644_v17 = vrot.slane %v8084_v1, 1  ;;  %v6129_v27 = vpop.f32.mrb[111].mxu1  ;;  %v8978_v1 = vld [vmem:[%s14096_s0 + $0x188] sm:$0xff] }
 0x9b4   :  { %7014 = vst.msk [vmem:[#allocation2 + $0x148] sm:$0xff] %vm80_vm0, %v6950_v11  ;;  %v6643_v16 = vrot.slane %v6129_v27, 1 }
 0x9b5   :  { %v6676_v36 = vsel %vm3244_vm1, %v6612_v15, %v6644_v17  ;;  %v6708_v45 = vsel %vm3244_vm1, %v6644_v17, %v6612_v15 }
 0x9b6   :  { %v6764_v21 = vsel %vm3179_vm4, %v6708_v45, 0.0  ;;  %v6891_v24 = vadd.f32 %v14816_v2, %v6676_v36  ;;  %v6675_v44 = vsel %vm3244_vm1, %v6611_v47, %v6643_v16  ;;  %v6707_v9 = vsel %vm3244_vm1, %v6643_v16, %v6611_v47 }
 0x9b7   :  { %v6892_v19 = vadd.f32 %v14817_v52, %v6764_v21  ;;  %v6762_v23 = vsel %vm3179_vm4, %v6707_v9, 0.0  ;;  %v6889_v42 = vadd.f32 %v14818_v57, %v6675_v44  ;;  %v14824_v44 = vld [vmem:[#allocation44_spill] sm:$0xff] }
 0x9b8   :  { %v6955_v29 = vadd.f32 %v8971_v59, %v6891_v24  ;;  %v6890_v56 = vadd.f32 %v14819_v40, %v6762_v23  ;;  %v8087_v46 = vpop.f32.mrb[112].mxu1  ;;  %v14825_v23 = vld [vmem:[#allocation41_spill] sm:$0xff]  ;;  %v14826_v59 = vld [vmem:[#allocation42_spill] sm:$0xff]  ;;  %v8979_v40 = vld [vmem:[%s14096_s0 + $0x1b0] sm:$0xff] }
 0x9b9   :  { %v6956_v28 = vadd.f32 %v8972_v38, %v6892_v19  ;;  %v6953_v32 = vadd.f32 %v8973_v18, %v6889_v42  ;;  %v6142_v53 = vpop.f32.mrb[113].mxu1  ;;  %v6614_v8 = vrot.slane %v8087_v46, 1  ;;  %v14827_v46 = vld [vmem:[#allocation9_spill] sm:$0xff]  ;;  %v8980_v18 = vld [vmem:[%s14096_s0 + $0x1b8] sm:$0xff] }
 0x9ba   :  { %7019 = vst.msk [vmem:[#allocation2 + $0x170] sm:$0xff] %vm80_vm0, %v6955_v29  ;;  %v6954_v26 = vadd.f32 %v8974_v41, %v6890_v56  ;;  %v8088_v62 = vpop.f32.mrb[114].mxu1  ;;  %v6613_v31 = vrot.slane %v6142_v53, 1  ;;  %v8981_v53 = vld [vmem:[%s14096_s0 + $0x1a0] sm:$0xff] }
 0x9bb   :  { %7020 = vst.msk [vmem:[#allocation2 + $0x178] sm:$0xff] %vm80_vm0, %v6956_v28  ;;  %7017 = vst.msk [vmem:[#allocation2 + $0x160] sm:$0xff] %vm80_vm0, %v6953_v32  ;;  %v6646_v33 = vrot.slane %v8088_v62, 1  ;;  %v6145_v39 = vpop.f32.mrb[115].mxu1  ;;  %v8982_v62 = vld [vmem:[%s14096_s0 + $0x1a8] sm:$0xff] }
 0x9bc   :  { %7018 = vst.msk [vmem:[#allocation2 + $0x168] sm:$0xff] %vm80_vm0, %v6954_v26  ;;  %v6645_v35 = vrot.slane %v6145_v39, 1 }
 0x9bd   :  { %v6678_v0 = vsel %vm3244_vm1, %v6614_v8, %v6646_v33  ;;  %v6710_v6 = vsel %vm3244_vm1, %v6646_v33, %v6614_v8 }
 0x9be   :  { %v6768_v49 = vsel %vm3179_vm4, %v6710_v6, 0.0  ;;  %v6895_v12 = vadd.f32 %v14820_v58, %v6678_v0  ;;  %v6677_v20 = vsel %vm3244_vm1, %v6613_v31, %v6645_v35  ;;  %v6709_v54 = vsel %vm3244_vm1, %v6645_v35, %v6613_v31 }
 0x9bf   :  { %v6896_v50 = vadd.f32 %v14821_v3, %v6768_v49  ;;  %v6766_v30 = vsel %vm3179_vm4, %v6709_v54, 0.0  ;;  %v6893_v37 = vadd.f32 %v14822_v4, %v6677_v20  ;;  %v14828_v20 = vld [vmem:[#allocation49_spill] sm:$0xff] }
 0x9c0   :  { %v6959_v25 = vadd.f32 %v8975_v55, %v6895_v12  ;;  %v6894_v63 = vadd.f32 %v14823_v34, %v6766_v30  ;;  %v8091_v43 = vpop.f32.mrb[116].mxu1  ;;  %v14829_v30 = vld [vmem:[#allocation47_spill] sm:$0xff]  ;;  %v14830_v55 = vld [vmem:[#allocation48_spill] sm:$0xff] }
 0x9c1   :  { %v6960_v51 = vadd.f32 %v8976_v48, %v6896_v50  ;;  %v6957_v14 = vadd.f32 %v8977_v10, %v6893_v37  ;;  %v6158_v11 = vpop.f32.mrb[117].mxu1  ;;  %v6616_v27 = vrot.slane %v8091_v43, 1  ;;  %v8983_v34 = vld [vmem:[%s14096_s0 + $0x1d0] sm:$0xff]  ;;  %v14831_v43 = vld [vmem:[#allocation45_spill] sm:$0xff]  ;;  %v8984_v10 = vld [vmem:[%s14096_s0 + $0x1d8] sm:$0xff] }
 0x9c2   :  { %7023 = vst.msk [vmem:[#allocation2 + $0x190] sm:$0xff] %vm80_vm0, %v6959_v25  ;;  %v6958_v15 = vadd.f32 %v8978_v1, %v6894_v63  ;;  %v8092_v17 = vpop.f32.mrb[118].mxu1  ;;  %v6615_v36 = vrot.slane %v6158_v11, 1  ;;  %v8985_v11 = vld [vmem:[%s14096_s0 + $0x1c0] sm:$0xff] }
 0x9c3   :  { %7024 = vst.msk [vmem:[#allocation2 + $0x198] sm:$0xff] %vm80_vm0, %v6960_v51  ;;  %7021 = vst.msk [vmem:[#allocation2 + $0x180] sm:$0xff] %vm80_vm0, %v6957_v14  ;;  %v6648_v47 = vrot.slane %v8092_v17, 1  ;;  %v6161_v16 = vpop.f32.mrb[119].mxu1  ;;  %v8986_v17 = vld [vmem:[%s14096_s0 + $0x1c8] sm:$0xff] }
 0x9c4   :  { %7022 = vst.msk [vmem:[#allocation2 + $0x188] sm:$0xff] %vm80_vm0, %v6958_v15  ;;  %v6647_v45 = vrot.slane %v6161_v16, 1 }
 0x9c5   :  { %v6680_v21 = vsel %vm3244_vm1, %v6616_v27, %v6648_v47  ;;  %v6712_v2 = vsel %vm3244_vm1, %v6648_v47, %v6616_v27 }
 0x9c6   :  { %v6772_v24 = vsel %vm3179_vm4, %v6712_v2, 0.0  ;;  %v6899_v9 = vadd.f32 %v14824_v44, %v6680_v21  ;;  %v6679_v52 = vsel %vm3244_vm1, %v6615_v36, %v6647_v45  ;;  %v6711_v19 = vsel %vm3244_vm1, %v6647_v45, %v6615_v36 }
 0x9c7   :  { %v6900_v57 = vadd.f32 %v14825_v23, %v6772_v24  ;;  %v6770_v42 = vsel %vm3179_vm4, %v6711_v19, 0.0  ;;  %v6897_v29 = vadd.f32 %v14826_v59, %v6679_v52 }
 0x9c8   :  { %v6963_v56 = vadd.f32 %v8979_v40, %v6899_v9  ;;  %v6898_v38 = vadd.f32 %v14827_v46, %v6770_v42  ;;  %v8095_v28 = vpop.f32.mrb[120].mxu1 }
 0x9c9   :  { %v6964_v32 = vadd.f32 %v8980_v18, %v6900_v57  ;;  %v6961_v41 = vadd.f32 %v8981_v53, %v6897_v29  ;;  %v6174_v26 = vpop.f32.mrb[121].mxu1  ;;  %v6618_v39 = vrot.slane %v8095_v28, 1  ;;  %v8987_v29 = vld [vmem:[%s14096_s0 + $0x1f0] sm:$0xff] }
 0x9ca   :  { %7027 = vst.msk [vmem:[#allocation2 + $0x1b0] sm:$0xff] %vm80_vm0, %v6963_v56  ;;  %v6962_v8 = vadd.f32 %v8982_v62, %v6898_v38  ;;  %v8096_v33 = vpop.f32.mrb[122].mxu1  ;;  %v6617_v0 = vrot.slane %v6174_v26, 1 }
 0x9cb   :  { %7028 = vst.msk [vmem:[#allocation2 + $0x1b8] sm:$0xff] %vm80_vm0, %v6964_v32  ;;  %7025 = vst.msk [vmem:[#allocation2 + $0x1a0] sm:$0xff] %vm80_vm0, %v6961_v41  ;;  %v6650_v31 = vrot.slane %v8096_v33, 1  ;;  %v6177_v35 = vpop.f32.mrb[123].mxu1 }
 0x9cc   :  { %7026 = vst.msk [vmem:[#allocation2 + $0x1a8] sm:$0xff] %vm80_vm0, %v6962_v8  ;;  %v6649_v6 = vrot.slane %v6177_v35, 1 }
 0x9cd   :  { %v6682_v49 = vsel %vm3244_vm1, %v6618_v39, %v6650_v31  ;;  %v6714_v58 = vsel %vm3244_vm1, %v6650_v31, %v6618_v39 }
 0x9ce   :  { %v6776_v12 = vsel %vm3179_vm4, %v6714_v58, 0.0  ;;  %v6903_v54 = vadd.f32 %v14828_v20, %v6682_v49  ;;  %v6681_v3 = vsel %vm3244_vm1, %v6617_v0, %v6649_v6  ;;  %v6713_v50 = vsel %vm3244_vm1, %v6649_v6, %v6617_v0 }
 0x9cf   :  { %v6904_v4 = vadd.f32 %v14829_v30, %v6776_v12  ;;  %v6774_v37 = vsel %vm3179_vm4, %v6713_v50, 0.0  ;;  %v6901_v25 = vadd.f32 %v14830_v55, %v6681_v3 }
 0x9d0   :  { %v6967_v63 = vadd.f32 %v8983_v34, %v6903_v54  ;;  %v6902_v48 = vadd.f32 %v14831_v43, %v6774_v37  ;;  %v8099_v51 = vpop.f32.mrb[124].mxu1 }
 0x9d1   :  { %v6968_v14 = vadd.f32 %v8984_v10, %v6904_v4  ;;  %v6965_v1 = vadd.f32 %v8985_v11, %v6901_v25  ;;  %v6190_v15 = vpop.f32.mrb[125].mxu1  ;;  %v6620_v16 = vrot.slane %v8099_v51, 1 }
 0x9d2   :  { %7031 = vst.msk [vmem:[#allocation2 + $0x1d0] sm:$0xff] %vm80_vm0, %v6967_v63  ;;  %v6966_v27 = vadd.f32 %v8986_v17, %v6902_v48  ;;  %v8100_v47 = vpop.f32.mrb[126].mxu1  ;;  %v6619_v21 = vrot.slane %v6190_v15, 1 }
 0x9d3   :  { %7032 = vst.msk [vmem:[#allocation2 + $0x1d8] sm:$0xff] %vm80_vm0, %v6968_v14  ;;  %7029 = vst.msk [vmem:[#allocation2 + $0x1c0] sm:$0xff] %vm80_vm0, %v6965_v1  ;;  %v6652_v36 = vrot.slane %v8100_v47, 1  ;;  %v6193_v45 = vpop.f32.mrb[127].mxu1 }
 0x9d4   :  { %7030 = vst.msk [vmem:[#allocation2 + $0x1c8] sm:$0xff] %vm80_vm0, %v6966_v27  ;;  %v6651_v2 = vrot.slane %v6193_v45, 1 }
 0x9d5   :  { %v6684_v24 = vsel %vm3244_vm1, %v6620_v16, %v6652_v36  ;;  %v6716_v44 = vsel %vm3244_vm1, %v6652_v36, %v6620_v16 }
 0x9d6   :  { %v6780_v9 = vsel %vm3179_vm4, %v6716_v44, 0.0  ;;  %v6907_v52 = vadd.f32 %v13570_v61, %v6684_v24  ;;  %v6683_v19 = vsel %vm3244_vm1, %v6619_v21, %v6651_v2  ;;  %v6715_v23 = vsel %vm3244_vm1, %v6651_v2, %v6619_v21 }
 0x9d7   :  { %v6908_v57 = vadd.f32 %v13568_v13, %v6780_v9  ;;  %v6778_v42 = vsel %vm3179_vm4, %v6715_v23, 0.0  ;;  %v6905_v59 = vadd.f32 %v13557_v60, %v6683_v19  ;;  %v8989_v13 = vld [vmem:[%s14096_s0 + $0x1e0] sm:$0xff]  ;;  %v8990_v60 = vld [vmem:[%s14096_s0 + $0x1e8] sm:$0xff] }
 0x9d8   :  { %v6971_v61 = vadd.f32 %v8987_v29, %v6907_v52  ;;  %v6906_v40 = vadd.f32 %v13554_v7, %v6778_v42 }
 0x9d9   :  { %v6972_v56 = vadd.f32 %v8988_v5, %v6908_v57  ;;  %v6969_v22 = vadd.f32 %v8989_v13, %v6905_v59 }
 0x9da   :  { %7035 = vst.msk [vmem:[#allocation2 + $0x1f0] sm:$0xff] %vm80_vm0, %v6971_v61  ;;  %v6970_v46 = vadd.f32 %v8990_v60, %v6906_v40 }
 0x9db   :  { %7036 = vst.msk [vmem:[#allocation2 + $0x1f8] sm:$0xff] %vm80_vm0, %v6972_v56  ;;  %7033 = vst.msk [vmem:[#allocation2 + $0x1e0] sm:$0xff] %vm80_vm0, %v6969_v22 }
 0x9dc   :  { %7034 = vst.msk [vmem:[#allocation2 + $0x1e8] sm:$0xff] %vm80_vm0, %v6970_v46 }
 0x9dd   :  { %9002 = shalt.err (!%p8999_p4)
}
 0x9de   :  { %s9003_s14 = scalar_lea.hbm %s14099_s3, 8192 }
 0x9df   :  { %p9004_p5 = scmp.ne.s32.totalorder %s14099_s3, %s9003_s14  ;;  %p9007_p6 = scmp.lt.u32.totalorder %s9003_s14, %s14099_s3 }
 0x9e1   :  { %p9009_p7 = pnand %p9007_p6, %p9004_p5 }
 0x9e3   :  { %9012 = shalt.err (!%p9009_p7)
}
 0x9e4   :  { %s9017_s1 = smov 128   ;;  %s9018_s18 = smov 8  }
 0x9e5   :  { %7048 = dma.vmem_to_hbm [thread:$0]  %s7043_s29, 8192, %s14099_s3, [#allocation3], %s9017_s1, %s9017_s1, %s9018_s18  }
 0x9e6   :  { %9013 = dma.done.wait [#allocation3], 8192  }
 0x9e7   :  { %9014 = vsyncadd [#allocation3], 4294959104 }
 0x9e8   :  { %7052 = vsyncpa [#allocation3], 1 }

</bundles_post_ra>
